<compile_context>
chip_gen: v7x
topology: tpu7x:2x2x1
jax: 0.10.0
libtpu: 0.0.40
codegen_flags: <defaults>
</compile_context>

<pallas_src>
import functools

import jax
import jax.numpy as jnp
from jax.experimental import pallas as pl
from jax.experimental.pallas import tpu as pltpu


def mha_kernel(q_ref, k_ref, v_ref, w_ref, b_ref, o_ref, *,
               num_heads, head_dim, scale):
    # q_ref: (1, C, TQ)   k_ref/v_ref: (1, C, n)   w_ref: (C, C)   b_ref: (C, 1)

    # Scale queries once for the whole tile (hoisted out of the head loop).
    q_all = q_ref[0] * jnp.asarray(scale, dtype=q_ref.dtype)    # (C, TQ)

    head_outs = []
    for h in range(num_heads):                  # static unroll, static slices
        lo = h * head_dim
        qh = q_all[lo:lo + head_dim, :]         # (hd, TQ) -- sublane-aligned
        kh = k_ref[0, lo:lo + head_dim, :]      # (hd, n)
        vh = v_ref[0, lo:lo + head_dim, :]      # (hd, n)

        # scores (TQ, n): contraction over head_dim, f32 accumulation on MXU.
        s = jnp.einsum('dq,dk->qk', qh, kh,
                       preferred_element_type=jnp.float32)

        # numerically stable softmax; divide routed to EUP via reciprocal.
        m = jnp.max(s, axis=-1, keepdims=True)
        p = jnp.exp(s - m)
        l = jnp.sum(p, axis=-1, keepdims=True)
        p = p * pl.reciprocal(l, approx=True)
        # TODO(synk): attn dropout (dp1) omitted -- identity in eval mode.

        # attention output for this head, transposed layout: (hd, TQ)
        oh = jnp.einsum('dk,qk->dq', vh, p.astype(vh.dtype),
                        preferred_element_type=jnp.float32)
        head_outs.append(oh)

    # (C, TQ) = concat of per-head (hd, TQ) blocks along channels (sublanes).
    o_all = jnp.concatenate(head_outs, axis=0)

    # Fused output projection as a single matmul with contraction dim C:
    #   y = x @ W.T + b   <=>   y.T = W @ x.T + b[:, None]
    out = jnp.dot(w_ref[...], o_all, preferred_element_type=jnp.float32)
    out = out + b_ref[...].astype(jnp.float32)
    # TODO(synk): proj dropout (dp2) omitted -- identity in eval mode.

    o_ref[0] = out.astype(o_ref.dtype)          # lane-dense (C, TQ) store


def _pick_tq(n):
    """Largest lane-aligned divisor of n (capped), else the full sequence."""
    if n % 128 != 0:
        return n
    for cand in (512, 384, 256, 128):
        if cand <= n and n % cand == 0:
            return cand
    return n


def multi_head_attention(k, q, v, proj_w, proj_b, num_heads=8):
    """Pallas implementation of MultiHeadAttention.forward(k, q, v)."""
    b, c, h, w = k.shape
    assert c % num_heads == 0, "dim must be divisible by num_heads"
    n = h * w
    hd = c // num_heads
    scale = hd ** (-0.5)

    # Free reshapes only (channels-first is kept end-to-end).
    q3 = q.reshape(b, c, n)
    k3 = k.reshape(b, c, n)
    v3 = v.reshape(b, c, n)
    bias = proj_b.reshape(c, 1)

    tq = _pick_tq(n)
    grid = (b, n // tq)

    kernel = functools.partial(mha_kernel, num_heads=num_heads,
                               head_dim=hd, scale=scale)

    out = pl.pallas_call(
        kernel,
        out_shape=jax.ShapeDtypeStruct((b, c, n), q.dtype),
        grid=grid,
        in_specs=[
            pl.BlockSpec((1, c, tq), lambda bi, qi: (bi, 0, qi)),  # q tile
            pl.BlockSpec((1, c, n), lambda bi, qi: (bi, 0, 0)),    # k (resident per batch)
            pl.BlockSpec((1, c, n), lambda bi, qi: (bi, 0, 0)),    # v (resident per batch)
            pl.BlockSpec((c, c), lambda bi, qi: (0, 0)),           # proj_w (resident)
            pl.BlockSpec((c, 1), lambda bi, qi: (0, 0)),           # bias (resident)
        ],
        out_specs=pl.BlockSpec((1, c, tq), lambda bi, qi: (bi, 0, qi)),
        compiler_params=pltpu.CompilerParams(
            dimension_semantics=("parallel", "parallel")),
    )(q3, k3, v3, proj_w, bias)

    # [B, C, n] -> [B, C, H, W] (free reshape, no transpose).
    return out.reshape(b, c, h, w)


def _reference(k, q, v, proj_w, proj_b, num_heads=8):
    b, c, h, w = k.shape
    n = h * w
    hd = c // num_heads
    scale = hd ** (-0.5)

    def to_bhnd(x):
        x = x.reshape(b, c, n).transpose(0, 2, 1)
        return x.reshape(b, n, num_heads, hd).transpose(0, 2, 1, 3)

    qh, kh, vh = to_bhnd(q), to_bhnd(k), to_bhnd(v)
    attn = jnp.einsum('bhqd,bhkd->bhqk', qh * scale, kh)
    attn = jax.nn.softmax(attn, axis=-1)
    o = jnp.einsum('bhqk,bhkd->bhqd', attn, vh)
    o = o.transpose(0, 2, 1, 3).reshape(b, n, c)
    o = o @ proj_w.T + proj_b
    return o.transpose(0, 2, 1).reshape(b, c, h, w)


if __name__ == "__main__":
    B, C, H, W = 2, 64, 16, 16     # n = 256 -> single lane-aligned q tile of 256
    NUM_HEADS = 8

    key = jax.random.PRNGKey(0)
    kk, kq, kv, kw, kb = jax.random.split(key, 5)
    k_in = jax.random.normal(kk, (B, C, H, W), dtype=jnp.float32)
    q_in = jax.random.normal(kq, (B, C, H, W), dtype=jnp.float32)
    v_in = jax.random.normal(kv, (B, C, H, W), dtype=jnp.float32)
    # deterministic "parameters" (shapes per nn.Linear(dim, dim))
    proj_w = jax.random.normal(kw, (C, C), dtype=jnp.float32) * 0.05
    proj_b = jax.random.normal(kb, (C,), dtype=jnp.float32) * 0.05

    out = multi_head_attention(k_in, q_in, v_in, proj_w, proj_b,
                               num_heads=NUM_HEADS)
    out = jax.block_until_ready(out)

    ref = _reference(k_in, q_in, v_in, proj_w, proj_b, num_heads=NUM_HEADS)
    assert out.shape == (B, C, H, W)
    # tolerance accounts for the approximate (EUP) reciprocal in the softmax
    assert jnp.allclose(out, ref, rtol=2e-3, atol=2e-3), float(
        jnp.max(jnp.abs(out - ref)))

    print("KERNEL_OK")
</pallas_src>

<mosaic_0001>
module attributes {stable_mosaic.version = 11 : i64} {
  func.func @mha_kernel(%arg0: i32, %arg1: i32, %arg2: memref<1x64x256xf32, #tpu.memory_space<vmem>>, %arg3: memref<1x64x256xf32, #tpu.memory_space<vmem>>, %arg4: memref<1x64x256xf32, #tpu.memory_space<vmem>>, %arg5: memref<64x64xf32, #tpu.memory_space<vmem>>, %arg6: memref<64x1xf32, #tpu.memory_space<vmem>>, %arg7: memref<1x64x256xf32, #tpu.memory_space<vmem>>) attributes {dimension_semantics = [#tpu.dimension_semantics<parallel>, #tpu.dimension_semantics<parallel>], iteration_bounds = array<i64: 2, 1>, scalar_prefetch = 0 : i64, scratch_operands = 0 : i64, tpu.core_type = #tpu.core_type<tc>, window_params = [{transform_indices = @transform_0, window_bounds = array<i64: 1, 64, 256>}, {transform_indices = @transform_1, window_bounds = array<i64: 1, 64, 256>}, {transform_indices = @transform_2, window_bounds = array<i64: 1, 64, 256>}, {pipeline_mode = #tpu.pipeline_mode<synchronous>, transform_indices = @transform_3, window_bounds = array<i64: 64, 64>}, {pipeline_mode = #tpu.pipeline_mode<synchronous>, transform_indices = @transform_4, window_bounds = array<i64: 64, 1>}, {transform_indices = @transform_5, window_bounds = array<i64: 1, 64, 256>}]} {
    %c0 = arith.constant 0 : index
    %c0_0 = arith.constant 0 : index
    %c0_1 = arith.constant 0 : index
    %0 = vector.load %arg2[%c0, %c0_0, %c0_1] : memref<1x64x256xf32, #tpu.memory_space<vmem>>, vector<1x64x256xf32>
    %1 = vector.shape_cast %0 : vector<1x64x256xf32> to vector<64x256xf32>
    %cst = arith.constant 0.353553385 : f32
    %2 = vector.broadcast %cst : f32 to vector<64x256xf32>
    %3 = arith.mulf %1, %2 : vector<64x256xf32>
    %4 = vector.extract_strided_slice %3 {offsets = [0, 0], sizes = [8, 256], strides = [1, 1]} : vector<64x256xf32> to vector<8x256xf32>
    %c0_2 = arith.constant 0 : index
    %c0_3 = arith.constant 0 : index
    %c0_4 = arith.constant 0 : index
    %5 = vector.load %arg3[%c0_2, %c0_3, %c0_4] : memref<1x64x256xf32, #tpu.memory_space<vmem>>, vector<1x8x256xf32>
    %6 = vector.shape_cast %5 : vector<1x8x256xf32> to vector<8x256xf32>
    %c0_5 = arith.constant 0 : index
    %c0_6 = arith.constant 0 : index
    %c0_7 = arith.constant 0 : index
    %7 = vector.load %arg4[%c0_5, %c0_6, %c0_7] : memref<1x64x256xf32, #tpu.memory_space<vmem>>, vector<1x8x256xf32>
    %8 = vector.shape_cast %7 : vector<1x8x256xf32> to vector<8x256xf32>
    "tpu.trace_start"() <{level = 10 : i32, message = "dq,dk->qk"}> : () -> ()
    %cst_8 = arith.constant dense<0.000000e+00> : vector<256x256xf32>
    %9 = tpu.matmul %4, %6, %cst_8 {dimension_numbers = #tpu.dot_dimension_numbers<[0], [0], [1], [1], [0, 1, 1, 1], [], []>} : vector<8x256xf32>, vector<8x256xf32>, vector<256x256xf32> -> vector<256x256xf32>
    "tpu.trace_stop"() : () -> ()
    %cst_9 = arith.constant dense<0xFF800000> : vector<256xf32>
    %10 = vector.multi_reduction <maximumf>, %9, %cst_9 [1] : vector<256x256xf32> to vector<256xf32>
    %11 = vector.shape_cast %10 : vector<256xf32> to vector<256x1xf32>
    %12 = vector.broadcast %11 : vector<256x1xf32> to vector<256x256xf32>
    %13 = arith.subf %9, %12 : vector<256x256xf32>
    %14 = math.exp %13 : vector<256x256xf32>
    %cst_10 = arith.constant dense<0.000000e+00> : vector<256xf32>
    %15 = vector.multi_reduction <add>, %14, %cst_10 [1] : vector<256x256xf32> to vector<256xf32>
    %16 = vector.shape_cast %15 : vector<256xf32> to vector<256x1xf32>
    %17 = tpu.reciprocal %16 {approx = true} : vector<256x1xf32> -> vector<256x1xf32>
    %18 = vector.broadcast %17 : vector<256x1xf32> to vector<256x256xf32>
    %19 = arith.mulf %14, %18 : vector<256x256xf32>
    "tpu.trace_start"() <{level = 10 : i32, message = "dk,qk->dq"}> : () -> ()
    %cst_11 = arith.constant dense<0.000000e+00> : vector<8x256xf32>
    %20 = tpu.matmul %8, %19, %cst_11 {dimension_numbers = #tpu.dot_dimension_numbers<[1], [1], [0], [0], [0, 0, 1, 0], [], []>} : vector<8x256xf32>, vector<256x256xf32>, vector<8x256xf32> -> vector<8x256xf32>
    "tpu.trace_stop"() : () -> ()
    %21 = vector.extract_strided_slice %3 {offsets = [8, 0], sizes = [8, 256], strides = [1, 1]} : vector<64x256xf32> to vector<8x256xf32>
    %c0_12 = arith.constant 0 : index
    %c8 = arith.constant 8 : index
    %c0_13 = arith.constant 0 : index
    %22 = vector.load %arg3[%c0_12, %c8, %c0_13] : memref<1x64x256xf32, #tpu.memory_space<vmem>>, vector<1x8x256xf32>
    %23 = vector.shape_cast %22 : vector<1x8x256xf32> to vector<8x256xf32>
    %c0_14 = arith.constant 0 : index
    %c8_15 = arith.constant 8 : index
    %c0_16 = arith.constant 0 : index
    %24 = vector.load %arg4[%c0_14, %c8_15, %c0_16] : memref<1x64x256xf32, #tpu.memory_space<vmem>>, vector<1x8x256xf32>
    %25 = vector.shape_cast %24 : vector<1x8x256xf32> to vector<8x256xf32>
    "tpu.trace_start"() <{level = 10 : i32, message = "dq,dk->qk"}> : () -> ()
    %cst_17 = arith.constant dense<0.000000e+00> : vector<256x256xf32>
    %26 = tpu.matmul %21, %23, %cst_17 {dimension_numbers = #tpu.dot_dimension_numbers<[0], [0], [1], [1], [0, 1, 1, 1], [], []>} : vector<8x256xf32>, vector<8x256xf32>, vector<256x256xf32> -> vector<256x256xf32>
    "tpu.trace_stop"() : () -> ()
    %cst_18 = arith.constant dense<0xFF800000> : vector<256xf32>
    %27 = vector.multi_reduction <maximumf>, %26, %cst_18 [1] : vector<256x256xf32> to vector<256xf32>
    %28 = vector.shape_cast %27 : vector<256xf32> to vector<256x1xf32>
    %29 = vector.broadcast %28 : vector<256x1xf32> to vector<256x256xf32>
    %30 = arith.subf %26, %29 : vector<256x256xf32>
    %31 = math.exp %30 : vector<256x256xf32>
    %cst_19 = arith.constant dense<0.000000e+00> : vector<256xf32>
    %32 = vector.multi_reduction <add>, %31, %cst_19 [1] : vector<256x256xf32> to vector<256xf32>
    %33 = vector.shape_cast %32 : vector<256xf32> to vector<256x1xf32>
    %34 = tpu.reciprocal %33 {approx = true} : vector<256x1xf32> -> vector<256x1xf32>
    %35 = vector.broadcast %34 : vector<256x1xf32> to vector<256x256xf32>
    %36 = arith.mulf %31, %35 : vector<256x256xf32>
    "tpu.trace_start"() <{level = 10 : i32, message = "dk,qk->dq"}> : () -> ()
    %cst_20 = arith.constant dense<0.000000e+00> : vector<8x256xf32>
    %37 = tpu.matmul %25, %36, %cst_20 {dimension_numbers = #tpu.dot_dimension_numbers<[1], [1], [0], [0], [0, 0, 1, 0], [], []>} : vector<8x256xf32>, vector<256x256xf32>, vector<8x256xf32> -> vector<8x256xf32>
    "tpu.trace_stop"() : () -> ()
    %38 = vector.extract_strided_slice %3 {offsets = [16, 0], sizes = [8, 256], strides = [1, 1]} : vector<64x256xf32> to vector<8x256xf32>
    %c0_21 = arith.constant 0 : index
    %c16 = arith.constant 16 : index
    %c0_22 = arith.constant 0 : index
    %39 = vector.load %arg3[%c0_21, %c16, %c0_22] : memref<1x64x256xf32, #tpu.memory_space<vmem>>, vector<1x8x256xf32>
    %40 = vector.shape_cast %39 : vector<1x8x256xf32> to vector<8x256xf32>
    %c0_23 = arith.constant 0 : index
    %c16_24 = arith.constant 16 : index
    %c0_25 = arith.constant 0 : index
    %41 = vector.load %arg4[%c0_23, %c16_24, %c0_25] : memref<1x64x256xf32, #tpu.memory_space<vmem>>, vector<1x8x256xf32>
    %42 = vector.shape_cast %41 : vector<1x8x256xf32> to vector<8x256xf32>
    "tpu.trace_start"() <{level = 10 : i32, message = "dq,dk->qk"}> : () -> ()
    %cst_26 = arith.constant dense<0.000000e+00> : vector<256x256xf32>
    %43 = tpu.matmul %38, %40, %cst_26 {dimension_numbers = #tpu.dot_dimension_numbers<[0], [0], [1], [1], [0, 1, 1, 1], [], []>} : vector<8x256xf32>, vector<8x256xf32>, vector<256x256xf32> -> vector<256x256xf32>
    "tpu.trace_stop"() : () -> ()
    %cst_27 = arith.constant dense<0xFF800000> : vector<256xf32>
    %44 = vector.multi_reduction <maximumf>, %43, %cst_27 [1] : vector<256x256xf32> to vector<256xf32>
    %45 = vector.shape_cast %44 : vector<256xf32> to vector<256x1xf32>
    %46 = vector.broadcast %45 : vector<256x1xf32> to vector<256x256xf32>
    %47 = arith.subf %43, %46 : vector<256x256xf32>
    %48 = math.exp %47 : vector<256x256xf32>
    %cst_28 = arith.constant dense<0.000000e+00> : vector<256xf32>
    %49 = vector.multi_reduction <add>, %48, %cst_28 [1] : vector<256x256xf32> to vector<256xf32>
    %50 = vector.shape_cast %49 : vector<256xf32> to vector<256x1xf32>
    %51 = tpu.reciprocal %50 {approx = true} : vector<256x1xf32> -> vector<256x1xf32>
    %52 = vector.broadcast %51 : vector<256x1xf32> to vector<256x256xf32>
    %53 = arith.mulf %48, %52 : vector<256x256xf32>
    "tpu.trace_start"() <{level = 10 : i32, message = "dk,qk->dq"}> : () -> ()
    %cst_29 = arith.constant dense<0.000000e+00> : vector<8x256xf32>
    %54 = tpu.matmul %42, %53, %cst_29 {dimension_numbers = #tpu.dot_dimension_numbers<[1], [1], [0], [0], [0, 0, 1, 0], [], []>} : vector<8x256xf32>, vector<256x256xf32>, vector<8x256xf32> -> vector<8x256xf32>
    "tpu.trace_stop"() : () -> ()
    %55 = vector.extract_strided_slice %3 {offsets = [24, 0], sizes = [8, 256], strides = [1, 1]} : vector<64x256xf32> to vector<8x256xf32>
    %c0_30 = arith.constant 0 : index
    %c24 = arith.constant 24 : index
    %c0_31 = arith.constant 0 : index
    %56 = vector.load %arg3[%c0_30, %c24, %c0_31] : memref<1x64x256xf32, #tpu.memory_space<vmem>>, vector<1x8x256xf32>
    %57 = vector.shape_cast %56 : vector<1x8x256xf32> to vector<8x256xf32>
    %c0_32 = arith.constant 0 : index
    %c24_33 = arith.constant 24 : index
    %c0_34 = arith.constant 0 : index
    %58 = vector.load %arg4[%c0_32, %c24_33, %c0_34] : memref<1x64x256xf32, #tpu.memory_space<vmem>>, vector<1x8x256xf32>
    %59 = vector.shape_cast %58 : vector<1x8x256xf32> to vector<8x256xf32>
    "tpu.trace_start"() <{level = 10 : i32, message = "dq,dk->qk"}> : () -> ()
    %cst_35 = arith.constant dense<0.000000e+00> : vector<256x256xf32>
    %60 = tpu.matmul %55, %57, %cst_35 {dimension_numbers = #tpu.dot_dimension_numbers<[0], [0], [1], [1], [0, 1, 1, 1], [], []>} : vector<8x256xf32>, vector<8x256xf32>, vector<256x256xf32> -> vector<256x256xf32>
    "tpu.trace_stop"() : () -> ()
    %cst_36 = arith.constant dense<0xFF800000> : vector<256xf32>
    %61 = vector.multi_reduction <maximumf>, %60, %cst_36 [1] : vector<256x256xf32> to vector<256xf32>
    %62 = vector.shape_cast %61 : vector<256xf32> to vector<256x1xf32>
    %63 = vector.broadcast %62 : vector<256x1xf32> to vector<256x256xf32>
    %64 = arith.subf %60, %63 : vector<256x256xf32>
    %65 = math.exp %64 : vector<256x256xf32>
    %cst_37 = arith.constant dense<0.000000e+00> : vector<256xf32>
    %66 = vector.multi_reduction <add>, %65, %cst_37 [1] : vector<256x256xf32> to vector<256xf32>
    %67 = vector.shape_cast %66 : vector<256xf32> to vector<256x1xf32>
    %68 = tpu.reciprocal %67 {approx = true} : vector<256x1xf32> -> vector<256x1xf32>
    %69 = vector.broadcast %68 : vector<256x1xf32> to vector<256x256xf32>
    %70 = arith.mulf %65, %69 : vector<256x256xf32>
    "tpu.trace_start"() <{level = 10 : i32, message = "dk,qk->dq"}> : () -> ()
    %cst_38 = arith.constant dense<0.000000e+00> : vector<8x256xf32>
    %71 = tpu.matmul %59, %70, %cst_38 {dimension_numbers = #tpu.dot_dimension_numbers<[1], [1], [0], [0], [0, 0, 1, 0], [], []>} : vector<8x256xf32>, vector<256x256xf32>, vector<8x256xf32> -> vector<8x256xf32>
    "tpu.trace_stop"() : () -> ()
    %72 = vector.extract_strided_slice %3 {offsets = [32, 0], sizes = [8, 256], strides = [1, 1]} : vector<64x256xf32> to vector<8x256xf32>
    %c0_39 = arith.constant 0 : index
    %c32 = arith.constant 32 : index
    %c0_40 = arith.constant 0 : index
    %73 = vector.load %arg3[%c0_39, %c32, %c0_40] : memref<1x64x256xf32, #tpu.memory_space<vmem>>, vector<1x8x256xf32>
    %74 = vector.shape_cast %73 : vector<1x8x256xf32> to vector<8x256xf32>
    %c0_41 = arith.constant 0 : index
    %c32_42 = arith.constant 32 : index
    %c0_43 = arith.constant 0 : index
    %75 = vector.load %arg4[%c0_41, %c32_42, %c0_43] : memref<1x64x256xf32, #tpu.memory_space<vmem>>, vector<1x8x256xf32>
    %76 = vector.shape_cast %75 : vector<1x8x256xf32> to vector<8x256xf32>
    "tpu.trace_start"() <{level = 10 : i32, message = "dq,dk->qk"}> : () -> ()
    %cst_44 = arith.constant dense<0.000000e+00> : vector<256x256xf32>
    %77 = tpu.matmul %72, %74, %cst_44 {dimension_numbers = #tpu.dot_dimension_numbers<[0], [0], [1], [1], [0, 1, 1, 1], [], []>} : vector<8x256xf32>, vector<8x256xf32>, vector<256x256xf32> -> vector<256x256xf32>
    "tpu.trace_stop"() : () -> ()
    %cst_45 = arith.constant dense<0xFF800000> : vector<256xf32>
    %78 = vector.multi_reduction <maximumf>, %77, %cst_45 [1] : vector<256x256xf32> to vector<256xf32>
    %79 = vector.shape_cast %78 : vector<256xf32> to vector<256x1xf32>
    %80 = vector.broadcast %79 : vector<256x1xf32> to vector<256x256xf32>
    %81 = arith.subf %77, %80 : vector<256x256xf32>
    %82 = math.exp %81 : vector<256x256xf32>
    %cst_46 = arith.constant dense<0.000000e+00> : vector<256xf32>
    %83 = vector.multi_reduction <add>, %82, %cst_46 [1] : vector<256x256xf32> to vector<256xf32>
    %84 = vector.shape_cast %83 : vector<256xf32> to vector<256x1xf32>
    %85 = tpu.reciprocal %84 {approx = true} : vector<256x1xf32> -> vector<256x1xf32>
    %86 = vector.broadcast %85 : vector<256x1xf32> to vector<256x256xf32>
    %87 = arith.mulf %82, %86 : vector<256x256xf32>
    "tpu.trace_start"() <{level = 10 : i32, message = "dk,qk->dq"}> : () -> ()
    %cst_47 = arith.constant dense<0.000000e+00> : vector<8x256xf32>
    %88 = tpu.matmul %76, %87, %cst_47 {dimension_numbers = #tpu.dot_dimension_numbers<[1], [1], [0], [0], [0, 0, 1, 0], [], []>} : vector<8x256xf32>, vector<256x256xf32>, vector<8x256xf32> -> vector<8x256xf32>
    "tpu.trace_stop"() : () -> ()
    %89 = vector.extract_strided_slice %3 {offsets = [40, 0], sizes = [8, 256], strides = [1, 1]} : vector<64x256xf32> to vector<8x256xf32>
    %c0_48 = arith.constant 0 : index
    %c40 = arith.constant 40 : index
    %c0_49 = arith.constant 0 : index
    %90 = vector.load %arg3[%c0_48, %c40, %c0_49] : memref<1x64x256xf32, #tpu.memory_space<vmem>>, vector<1x8x256xf32>
    %91 = vector.shape_cast %90 : vector<1x8x256xf32> to vector<8x256xf32>
    %c0_50 = arith.constant 0 : index
    %c40_51 = arith.constant 40 : index
    %c0_52 = arith.constant 0 : index
    %92 = vector.load %arg4[%c0_50, %c40_51, %c0_52] : memref<1x64x256xf32, #tpu.memory_space<vmem>>, vector<1x8x256xf32>
    %93 = vector.shape_cast %92 : vector<1x8x256xf32> to vector<8x256xf32>
    "tpu.trace_start"() <{level = 10 : i32, message = "dq,dk->qk"}> : () -> ()
    %cst_53 = arith.constant dense<0.000000e+00> : vector<256x256xf32>
    %94 = tpu.matmul %89, %91, %cst_53 {dimension_numbers = #tpu.dot_dimension_numbers<[0], [0], [1], [1], [0, 1, 1, 1], [], []>} : vector<8x256xf32>, vector<8x256xf32>, vector<256x256xf32> -> vector<256x256xf32>
    "tpu.trace_stop"() : () -> ()
    %cst_54 = arith.constant dense<0xFF800000> : vector<256xf32>
    %95 = vector.multi_reduction <maximumf>, %94, %cst_54 [1] : vector<256x256xf32> to vector<256xf32>
    %96 = vector.shape_cast %95 : vector<256xf32> to vector<256x1xf32>
    %97 = vector.broadcast %96 : vector<256x1xf32> to vector<256x256xf32>
    %98 = arith.subf %94, %97 : vector<256x256xf32>
    %99 = math.exp %98 : vector<256x256xf32>
    %cst_55 = arith.constant dense<0.000000e+00> : vector<256xf32>
    %100 = vector.multi_reduction <add>, %99, %cst_55 [1] : vector<256x256xf32> to vector<256xf32>
    %101 = vector.shape_cast %100 : vector<256xf32> to vector<256x1xf32>
    %102 = tpu.reciprocal %101 {approx = true} : vector<256x1xf32> -> vector<256x1xf32>
    %103 = vector.broadcast %102 : vector<256x1xf32> to vector<256x256xf32>
    %104 = arith.mulf %99, %103 : vector<256x256xf32>
    "tpu.trace_start"() <{level = 10 : i32, message = "dk,qk->dq"}> : () -> ()
    %cst_56 = arith.constant dense<0.000000e+00> : vector<8x256xf32>
    %105 = tpu.matmul %93, %104, %cst_56 {dimension_numbers = #tpu.dot_dimension_numbers<[1], [1], [0], [0], [0, 0, 1, 0], [], []>} : vector<8x256xf32>, vector<256x256xf32>, vector<8x256xf32> -> vector<8x256xf32>
    "tpu.trace_stop"() : () -> ()
    %106 = vector.extract_strided_slice %3 {offsets = [48, 0], sizes = [8, 256], strides = [1, 1]} : vector<64x256xf32> to vector<8x256xf32>
    %c0_57 = arith.constant 0 : index
    %c48 = arith.constant 48 : index
    %c0_58 = arith.constant 0 : index
    %107 = vector.load %arg3[%c0_57, %c48, %c0_58] : memref<1x64x256xf32, #tpu.memory_space<vmem>>, vector<1x8x256xf32>
    %108 = vector.shape_cast %107 : vector<1x8x256xf32> to vector<8x256xf32>
    %c0_59 = arith.constant 0 : index
    %c48_60 = arith.constant 48 : index
    %c0_61 = arith.constant 0 : index
    %109 = vector.load %arg4[%c0_59, %c48_60, %c0_61] : memref<1x64x256xf32, #tpu.memory_space<vmem>>, vector<1x8x256xf32>
    %110 = vector.shape_cast %109 : vector<1x8x256xf32> to vector<8x256xf32>
    "tpu.trace_start"() <{level = 10 : i32, message = "dq,dk->qk"}> : () -> ()
    %cst_62 = arith.constant dense<0.000000e+00> : vector<256x256xf32>
    %111 = tpu.matmul %106, %108, %cst_62 {dimension_numbers = #tpu.dot_dimension_numbers<[0], [0], [1], [1], [0, 1, 1, 1], [], []>} : vector<8x256xf32>, vector<8x256xf32>, vector<256x256xf32> -> vector<256x256xf32>
    "tpu.trace_stop"() : () -> ()
    %cst_63 = arith.constant dense<0xFF800000> : vector<256xf32>
    %112 = vector.multi_reduction <maximumf>, %111, %cst_63 [1] : vector<256x256xf32> to vector<256xf32>
    %113 = vector.shape_cast %112 : vector<256xf32> to vector<256x1xf32>
    %114 = vector.broadcast %113 : vector<256x1xf32> to vector<256x256xf32>
    %115 = arith.subf %111, %114 : vector<256x256xf32>
    %116 = math.exp %115 : vector<256x256xf32>
    %cst_64 = arith.constant dense<0.000000e+00> : vector<256xf32>
    %117 = vector.multi_reduction <add>, %116, %cst_64 [1] : vector<256x256xf32> to vector<256xf32>
    %118 = vector.shape_cast %117 : vector<256xf32> to vector<256x1xf32>
    %119 = tpu.reciprocal %118 {approx = true} : vector<256x1xf32> -> vector<256x1xf32>
    %120 = vector.broadcast %119 : vector<256x1xf32> to vector<256x256xf32>
    %121 = arith.mulf %116, %120 : vector<256x256xf32>
    "tpu.trace_start"() <{level = 10 : i32, message = "dk,qk->dq"}> : () -> ()
    %cst_65 = arith.constant dense<0.000000e+00> : vector<8x256xf32>
    %122 = tpu.matmul %110, %121, %cst_65 {dimension_numbers = #tpu.dot_dimension_numbers<[1], [1], [0], [0], [0, 0, 1, 0], [], []>} : vector<8x256xf32>, vector<256x256xf32>, vector<8x256xf32> -> vector<8x256xf32>
    "tpu.trace_stop"() : () -> ()
    %123 = vector.extract_strided_slice %3 {offsets = [56, 0], sizes = [8, 256], strides = [1, 1]} : vector<64x256xf32> to vector<8x256xf32>
    %c0_66 = arith.constant 0 : index
    %c56 = arith.constant 56 : index
    %c0_67 = arith.constant 0 : index
    %124 = vector.load %arg3[%c0_66, %c56, %c0_67] : memref<1x64x256xf32, #tpu.memory_space<vmem>>, vector<1x8x256xf32>
    %125 = vector.shape_cast %124 : vector<1x8x256xf32> to vector<8x256xf32>
    %c0_68 = arith.constant 0 : index
    %c56_69 = arith.constant 56 : index
    %c0_70 = arith.constant 0 : index
    %126 = vector.load %arg4[%c0_68, %c56_69, %c0_70] : memref<1x64x256xf32, #tpu.memory_space<vmem>>, vector<1x8x256xf32>
    %127 = vector.shape_cast %126 : vector<1x8x256xf32> to vector<8x256xf32>
    "tpu.trace_start"() <{level = 10 : i32, message = "dq,dk->qk"}> : () -> ()
    %cst_71 = arith.constant dense<0.000000e+00> : vector<256x256xf32>
    %128 = tpu.matmul %123, %125, %cst_71 {dimension_numbers = #tpu.dot_dimension_numbers<[0], [0], [1], [1], [0, 1, 1, 1], [], []>} : vector<8x256xf32>, vector<8x256xf32>, vector<256x256xf32> -> vector<256x256xf32>
    "tpu.trace_stop"() : () -> ()
    %cst_72 = arith.constant dense<0xFF800000> : vector<256xf32>
    %129 = vector.multi_reduction <maximumf>, %128, %cst_72 [1] : vector<256x256xf32> to vector<256xf32>
    %130 = vector.shape_cast %129 : vector<256xf32> to vector<256x1xf32>
    %131 = vector.broadcast %130 : vector<256x1xf32> to vector<256x256xf32>
    %132 = arith.subf %128, %131 : vector<256x256xf32>
    %133 = math.exp %132 : vector<256x256xf32>
    %cst_73 = arith.constant dense<0.000000e+00> : vector<256xf32>
    %134 = vector.multi_reduction <add>, %133, %cst_73 [1] : vector<256x256xf32> to vector<256xf32>
    %135 = vector.shape_cast %134 : vector<256xf32> to vector<256x1xf32>
    %136 = tpu.reciprocal %135 {approx = true} : vector<256x1xf32> -> vector<256x1xf32>
    %137 = vector.broadcast %136 : vector<256x1xf32> to vector<256x256xf32>
    %138 = arith.mulf %133, %137 : vector<256x256xf32>
    "tpu.trace_start"() <{level = 10 : i32, message = "dk,qk->dq"}> : () -> ()
    %cst_74 = arith.constant dense<0.000000e+00> : vector<8x256xf32>
    %139 = tpu.matmul %127, %138, %cst_74 {dimension_numbers = #tpu.dot_dimension_numbers<[1], [1], [0], [0], [0, 0, 1, 0], [], []>} : vector<8x256xf32>, vector<256x256xf32>, vector<8x256xf32> -> vector<8x256xf32>
    "tpu.trace_stop"() : () -> ()
    %140 = tpu.concatenate %20, %37, %54, %71, %88, %105, %122, %139 in 0 : vector<8x256xf32>, vector<8x256xf32>, vector<8x256xf32>, vector<8x256xf32>, vector<8x256xf32>, vector<8x256xf32>, vector<8x256xf32>, vector<8x256xf32> -> vector<64x256xf32>
    %c0_75 = arith.constant 0 : index
    %c0_76 = arith.constant 0 : index
    %141 = vector.load %arg5[%c0_75, %c0_76] : memref<64x64xf32, #tpu.memory_space<vmem>>, vector<64x64xf32>
    %cst_77 = arith.constant dense<0.000000e+00> : vector<64x256xf32>
    %142 = tpu.matmul %141, %140, %cst_77 {dimension_numbers = #tpu.dot_dimension_numbers<[1], [0], [0], [1], [0, 0, 1, 1], [], []>} : vector<64x64xf32>, vector<64x256xf32>, vector<64x256xf32> -> vector<64x256xf32>
    %c0_78 = arith.constant 0 : index
    %c0_79 = arith.constant 0 : index
    %143 = vector.load %arg6[%c0_78, %c0_79] : memref<64x1xf32, #tpu.memory_space<vmem>>, vector<64x1xf32>
    %144 = vector.broadcast %143 : vector<64x1xf32> to vector<64x256xf32>
    %145 = arith.addf %142, %144 : vector<64x256xf32>
    %c0_80 = arith.constant 0 : index
    %c0_81 = arith.constant 0 : index
    %c0_82 = arith.constant 0 : index
    %146 = vector.load %arg7[%c0_80, %c0_81, %c0_82] : memref<1x64x256xf32, #tpu.memory_space<vmem>>, vector<1x64x256xf32>
    %147 = vector.shape_cast %146 : vector<1x64x256xf32> to vector<64x256xf32>
    %148 = vector.shape_cast %145 : vector<64x256xf32> to vector<1x64x256xf32>
    tpu.vector_store %arg7[%c0_80, %c0_81, %c0_82], %148 {strides = array<i32>} : memref<1x64x256xf32, #tpu.memory_space<vmem>>, vector<1x64x256xf32>,
    return
  }
  func.func @transform_0(%arg0: i32, %arg1: i32) -> (i32, i32, i32) {
    %c0_i32 = arith.constant 0 : i32
    %c0_i32_0 = arith.constant 0 : i32
    return %arg0, %c0_i32, %arg1 : i32, i32, i32
  }
  func.func @transform_1(%arg0: i32, %arg1: i32) -> (i32, i32, i32) {
    %c0_i32 = arith.constant 0 : i32
    %c0_i32_0 = arith.constant 0 : i32
    %c0_i32_1 = arith.constant 0 : i32
    return %arg0, %c0_i32, %c0_i32_0 : i32, i32, i32
  }
  func.func @transform_2(%arg0: i32, %arg1: i32) -> (i32, i32, i32) {
    %c0_i32 = arith.constant 0 : i32
    %c0_i32_0 = arith.constant 0 : i32
    %c0_i32_1 = arith.constant 0 : i32
    return %arg0, %c0_i32, %c0_i32_0 : i32, i32, i32
  }
  func.func @transform_3(%arg0: i32, %arg1: i32) -> (i32, i32) {
    %c0_i32 = arith.constant 0 : i32
    %c0_i32_0 = arith.constant 0 : i32
    %c0_i32_1 = arith.constant 0 : i32
    return %c0_i32, %c0_i32_0 : i32, i32
  }
  func.func @transform_4(%arg0: i32, %arg1: i32) -> (i32, i32) {
    %c0_i32 = arith.constant 0 : i32
    %c0_i32_0 = arith.constant 0 : i32
    %c0_i32_1 = arith.constant 0 : i32
    return %c0_i32, %c0_i32_0 : i32, i32
  }
  func.func @transform_5(%arg0: i32, %arg1: i32) -> (i32, i32, i32) {
    %c0_i32 = arith.constant 0 : i32
    %c0_i32_0 = arith.constant 0 : i32
    return %arg0, %c0_i32, %arg1 : i32, i32, i32
  }
}

</mosaic_0001>

<bundles_post_ra>
// kernel: tpu_custom_call.1
= control target key start
LH: loop header
LB: loop body
LE: loop exit
PB: predicated region body
PF: predicated region fallthrough
CT: control target
= control target key end

     0   :  { %s16303_s0 = inlined_call_operand.hbm [shape: f32[2,64,256], index: 0, kind: input, shape index: {}]   ;;  %s16304_s1 = inlined_call_operand.hbm [shape: f32[2,64,256], index: 1, kind: input, shape index: {}]   ;;  %s16305_s2 = inlined_call_operand.hbm [shape: f32[2,64,256], index: 2, kind: input, shape index: {}]   ;;  %s16306_s3 = inlined_call_operand.vmem [shape: f32[64,64], index: 3, kind: input, shape index: {}]   ;;  %s16307_s4 = inlined_call_operand.vmem [shape: f32[64,1], index: 4, kind: input, shape index: {}]   ;;  %s16308_s5 = inlined_call_operand.hbm [shape: f32[2,64,256], index: 5, kind: output, shape index: {}]  }
   0x1   :  { %16953 = sst [smem:[#allocation101_spill]] %s16304_s1 }
   0x2   :  { %10 = vsyncpa [#allocation3], 0 }
   0x3   :  { %12 = vsyncpa [#allocation3 + $0x1], 0 }
   0x4   :  { %13 = vsyncpa [#allocation6], 0 }
   0x5   :  { %15 = vsyncpa [#allocation6 + $0x1], 0 }
   0x6   :  { %16 = vsyncpa [#allocation4], 0 }
   0x7   :  { %18 = vsyncpa [#allocation4 + $0x1], 0  ;;  %s11166_s18 = smov 0   ;;  %s11168_s19 = smov 0  }
   0x8   :  { %s11170_s20 = smov 0   ;;  %s11172_s21 = smov 0  }
   0x9   :  { %s11174_s22 = smov 0   ;;  %s11176_s23 = smov 0  }
   0xa LB: > { %16954 = sst [smem:[#allocation12_spill]] %s11120_s22  ;;  %s11197_s24 = sadd.s32 4294967295, %s11124_s23   ;;  %s11124_s23 = sphi %s11176_s23, %s24_s23   ;;  %s11120_s22 = sphi %s11174_s22, %s18264_s22   ;;  %s11116_s21 = sphi %s11172_s21, %s18263_s21   ;;  %s11112_s20 = sphi %s11170_s20, %s18267_s20   ;;  %s11108_s19 = sphi %s11168_s19, %s18266_s19   ;;  %s11104_s18 = sphi %s11166_s18, %s18265_s18  }
   0xb   : > { %16955 = sst [smem:[#allocation13_spill]] %s11124_s23  ;;  %s8506_s25 = sadd.s32 4294967294, %s11124_s23  }
   0xc   : > { %s36_s26 = sadd.s32 1, %s11120_s22  ;;  %s45_s27 = sadd.s32 1, %s11112_s20 }
   0xd   : > { %p38_p0 = scmp.ge.s32.totalorder %s36_s26, 2  ;;  %p52_p1 = scmp.ne.s32.totalorder %s11112_s20, %s11108_s19 }
   0xe   : > { %p53_p2 = scmp.eq.s32.totalorder %s11124_s23, 0  ;;  %p58_p3 = scmp.ne.s32.totalorder %s11108_s19, %s11104_s18 }
   0xf   : > { %s18269_s26 = smov (%p38_p0, %s36_s26), 0  ;;  %p59_p5 = scmp.eq.s32.totalorder %s11197_s24, 0 }
  0x10   : > { %16956 = sst [smem:[#allocation14_spill]] %s18269_s26  ;;  %p11209_p4 = por %p53_p2, %p52_p1 }
  0x11   : > { %s40_s29 = ssub.s32 %s11120_s22, %s18269_s26  ;;  %p178_p6 = scmp.eq.s32.totalorder %s11197_s24, 1 }
  0x12   : > { %p43_p7 = scmp.eq.s32.totalorder %s40_s29, 0  ;;  %p11217_p8 = por %p59_p5, %p58_p3 }
  0x13   : > { %p11221_p9 = por %p178_p6, %p52_p1  ;;  %p184_p10 = scmp.eq.s32.totalorder %s8506_s25, 1 }
  0x14   : > { %s16958_s30 = scalar_select %p11217_p8, 1, 0 }
  0x15   : > { %s16959_s6 = scalar_select %p11221_p9, 1, 0 }
  0x16   : > { %s11226_s7 = scalar_select %p43_p7, %s11112_s20, %s45_s27  }
  0x17   : > { %p11228_p11 = por %p184_p10, %p58_p3  ;;  %p9354_p13 = scmp.lt.s32.totalorder %s11124_s23, 2 }
  0x18   : > { %16960 = sst [smem:[#allocation15_spill]] %s11226_s7  ;;  %s16309_s9 = sand.u32 1, %s11112_s20  }
  0x19   : > { %s16961_s8 = scalar_select %p11228_p11, 1, 0 }
  0x1a   : > { %s11237_s10 = sshll.u32 %s16309_s9, 7  ;;  %s11240_s11 = sshll.u32 %s11120_s22, 11 }
  0x1b   : > { %16962 = sst [smem:[#allocation16_spill]] %s16961_s8  ;;  %p11244_p0 = pnand %p9354_p13, %p11209_p4 }
  0x1c   : > { %s233_s13 = sand.u32 1, %s11124_s23   ;;  %s16964_s1 = sld [smem:[#allocation101_spill]] }
  0x1d   : > { %s237_s17 = scalar_lea.vmem [#allocation5], %s11237_s10  ;;  %s11260_s27 = scalar_lea.sflag [#allocation6], %s233_s13 }
  0x1e   : > { %s244_s25 = sshll.u32 %s237_s17, 4  ;;  %p11266_p4 = pneg %p11244_p0  ;;  %s11257_s25 = int_to_ptr.vmem [resolvable:$true] %s244_s25 }
  0x22   : > { %s11253_s16 = scalar_lea.hbm %s16964_s1, %s11240_s11  ;;  %s10953_s17 = scalar_lea.hbm %s16964_s1, 4096 }
  0x23   : > { %s10948_s28 = scalar_lea.hbm %s11253_s16, 2048  ;;  %p10954_p7 = scmp.lt.u32.totalorder %s11253_s16, %s16964_s1 }
  0x24   : > { %p10949_p3 = scmp.ne.s32.totalorder %s11253_s16, %s10948_s28  ;;  %p10955_p10 = scmp.lt.u32.totalorder %s10953_s17, %s10948_s28 }
  0x25   : > { %p10957_p12 = scmp.lt.u32.totalorder %s10948_s28, %s11253_s16 }
  0x26   : > { %p10951_p5 = pnand %p11266_p4, %p10949_p3  ;;  %p10956_p13 = por %p10955_p10, %p10954_p7 }
  0x28   : > { %p10952_p6 = pneg %p10951_p5  ;;  %p10958_p1 = por %p10957_p12, %p10956_p13 }
  0x2a   : > { %p10959_p2 = pnand %p10958_p1, %p10952_p6 }
  0x2c   : > { %10962 = shalt.err (!%p10959_p2)
}
  0x2d   : > { %s10963_s13 = scalar_lea.vmem %s11257_s25, 2048  ;;  %s11126_s14 = smov [#allocation5]  }
  0x2e   : > { %p10964_p3 = scmp.ne.s32.totalorder %s11257_s25, %s10963_s13  ;;  %s10968_s15 = sshll.u32 %s11126_s14, 4  ;;  %s10969_s15 = int_to_ptr.vmem [resolvable:$false] %s10968_s15 }
  0x2f   : > { %s10970_s26 = scalar_lea.vmem %s10969_s15, 4096  ;;  %p10971_p9 = scmp.lt.s32.totalorder %s11257_s25, %s10969_s15 }
  0x30   : > { %p10966_p5 = pnand %p10964_p3, %p11266_p4  ;;  %p10972_p8 = scmp.lt.s32.totalorder %s10970_s26, %s10963_s13 }
  0x32   : > { %p10967_p11 = pneg %p10966_p5  ;;  %p10973_p7 = por %p10972_p8, %p10971_p9 }
  0x34   : > { %p10974_p10 = pnand %p10973_p7, %p10967_p11 }
  0x36   : > { %10977 = shalt.err (!%p10974_p10)
}
  0x37   : > { %s16313_s9 = smov 256   ;;  %s16315_s28 = smov 16  }
  0x38   : > { %9346 = dma.hbm_to_vmem [thread:$0]  (!%p11244_p0), %s11253_s16, 2048, %s11257_s25, %s11260_s27, %s16313_s9, %s16313_s9, %s16315_s28  }
  0x39   : > { %p16966_p8 = scmp.lt.s32.totalorder %s11124_s23, 3  ;;  %p16967_p9 = scmp.ge.s32.totalorder %s11124_s23, 1 }
  0x3a   : > { %s11305_s15 = scalar_lea.hbm %s16303_s0, %s11240_s11  ;;  %s214_s26 = scalar_lea.vmem [#allocation2], %s11237_s10 }
  0x3b   : > { %p11297_p11 = pnand %p16967_p9, %p16966_p8  ;;  %s223_s1 = sshll.u32 %s214_s26, 4  ;;  %s11308_s1 = int_to_ptr.vmem [resolvable:$true] %s223_s1 }
  0x3c   : > { %s11314_s9 = scalar_lea.hbm %s16305_s2, %s11240_s11  ;;  %s16969_s28 = sand.u32 1, %s11112_s20  }
  0x3d   : > { %s16968_s17 = scalar_select %p11297_p11, 1, 0 }
  0x3e   : > { %s11318_s22 = scalar_lea.sflag [#allocation3], %s16969_s28  ;;  %s10978_s7 = scalar_lea.hbm %s11305_s15, 2048 }
  0x3f   : > { %p10979_p12 = scmp.ne.s32.totalorder %s11305_s15, %s10978_s7  ;;  %s10983_s23 = scalar_lea.hbm %s16303_s0, 4096 }
  0x40   : > { %p10984_p6 = scmp.lt.u32.totalorder %s11305_s15, %s16303_s0  ;;  %p10985_p13 = scmp.lt.u32.totalorder %s10983_s23, %s10978_s7 }
  0x41   : > { %p10981_p1 = pnand %p10979_p12, %p11266_p4  ;;  %p10987_p5 = scmp.lt.u32.totalorder %s10978_s7, %s11305_s15 }
  0x42   : > { %p10986_p3 = por %p10985_p13, %p10984_p6 }
  0x43   : > { %p10982_p2 = pneg %p10981_p1 }
  0x44   : > { %p10988_p7 = por %p10987_p5, %p10986_p3 }
  0x46   : > { %p10989_p10 = pnand %p10988_p7, %p10982_p2 }
  0x48   : > { %10992 = shalt.err (!%p10989_p10)
}
  0x49   : > { %s10993_s11 = scalar_lea.vmem %s11308_s1, 2048  ;;  %s11129_s28 = smov [#allocation2]  }
  0x4a   : > { %p10994_p8 = scmp.ne.s32.totalorder %s11308_s1, %s10993_s11  ;;  %s10998_s16 = sshll.u32 %s11129_s28, 4  ;;  %s10999_s16 = int_to_ptr.vmem [resolvable:$false] %s10998_s16 }
  0x4b   : > { %s11000_s8 = scalar_lea.vmem %s10999_s16, 4096  ;;  %p11001_p1 = scmp.lt.s32.totalorder %s11308_s1, %s10999_s16 }
  0x4c   : > { %p10996_p9 = pnand %p10994_p8, %p11266_p4  ;;  %p11002_p11 = scmp.lt.s32.totalorder %s11000_s8, %s10993_s11 }
  0x4e   : > { %p10997_p12 = pneg %p10996_p9  ;;  %p11003_p6 = por %p11002_p11, %p11001_p1 }
  0x50   : > { %p11004_p13 = pnand %p11003_p6, %p10997_p12 }
  0x52   : > { %11007 = shalt.err (!%p11004_p13)
}
  0x53   : > { %s16970_s23 = smov 16   ;;  %s16971_s7 = smov 256  }
  0x54   : > { %9343 = dma.hbm_to_vmem [thread:$0]  (!%p11244_p0), %s11305_s15, 2048, %s11308_s1, %s11318_s22, %s16971_s7, %s16971_s7, %s16970_s23  }
  0x55   : > { %s258_s25 = scalar_lea.vmem [#allocation7], %s11237_s10  ;;  %s11008_s14 = scalar_lea.hbm %s11314_s9, 2048 }
  0x56   : > { %s265_s13 = sshll.u32 %s258_s25, 4  ;;  %p11009_p11 = scmp.ne.s32.totalorder %s11314_s9, %s11008_s14  ;;  %s11346_s13 = int_to_ptr.vmem [resolvable:$true] %s265_s13 }
  0x57   : > { %s11013_s28 = scalar_lea.hbm %s16305_s2, 4096  ;;  %p11014_p5 = scmp.lt.u32.totalorder %s11314_s9, %s16305_s2 }
  0x58   : > { %p11011_p2 = pnand %p11009_p11, %p11266_p4  ;;  %p11015_p7 = scmp.lt.u32.totalorder %s11013_s28, %s11008_s14 }
  0x59   : > { %p11017_p8 = scmp.lt.u32.totalorder %s11008_s14, %s11314_s9 }
  0x5a   : > { %p11012_p3 = pneg %p11011_p2  ;;  %p11016_p10 = por %p11015_p7, %p11014_p5 }
  0x5c   : > { %p11018_p9 = por %p11017_p8, %p11016_p10 }
  0x5e   : > { %p11019_p12 = pnand %p11018_p9, %p11012_p3 }
  0x60   : > { %11022 = shalt.err (!%p11019_p12)
}
  0x61   : > { %s11023_s1 = scalar_lea.vmem %s11346_s13, 2048  ;;  %s11130_s22 = smov [#allocation7]  }
  0x62   : > { %p11024_p1 = scmp.ne.s32.totalorder %s11346_s13, %s11023_s1  ;;  %s11028_s10 = sshll.u32 %s11130_s22, 4  ;;  %s11029_s10 = int_to_ptr.vmem [resolvable:$false] %s11028_s10 }
  0x63   : > { %s11030_s15 = scalar_lea.vmem %s11029_s10, 4096  ;;  %p11031_p11 = scmp.lt.s32.totalorder %s11346_s13, %s11029_s10 }
  0x64   : > { %p11026_p6 = pnand %p11024_p1, %p11266_p4  ;;  %p11032_p2 = scmp.lt.s32.totalorder %s11030_s15, %s11023_s1 }
  0x66   : > { %p11027_p13 = pneg %p11026_p6  ;;  %p11033_p5 = por %p11032_p2, %p11031_p11 }
  0x68   : > { %p11034_p7 = pnand %p11033_p5, %p11027_p13 }
  0x6a   : > { %11037 = shalt.err (!%p11034_p7)
}
  0x6b   : > { %9349 = dma.hbm_to_vmem [thread:$0]  (!%p11244_p0), %s11314_s9, 2048, %s11346_s13, %s11260_s27, %s16971_s7, %s16971_s7, %s16970_s23  }
  0x6c   : > { %p16972_p4 = scmp.ne.s32.totalorder %s16968_s17, 0 }
  0x6e   : > { %277 = sbr.rel (%p16972_p4) target bundleno = 3486 (0xd9e), region = 40 }
  0x75   : > { %s11376_s29 = sand.u32 1, %s11108_s19   ;;  %p16973_p3 = scmp.ne.s32.totalorder %s16958_s30, 0 }
  0x76   : > { %s11379_s25 = sshll.u32 %s11376_s29, 7  ;;  %s280_s12 = scalar_lea.sflag [#allocation3], %s11376_s29 }
  0x77   : > { %s11383_s14 = scalar_lea.vmem [#allocation2], %s11379_s25 }
  0x78   : > { %11091 = dma.done.wait (%p16973_p3), %s280_s12, 2048  }
  0x79   : > { %11093 = vsyncadd (%p16973_p3), %s280_s12, 4294965248  ;;  %s288_s27 = sand.u32 1, %s11197_s24   ;;  %s11391_s17 = scalar_lea.vmem [#allocation5], %s11379_s25 }
  0x7a   : > { %s289_s9 = scalar_lea.sflag [#allocation6], %s288_s27 }
  0x7b   : > { %11095 = dma.done.wait (%p16973_p3), %s289_s9, 4096  }
  0x7c   : > { %11097 = vsyncadd (%p16973_p3), %s289_s9, 4294963200  ;;  %v16321_v0 = vmov 0.0   ;;  %v340_v1 = vld [vmem:[%s11383_s14] sm:$0xff]  ;;  %v341_v2 = vld [vmem:[%s11383_s14 + $0x8] sm:$0xff]  ;;  %vm440_vm0 = vcmask 64512   ;;  %s12518_s24 = scalar_lea.vmem [#allocation7], %s11379_s25 }
  0x7d   : > { %601 = vmatprep.mubr.f32.mxu1 %v16321_v0  ;;  %1573 = vmatprep.mubr.f32.mxu0 %v16321_v0  ;;  %v356_v3 = vmul.f32 0.35355338, %v340_v1  ;;  %v357_v4 = vmul.f32 0.35355338, %v341_v2  ;;  %v373_v5 = vld [vmem:[%s11391_s17 + $0x8] sm:$0xff]  ;;  %v372_v6 = vld [vmem:[%s11391_s17] sm:$0xff] }
  0x7e   : > { %537 = vmatprep.subr.mxu1 %v373_v5  ;;  %v342_v7 = vld [vmem:[%s11383_s14 + $0x10] sm:$0xff]  ;;  %v343_v8 = vld [vmem:[%s11383_s14 + $0x18] sm:$0xff]  ;;  %vm8205_vm1 = vcmask 523264   ;;  %s16229_s12 = scalar_lea.vmem [#allocation8], %s11379_s25  ;;  %s8795_s25 = sshll.u32 %s11116_s21, 11 }
  0x7f   : > { %376 = vxpose.xlu0.b32.start.end [1/1] (short) %v356_v3, 128  ;;  %408 = vxpose.xlu1.b32.start.end [1/1] (short) %v357_v4, 128  ;;  %v358_v9 = vmul.f32 0.35355338, %v342_v7  ;;  %v359_v10 = vmul.f32 0.35355338, %v343_v8  ;;  %v1346_v11 = vld [vmem:[%s11391_s17 + $0x18] sm:$0xff]  ;;  %v1345_v12 = vld [vmem:[%s11391_s17 + $0x10] sm:$0xff]  ;;  %s16248_s9 = scalar_lea.hbm %s16308_s5, %s8795_s25 }
  0x80   : > { %538 = vmatpush1.msra.mxu1 %v372_v6  ;;  %1509 = vmatprep.subr.mxu0 %v1346_v11  ;;  %p18257_p10 = scmp.ne.s32.totalorder %s16959_s6, 0  ;;  %s11133_s30 = smov [#allocation8]  }
  0x81   : > { %1510 = vmatpush1.msra.mxu0 %v1345_v12  ;;  %s11042_s23 = sshll.u32 %s11133_s30, 4  ;;  %s11043_s23 = int_to_ptr.vmem [resolvable:$false] %s11042_s23 }
  0x82   : > { %s11044_s7 = scalar_lea.vmem %s11043_s23, 4096 }
  0xbc   : > { %1349 = vxpose.xlu0.b32.start.end [1/1] (short) %v358_v9, 128  ;;  %1381 = vxpose.xlu1.b32.start.end [1/1] (short) %v359_v10, 128 }
  0xff   : > { %v392_v13 = vpop.trf.xlu0  ;;  %v424_v14 = vpop.trf.xlu1 }
 0x100   : > { %8523 = vmatmul.mubr.msk.f32.vlgmr.msra.gmra.mrb[0].mxu1 %vm440_vm0, %v392_v13 }
 0x101   : > { %607 = vmatprep.mubr.f32.mxu1 %v16321_v0 }
 0x103   : > { %v393_v15 = vpop.trf.xlu0  ;;  %v425_v17 = vpop.trf.xlu1 }
 0x104   : > { %8524 = vmatmul.mubr.msk.f32.gmra.mrb[2].mxu1 %vm440_vm0, %v393_v15 }
 0x105   : > { %613 = vmatprep.mubr.f32.mxu1 %v16321_v0 }
 0x107   : > { %v394_v16 = vpop.trf.xlu0  ;;  %v426_v19 = vpop.trf.xlu1 }
 0x108   : > { %8525 = vmatmul.mubr.msk.f32.gmra.mrb[4].mxu1 %vm440_vm0, %v394_v16 }
 0x109   : > { %619 = vmatprep.mubr.f32.mxu1 %v16321_v0 }
 0x10b   : > { %v395_v18 = vpop.trf.xlu0  ;;  %v427_v22 = vpop.trf.xlu1 }
 0x10c   : > { %8526 = vmatmul.mubr.msk.f32.gmra.mrb[6].mxu1 %vm440_vm0, %v395_v18 }
 0x10d   : > { %625 = vmatprep.mubr.f32.mxu1 %v16321_v0 }
 0x10f   : > { %v396_v20 = vpop.trf.xlu0  ;;  %v428_v24 = vpop.trf.xlu1 }
 0x110   : > { %8527 = vmatmul.mubr.msk.f32.gmra.mrb[8].mxu1 %vm440_vm0, %v396_v20 }
 0x111   : > { %631 = vmatprep.mubr.f32.mxu1 %v16321_v0 }
 0x113   : > { %v397_v21 = vpop.trf.xlu0  ;;  %v429_v27 = vpop.trf.xlu1 }
 0x114   : > { %8528 = vmatmul.mubr.msk.f32.gmra.mrb[10].mxu1 %vm440_vm0, %v397_v21 }
 0x115   : > { %637 = vmatprep.mubr.f32.mxu1 %v16321_v0 }
 0x117   : > { %v398_v23 = vpop.trf.xlu0  ;;  %v430_v29 = vpop.trf.xlu1 }
 0x118   : > { %8529 = vmatmul.mubr.msk.f32.gmra.mrb[12].mxu1 %vm440_vm0, %v398_v23 }
 0x119   : > { %643 = vmatprep.mubr.f32.mxu1 %v16321_v0 }
 0x11b   : > { %v399_v25 = vpop.trf.xlu0  ;;  %v431_v32 = vpop.trf.xlu1 }
 0x11c   : > { %8530 = vmatmul.mubr.msk.f32.gmra.mrb[14].mxu1 %vm440_vm0, %v399_v25 }
 0x11d   : > { %649 = vmatprep.mubr.f32.mxu1 %v16321_v0 }
 0x11f   : > { %v400_v26 = vpop.trf.xlu0  ;;  %v432_v34 = vpop.trf.xlu1 }
 0x120   : > { %8531 = vmatmul.mubr.msk.f32.gmra.mrb[16].mxu1 %vm440_vm0, %v400_v26 }
 0x121   : > { %655 = vmatprep.mubr.f32.mxu1 %v16321_v0 }
 0x123   : > { %v401_v28 = vpop.trf.xlu0  ;;  %v433_v37 = vpop.trf.xlu1 }
 0x124   : > { %8532 = vmatmul.mubr.msk.f32.gmra.mrb[18].mxu1 %vm440_vm0, %v401_v28 }
 0x125   : > { %661 = vmatprep.mubr.f32.mxu1 %v16321_v0 }
 0x127   : > { %v402_v30 = vpop.trf.xlu0  ;;  %v434_v39 = vpop.trf.xlu1 }
 0x128   : > { %8533 = vmatmul.mubr.msk.f32.gmra.mrb[20].mxu1 %vm440_vm0, %v402_v30 }
 0x129   : > { %667 = vmatprep.mubr.f32.mxu1 %v16321_v0 }
 0x12b   : > { %v403_v31 = vpop.trf.xlu0  ;;  %v435_v42 = vpop.trf.xlu1 }
 0x12c   : > { %8534 = vmatmul.mubr.msk.f32.gmra.mrb[22].mxu1 %vm440_vm0, %v403_v31 }
 0x12d   : > { %673 = vmatprep.mubr.f32.mxu1 %v16321_v0 }
 0x12f   : > { %v404_v33 = vpop.trf.xlu0  ;;  %v436_v44 = vpop.trf.xlu1 }
 0x130   : > { %8535 = vmatmul.mubr.msk.f32.gmra.mrb[24].mxu1 %vm440_vm0, %v404_v33 }
 0x131   : > { %679 = vmatprep.mubr.f32.mxu1 %v16321_v0 }
 0x133   : > { %v405_v35 = vpop.trf.xlu0  ;;  %v437_v47 = vpop.trf.xlu1 }
 0x134   : > { %8536 = vmatmul.mubr.msk.f32.gmra.mrb[26].mxu1 %vm440_vm0, %v405_v35 }
 0x135   : > { %685 = vmatprep.mubr.f32.mxu1 %v16321_v0 }
 0x137   : > { %v406_v36 = vpop.trf.xlu0  ;;  %v438_v49 = vpop.trf.xlu1 }
 0x138   : > { %8537 = vmatmul.mubr.msk.f32.gmra.mrb[28].mxu1 %vm440_vm0, %v406_v36 }
 0x139   : > { %691 = vmatprep.mubr.f32.mxu1 %v16321_v0 }
 0x13b   : > { %v407_v38 = vpop.trf.xlu0  ;;  %v439_v52 = vpop.trf.xlu1 }
 0x13c   : > { %8538 = vmatmul.mubr.msk.f32.gmra.mrb[30].mxu1 %vm440_vm0, %v407_v38 }
 0x13d   : > { %697 = vmatprep.mubr.f32.mxu1 %v16321_v0 }
 0x13f   : > { %v1365_v40 = vpop.trf.xlu0  ;;  %v1397_v54 = vpop.trf.xlu1 }
 0x140   : > { %8555 = vmatmul.mubr.msk.f32.vlgmr.msra.gmra.mrb[0].mxu0 %vm440_vm0, %v1365_v40  ;;  %8539 = vmatmul.mubr.msk.f32.gmra.mrb[32].mxu1 %vm440_vm0, %v424_v14 }
 0x141   : > { %1579 = vmatprep.mubr.f32.mxu0 %v16321_v0  ;;  %703 = vmatprep.mubr.f32.mxu1 %v16321_v0 }
 0x143   : > { %v1366_v41 = vpop.trf.xlu0  ;;  %v1398_v57 = vpop.trf.xlu1 }
 0x144   : > { %8556 = vmatmul.mubr.msk.f32.gmra.mrb[2].mxu0 %vm440_vm0, %v1366_v41  ;;  %8540 = vmatmul.mubr.msk.f32.gmra.mrb[34].mxu1 %vm440_vm0, %v425_v17 }
 0x145   : > { %1585 = vmatprep.mubr.f32.mxu0 %v16321_v0  ;;  %709 = vmatprep.mubr.f32.mxu1 %v16321_v0 }
 0x147   : > { %v1367_v43 = vpop.trf.xlu0  ;;  %v1399_v59 = vpop.trf.xlu1 }
 0x148   : > { %8557 = vmatmul.mubr.msk.f32.gmra.mrb[4].mxu0 %vm440_vm0, %v1367_v43  ;;  %8541 = vmatmul.mubr.msk.f32.gmra.mrb[36].mxu1 %vm440_vm0, %v426_v19 }
 0x149   : > { %1591 = vmatprep.mubr.f32.mxu0 %v16321_v0  ;;  %715 = vmatprep.mubr.f32.mxu1 %v16321_v0 }
 0x14b   : > { %v1368_v45 = vpop.trf.xlu0  ;;  %v1400_v62 = vpop.trf.xlu1 }
 0x14c   : > { %8558 = vmatmul.mubr.msk.f32.gmra.mrb[6].mxu0 %vm440_vm0, %v1368_v45  ;;  %8542 = vmatmul.mubr.msk.f32.gmra.mrb[38].mxu1 %vm440_vm0, %v427_v22 }
 0x14d   : > { %1597 = vmatprep.mubr.f32.mxu0 %v16321_v0  ;;  %721 = vmatprep.mubr.f32.mxu1 %v16321_v0 }
 0x14f   : > { %v1369_v46 = vpop.trf.xlu0  ;;  %v1401_v1 = vpop.trf.xlu1 }
 0x150   : > { %8559 = vmatmul.mubr.msk.f32.gmra.mrb[8].mxu0 %vm440_vm0, %v1369_v46  ;;  %8543 = vmatmul.mubr.msk.f32.gmra.mrb[40].mxu1 %vm440_vm0, %v428_v24 }
 0x151   : > { %1603 = vmatprep.mubr.f32.mxu0 %v16321_v0  ;;  %727 = vmatprep.mubr.f32.mxu1 %v16321_v0 }
 0x153   : > { %v1370_v48 = vpop.trf.xlu0  ;;  %v1402_v3 = vpop.trf.xlu1 }
 0x154   : > { %8560 = vmatmul.mubr.msk.f32.gmra.mrb[10].mxu0 %vm440_vm0, %v1370_v48  ;;  %8544 = vmatmul.mubr.msk.f32.gmra.mrb[42].mxu1 %vm440_vm0, %v429_v27 }
 0x155   : > { %1609 = vmatprep.mubr.f32.mxu0 %v16321_v0  ;;  %733 = vmatprep.mubr.f32.mxu1 %v16321_v0 }
 0x157   : > { %v1371_v50 = vpop.trf.xlu0  ;;  %v1403_v4 = vpop.trf.xlu1 }
 0x158   : > { %8561 = vmatmul.mubr.msk.f32.gmra.mrb[12].mxu0 %vm440_vm0, %v1371_v50  ;;  %8545 = vmatmul.mubr.msk.f32.gmra.mrb[44].mxu1 %vm440_vm0, %v430_v29 }
 0x159   : > { %1615 = vmatprep.mubr.f32.mxu0 %v16321_v0  ;;  %739 = vmatprep.mubr.f32.mxu1 %v16321_v0 }
 0x15b   : > { %v1372_v51 = vpop.trf.xlu0  ;;  %v1404_v5 = vpop.trf.xlu1 }
 0x15c   : > { %8562 = vmatmul.mubr.msk.f32.gmra.mrb[14].mxu0 %vm440_vm0, %v1372_v51  ;;  %8546 = vmatmul.mubr.msk.f32.gmra.mrb[46].mxu1 %vm440_vm0, %v431_v32 }
 0x15d   : > { %1621 = vmatprep.mubr.f32.mxu0 %v16321_v0  ;;  %745 = vmatprep.mubr.f32.mxu1 %v16321_v0 }
 0x15f   : > { %v1373_v53 = vpop.trf.xlu0  ;;  %v1405_v6 = vpop.trf.xlu1 }
 0x160   : > { %8563 = vmatmul.mubr.msk.f32.gmra.mrb[16].mxu0 %vm440_vm0, %v1373_v53  ;;  %8547 = vmatmul.mubr.msk.f32.gmra.mrb[48].mxu1 %vm440_vm0, %v432_v34 }
 0x161   : > { %1627 = vmatprep.mubr.f32.mxu0 %v16321_v0  ;;  %751 = vmatprep.mubr.f32.mxu1 %v16321_v0 }
 0x163   : > { %v1374_v55 = vpop.trf.xlu0  ;;  %v1406_v7 = vpop.trf.xlu1 }
 0x164   : > { %8564 = vmatmul.mubr.msk.f32.gmra.mrb[18].mxu0 %vm440_vm0, %v1374_v55  ;;  %8548 = vmatmul.mubr.msk.f32.gmra.mrb[50].mxu1 %vm440_vm0, %v433_v37 }
 0x165   : > { %1633 = vmatprep.mubr.f32.mxu0 %v16321_v0  ;;  %757 = vmatprep.mubr.f32.mxu1 %v16321_v0 }
 0x167   : > { %v1375_v56 = vpop.trf.xlu0  ;;  %v1407_v8 = vpop.trf.xlu1 }
 0x168   : > { %8565 = vmatmul.mubr.msk.f32.gmra.mrb[20].mxu0 %vm440_vm0, %v1375_v56  ;;  %8549 = vmatmul.mubr.msk.f32.gmra.mrb[52].mxu1 %vm440_vm0, %v434_v39 }
 0x169   : > { %1639 = vmatprep.mubr.f32.mxu0 %v16321_v0  ;;  %763 = vmatprep.mubr.f32.mxu1 %v16321_v0 }
 0x16b   : > { %v1376_v58 = vpop.trf.xlu0  ;;  %v1408_v9 = vpop.trf.xlu1 }
 0x16c   : > { %8566 = vmatmul.mubr.msk.f32.gmra.mrb[22].mxu0 %vm440_vm0, %v1376_v58  ;;  %8550 = vmatmul.mubr.msk.f32.gmra.mrb[54].mxu1 %vm440_vm0, %v435_v42 }
 0x16d   : > { %1645 = vmatprep.mubr.f32.mxu0 %v16321_v0  ;;  %769 = vmatprep.mubr.f32.mxu1 %v16321_v0 }
 0x16f   : > { %v1377_v60 = vpop.trf.xlu0  ;;  %v1409_v10 = vpop.trf.xlu1 }
 0x170   : > { %8567 = vmatmul.mubr.msk.f32.gmra.mrb[24].mxu0 %vm440_vm0, %v1377_v60  ;;  %8551 = vmatmul.mubr.msk.f32.gmra.mrb[56].mxu1 %vm440_vm0, %v436_v44 }
 0x171   : > { %1651 = vmatprep.mubr.f32.mxu0 %v16321_v0  ;;  %775 = vmatprep.mubr.f32.mxu1 %v16321_v0 }
 0x173   : > { %v1378_v61 = vpop.trf.xlu0  ;;  %v1410_v11 = vpop.trf.xlu1 }
 0x174   : > { %8568 = vmatmul.mubr.msk.f32.gmra.mrb[26].mxu0 %vm440_vm0, %v1378_v61  ;;  %8552 = vmatmul.mubr.msk.f32.gmra.mrb[58].mxu1 %vm440_vm0, %v437_v47 }
 0x175   : > { %1657 = vmatprep.mubr.f32.mxu0 %v16321_v0  ;;  %781 = vmatprep.mubr.f32.mxu1 %v16321_v0 }
 0x177   : > { %v1379_v63 = vpop.trf.xlu0  ;;  %v1411_v12 = vpop.trf.xlu1 }
 0x178   : > { %8569 = vmatmul.mubr.msk.f32.gmra.mrb[28].mxu0 %vm440_vm0, %v1379_v63  ;;  %8553 = vmatmul.mubr.msk.f32.gmra.mrb[60].mxu1 %vm440_vm0, %v438_v49 }
 0x179   : > { %1663 = vmatprep.mubr.f32.mxu0 %v16321_v0  ;;  %787 = vmatprep.mubr.f32.mxu1 %v16321_v0 }
 0x17b   : > { %v1380_v2 = vpop.trf.xlu0  ;;  %v1412_v13 = vpop.trf.xlu1 }
 0x17c   : > { %8570 = vmatmul.mubr.msk.f32.gmra.mrb[30].mxu0 %vm440_vm0, %v1380_v2  ;;  %8554 = vmatmul.mubr.msk.f32.gmra.mrb[62].mxu1 %vm440_vm0, %v439_v52 }
 0x17d   : > { %1669 = vmatprep.mubr.f32.mxu0 %v16321_v0 }
 0x180   : > { %8571 = vmatmul.mubr.msk.f32.gmra.mrb[32].mxu0 %vm440_vm0, %v1397_v54 }
 0x181   : > { %1675 = vmatprep.mubr.f32.mxu0 %v16321_v0 }
 0x184   : > { %8572 = vmatmul.mubr.msk.f32.gmra.mrb[34].mxu0 %vm440_vm0, %v1398_v57 }
 0x185   : > { %1681 = vmatprep.mubr.f32.mxu0 %v16321_v0 }
 0x188   : > { %8573 = vmatmul.mubr.msk.f32.gmra.mrb[36].mxu0 %vm440_vm0, %v1399_v59 }
 0x189   : > { %1687 = vmatprep.mubr.f32.mxu0 %v16321_v0 }
 0x18c   : > { %8574 = vmatmul.mubr.msk.f32.gmra.mrb[38].mxu0 %vm440_vm0, %v1400_v62 }
 0x18d   : > { %1693 = vmatprep.mubr.f32.mxu0 %v16321_v0 }
 0x190   : > { %8575 = vmatmul.mubr.msk.f32.gmra.mrb[40].mxu0 %vm440_vm0, %v1401_v1 }
 0x191   : > { %1699 = vmatprep.mubr.f32.mxu0 %v16321_v0 }
 0x194   : > { %8576 = vmatmul.mubr.msk.f32.gmra.mrb[42].mxu0 %vm440_vm0, %v1402_v3 }
 0x195   : > { %1705 = vmatprep.mubr.f32.mxu0 %v16321_v0 }
 0x198   : > { %8577 = vmatmul.mubr.msk.f32.gmra.mrb[44].mxu0 %vm440_vm0, %v1403_v4 }
 0x199   : > { %1711 = vmatprep.mubr.f32.mxu0 %v16321_v0 }
 0x19c   : > { %8578 = vmatmul.mubr.msk.f32.gmra.mrb[46].mxu0 %vm440_vm0, %v1404_v5 }
 0x19d   : > { %1717 = vmatprep.mubr.f32.mxu0 %v16321_v0 }
 0x1a0   : > { %8579 = vmatmul.mubr.msk.f32.gmra.mrb[48].mxu0 %vm440_vm0, %v1405_v6 }
 0x1a1   : > { %1723 = vmatprep.mubr.f32.mxu0 %v16321_v0 }
 0x1a4   : > { %8580 = vmatmul.mubr.msk.f32.gmra.mrb[50].mxu0 %vm440_vm0, %v1406_v7 }
 0x1a5   : > { %1729 = vmatprep.mubr.f32.mxu0 %v16321_v0 }
 0x1a8   : > { %8581 = vmatmul.mubr.msk.f32.gmra.mrb[52].mxu0 %vm440_vm0, %v1407_v8 }
 0x1a9   : > { %1735 = vmatprep.mubr.f32.mxu0 %v16321_v0 }
 0x1ac   : > { %8582 = vmatmul.mubr.msk.f32.gmra.mrb[54].mxu0 %vm440_vm0, %v1408_v9 }
 0x1ad   : > { %1741 = vmatprep.mubr.f32.mxu0 %v16321_v0 }
 0x1b0   : > { %8583 = vmatmul.mubr.msk.f32.gmra.mrb[56].mxu0 %vm440_vm0, %v1409_v10 }
 0x1b1   : > { %1747 = vmatprep.mubr.f32.mxu0 %v16321_v0 }
 0x1b4   : > { %8584 = vmatmul.mubr.msk.f32.gmra.mrb[58].mxu0 %vm440_vm0, %v1410_v11 }
 0x1b5   : > { %1753 = vmatprep.mubr.f32.mxu0 %v16321_v0 }
 0x1b8   : > { %8585 = vmatmul.mubr.msk.f32.gmra.mrb[60].mxu0 %vm440_vm0, %v1411_v12 }
 0x1b9   : > { %1759 = vmatprep.mubr.f32.mxu0 %v16321_v0 }
 0x1bc   : > { %8586 = vmatmul.mubr.msk.f32.gmra.mrb[62].mxu0 %vm440_vm0, %v1412_v13 }
 0x1d3   : > { %v11533_v14 = vpop.f32.mrb[0].mxu1 }
 0x1d4   : > { %v11535_v15 = vpop.f32.mrb[1].mxu1 }
 0x1d5   : > { %v794_v16 = vmax.f32 %v11533_v14, %v11535_v15 }
 0x1d7   : > { %795 = vmax.xlane.f32.xlu0 %v794_v16  ;;  %v11539_v17 = vpop.f32.mrb[2].mxu1 }
 0x1d8   : > { %v11541_v18 = vpop.f32.mrb[3].mxu1 }
 0x1d9   : > { %v797_v19 = vmax.f32 %v11539_v17, %v11541_v18 }
 0x1db   : > { %v11545_v20 = vpop.f32.mrb[4].mxu1 }
 0x1dc   : > { %v11547_v21 = vpop.f32.mrb[5].mxu1 }
 0x1dd   : > { %v800_v22 = vmax.f32 %v11545_v20, %v11547_v21 }
 0x1df   : > { %801 = vmax.xlane.f32.xlu0 %v800_v22  ;;  %v11551_v23 = vpop.f32.mrb[6].mxu1 }
 0x1e0   : > { %v11553_v24 = vpop.f32.mrb[7].mxu1 }
 0x1e1   : > { %v803_v25 = vmax.f32 %v11551_v23, %v11553_v24 }
 0x1e3   : > { %v11557_v26 = vpop.f32.mrb[8].mxu1 }
 0x1e4   : > { %v11559_v27 = vpop.f32.mrb[9].mxu1 }
 0x1e5   : > { %v806_v28 = vmax.f32 %v11557_v26, %v11559_v27 }
 0x1e7   : > { %v11563_v29 = vpop.f32.mrb[10].mxu1 }
 0x1e8   : > { %16974 = vst [vmem:[#allocation17_spill] sm:$0xff] %v11563_v29  ;;  %v11565_v30 = vpop.f32.mrb[11].mxu1 }
 0x1e9   : > { %16975 = vst [vmem:[#allocation18_spill] sm:$0xff] %v11565_v30  ;;  %v809_v31 = vmax.f32 %v11563_v29, %v11565_v30 }
 0x1eb   : > { %v11569_v32 = vpop.f32.mrb[12].mxu1 }
 0x1ec   : > { %16976 = vst [vmem:[#allocation19_spill] sm:$0xff] %v11569_v32  ;;  %v11571_v33 = vpop.f32.mrb[13].mxu1 }
 0x1ed   : > { %16977 = vst [vmem:[#allocation20_spill] sm:$0xff] %v11571_v33  ;;  %v812_v34 = vmax.f32 %v11569_v32, %v11571_v33 }
 0x1ef   : > { %v11575_v35 = vpop.f32.mrb[14].mxu1 }
 0x1f0   : > { %16978 = vst [vmem:[#allocation21_spill] sm:$0xff] %v11575_v35  ;;  %v11577_v36 = vpop.f32.mrb[15].mxu1 }
 0x1f1   : > { %16979 = vst [vmem:[#allocation22_spill] sm:$0xff] %v11577_v36  ;;  %v17003_v43 = vmax.f32 %v11575_v35, %v11577_v36 }
 0x1f3   : > { %v11581_v38 = vpop.f32.mrb[16].mxu1 }
 0x1f4   : > { %16980 = vst [vmem:[#allocation23_spill] sm:$0xff] %v11581_v38  ;;  %v11583_v39 = vpop.f32.mrb[17].mxu1 }
 0x1f5   : > { %16981 = vst [vmem:[#allocation24_spill] sm:$0xff] %v11583_v39 }
 0x1f7   : > { %v11587_v41 = vpop.f32.mrb[18].mxu1 }
 0x1f8   : > { %16982 = vst [vmem:[#allocation25_spill] sm:$0xff] %v11587_v41  ;;  %v11589_v42 = vpop.f32.mrb[19].mxu1 }
 0x1f9   : > { %16983 = vst [vmem:[#allocation26_spill] sm:$0xff] %v11589_v42  ;;  %v17011_v32 = vmax.f32 %v11587_v41, %v11589_v42 }
 0x1fb   : > { %v11593_v44 = vpop.f32.mrb[20].mxu1 }
 0x1fc   : > { %16984 = vst [vmem:[#allocation27_spill] sm:$0xff] %v11593_v44  ;;  %v11595_v45 = vpop.f32.mrb[21].mxu1 }
 0x1fd   : > { %16985 = vst [vmem:[#allocation28_spill] sm:$0xff] %v11595_v45 }
 0x1ff   : > { %v11599_v47 = vpop.f32.mrb[22].mxu1 }
 0x200   : > { %16986 = vst [vmem:[#allocation29_spill] sm:$0xff] %v11599_v47  ;;  %v11601_v48 = vpop.f32.mrb[23].mxu1 }
 0x201   : > { %16987 = vst [vmem:[#allocation30_spill] sm:$0xff] %v11601_v48 }
 0x203   : > { %v11605_v50 = vpop.f32.mrb[24].mxu1 }
 0x204   : > { %16988 = vst [vmem:[#allocation31_spill] sm:$0xff] %v11605_v50  ;;  %v11607_v51 = vpop.f32.mrb[25].mxu1 }
 0x205   : > { %16989 = vst [vmem:[#allocation32_spill] sm:$0xff] %v11607_v51 }
 0x207   : > { %v11611_v53 = vpop.f32.mrb[26].mxu1 }
 0x208   : > { %v11613_v54 = vpop.f32.mrb[27].mxu1 }
 0x209   : > { %16990 = vst [vmem:[#allocation33_spill] sm:$0xff] %v11613_v54 }
 0x20b   : > { %v11617_v56 = vpop.f32.mrb[28].mxu1 }
 0x20c   : > { %16991 = vst [vmem:[#allocation34_spill] sm:$0xff] %v11617_v56  ;;  %v11619_v57 = vpop.f32.mrb[29].mxu1 }
 0x20d   : > { %16992 = vst [vmem:[#allocation35_spill] sm:$0xff] %v11619_v57 }
 0x20f   : > { %v11623_v59 = vpop.f32.mrb[30].mxu1 }
 0x210   : > { %v11625_v60 = vpop.f32.mrb[31].mxu1 }
 0x213   : > { %v11629_v62 = vpop.f32.mrb[0].mxu0  ;;  %v11631_v63 = vpop.f32.mrb[32].mxu1 }
 0x214   : > { %v11633_v1 = vpop.f32.mrb[1].mxu0  ;;  %v11635_v2 = vpop.f32.mrb[33].mxu1 }
 0x215   : > { %16993 = vst [vmem:[#allocation36_spill] sm:$0xff] %v11635_v2  ;;  %v1766_v3 = vmax.f32 %v11629_v62, %v11633_v1 }
 0x217   : > { %1767 = vmax.xlane.f32.xlu1 %v1766_v3  ;;  %v11641_v5 = vpop.f32.mrb[2].mxu0  ;;  %v11643_v6 = vpop.f32.mrb[34].mxu1 }
 0x218   : > { %v11645_v7 = vpop.f32.mrb[3].mxu0  ;;  %v11647_v8 = vpop.f32.mrb[35].mxu1 }
 0x219   : > { %v1769_v10 = vmax.f32 %v11641_v5, %v11645_v7 }
 0x21b   : > { %798 = vmax.xlane.f32.xlu1 %v797_v19  ;;  %v11653_v11 = vpop.f32.mrb[4].mxu0  ;;  %v11655_v12 = vpop.f32.mrb[36].mxu1 }
 0x21c   : > { %v11657_v13 = vpop.f32.mrb[5].mxu0  ;;  %v11659_v16 = vpop.f32.mrb[37].mxu1 }
 0x21d   : > { %16994 = vst [vmem:[#allocation37_spill] sm:$0xff] %v11659_v16  ;;  %v1772_v3 = vmax.f32 %v11653_v11, %v11657_v13 }
 0x21f   : > { %1770 = vmax.xlane.f32.xlu1 %v1769_v10  ;;  %1773 = vmax.xlane.f32.xlu0 %v1772_v3  ;;  %v11665_v0 = vpop.f32.mrb[6].mxu0  ;;  %v11667_v9 = vpop.f32.mrb[38].mxu1 }
 0x220   : > { %v11669_v19 = vpop.f32.mrb[7].mxu0  ;;  %v11671_v4 = vpop.f32.mrb[39].mxu1 }
 0x221   : > { %v1775_v58 = vmax.f32 %v11665_v0, %v11669_v19 }
 0x223   : > { %804 = vmax.xlane.f32.xlu1 %v803_v25  ;;  %807 = vmax.xlane.f32.xlu0 %v806_v28  ;;  %v11680_v10 = vpop.f32.mrb[8].mxu0  ;;  %v11682_v3 = vpop.f32.mrb[40].mxu1 }
 0x224   : > { %v11684_v22 = vpop.f32.mrb[9].mxu0  ;;  %v11686_v55 = vpop.f32.mrb[41].mxu1 }
 0x225   : > { %16995 = vst [vmem:[#allocation38_spill] sm:$0xff] %v11686_v55  ;;  %v1778_v61 = vmax.f32 %v11680_v10, %v11684_v22 }
 0x227   : > { %1776 = vmax.xlane.f32.xlu1 %v1775_v58  ;;  %1779 = vmax.xlane.f32.xlu0 %v1778_v61  ;;  %v11692_v49 = vpop.f32.mrb[10].mxu0  ;;  %v11694_v25 = vpop.f32.mrb[42].mxu1 }
 0x228   : > { %16996 = vst [vmem:[#allocation39_spill] sm:$0xff] %v11692_v49  ;;  %v11696_v28 = vpop.f32.mrb[11].mxu0  ;;  %v11698_v46 = vpop.f32.mrb[43].mxu1 }
 0x229   : > { %16997 = vst [vmem:[#allocation40_spill] sm:$0xff] %v11696_v28  ;;  %v1781_v40 = vmax.f32 %v11692_v49, %v11696_v28 }
 0x22b   : > { %810 = vmax.xlane.f32.xlu1 %v809_v31  ;;  %813 = vmax.xlane.f32.xlu0 %v812_v34  ;;  %v11710_v58 = vpop.f32.mrb[12].mxu0  ;;  %v11712_v61 = vpop.f32.mrb[44].mxu1 }
 0x22c   : > { %16998 = vst [vmem:[#allocation41_spill] sm:$0xff] %v11710_v58  ;;  %v11714_v52 = vpop.f32.mrb[13].mxu0  ;;  %v11716_v37 = vpop.f32.mrb[45].mxu1 }
 0x22d   : > { %16999 = vst [vmem:[#allocation42_spill] sm:$0xff] %v11714_v52  ;;  %17000 = vst [vmem:[#allocation43_spill] sm:$0xff] %v11716_v37  ;;  %v1784_v28 = vmax.f32 %v11710_v58, %v11714_v52 }
 0x22f   : > { %1782 = vmax.xlane.f32.xlu1 %v1781_v40  ;;  %1785 = vmax.xlane.f32.xlu0 %v1784_v28  ;;  %v11722_v31 = vpop.f32.mrb[14].mxu0  ;;  %v11724_v49 = vpop.f32.mrb[46].mxu1  ;;  %v17004_v40 = vmax.f32 %v11581_v38, %v11583_v39  ;;  %v17017_v38 = vmax.f32 %v11599_v47, %v11601_v48 }
 0x230   : > { %17001 = vst [vmem:[#allocation44_spill] sm:$0xff] %v11722_v31  ;;  %v11726_v34 = vpop.f32.mrb[15].mxu0  ;;  %v11728_v33 = vpop.f32.mrb[47].mxu1 }
 0x231   : > { %17002 = vst [vmem:[#allocation45_spill] sm:$0xff] %v11726_v34  ;;  %v1787_v30 = vmax.f32 %v11722_v31, %v11726_v34 }
 0x233   : > { %816 = vmax.xlane.f32.xlu1 %v17003_v43  ;;  %819 = vmax.xlane.f32.xlu0 %v17004_v40  ;;  %v11740_v28 = vpop.f32.mrb[16].mxu0  ;;  %v11742_v52 = vpop.f32.mrb[48].mxu1 }
 0x234   : > { %17005 = vst [vmem:[#allocation46_spill] sm:$0xff] %v11740_v28  ;;  %17006 = vst [vmem:[#allocation47_spill] sm:$0xff] %v11742_v52  ;;  %v11744_v58 = vpop.f32.mrb[17].mxu0  ;;  %v11746_v29 = vpop.f32.mrb[49].mxu1 }
 0x235   : > { %17007 = vst [vmem:[#allocation48_spill] sm:$0xff] %v11744_v58  ;;  %17008 = vst [vmem:[#allocation49_spill] sm:$0xff] %v11746_v29  ;;  %v1790_v34 = vmax.f32 %v11740_v28, %v11744_v58 }
 0x237   : > { %1788 = vmax.xlane.f32.xlu1 %v1787_v30  ;;  %1791 = vmax.xlane.f32.xlu0 %v1790_v34  ;;  %v11752_v43 = vpop.f32.mrb[18].mxu0  ;;  %v11754_v31 = vpop.f32.mrb[50].mxu1  ;;  %v17012_v30 = vmax.f32 %v11593_v44, %v11595_v45  ;;  %v17025_v44 = vmax.f32 %v11611_v53, %v11613_v54 }
 0x238   : > { %17009 = vst [vmem:[#allocation50_spill] sm:$0xff] %v11752_v43  ;;  %v11756_v40 = vpop.f32.mrb[19].mxu0  ;;  %v11758_v39 = vpop.f32.mrb[51].mxu1 }
 0x239   : > { %17010 = vst [vmem:[#allocation51_spill] sm:$0xff] %v11756_v40  ;;  %v1793_v36 = vmax.f32 %v11752_v43, %v11756_v40 }
 0x23b   : > { %822 = vmax.xlane.f32.xlu1 %v17011_v32  ;;  %825 = vmax.xlane.f32.xlu0 %v17012_v30  ;;  %v11770_v34 = vpop.f32.mrb[20].mxu0  ;;  %v11772_v58 = vpop.f32.mrb[52].mxu1 }
 0x23c   : > { %17013 = vst [vmem:[#allocation52_spill] sm:$0xff] %v11770_v34  ;;  %v11774_v28 = vpop.f32.mrb[21].mxu0  ;;  %v11776_v35 = vpop.f32.mrb[53].mxu1 }
 0x23d   : > { %17014 = vst [vmem:[#allocation53_spill] sm:$0xff] %v11774_v28  ;;  %v1796_v40 = vmax.f32 %v11770_v34, %v11774_v28 }
 0x23f   : > { %1794 = vmax.xlane.f32.xlu1 %v1793_v36  ;;  %1797 = vmax.xlane.f32.xlu0 %v1796_v40  ;;  %v11782_v32 = vpop.f32.mrb[22].mxu0  ;;  %v11784_v43 = vpop.f32.mrb[54].mxu1  ;;  %v17018_v36 = vmax.f32 %v11605_v50, %v11607_v51  ;;  %v17033_v50 = vmax.f32 %v11623_v59, %v11625_v60 }
 0x240   : > { %17015 = vst [vmem:[#allocation54_spill] sm:$0xff] %v11782_v32  ;;  %v11786_v30 = vpop.f32.mrb[23].mxu0  ;;  %v11788_v45 = vpop.f32.mrb[55].mxu1 }
 0x241   : > { %17016 = vst [vmem:[#allocation55_spill] sm:$0xff] %v11786_v30  ;;  %v1799_v42 = vmax.f32 %v11782_v32, %v11786_v30 }
 0x243   : > { %828 = vmax.xlane.f32.xlu1 %v17017_v38  ;;  %831 = vmax.xlane.f32.xlu0 %v17018_v36  ;;  %v11800_v40 = vpop.f32.mrb[24].mxu0  ;;  %v11802_v28 = vpop.f32.mrb[56].mxu1 }
 0x244   : > { %17019 = vst [vmem:[#allocation56_spill] sm:$0xff] %v11800_v40  ;;  %v11804_v34 = vpop.f32.mrb[25].mxu0  ;;  %v11806_v41 = vpop.f32.mrb[57].mxu1 }
 0x245   : > { %17020 = vst [vmem:[#allocation57_spill] sm:$0xff] %v11804_v34  ;;  %v1802_v30 = vmax.f32 %v11800_v40, %v11804_v34 }
 0x247   : > { %1800 = vmax.xlane.f32.xlu1 %v1799_v42  ;;  %1803 = vmax.xlane.f32.xlu0 %v1802_v30  ;;  %v11812_v38 = vpop.f32.mrb[26].mxu0  ;;  %v11814_v32 = vpop.f32.mrb[58].mxu1  ;;  %v17026_v42 = vmax.f32 %v11617_v56, %v11619_v57 }
 0x248   : > { %17021 = vst [vmem:[#allocation58_spill] sm:$0xff] %v11812_v38  ;;  %17022 = vst [vmem:[#allocation59_spill] sm:$0xff] %v11814_v32  ;;  %v11816_v36 = vpop.f32.mrb[27].mxu0  ;;  %v11818_v51 = vpop.f32.mrb[59].mxu1 }
 0x249   : > { %17023 = vst [vmem:[#allocation60_spill] sm:$0xff] %v11816_v36  ;;  %17024 = vst [vmem:[#allocation61_spill] sm:$0xff] %v11818_v51  ;;  %v1805_v48 = vmax.f32 %v11812_v38, %v11816_v36 }
 0x24b   : > { %834 = vmax.xlane.f32.xlu1 %v17025_v44  ;;  %837 = vmax.xlane.f32.xlu0 %v17026_v42  ;;  %v11830_v30 = vpop.f32.mrb[28].mxu0  ;;  %v11832_v34 = vpop.f32.mrb[60].mxu1 }
 0x24c   : > { %17027 = vst [vmem:[#allocation62_spill] sm:$0xff] %v11830_v30  ;;  %17028 = vst [vmem:[#allocation63_spill] sm:$0xff] %v11832_v34  ;;  %v11834_v40 = vpop.f32.mrb[29].mxu0  ;;  %v11836_v47 = vpop.f32.mrb[61].mxu1 }
 0x24d   : > { %17029 = vst [vmem:[#allocation64_spill] sm:$0xff] %v11834_v40  ;;  %17030 = vst [vmem:[#allocation65_spill] sm:$0xff] %v11836_v47  ;;  %v1808_v36 = vmax.f32 %v11830_v30, %v11834_v40 }
 0x24f   : > { %1806 = vmax.xlane.f32.xlu1 %v1805_v48  ;;  %1809 = vmax.xlane.f32.xlu0 %v1808_v36  ;;  %v11842_v44 = vpop.f32.mrb[30].mxu0  ;;  %v11844_v38 = vpop.f32.mrb[62].mxu1  ;;  %v17034_v48 = vmax.f32 %v11631_v63, %v11635_v2 }
 0x250   : > { %17031 = vst [vmem:[#allocation66_spill] sm:$0xff] %v11842_v44  ;;  %v11846_v42 = vpop.f32.mrb[31].mxu0  ;;  %v11848_v57 = vpop.f32.mrb[63].mxu1 }
 0x251   : > { %17032 = vst [vmem:[#allocation67_spill] sm:$0xff] %v11846_v42  ;;  %v1811_v54 = vmax.f32 %v11842_v44, %v11846_v42  ;;  %v17038_v44 = vmax.f32 %v11643_v6, %v11647_v8 }
 0x253   : > { %840 = vmax.xlane.f32.xlu1 %v17033_v50  ;;  %843 = vmax.xlane.f32.xlu0 %v17034_v48  ;;  %v11860_v36 = vpop.f32.mrb[32].mxu0  ;;  %v17039_v48 = vmax.f32 %v11655_v12, %v11659_v16 }
 0x254   : > { %v11862_v40 = vpop.f32.mrb[33].mxu0 }
 0x255   : > { %17035 = vst [vmem:[#allocation68_spill] sm:$0xff] %v11862_v40  ;;  %v1814_v30 = vmax.f32 %v11860_v36, %v11862_v40 }
 0x257   : > { %1812 = vmax.xlane.f32.xlu1 %v1811_v54  ;;  %1815 = vmax.xlane.f32.xlu0 %v1814_v30  ;;  %v11866_v56 = vpop.f32.mrb[34].mxu0 }
 0x258   : > { %17036 = vst [vmem:[#allocation69_spill] sm:$0xff] %v11866_v56  ;;  %v11868_v42 = vpop.f32.mrb[35].mxu0 }
 0x259   : > { %17037 = vst [vmem:[#allocation70_spill] sm:$0xff] %v11868_v42  ;;  %v1817_v50 = vmax.f32 %v11866_v56, %v11868_v42  ;;  %v17043_v56 = vmax.f32 %v11667_v9, %v11671_v4 }
 0x25b   : > { %846 = vmax.xlane.f32.xlu1 %v17038_v44  ;;  %849 = vmax.xlane.f32.xlu0 %v17039_v48  ;;  %v11878_v2 = vpop.f32.mrb[36].mxu0  ;;  %v17044_v48 = vmax.f32 %v11682_v3, %v11686_v55 }
 0x25c   : > { %v11880_v40 = vpop.f32.mrb[37].mxu0 }
 0x25d   : > { %17040 = vst [vmem:[#allocation71_spill] sm:$0xff] %v11880_v40  ;;  %v1820_v54 = vmax.f32 %v11878_v2, %v11880_v40 }
 0x25f   : > { %1818 = vmax.xlane.f32.xlu1 %v1817_v50  ;;  %1821 = vmax.xlane.f32.xlu0 %v1820_v54  ;;  %v11884_v30 = vpop.f32.mrb[38].mxu0 }
 0x260   : > { %17041 = vst [vmem:[#allocation72_spill] sm:$0xff] %v11884_v30  ;;  %v11886_v42 = vpop.f32.mrb[39].mxu0 }
 0x261   : > { %17042 = vst [vmem:[#allocation73_spill] sm:$0xff] %v11886_v42  ;;  %v1823_v44 = vmax.f32 %v11884_v30, %v11886_v42  ;;  %v17048_v30 = vmax.f32 %v11694_v25, %v11698_v46 }
 0x263   : > { %852 = vmax.xlane.f32.xlu1 %v17043_v56  ;;  %855 = vmax.xlane.f32.xlu0 %v17044_v48  ;;  %v11896_v16 = vpop.f32.mrb[40].mxu0  ;;  %v17049_v48 = vmax.f32 %v11712_v61, %v11716_v37 }
 0x264   : > { %v11898_v40 = vpop.f32.mrb[41].mxu0 }
 0x265   : > { %17045 = vst [vmem:[#allocation74_spill] sm:$0xff] %v11898_v40  ;;  %v1826_v50 = vmax.f32 %v11896_v16, %v11898_v40 }
 0x267   : > { %1824 = vmax.xlane.f32.xlu1 %v1823_v44  ;;  %1827 = vmax.xlane.f32.xlu0 %v1826_v50  ;;  %v11902_v54 = vpop.f32.mrb[42].mxu0 }
 0x268   : > { %17046 = vst [vmem:[#allocation75_spill] sm:$0xff] %v11902_v54  ;;  %v11904_v42 = vpop.f32.mrb[43].mxu0 }
 0x269   : > { %17047 = vst [vmem:[#allocation76_spill] sm:$0xff] %v11904_v42  ;;  %v1829_v56 = vmax.f32 %v11902_v54, %v11904_v42  ;;  %v17053_v54 = vmax.f32 %v11724_v49, %v11728_v33 }
 0x26b   : > { %858 = vmax.xlane.f32.xlu1 %v17048_v30  ;;  %861 = vmax.xlane.f32.xlu0 %v17049_v48  ;;  %v11914_v55 = vpop.f32.mrb[44].mxu0  ;;  %v17054_v48 = vmax.f32 %v11742_v52, %v11746_v29  ;;  %v17060_v52 = vmax.f32 %v11772_v58, %v11776_v35 }
 0x26c   : > { %v11916_v40 = vpop.f32.mrb[45].mxu0 }
 0x26d   : > { %17050 = vst [vmem:[#allocation77_spill] sm:$0xff] %v11916_v40  ;;  %v1832_v44 = vmax.f32 %v11914_v55, %v11916_v40 }
 0x26f   : > { %1830 = vmax.xlane.f32.xlu1 %v1829_v56  ;;  %1833 = vmax.xlane.f32.xlu0 %v1832_v44  ;;  %v11920_v50 = vpop.f32.mrb[46].mxu0 }
 0x270   : > { %17051 = vst [vmem:[#allocation78_spill] sm:$0xff] %v11920_v50  ;;  %v11922_v42 = vpop.f32.mrb[47].mxu0 }
 0x271   : > { %17052 = vst [vmem:[#allocation79_spill] sm:$0xff] %v11922_v42  ;;  %v1835_v30 = vmax.f32 %v11920_v50, %v11922_v42  ;;  %v796_v42 = vpop.xlane.xlu0 %795 }
 0x272   : > { %v890_v29 = vsub.f32 %v11533_v14, %v796_v42 }
 0x273   : > { %864 = vmax.xlane.f32.xlu1 %v17053_v54  ;;  %867 = vmax.xlane.f32.xlu0 %v17054_v48  ;;  %v11932_v37 = vpop.f32.mrb[48].mxu0  ;;  %v17059_v48 = vmax.f32 %v11754_v31, %v11758_v39 }
 0x274   : > { %17055 = vst [vmem:[#allocation80_spill] sm:$0xff] %v11932_v37  ;;  %v11934_v40 = vpop.f32.mrb[49].mxu0 }
 0x275   : > { %17056 = vst [vmem:[#allocation81_spill] sm:$0xff] %v11934_v40  ;;  %v1838_v56 = vmax.f32 %v11932_v37, %v11934_v40 }
 0x277   : > { %1836 = vmax.xlane.f32.xlu1 %v1835_v30  ;;  %1839 = vmax.xlane.f32.xlu0 %v1838_v56  ;;  %v11938_v44 = vpop.f32.mrb[50].mxu0  ;;  %v891_v56 = vsub.f32 %v11535_v15, %v796_v42  ;;  %v17062_v15 = vmax.f32 %v11784_v43, %v11788_v45  ;;  %v17063_v42 = vmax.f32 %v11802_v28, %v11806_v41 }
 0x278   : > { %17057 = vst [vmem:[#allocation82_spill] sm:$0xff] %v11938_v44  ;;  %v11940_v50 = vpop.f32.mrb[51].mxu0 }
 0x279   : > { %17058 = vst [vmem:[#allocation83_spill] sm:$0xff] %v11940_v50  ;;  %v1841_v54 = vmax.f32 %v11938_v44, %v11940_v50  ;;  %v954_v50 = vmul.f32 1.442695, %v890_v29  ;;  %v956_v44 = vmul.f32 1.442695, %v891_v56 }
 0x27b   : > { %870 = vmax.xlane.f32.xlu1 %v17059_v48  ;;  %873 = vmax.xlane.f32.xlu0 %v17060_v52  ;;  %v11951_v30 = vpop.f32.mrb[52].mxu0  ;;  %9412 = vpow2.f32 %v954_v50 }
 0x27c   : > { %v11954_v40 = vpop.f32.mrb[53].mxu0  ;;  %9414 = vpow2.f32 %v956_v44  ;;  %v17069_v44 = vmax.f32 %v11832_v34, %v11836_v47  ;;  %v17076_v47 = vmax.f32 %v11844_v38, %v11848_v57 }
 0x27d   : > { %v1844_v37 = vmax.f32 %v11951_v30, %v11954_v40 }
 0x27f   : > { %1842 = vmax.xlane.f32.xlu1 %v1841_v54  ;;  %1845 = vmax.xlane.f32.xlu0 %v1844_v37  ;;  %v11958_v14 = vpop.f32.mrb[54].mxu0 }
 0x280   : > { %v11960_v48 = vpop.f32.mrb[55].mxu0 }
 0x281   : > { %17061 = vst [vmem:[#allocation84_spill] sm:$0xff] %v11960_v48  ;;  %v1847_v52 = vmax.f32 %v11958_v14, %v11960_v48 }
 0x283   : > { %876 = vmax.xlane.f32.xlu1 %v17062_v15  ;;  %879 = vmax.xlane.f32.xlu0 %v17063_v42  ;;  %v11970_v29 = vpop.f32.mrb[56].mxu0  ;;  %v17068_v42 = vmax.f32 %v11814_v32, %v11818_v51 }
 0x284   : > { %17064 = vst [vmem:[#allocation85_spill] sm:$0xff] %v11970_v29  ;;  %v11972_v37 = vpop.f32.mrb[57].mxu0 }
 0x285   : > { %17065 = vst [vmem:[#allocation86_spill] sm:$0xff] %v11972_v37  ;;  %v1850_v54 = vmax.f32 %v11970_v29, %v11972_v37 }
 0x287   : > { %1848 = vmax.xlane.f32.xlu1 %v1847_v52  ;;  %1851 = vmax.xlane.f32.xlu0 %v1850_v54  ;;  %v11976_v56 = vpop.f32.mrb[58].mxu0  ;;  %v11992_v52 = vpop.eup %9412 }
 0x288   : > { %17066 = vst [vmem:[#allocation87_spill] sm:$0xff] %v11976_v56  ;;  %v11978_v50 = vpop.f32.mrb[59].mxu0  ;;  %17072 = vst [vmem:[#allocation91_spill] sm:$0xff] %v11992_v52  ;;  %v11996_v29 = vpop.eup %9414 }
 0x289   : > { %17067 = vst [vmem:[#allocation88_spill] sm:$0xff] %v11978_v50  ;;  %v1853_v15 = vmax.f32 %v11976_v56, %v11978_v50  ;;  %17073 = vst [vmem:[#allocation92_spill] sm:$0xff] %v11996_v29  ;;  %v1082_v56 = vadd.f32 %v11996_v29, %v11992_v52 }
 0x28b   : > { %882 = vmax.xlane.f32.xlu1 %v17068_v42  ;;  %885 = vmax.xlane.f32.xlu0 %v17069_v44  ;;  %v11988_v48 = vpop.f32.mrb[60].mxu0 }
 0x28c   : > { %17070 = vst [vmem:[#allocation89_spill] sm:$0xff] %v11988_v48  ;;  %v11990_v37 = vpop.f32.mrb[61].mxu0 }
 0x28d   : > { %17071 = vst [vmem:[#allocation90_spill] sm:$0xff] %v11990_v37  ;;  %v1856_v54 = vmax.f32 %v11988_v48, %v11990_v37  ;;  %v802_v37 = vpop.xlane.xlu0 %801 }
 0x28f   : > { %1854 = vmax.xlane.f32.xlu1 %v1853_v15  ;;  %1857 = vmax.xlane.f32.xlu0 %v1856_v54  ;;  %v11998_v50 = vpop.f32.mrb[62].mxu0  ;;  %v894_v15 = vsub.f32 %v11545_v20, %v802_v37  ;;  %v895_v54 = vsub.f32 %v11547_v21, %v802_v37 }
 0x290   : > { %17074 = vst [vmem:[#allocation93_spill] sm:$0xff] %v11998_v50  ;;  %v12000_v42 = vpop.f32.mrb[63].mxu0 }
 0x291   : > { %17075 = vst [vmem:[#allocation94_spill] sm:$0xff] %v12000_v42  ;;  %v1859_v44 = vmax.f32 %v11998_v50, %v12000_v42  ;;  %v962_v42 = vmul.f32 1.442695, %v894_v15  ;;  %v964_v52 = vmul.f32 1.442695, %v895_v54 }
 0x293   : > { %888 = vmax.xlane.f32.xlu1 %v17076_v47  ;;  %1083 = vadd.xlane.f32.xlu0 %v1082_v56 }
 0x297   : > { %1860 = vmax.xlane.f32.xlu1 %v1859_v44 }
 0x2a4   : > { %v1768_v48 = vpop.xlane.xlu1 %1767 }
 0x2a5   : > { %v1862_v34 = vsub.f32 %v11629_v62, %v1768_v48  ;;  %v1863_v51 = vsub.f32 %v11633_v1, %v1768_v48 }
 0x2a7   : > { %v1926_v50 = vmul.f32 1.442695, %v1862_v34  ;;  %v1928_v32 = vmul.f32 1.442695, %v1863_v51 }
 0x2a8   : > { %v799_v29 = vpop.xlane.xlu1 %798 }
 0x2a9   : > { %9416 = vpow2.f32 %v1926_v50  ;;  %v892_v47 = vsub.f32 %v11539_v17, %v799_v29  ;;  %v893_v56 = vsub.f32 %v11541_v18, %v799_v29 }
 0x2aa   : > { %9418 = vpow2.f32 %v1928_v32 }
 0x2ab   : > { %9420 = vpow2.f32 %v962_v42  ;;  %v958_v20 = vmul.f32 1.442695, %v892_v47  ;;  %v960_v44 = vmul.f32 1.442695, %v893_v56 }
 0x2ac   : > { %9422 = vpow2.f32 %v964_v52  ;;  %v1771_v21 = vpop.xlane.xlu1 %1770  ;;  %v1774_v37 = vpop.xlane.xlu0 %1773 }
 0x2ad   : > { %9424 = vpow2.f32 %v958_v20  ;;  %v1864_v62 = vsub.f32 %v11641_v5, %v1771_v21  ;;  %v1865_v1 = vsub.f32 %v11645_v7, %v1771_v21  ;;  %v1866_v51 = vsub.f32 %v11653_v11, %v1774_v37 }
 0x2ae   : > { %9426 = vpow2.f32 %v960_v44  ;;  %v1867_v34 = vsub.f32 %v11657_v13, %v1774_v37 }
 0x2af   : > { %v1930_v17 = vmul.f32 1.442695, %v1864_v62  ;;  %v1932_v48 = vmul.f32 1.442695, %v1865_v1  ;;  %v1934_v18 = vmul.f32 1.442695, %v1866_v51 }
 0x2b0   : > { %v1936_v32 = vmul.f32 1.442695, %v1867_v34  ;;  %v805_v29 = vpop.xlane.xlu1 %804  ;;  %v808_v50 = vpop.xlane.xlu0 %807 }
 0x2b1   : > { %9428 = vpow2.f32 %v1930_v17  ;;  %v896_v52 = vsub.f32 %v11551_v23, %v805_v29  ;;  %v897_v42 = vsub.f32 %v11553_v24, %v805_v29  ;;  %v898_v5 = vsub.f32 %v11557_v26, %v808_v50 }
 0x2b2   : > { %9430 = vpow2.f32 %v1932_v48  ;;  %v899_v7 = vsub.f32 %v11559_v27, %v808_v50  ;;  %v17079_v50 = vld [vmem:[#allocation19_spill] sm:$0xff] }
 0x2b3   : > { %v12023_v11 = vpop.eup %9416  ;;  %9432 = vpow2.f32 %v1934_v18  ;;  %v966_v13 = vmul.f32 1.442695, %v896_v52  ;;  %v968_v15 = vmul.f32 1.442695, %v897_v42  ;;  %v970_v54 = vmul.f32 1.442695, %v898_v5 }
 0x2b4   : > { %v12025_v47 = vpop.eup %9418  ;;  %9434 = vpow2.f32 %v1936_v32  ;;  %v972_v56 = vmul.f32 1.442695, %v899_v7  ;;  %v1777_v20 = vpop.xlane.xlu1 %1776  ;;  %v17077_v18 = vld [vmem:[#allocation17_spill] sm:$0xff]  ;;  %v17080_v42 = vld [vmem:[#allocation20_spill] sm:$0xff] }
 0x2b5   : > { %v1780_v44 = vpop.xlane.xlu0 %1779  ;;  %v12027_v23 = vpop.eup %9420  ;;  %9436 = vpow2.f32 %v966_v13  ;;  %v1868_v24 = vsub.f32 %v11665_v0, %v1777_v20  ;;  %v1869_v26 = vsub.f32 %v11669_v19, %v1777_v20  ;;  %v2054_v62 = vadd.f32 %v12025_v47, %v12023_v11 }
 0x2b6   : > { %v1870_v27 = vsub.f32 %v11680_v10, %v1780_v44  ;;  %v12032_v21 = vpop.eup %9422  ;;  %9438 = vpow2.f32 %v968_v15  ;;  %v1871_v37 = vsub.f32 %v11684_v22, %v1780_v44  ;;  %v17078_v22 = vld [vmem:[#allocation18_spill] sm:$0xff] }
 0x2b7   : > { %v12037_v1 = vpop.eup %9424  ;;  %9440 = vpow2.f32 %v970_v54  ;;  %v1938_v51 = vmul.f32 1.442695, %v1868_v24  ;;  %v1940_v34 = vmul.f32 1.442695, %v1869_v26  ;;  %2055 = vadd.xlane.f32.xlu0 %v2054_v62  ;;  %v1088_v13 = vadd.f32 %v12032_v21, %v12027_v23  ;;  %v17082_v62 = vld [vmem:[#allocation39_spill] sm:$0xff] }
 0x2b8   : > { %v1942_v17 = vmul.f32 1.442695, %v1870_v27  ;;  %v12039_v48 = vpop.eup %9426  ;;  %9442 = vpow2.f32 %v972_v56  ;;  %v1944_v0 = vmul.f32 1.442695, %v1871_v37  ;;  %v811_v19 = vpop.xlane.xlu1 %810 }
 0x2b9   : > { %v814_v10 = vpop.xlane.xlu0 %813  ;;  %9444 = vpow2.f32 %v1938_v51  ;;  %v900_v32 = vsub.f32 %v17077_v18, %v811_v19  ;;  %v901_v29 = vsub.f32 %v17078_v22, %v811_v19  ;;  %v1085_v7 = vadd.f32 %v12039_v48, %v12037_v1 }
 0x2ba   : > { %v902_v52 = vsub.f32 %v17079_v50, %v814_v10  ;;  %9446 = vpow2.f32 %v1940_v34  ;;  %v903_v5 = vsub.f32 %v17080_v42, %v814_v10  ;;  %v17083_v34 = vld [vmem:[#allocation40_spill] sm:$0xff]  ;;  %v17084_v10 = vld [vmem:[#allocation41_spill] sm:$0xff] }
 0x2bb   : > { %v12049_v15 = vpop.eup %9428  ;;  %9448 = vpow2.f32 %v1942_v17  ;;  %v974_v54 = vmul.f32 1.442695, %v900_v32  ;;  %v976_v56 = vmul.f32 1.442695, %v901_v29  ;;  %1086 = vadd.xlane.f32.xlu1 %v1085_v7  ;;  %1089 = vadd.xlane.f32.xlu0 %v1088_v13  ;;  %v17086_v32 = vld [vmem:[#allocation42_spill] sm:$0xff] }
 0x2bc   : > { %v978_v20 = vmul.f32 1.442695, %v902_v52  ;;  %v12051_v44 = vpop.eup %9430  ;;  %9450 = vpow2.f32 %v1944_v0  ;;  %v980_v24 = vmul.f32 1.442695, %v903_v5  ;;  %v1783_v26 = vpop.xlane.xlu1 %1782 }
 0x2bd   : > { %v1786_v27 = vpop.xlane.xlu0 %1785  ;;  %v12053_v37 = vpop.eup %9432  ;;  %9452 = vpow2.f32 %v974_v54  ;;  %v1872_v51 = vsub.f32 %v17082_v62, %v1783_v26  ;;  %v1873_v19 = vsub.f32 %v17083_v34, %v1783_v26  ;;  %v2057_v0 = vadd.f32 %v12051_v44, %v12049_v15  ;;  %v17090_v34 = vld [vmem:[#allocation22_spill] sm:$0xff] }
 0x2be   : > { %17081 = vst [vmem:[#allocation17_spill] sm:$0xff] %v12053_v37  ;;  %v1874_v17 = vsub.f32 %v17084_v10, %v1786_v27  ;;  %v12058_v18 = vpop.eup %9434  ;;  %9454 = vpow2.f32 %v976_v56  ;;  %v1875_v22 = vsub.f32 %v17086_v32, %v1786_v27  ;;  %v17089_v27 = vld [vmem:[#allocation21_spill] sm:$0xff] }
 0x2bf   : > { %17085 = vst [vmem:[#allocation18_spill] sm:$0xff] %v12058_v18  ;;  %v12063_v29 = vpop.eup %9436  ;;  %9456 = vpow2.f32 %v978_v20  ;;  %v1946_v50 = vmul.f32 1.442695, %v1872_v51  ;;  %v1948_v52 = vmul.f32 1.442695, %v1873_v19  ;;  %2058 = vadd.xlane.f32.xlu1 %v2057_v0  ;;  %v2060_v13 = vadd.f32 %v12058_v18, %v12053_v37  ;;  %v17091_v51 = vld [vmem:[#allocation23_spill] sm:$0xff] }
 0x2c0   : > { %17087 = vst [vmem:[#allocation19_spill] sm:$0xff] %v12063_v29  ;;  %v1950_v42 = vmul.f32 1.442695, %v1874_v17  ;;  %v12065_v5 = vpop.eup %9438  ;;  %9458 = vpow2.f32 %v980_v24  ;;  %v1952_v7 = vmul.f32 1.442695, %v1875_v22  ;;  %v817_v54 = vpop.xlane.xlu1 %816  ;;  %v17093_v24 = vld [vmem:[#allocation24_spill] sm:$0xff] }
 0x2c1   : > { %v820_v56 = vpop.xlane.xlu0 %819  ;;  %v12069_v26 = vpop.eup %9440  ;;  %9460 = vpow2.f32 %v1946_v50  ;;  %v904_v62 = vsub.f32 %v17089_v27, %v817_v54  ;;  %v905_v20 = vsub.f32 %v17090_v34, %v817_v54  ;;  %2061 = vadd.xlane.f32.xlu0 %v2060_v13  ;;  %v1091_v32 = vadd.f32 %v12065_v5, %v12063_v29  ;;  %v17098_v18 = vld [vmem:[#allocation45_spill] sm:$0xff] }
 0x2c2   : > { %17088 = vst [vmem:[#allocation20_spill] sm:$0xff] %v12069_v26  ;;  %v906_v19 = vsub.f32 %v17091_v51, %v820_v56  ;;  %v12074_v10 = vpop.eup %9442  ;;  %9462 = vpow2.f32 %v1948_v52  ;;  %v907_v17 = vsub.f32 %v17093_v24, %v820_v56  ;;  %v17097_v51 = vld [vmem:[#allocation44_spill] sm:$0xff] }
 0x2c3   : > { %17092 = vst [vmem:[#allocation39_spill] sm:$0xff] %v12074_v10  ;;  %v12079_v22 = vpop.eup %9444  ;;  %9464 = vpow2.f32 %v1950_v42  ;;  %v982_v0 = vmul.f32 1.442695, %v904_v62  ;;  %v984_v50 = vmul.f32 1.442695, %v905_v20  ;;  %1092 = vadd.xlane.f32.xlu1 %v1091_v32  ;;  %v1094_v52 = vadd.f32 %v12074_v10, %v12069_v26  ;;  %v17099_v62 = vld [vmem:[#allocation46_spill] sm:$0xff] }
 0x2c4   : > { %17094 = vst [vmem:[#allocation40_spill] sm:$0xff] %v12079_v22  ;;  %v986_v37 = vmul.f32 1.442695, %v906_v19  ;;  %v12081_v27 = vpop.eup %9446  ;;  %9466 = vpow2.f32 %v1952_v7  ;;  %v988_v54 = vmul.f32 1.442695, %v907_v17  ;;  %v1789_v13 = vpop.xlane.xlu1 %1788  ;;  %v17101_v7 = vld [vmem:[#allocation48_spill] sm:$0xff] }
 0x2c5   : > { %17095 = vst [vmem:[#allocation41_spill] sm:$0xff] %v12081_v27  ;;  %v1792_v34 = vpop.xlane.xlu0 %1791  ;;  %v12085_v56 = vpop.eup %9448  ;;  %9468 = vpow2.f32 %v982_v0  ;;  %v1876_v24 = vsub.f32 %v17097_v51, %v1789_v13  ;;  %v1877_v42 = vsub.f32 %v17098_v18, %v1789_v13  ;;  %1095 = vadd.xlane.f32.xlu0 %v1094_v52  ;;  %v2063_v32 = vadd.f32 %v12081_v27, %v12079_v22  ;;  %v17106_v22 = vld [vmem:[#allocation26_spill] sm:$0xff] }
 0x2c6   : > { %17096 = vst [vmem:[#allocation42_spill] sm:$0xff] %v12085_v56  ;;  %v1878_v20 = vsub.f32 %v17099_v62, %v1792_v34  ;;  %v12090_v19 = vpop.eup %9450  ;;  %9470 = vpow2.f32 %v984_v50  ;;  %v1879_v17 = vsub.f32 %v17101_v7, %v1792_v34  ;;  %v17105_v62 = vld [vmem:[#allocation25_spill] sm:$0xff] }
 0x2c7   : > { %17100 = vst [vmem:[#allocation21_spill] sm:$0xff] %v12090_v19  ;;  %v12095_v26 = vpop.eup %9452  ;;  %9472 = vpow2.f32 %v986_v37  ;;  %v1954_v10 = vmul.f32 1.442695, %v1876_v24  ;;  %v1956_v0 = vmul.f32 1.442695, %v1877_v42  ;;  %2064 = vadd.xlane.f32.xlu1 %v2063_v32  ;;  %v2066_v50 = vadd.f32 %v12090_v19, %v12085_v56  ;;  %v17107_v24 = vld [vmem:[#allocation27_spill] sm:$0xff] }
 0x2c8   : > { %17102 = vst [vmem:[#allocation22_spill] sm:$0xff] %v12095_v26  ;;  %v1958_v29 = vmul.f32 1.442695, %v1878_v20  ;;  %v12097_v51 = vpop.eup %9454  ;;  %9474 = vpow2.f32 %v988_v54  ;;  %v1960_v18 = vmul.f32 1.442695, %v1879_v17  ;;  %v823_v52 = vpop.xlane.xlu1 %822  ;;  %v17109_v54 = vld [vmem:[#allocation28_spill] sm:$0xff] }
 0x2c9   : > { %17103 = vst [vmem:[#allocation23_spill] sm:$0xff] %v12097_v51  ;;  %v826_v13 = vpop.xlane.xlu0 %825  ;;  %v12101_v34 = vpop.eup %9456  ;;  %9476 = vpow2.f32 %v1954_v10  ;;  %v908_v7 = vsub.f32 %v17105_v62, %v823_v52  ;;  %v909_v37 = vsub.f32 %v17106_v22, %v823_v52  ;;  %2067 = vadd.xlane.f32.xlu0 %v2066_v50  ;;  %v1097_v32 = vadd.f32 %v12097_v51, %v12095_v26  ;;  %v17114_v26 = vld [vmem:[#allocation51_spill] sm:$0xff] }
 0x2ca   : > { %17104 = vst [vmem:[#allocation24_spill] sm:$0xff] %v12101_v34  ;;  %v910_v42 = vsub.f32 %v17107_v24, %v826_v13  ;;  %v12106_v20 = vpop.eup %9458  ;;  %9478 = vpow2.f32 %v1956_v0  ;;  %v911_v17 = vsub.f32 %v17109_v54, %v826_v13  ;;  %v17113_v24 = vld [vmem:[#allocation50_spill] sm:$0xff] }
 0x2cb   : > { %17108 = vst [vmem:[#allocation44_spill] sm:$0xff] %v12106_v20  ;;  %v12111_v56 = vpop.eup %9460  ;;  %9480 = vpow2.f32 %v1958_v29  ;;  %v990_v19 = vmul.f32 1.442695, %v908_v7  ;;  %v992_v10 = vmul.f32 1.442695, %v909_v37  ;;  %1098 = vadd.xlane.f32.xlu1 %v1097_v32  ;;  %v1100_v0 = vadd.f32 %v12106_v20, %v12101_v34  ;;  %v17115_v7 = vld [vmem:[#allocation52_spill] sm:$0xff] }
 0x2cc   : > { %17110 = vst [vmem:[#allocation45_spill] sm:$0xff] %v12111_v56  ;;  %v994_v27 = vmul.f32 1.442695, %v910_v42  ;;  %v12113_v62 = vpop.eup %9462  ;;  %9482 = vpow2.f32 %v1960_v18  ;;  %v996_v22 = vmul.f32 1.442695, %v911_v17  ;;  %v1795_v50 = vpop.xlane.xlu1 %1794  ;;  %v17117_v18 = vld [vmem:[#allocation53_spill] sm:$0xff] }
 0x2cd   : > { %17111 = vst [vmem:[#allocation46_spill] sm:$0xff] %v12113_v62  ;;  %v1798_v52 = vpop.xlane.xlu0 %1797  ;;  %v12117_v13 = vpop.eup %9464  ;;  %9484 = vpow2.f32 %v990_v19  ;;  %v1880_v54 = vsub.f32 %v17113_v24, %v1795_v50  ;;  %v1881_v29 = vsub.f32 %v17114_v26, %v1795_v50  ;;  %1101 = vadd.xlane.f32.xlu0 %v1100_v0  ;;  %v2069_v32 = vadd.f32 %v12113_v62, %v12111_v56  ;;  %v17122_v56 = vld [vmem:[#allocation30_spill] sm:$0xff] }
 0x2ce   : > { %17112 = vst [vmem:[#allocation48_spill] sm:$0xff] %v12117_v13  ;;  %v1882_v37 = vsub.f32 %v17115_v7, %v1798_v52  ;;  %v12122_v42 = vpop.eup %9466  ;;  %9486 = vpow2.f32 %v992_v10  ;;  %v1883_v17 = vsub.f32 %v17117_v18, %v1798_v52  ;;  %v17121_v7 = vld [vmem:[#allocation29_spill] sm:$0xff] }
 0x2cf   : > { %17116 = vst [vmem:[#allocation25_spill] sm:$0xff] %v12122_v42  ;;  %v12127_v34 = vpop.eup %9468  ;;  %9488 = vpow2.f32 %v994_v27  ;;  %v1962_v20 = vmul.f32 1.442695, %v1880_v54  ;;  %v1964_v19 = vmul.f32 1.442695, %v1881_v29  ;;  %2070 = vadd.xlane.f32.xlu1 %v2069_v32  ;;  %v2072_v10 = vadd.f32 %v12122_v42, %v12117_v13  ;;  %v17123_v54 = vld [vmem:[#allocation31_spill] sm:$0xff] }
 0x2d0   : > { %17118 = vst [vmem:[#allocation26_spill] sm:$0xff] %v12127_v34  ;;  %v1966_v51 = vmul.f32 1.442695, %v1882_v37  ;;  %v12129_v24 = vpop.eup %9470  ;;  %9490 = vpow2.f32 %v996_v22  ;;  %v1968_v26 = vmul.f32 1.442695, %v1883_v17  ;;  %v829_v0 = vpop.xlane.xlu1 %828  ;;  %v17125_v22 = vld [vmem:[#allocation32_spill] sm:$0xff] }
 0x2d1   : > { %17119 = vst [vmem:[#allocation27_spill] sm:$0xff] %v12129_v24  ;;  %v832_v50 = vpop.xlane.xlu0 %831  ;;  %v12133_v52 = vpop.eup %9472  ;;  %9492 = vpow2.f32 %v1962_v20  ;;  %v912_v18 = vsub.f32 %v17121_v7, %v829_v0  ;;  %v913_v27 = vsub.f32 %v17122_v56, %v829_v0  ;;  %2073 = vadd.xlane.f32.xlu0 %v2072_v10  ;;  %v1103_v32 = vadd.f32 %v12129_v24, %v12127_v34  ;;  %v17129_v34 = vld [vmem:[#allocation55_spill] sm:$0xff] }
 0x2d2   : > { %17120 = vst [vmem:[#allocation28_spill] sm:$0xff] %v12133_v52  ;;  %v914_v29 = vsub.f32 %v17123_v54, %v832_v50  ;;  %v12138_v37 = vpop.eup %9474  ;;  %9494 = vpow2.f32 %v1964_v19  ;;  %v915_v17 = vsub.f32 %v17125_v22, %v832_v50  ;;  %v17128_v54 = vld [vmem:[#allocation54_spill] sm:$0xff] }
 0x2d3   : > { %17124 = vst [vmem:[#allocation50_spill] sm:$0xff] %v12138_v37  ;;  %v12143_v13 = vpop.eup %9476  ;;  %9496 = vpow2.f32 %v1966_v51  ;;  %v998_v42 = vmul.f32 1.442695, %v912_v18  ;;  %v1000_v20 = vmul.f32 1.442695, %v913_v27  ;;  %1104 = vadd.xlane.f32.xlu1 %v1103_v32  ;;  %v1106_v19 = vadd.f32 %v12138_v37, %v12133_v52  ;;  %v17130_v18 = vld [vmem:[#allocation56_spill] sm:$0xff] }
 0x2d4   : > { %17126 = vst [vmem:[#allocation51_spill] sm:$0xff] %v12143_v13  ;;  %v1002_v62 = vmul.f32 1.442695, %v914_v29  ;;  %v12145_v7 = vpop.eup %9478  ;;  %9498 = vpow2.f32 %v1968_v26  ;;  %v1004_v56 = vmul.f32 1.442695, %v915_v17  ;;  %v1801_v10 = vpop.xlane.xlu1 %1800  ;;  %v17132_v26 = vld [vmem:[#allocation57_spill] sm:$0xff] }
 0x2d5   : > { %v1804_v0 = vpop.xlane.xlu0 %1803  ;;  %v12149_v50 = vpop.eup %9480  ;;  %9500 = vpow2.f32 %v998_v42  ;;  %v1884_v22 = vsub.f32 %v17128_v54, %v1801_v10  ;;  %v1885_v51 = vsub.f32 %v17129_v34, %v1801_v10  ;;  %1107 = vadd.xlane.f32.xlu0 %v1106_v19  ;;  %v2075_v32 = vadd.f32 %v12145_v7, %v12143_v13 }
 0x2d6   : > { %17127 = vst [vmem:[#allocation52_spill] sm:$0xff] %v12149_v50  ;;  %v1886_v27 = vsub.f32 %v17130_v18, %v1804_v0  ;;  %v12154_v29 = vpop.eup %9482  ;;  %9502 = vpow2.f32 %v1000_v20  ;;  %v1887_v17 = vsub.f32 %v17132_v26, %v1804_v0  ;;  %v17136_v26 = vld [vmem:[#allocation33_spill] sm:$0xff] }
 0x2d7   : > { %17131 = vst [vmem:[#allocation53_spill] sm:$0xff] %v12154_v29  ;;  %v12159_v52 = vpop.eup %9484  ;;  %9504 = vpow2.f32 %v1002_v62  ;;  %v1970_v37 = vmul.f32 1.442695, %v1884_v22  ;;  %v1972_v42 = vmul.f32 1.442695, %v1885_v51  ;;  %2076 = vadd.xlane.f32.xlu1 %v2075_v32  ;;  %v2078_v20 = vadd.f32 %v12154_v29, %v12149_v50  ;;  %v17137_v22 = vld [vmem:[#allocation34_spill] sm:$0xff] }
 0x2d8   : > { %17133 = vst [vmem:[#allocation29_spill] sm:$0xff] %v12159_v52  ;;  %v1974_v24 = vmul.f32 1.442695, %v1886_v27  ;;  %v12161_v54 = vpop.eup %9486  ;;  %9506 = vpow2.f32 %v1004_v56  ;;  %v1976_v34 = vmul.f32 1.442695, %v1887_v17  ;;  %v835_v19 = vpop.xlane.xlu1 %834  ;;  %v17139_v56 = vld [vmem:[#allocation35_spill] sm:$0xff] }
 0x2d9   : > { %17134 = vst [vmem:[#allocation30_spill] sm:$0xff] %v12161_v54  ;;  %v838_v10 = vpop.xlane.xlu0 %837  ;;  %v12165_v0 = vpop.eup %9488  ;;  %9508 = vpow2.f32 %v1970_v37  ;;  %v916_v18 = vsub.f32 %v11611_v53, %v835_v19  ;;  %v917_v62 = vsub.f32 %v17136_v26, %v835_v19  ;;  %2079 = vadd.xlane.f32.xlu0 %v2078_v20  ;;  %v1109_v32 = vadd.f32 %v12161_v54, %v12159_v52  ;;  %v17142_v52 = vld [vmem:[#allocation60_spill] sm:$0xff] }
 0x2da   : > { %17135 = vst [vmem:[#allocation31_spill] sm:$0xff] %v12165_v0  ;;  %v918_v51 = vsub.f32 %v17137_v22, %v838_v10  ;;  %v12170_v27 = vpop.eup %9490  ;;  %9510 = vpow2.f32 %v1972_v42  ;;  %v919_v17 = vsub.f32 %v17139_v56, %v838_v10  ;;  %v17141_v22 = vld [vmem:[#allocation58_spill] sm:$0xff] }
 0x2db   : > { %17138 = vst [vmem:[#allocation32_spill] sm:$0xff] %v12170_v27  ;;  %v12175_v50 = vpop.eup %9492  ;;  %9512 = vpow2.f32 %v1974_v24  ;;  %v1006_v29 = vmul.f32 1.442695, %v916_v18  ;;  %v1008_v37 = vmul.f32 1.442695, %v917_v62  ;;  %1110 = vadd.xlane.f32.xlu1 %v1109_v32  ;;  %v1112_v42 = vadd.f32 %v12170_v27, %v12165_v0  ;;  %v17143_v18 = vld [vmem:[#allocation62_spill] sm:$0xff] }
 0x2dc   : > { %v1010_v13 = vmul.f32 1.442695, %v918_v51  ;;  %v12177_v53 = vpop.eup %9494  ;;  %9514 = vpow2.f32 %v1976_v34  ;;  %v1012_v19 = vmul.f32 1.442695, %v919_v17  ;;  %v1807_v20 = vpop.xlane.xlu1 %1806  ;;  %v17145_v34 = vld [vmem:[#allocation64_spill] sm:$0xff] }
 0x2dd   : > { %v1810_v26 = vpop.xlane.xlu0 %1809  ;;  %v12181_v10 = vpop.eup %9496  ;;  %9516 = vpow2.f32 %v1006_v29  ;;  %v1888_v56 = vsub.f32 %v17141_v22, %v1807_v20  ;;  %v1889_v24 = vsub.f32 %v17142_v52, %v1807_v20  ;;  %1113 = vadd.xlane.f32.xlu0 %v1112_v42  ;;  %v2081_v32 = vadd.f32 %v12177_v53, %v12175_v50 }
 0x2de   : > { %17140 = vst [vmem:[#allocation54_spill] sm:$0xff] %v12181_v10  ;;  %v1890_v62 = vsub.f32 %v17143_v18, %v1810_v26  ;;  %v12186_v51 = vpop.eup %9498  ;;  %9518 = vpow2.f32 %v1008_v37  ;;  %v1891_v17 = vsub.f32 %v17145_v34, %v1810_v26 }
 0x2df   : > { %17144 = vst [vmem:[#allocation55_spill] sm:$0xff] %v12186_v51  ;;  %v12191_v0 = vpop.eup %9500  ;;  %9520 = vpow2.f32 %v1010_v13  ;;  %v1978_v27 = vmul.f32 1.442695, %v1888_v56  ;;  %v1980_v29 = vmul.f32 1.442695, %v1889_v24  ;;  %2082 = vadd.xlane.f32.xlu1 %v2081_v32  ;;  %v2084_v37 = vadd.f32 %v12186_v51, %v12181_v10  ;;  %v17151_v51 = vld [vmem:[#allocation67_spill] sm:$0xff] }
 0x2e0   : > { %v1982_v54 = vmul.f32 1.442695, %v1890_v62  ;;  %v12193_v22 = vpop.eup %9502  ;;  %9522 = vpow2.f32 %v1012_v19  ;;  %v1984_v52 = vmul.f32 1.442695, %v1891_v17  ;;  %v841_v42 = vpop.xlane.xlu1 %840  ;;  %v17148_v19 = vld [vmem:[#allocation36_spill] sm:$0xff] }
 0x2e1   : > { %v844_v20 = vpop.xlane.xlu0 %843  ;;  %v12197_v26 = vpop.eup %9504  ;;  %9524 = vpow2.f32 %v1978_v27  ;;  %v920_v18 = vsub.f32 %v11623_v59, %v841_v42  ;;  %v921_v13 = vsub.f32 %v11625_v60, %v841_v42  ;;  %2085 = vadd.xlane.f32.xlu0 %v2084_v37  ;;  %v1115_v34 = vadd.f32 %v12193_v22, %v12191_v0 }
 0x2e2   : > { %17146 = vst [vmem:[#allocation56_spill] sm:$0xff] %v12197_v26  ;;  %v922_v56 = vsub.f32 %v11631_v63, %v844_v20  ;;  %v12202_v24 = vpop.eup %9506  ;;  %9526 = vpow2.f32 %v1980_v29  ;;  %v923_v62 = vsub.f32 %v17148_v19, %v844_v20  ;;  %v17150_v20 = vld [vmem:[#allocation66_spill] sm:$0xff] }
 0x2e3   : > { %17147 = vst [vmem:[#allocation57_spill] sm:$0xff] %v12202_v24  ;;  %v12207_v17 = vpop.eup %9508  ;;  %9528 = vpow2.f32 %v1982_v54  ;;  %v1014_v32 = vmul.f32 1.442695, %v920_v18  ;;  %v1016_v27 = vmul.f32 1.442695, %v921_v13  ;;  %1116 = vadd.xlane.f32.xlu1 %v1115_v34  ;;  %v1118_v63 = vadd.f32 %v12202_v24, %v12197_v26 }
 0x2e4   : > { %v1018_v10 = vmul.f32 1.442695, %v922_v56  ;;  %v12209_v59 = vpop.eup %9510  ;;  %9530 = vpow2.f32 %v1984_v52  ;;  %v1020_v60 = vmul.f32 1.442695, %v923_v62  ;;  %v1813_v29 = vpop.xlane.xlu1 %1812  ;;  %v17153_v52 = vld [vmem:[#allocation68_spill] sm:$0xff] }
 0x2e5   : > { %v1816_v37 = vpop.xlane.xlu0 %1815  ;;  %v12213_v42 = vpop.eup %9512  ;;  %9532 = vpow2.f32 %v1014_v32  ;;  %v1892_v19 = vsub.f32 %v17150_v20, %v1813_v29  ;;  %v1893_v54 = vsub.f32 %v17151_v51, %v1813_v29  ;;  %1119 = vadd.xlane.f32.xlu0 %v1118_v63  ;;  %v2087_v62 = vadd.f32 %v12209_v59, %v12207_v17 }
 0x2e6   : > { %17149 = vst [vmem:[#allocation33_spill] sm:$0xff] %v12213_v42  ;;  %v1894_v18 = vsub.f32 %v11860_v36, %v1816_v37  ;;  %v12218_v13 = vpop.eup %9514  ;;  %9534 = vpow2.f32 %v1016_v27  ;;  %v1895_v56 = vsub.f32 %v17153_v52, %v1816_v37 }
 0x2e7   : > { %17152 = vst [vmem:[#allocation34_spill] sm:$0xff] %v12218_v13  ;;  %v12223_v34 = vpop.eup %9516  ;;  %9536 = vpow2.f32 %v1018_v10  ;;  %v1986_v26 = vmul.f32 1.442695, %v1892_v19  ;;  %v1988_v32 = vmul.f32 1.442695, %v1893_v54  ;;  %2088 = vadd.xlane.f32.xlu1 %v2087_v62  ;;  %v2090_v36 = vadd.f32 %v12218_v13, %v12213_v42  ;;  %v17159_v13 = vld [vmem:[#allocation70_spill] sm:$0xff] }
 0x2e8   : > { %v1990_v24 = vmul.f32 1.442695, %v1894_v18  ;;  %v12225_v20 = vpop.eup %9518  ;;  %9538 = vpow2.f32 %v1020_v60  ;;  %v1992_v51 = vmul.f32 1.442695, %v1895_v56  ;;  %v847_v27 = vpop.xlane.xlu1 %846  ;;  %v17156_v60 = vld [vmem:[#allocation37_spill] sm:$0xff] }
 0x2e9   : > { %v850_v63 = vpop.xlane.xlu0 %849  ;;  %v12229_v29 = vpop.eup %9520  ;;  %9540 = vpow2.f32 %v1986_v26  ;;  %v924_v37 = vsub.f32 %v11643_v6, %v847_v27  ;;  %v925_v10 = vsub.f32 %v11647_v8, %v847_v27  ;;  %2091 = vadd.xlane.f32.xlu0 %v2090_v36  ;;  %v1121_v52 = vadd.f32 %v12225_v20, %v12223_v34 }
 0x2ea   : > { %17154 = vst [vmem:[#allocation35_spill] sm:$0xff] %v12229_v29  ;;  %v926_v19 = vsub.f32 %v11655_v12, %v850_v63  ;;  %v12234_v54 = vpop.eup %9522  ;;  %9542 = vpow2.f32 %v1988_v32  ;;  %v927_v18 = vsub.f32 %v17156_v60, %v850_v63  ;;  %v17158_v63 = vld [vmem:[#allocation69_spill] sm:$0xff] }
 0x2eb   : > { %17155 = vst [vmem:[#allocation58_spill] sm:$0xff] %v12234_v54  ;;  %v12239_v56 = vpop.eup %9524  ;;  %9544 = vpow2.f32 %v1990_v24  ;;  %v1022_v62 = vmul.f32 1.442695, %v924_v37  ;;  %v1024_v26 = vmul.f32 1.442695, %v925_v10  ;;  %1122 = vadd.xlane.f32.xlu1 %v1121_v52  ;;  %v1124_v12 = vadd.f32 %v12234_v54, %v12229_v29 }
 0x2ec   : > { %v1026_v42 = vmul.f32 1.442695, %v926_v19  ;;  %v12241_v6 = vpop.eup %9526  ;;  %9546 = vpow2.f32 %v1992_v51  ;;  %v1028_v8 = vmul.f32 1.442695, %v927_v18  ;;  %v1819_v32 = vpop.xlane.xlu1 %1818  ;;  %v17161_v51 = vld [vmem:[#allocation71_spill] sm:$0xff] }
 0x2ed   : > { %v1822_v36 = vpop.xlane.xlu0 %1821  ;;  %v12245_v27 = vpop.eup %9528  ;;  %9548 = vpow2.f32 %v1022_v62  ;;  %v1896_v60 = vsub.f32 %v17158_v63, %v1819_v32  ;;  %v1897_v24 = vsub.f32 %v17159_v13, %v1819_v32  ;;  %1125 = vadd.xlane.f32.xlu0 %v1124_v12  ;;  %v2093_v18 = vadd.f32 %v12241_v6, %v12239_v56 }
 0x2ee   : > { %17157 = vst [vmem:[#allocation60_spill] sm:$0xff] %v12245_v27  ;;  %v1898_v37 = vsub.f32 %v11878_v2, %v1822_v36  ;;  %v12250_v10 = vpop.eup %9530  ;;  %9550 = vpow2.f32 %v1024_v26  ;;  %v1899_v19 = vsub.f32 %v17161_v51, %v1822_v36 }
 0x2ef   : > { %17160 = vst [vmem:[#allocation62_spill] sm:$0xff] %v12250_v10  ;;  %v12255_v52 = vpop.eup %9532  ;;  %9552 = vpow2.f32 %v1026_v42  ;;  %v1994_v29 = vmul.f32 1.442695, %v1896_v60  ;;  %v1996_v62 = vmul.f32 1.442695, %v1897_v24  ;;  %2094 = vadd.xlane.f32.xlu1 %v2093_v18  ;;  %v2096_v2 = vadd.f32 %v12250_v10, %v12245_v27  ;;  %v17167_v10 = vld [vmem:[#allocation73_spill] sm:$0xff] }
 0x2f0   : > { %v1998_v54 = vmul.f32 1.442695, %v1898_v37  ;;  %v12257_v63 = vpop.eup %9534  ;;  %9554 = vpow2.f32 %v1028_v8  ;;  %v2000_v13 = vmul.f32 1.442695, %v1899_v19  ;;  %v853_v26 = vpop.xlane.xlu1 %852  ;;  %v17164_v8 = vld [vmem:[#allocation38_spill] sm:$0xff] }
 0x2f1   : > { %v856_v12 = vpop.xlane.xlu0 %855  ;;  %v12261_v32 = vpop.eup %9536  ;;  %9556 = vpow2.f32 %v1994_v29  ;;  %v928_v36 = vsub.f32 %v11667_v9, %v853_v26  ;;  %v929_v42 = vsub.f32 %v11671_v4, %v853_v26  ;;  %2097 = vadd.xlane.f32.xlu0 %v2096_v2  ;;  %v1127_v51 = vadd.f32 %v12257_v63, %v12255_v52 }
 0x2f2   : > { %17162 = vst [vmem:[#allocation64_spill] sm:$0xff] %v12261_v32  ;;  %v930_v60 = vsub.f32 %v11682_v3, %v856_v12  ;;  %v12266_v24 = vpop.eup %9538  ;;  %9558 = vpow2.f32 %v1996_v62  ;;  %v931_v37 = vsub.f32 %v17164_v8, %v856_v12  ;;  %v17166_v12 = vld [vmem:[#allocation72_spill] sm:$0xff] }
 0x2f3   : > { %17163 = vst [vmem:[#allocation36_spill] sm:$0xff] %v12266_v24  ;;  %v12271_v19 = vpop.eup %9540  ;;  %9560 = vpow2.f32 %v1998_v54  ;;  %v1030_v18 = vmul.f32 1.442695, %v928_v36  ;;  %v1032_v29 = vmul.f32 1.442695, %v929_v42  ;;  %1128 = vadd.xlane.f32.xlu1 %v1127_v51  ;;  %v1130_v3 = vadd.f32 %v12266_v24, %v12261_v32 }
 0x2f4   : > { %v1034_v27 = vmul.f32 1.442695, %v930_v60  ;;  %v12273_v9 = vpop.eup %9542  ;;  %9562 = vpow2.f32 %v2000_v13  ;;  %v1036_v4 = vmul.f32 1.442695, %v931_v37  ;;  %v1825_v62 = vpop.xlane.xlu1 %1824  ;;  %v17169_v13 = vld [vmem:[#allocation74_spill] sm:$0xff] }
 0x2f5   : > { %v1828_v2 = vpop.xlane.xlu0 %1827  ;;  %v12277_v26 = vpop.eup %9544  ;;  %9564 = vpow2.f32 %v1030_v18  ;;  %v1900_v8 = vsub.f32 %v17166_v12, %v1825_v62  ;;  %v1901_v54 = vsub.f32 %v17167_v10, %v1825_v62  ;;  %1131 = vadd.xlane.f32.xlu0 %v1130_v3  ;;  %v2099_v37 = vadd.f32 %v12273_v9, %v12271_v19 }
 0x2f6   : > { %17165 = vst [vmem:[#allocation66_spill] sm:$0xff] %v12277_v26  ;;  %v1902_v36 = vsub.f32 %v11896_v16, %v1828_v2  ;;  %v12282_v42 = vpop.eup %9546  ;;  %9566 = vpow2.f32 %v1032_v29  ;;  %v1903_v60 = vsub.f32 %v17169_v13, %v1828_v2 }
 0x2f7   : > { %17168 = vst [vmem:[#allocation67_spill] sm:$0xff] %v12282_v42  ;;  %v12287_v51 = vpop.eup %9548  ;;  %9568 = vpow2.f32 %v1034_v27  ;;  %v2002_v32 = vmul.f32 1.442695, %v1900_v8  ;;  %v2004_v18 = vmul.f32 1.442695, %v1901_v54  ;;  %2100 = vadd.xlane.f32.xlu1 %v2099_v37  ;;  %v2102_v16 = vadd.f32 %v12282_v42, %v12277_v26  ;;  %v17175_v42 = vld [vmem:[#allocation76_spill] sm:$0xff] }
 0x2f8   : > { %v2006_v24 = vmul.f32 1.442695, %v1902_v36  ;;  %v12289_v12 = vpop.eup %9550  ;;  %9570 = vpow2.f32 %v1036_v4  ;;  %v2008_v10 = vmul.f32 1.442695, %v1903_v60  ;;  %v859_v29 = vpop.xlane.xlu1 %858  ;;  %v17172_v4 = vld [vmem:[#allocation43_spill] sm:$0xff] }
 0x2f9   : > { %v862_v3 = vpop.xlane.xlu0 %861  ;;  %v12293_v62 = vpop.eup %9552  ;;  %9572 = vpow2.f32 %v2002_v32  ;;  %v932_v2 = vsub.f32 %v11694_v25, %v859_v29  ;;  %v933_v27 = vsub.f32 %v11698_v46, %v859_v29  ;;  %2103 = vadd.xlane.f32.xlu0 %v2102_v16  ;;  %v1133_v13 = vadd.f32 %v12289_v12, %v12287_v51 }
 0x2fa   : > { %17170 = vst [vmem:[#allocation68_spill] sm:$0xff] %v12293_v62  ;;  %v934_v8 = vsub.f32 %v11712_v61, %v862_v3  ;;  %v12298_v54 = vpop.eup %9554  ;;  %9574 = vpow2.f32 %v2004_v18  ;;  %v935_v36 = vsub.f32 %v17172_v4, %v862_v3  ;;  %v17174_v3 = vld [vmem:[#allocation75_spill] sm:$0xff] }
 0x2fb   : > { %17171 = vst [vmem:[#allocation37_spill] sm:$0xff] %v12298_v54  ;;  %v12303_v60 = vpop.eup %9556  ;;  %9576 = vpow2.f32 %v2006_v24  ;;  %v1038_v37 = vmul.f32 1.442695, %v932_v2  ;;  %v1040_v32 = vmul.f32 1.442695, %v933_v27  ;;  %1134 = vadd.xlane.f32.xlu1 %v1133_v13  ;;  %v1136_v61 = vadd.f32 %v12298_v54, %v12293_v62 }
 0x2fc   : > { %v1042_v26 = vmul.f32 1.442695, %v934_v8  ;;  %v12305_v25 = vpop.eup %9558  ;;  %9578 = vpow2.f32 %v2008_v10  ;;  %v1044_v46 = vmul.f32 1.442695, %v935_v36  ;;  %v1831_v18 = vpop.xlane.xlu1 %1830  ;;  %v17177_v10 = vld [vmem:[#allocation77_spill] sm:$0xff] }
 0x2fd   : > { %v1834_v16 = vpop.xlane.xlu0 %1833  ;;  %v12309_v29 = vpop.eup %9560  ;;  %9580 = vpow2.f32 %v1038_v37  ;;  %v1904_v4 = vsub.f32 %v17174_v3, %v1831_v18  ;;  %v1905_v24 = vsub.f32 %v17175_v42, %v1831_v18  ;;  %1137 = vadd.xlane.f32.xlu0 %v1136_v61  ;;  %v2105_v36 = vadd.f32 %v12305_v25, %v12303_v60 }
 0x2fe   : > { %17173 = vst [vmem:[#allocation69_spill] sm:$0xff] %v12309_v29  ;;  %v1906_v2 = vsub.f32 %v11914_v55, %v1834_v16  ;;  %v12314_v27 = vpop.eup %9562  ;;  %9582 = vpow2.f32 %v1040_v32  ;;  %v1907_v8 = vsub.f32 %v17177_v10, %v1834_v16 }
 0x2ff   : > { %17176 = vst [vmem:[#allocation70_spill] sm:$0xff] %v12314_v27  ;;  %v12319_v13 = vpop.eup %9564  ;;  %9584 = vpow2.f32 %v1042_v26  ;;  %v2010_v62 = vmul.f32 1.442695, %v1904_v4  ;;  %v2012_v37 = vmul.f32 1.442695, %v1905_v24  ;;  %2106 = vadd.xlane.f32.xlu1 %v2105_v36  ;;  %v2108_v55 = vadd.f32 %v12314_v27, %v12309_v29  ;;  %v17181_v4 = vld [vmem:[#allocation47_spill] sm:$0xff] }
 0x300   : > { %17178 = vst [vmem:[#allocation71_spill] sm:$0xff] %v12319_v13  ;;  %v2014_v54 = vmul.f32 1.442695, %v1906_v2  ;;  %v12321_v3 = vpop.eup %9566  ;;  %9586 = vpow2.f32 %v1044_v46  ;;  %v2016_v42 = vmul.f32 1.442695, %v1907_v8  ;;  %v865_v32 = vpop.xlane.xlu1 %864  ;;  %v17183_v46 = vld [vmem:[#allocation49_spill] sm:$0xff] }
 0x301   : > { %17179 = vst [vmem:[#allocation38_spill] sm:$0xff] %v12321_v3  ;;  %v868_v61 = vpop.xlane.xlu0 %867  ;;  %v12325_v18 = vpop.eup %9568  ;;  %9588 = vpow2.f32 %v2010_v62  ;;  %v936_v16 = vsub.f32 %v11724_v49, %v865_v32  ;;  %v937_v26 = vsub.f32 %v11728_v33, %v865_v32  ;;  %2109 = vadd.xlane.f32.xlu0 %v2108_v55  ;;  %v1139_v8 = vadd.f32 %v12321_v3, %v12319_v13  ;;  %v17186_v13 = vld [vmem:[#allocation79_spill] sm:$0xff] }
 0x302   : > { %17180 = vst [vmem:[#allocation72_spill] sm:$0xff] %v12325_v18  ;;  %v938_v24 = vsub.f32 %v17181_v4, %v868_v61  ;;  %v12330_v2 = vpop.eup %9570  ;;  %9590 = vpow2.f32 %v2012_v37  ;;  %v939_v10 = vsub.f32 %v17183_v46, %v868_v61  ;;  %v17185_v4 = vld [vmem:[#allocation78_spill] sm:$0xff] }
 0x303   : > { %17182 = vst [vmem:[#allocation73_spill] sm:$0xff] %v12330_v2  ;;  %v12335_v36 = vpop.eup %9572  ;;  %9592 = vpow2.f32 %v2014_v54  ;;  %v1046_v29 = vmul.f32 1.442695, %v936_v16  ;;  %v1048_v62 = vmul.f32 1.442695, %v937_v26  ;;  %1140 = vadd.xlane.f32.xlu1 %v1139_v8  ;;  %v1142_v37 = vadd.f32 %v12330_v2, %v12325_v18  ;;  %v17187_v16 = vld [vmem:[#allocation80_spill] sm:$0xff] }
 0x304   : > { %v1050_v27 = vmul.f32 1.442695, %v938_v24  ;;  %v12337_v49 = vpop.eup %9574  ;;  %9594 = vpow2.f32 %v2016_v42  ;;  %v1052_v33 = vmul.f32 1.442695, %v939_v10  ;;  %v1837_v55 = vpop.xlane.xlu1 %1836  ;;  %v17188_v42 = vld [vmem:[#allocation81_spill] sm:$0xff] }
 0x305   : > { %v1840_v32 = vpop.xlane.xlu0 %1839  ;;  %v12341_v61 = vpop.eup %9576  ;;  %9596 = vpow2.f32 %v1046_v29  ;;  %v1908_v46 = vsub.f32 %v17185_v4, %v1837_v55  ;;  %v1909_v54 = vsub.f32 %v17186_v13, %v1837_v55  ;;  %1143 = vadd.xlane.f32.xlu0 %v1142_v37  ;;  %v2111_v8 = vadd.f32 %v12337_v49, %v12335_v36 }
 0x306   : > { %17184 = vst [vmem:[#allocation74_spill] sm:$0xff] %v12341_v61  ;;  %v1910_v26 = vsub.f32 %v17187_v16, %v1840_v32  ;;  %v12346_v24 = vpop.eup %9578  ;;  %9598 = vpow2.f32 %v1048_v62  ;;  %v1911_v10 = vsub.f32 %v17188_v42, %v1840_v32 }
 0x307   : > { %v12351_v18 = vpop.eup %9580  ;;  %9600 = vpow2.f32 %v1050_v27  ;;  %v2018_v2 = vmul.f32 1.442695, %v1908_v46  ;;  %v2020_v29 = vmul.f32 1.442695, %v1909_v54  ;;  %2112 = vadd.xlane.f32.xlu1 %v2111_v8  ;;  %v2114_v62 = vadd.f32 %v12346_v24, %v12341_v61  ;;  %v17192_v61 = vld [vmem:[#allocation83_spill] sm:$0xff] }
 0x308   : > { %v2022_v3 = vmul.f32 1.442695, %v1910_v26  ;;  %v12353_v4 = vpop.eup %9582  ;;  %9602 = vpow2.f32 %v1052_v33  ;;  %v2024_v13 = vmul.f32 1.442695, %v1911_v10  ;;  %v871_v37 = vpop.xlane.xlu1 %870 }
 0x309   : > { %v874_v55 = vpop.xlane.xlu0 %873  ;;  %v12357_v32 = vpop.eup %9584  ;;  %9604 = vpow2.f32 %v2018_v2  ;;  %v940_v16 = vsub.f32 %v11754_v31, %v871_v37  ;;  %v941_v27 = vsub.f32 %v11758_v39, %v871_v37  ;;  %2115 = vadd.xlane.f32.xlu0 %v2114_v62  ;;  %v1145_v26 = vadd.f32 %v12353_v4, %v12351_v18  ;;  %v17191_v37 = vld [vmem:[#allocation82_spill] sm:$0xff] }
 0x30a   : > { %17189 = vst [vmem:[#allocation43_spill] sm:$0xff] %v12357_v32  ;;  %v942_v46 = vsub.f32 %v11772_v58, %v874_v55  ;;  %v12362_v54 = vpop.eup %9586  ;;  %9606 = vpow2.f32 %v2020_v29  ;;  %v943_v33 = vsub.f32 %v11776_v35, %v874_v55 }
 0x30b   : > { %v12367_v42 = vpop.eup %9588  ;;  %9608 = vpow2.f32 %v2022_v3  ;;  %v1054_v10 = vmul.f32 1.442695, %v940_v16  ;;  %v1056_v2 = vmul.f32 1.442695, %v941_v27  ;;  %1146 = vadd.xlane.f32.xlu1 %v1145_v26  ;;  %v1148_v58 = vadd.f32 %v12362_v54, %v12357_v32 }
 0x30c   : > { %v1058_v8 = vmul.f32 1.442695, %v942_v46  ;;  %v12369_v31 = vpop.eup %9590  ;;  %9610 = vpow2.f32 %v2024_v13  ;;  %v1060_v39 = vmul.f32 1.442695, %v943_v33  ;;  %v1843_v29 = vpop.xlane.xlu1 %1842 }
 0x30d   : > { %v1846_v62 = vpop.xlane.xlu0 %1845  ;;  %v12373_v35 = vpop.eup %9592  ;;  %9612 = vpow2.f32 %v1054_v10  ;;  %v1912_v55 = vsub.f32 %v17191_v37, %v1843_v29  ;;  %v1913_v3 = vsub.f32 %v17192_v61, %v1843_v29  ;;  %1149 = vadd.xlane.f32.xlu0 %v1148_v58  ;;  %v2117_v46 = vadd.f32 %v12369_v31, %v12367_v42 }
 0x30e   : > { %17190 = vst [vmem:[#allocation75_spill] sm:$0xff] %v12373_v35  ;;  %v1914_v16 = vsub.f32 %v11951_v30, %v1846_v62  ;;  %v12378_v27 = vpop.eup %9594  ;;  %9614 = vpow2.f32 %v1056_v2  ;;  %v1915_v13 = vsub.f32 %v11954_v40, %v1846_v62 }
 0x30f   : > { %v12383_v33 = vpop.eup %9596  ;;  %9616 = vpow2.f32 %v1058_v8  ;;  %v2026_v26 = vmul.f32 1.442695, %v1912_v55  ;;  %v2028_v10 = vmul.f32 1.442695, %v1913_v3  ;;  %2118 = vadd.xlane.f32.xlu1 %v2117_v46  ;;  %v2120_v30 = vadd.f32 %v12378_v27, %v12373_v35 }
 0x310   : > { %v2030_v32 = vmul.f32 1.442695, %v1914_v16  ;;  %v12385_v37 = vpop.eup %9598  ;;  %9618 = vpow2.f32 %v1060_v39  ;;  %v2032_v61 = vmul.f32 1.442695, %v1915_v13  ;;  %v877_v2 = vpop.xlane.xlu1 %876 }
 0x311   : > { %v880_v58 = vpop.xlane.xlu0 %879  ;;  %v12389_v40 = vpop.eup %9600  ;;  %9620 = vpow2.f32 %v2026_v26  ;;  %v944_v29 = vsub.f32 %v11784_v43, %v877_v2  ;;  %v945_v8 = vsub.f32 %v11788_v45, %v877_v2  ;;  %2121 = vadd.xlane.f32.xlu0 %v2120_v30  ;;  %v1151_v3 = vadd.f32 %v12385_v37, %v12383_v33 }
 0x312   : > { %17193 = vst [vmem:[#allocation76_spill] sm:$0xff] %v12389_v40  ;;  %v946_v62 = vsub.f32 %v11802_v28, %v880_v58  ;;  %v12394_v55 = vpop.eup %9602  ;;  %9622 = vpow2.f32 %v2028_v10  ;;  %v947_v39 = vsub.f32 %v11806_v41, %v880_v58  ;;  %v17198_v58 = vld [vmem:[#allocation84_spill] sm:$0xff] }
 0x313   : > { %17194 = vst [vmem:[#allocation77_spill] sm:$0xff] %v12394_v55  ;;  %v12399_v16 = vpop.eup %9604  ;;  %9624 = vpow2.f32 %v2030_v32  ;;  %v1062_v13 = vmul.f32 1.442695, %v944_v29  ;;  %v1064_v46 = vmul.f32 1.442695, %v945_v8  ;;  %1152 = vadd.xlane.f32.xlu1 %v1151_v3  ;;  %v1154_v28 = vadd.f32 %v12394_v55, %v12389_v40  ;;  %v17199_v29 = vld [vmem:[#allocation85_spill] sm:$0xff] }
 0x314   : > { %17195 = vst [vmem:[#allocation47_spill] sm:$0xff] %v12399_v16  ;;  %v1066_v26 = vmul.f32 1.442695, %v946_v62  ;;  %v12401_v43 = vpop.eup %9606  ;;  %9626 = vpow2.f32 %v2032_v61  ;;  %v1068_v45 = vmul.f32 1.442695, %v947_v39  ;;  %v1849_v10 = vpop.xlane.xlu1 %1848  ;;  %v17201_v61 = vld [vmem:[#allocation86_spill] sm:$0xff] }
 0x315   : > { %17196 = vst [vmem:[#allocation49_spill] sm:$0xff] %v12401_v43  ;;  %v1852_v30 = vpop.xlane.xlu0 %1851  ;;  %v12405_v41 = vpop.eup %9608  ;;  %9628 = vpow2.f32 %v1062_v13  ;;  %v1916_v2 = vsub.f32 %v11958_v14, %v1849_v10  ;;  %v1917_v32 = vsub.f32 %v17198_v58, %v1849_v10  ;;  %1155 = vadd.xlane.f32.xlu0 %v1154_v28  ;;  %v2123_v3 = vadd.f32 %v12401_v43, %v12399_v16  ;;  %v17206_v16 = vld [vmem:[#allocation61_spill] sm:$0xff] }
 0x316   : > { %17197 = vst [vmem:[#allocation78_spill] sm:$0xff] %v12405_v41  ;;  %v1918_v8 = vsub.f32 %v17199_v29, %v1852_v30  ;;  %v12410_v62 = vpop.eup %9610  ;;  %9630 = vpow2.f32 %v1064_v46  ;;  %v1919_v39 = vsub.f32 %v17201_v61, %v1852_v30  ;;  %v17205_v29 = vld [vmem:[#allocation59_spill] sm:$0xff] }
 0x317   : > { %17200 = vst [vmem:[#allocation79_spill] sm:$0xff] %v12410_v62  ;;  %v12415_v40 = vpop.eup %9612  ;;  %9632 = vpow2.f32 %v1066_v26  ;;  %v2034_v55 = vmul.f32 1.442695, %v1916_v2  ;;  %v2036_v13 = vmul.f32 1.442695, %v1917_v32  ;;  %2124 = vadd.xlane.f32.xlu1 %v2123_v3  ;;  %v2126_v46 = vadd.f32 %v12410_v62, %v12405_v41  ;;  %v17207_v2 = vld [vmem:[#allocation63_spill] sm:$0xff] }
 0x318   : > { %17202 = vst [vmem:[#allocation80_spill] sm:$0xff] %v12415_v40  ;;  %v2038_v35 = vmul.f32 1.442695, %v1918_v8  ;;  %v12417_v14 = vpop.eup %9614  ;;  %9634 = vpow2.f32 %v1068_v45  ;;  %v2040_v10 = vmul.f32 1.442695, %v1919_v39  ;;  %v883_v28 = vpop.xlane.xlu1 %882  ;;  %v17209_v45 = vld [vmem:[#allocation65_spill] sm:$0xff] }
 0x319   : > { %17203 = vst [vmem:[#allocation81_spill] sm:$0xff] %v12417_v14  ;;  %v886_v58 = vpop.xlane.xlu0 %885  ;;  %v12421_v30 = vpop.eup %9616  ;;  %9636 = vpow2.f32 %v2034_v55  ;;  %v948_v61 = vsub.f32 %v17205_v29, %v883_v28  ;;  %v949_v26 = vsub.f32 %v17206_v16, %v883_v28  ;;  %2127 = vadd.xlane.f32.xlu0 %v2126_v46  ;;  %v1157_v3 = vadd.f32 %v12417_v14, %v12415_v40  ;;  %v17211_v40 = vld [vmem:[#allocation88_spill] sm:$0xff] }
 0x31a   : > { %17204 = vst [vmem:[#allocation82_spill] sm:$0xff] %v12421_v30  ;;  %v950_v32 = vsub.f32 %v17207_v2, %v886_v58  ;;  %v12426_v8 = vpop.eup %9618  ;;  %9638 = vpow2.f32 %v2036_v13  ;;  %v951_v39 = vsub.f32 %v17209_v45, %v886_v58  ;;  %v17210_v2 = vld [vmem:[#allocation87_spill] sm:$0xff] }
 0x31b   : > { %17208 = vst [vmem:[#allocation83_spill] sm:$0xff] %v12426_v8  ;;  %v12431_v41 = vpop.eup %9620  ;;  %9640 = vpow2.f32 %v2038_v35  ;;  %v1070_v62 = vmul.f32 1.442695, %v948_v61  ;;  %v1072_v55 = vmul.f32 1.442695, %v949_v26  ;;  %1158 = vadd.xlane.f32.xlu1 %v1157_v3  ;;  %v1160_v13 = vadd.f32 %v12426_v8, %v12421_v30  ;;  %v17212_v61 = vld [vmem:[#allocation89_spill] sm:$0xff] }
 0x31c   : > { %v1074_v43 = vmul.f32 1.442695, %v950_v32  ;;  %v12433_v29 = vpop.eup %9622  ;;  %9642 = vpow2.f32 %v2040_v10  ;;  %v1076_v16 = vmul.f32 1.442695, %v951_v39  ;;  %v1855_v46 = vpop.xlane.xlu1 %1854  ;;  %v17213_v10 = vld [vmem:[#allocation90_spill] sm:$0xff] }
 0x31d   : > { %v1858_v28 = vpop.xlane.xlu0 %1857  ;;  %v12437_v58 = vpop.eup %9624  ;;  %9644 = vpow2.f32 %v1070_v62  ;;  %v1920_v45 = vsub.f32 %v17210_v2, %v1855_v46  ;;  %v1921_v35 = vsub.f32 %v17211_v40, %v1855_v46  ;;  %1161 = vadd.xlane.f32.xlu0 %v1160_v13  ;;  %v2129_v3 = vadd.f32 %v12433_v29, %v12431_v41 }
 0x31e   : > { %v1922_v26 = vsub.f32 %v17212_v61, %v1858_v28  ;;  %v12442_v32 = vpop.eup %9626  ;;  %9646 = vpow2.f32 %v1072_v55  ;;  %v1923_v39 = vsub.f32 %v17213_v10, %v1858_v28 }
 0x31f   : > { %v12447_v30 = vpop.eup %9628  ;;  %9648 = vpow2.f32 %v1074_v43  ;;  %v2042_v8 = vmul.f32 1.442695, %v1920_v45  ;;  %v2044_v62 = vmul.f32 1.442695, %v1921_v35  ;;  %2130 = vadd.xlane.f32.xlu1 %v2129_v3  ;;  %v2132_v55 = vadd.f32 %v12442_v32, %v12437_v58 }
 0x320   : > { %v2046_v14 = vmul.f32 1.442695, %v1922_v26  ;;  %v12449_v2 = vpop.eup %9630  ;;  %9650 = vpow2.f32 %v1076_v16  ;;  %v2048_v40 = vmul.f32 1.442695, %v1923_v39  ;;  %v889_v13 = vpop.xlane.xlu1 %888  ;;  %v17217_v39 = vld [vmem:[#allocation93_spill] sm:$0xff] }
 0x321   : > { %v12453_v46 = vpop.eup %9632  ;;  %9652 = vpow2.f32 %v2042_v8  ;;  %v952_v28 = vsub.f32 %v11844_v38, %v889_v13  ;;  %v953_v61 = vsub.f32 %v11848_v57, %v889_v13  ;;  %v1163_v43 = vadd.f32 %v12449_v2, %v12447_v30  ;;  %2133 = vadd.xlane.f32.xlu0 %v2132_v55 }
 0x322   : > { %17214 = vst [vmem:[#allocation84_spill] sm:$0xff] %v12453_v46  ;;  %v12459_v45 = vpop.eup %9634  ;;  %9654 = vpow2.f32 %v2044_v62  ;;  %v17218_v62 = vld [vmem:[#allocation94_spill] sm:$0xff] }
 0x323   : > { %17215 = vst [vmem:[#allocation85_spill] sm:$0xff] %v12459_v45  ;;  %v12461_v16 = vpop.eup %9636  ;;  %9656 = vpow2.f32 %v2046_v14  ;;  %v1078_v35 = vmul.f32 1.442695, %v952_v28  ;;  %v1080_v26 = vmul.f32 1.442695, %v953_v61  ;;  %v1166_v10 = vadd.f32 %v12459_v45, %v12453_v46  ;;  %1164 = vadd.xlane.f32.xlu1 %v1163_v43 }
 0x324   : > { %v12465_v8 = vpop.eup %9638  ;;  %9658 = vpow2.f32 %v2048_v40  ;;  %v1861_v57 = vpop.xlane.xlu1 %1860 }
 0x325   : > { %v12467_v38 = vpop.eup %9640  ;;  %9660 = vpow2.f32 %v1078_v35  ;;  %v1924_v3 = vsub.f32 %v17217_v39, %v1861_v57  ;;  %v1925_v55 = vsub.f32 %v17218_v62, %v1861_v57  ;;  %v2135_v14 = vadd.f32 %v12465_v8, %v12461_v16  ;;  %1167 = vadd.xlane.f32.xlu0 %v1166_v10 }
 0x326   : > { %17216 = vst [vmem:[#allocation86_spill] sm:$0xff] %v12467_v38  ;;  %v12473_v13 = vpop.eup %9642  ;;  %9662 = vpow2.f32 %v1080_v26 }
 0x327   : > { %17219 = vst [vmem:[#allocation59_spill] sm:$0xff] %v12473_v13  ;;  %v12475_v28 = vpop.eup %9644  ;;  %v2050_v61 = vmul.f32 1.442695, %v1924_v3  ;;  %v2052_v40 = vmul.f32 1.442695, %v1925_v55  ;;  %v2138_v43 = vadd.f32 %v12473_v13, %v12467_v38  ;;  %2136 = vadd.xlane.f32.xlu1 %v2135_v14  ;;  %v17233_v13 = vld [vmem:[#allocation91_spill] sm:$0xff] }
 0x328   : > { %17220 = vst [vmem:[#allocation61_spill] sm:$0xff] %v12475_v28  ;;  %v12479_v46 = vpop.eup %9646 }
 0x329   : > { %17221 = vst [vmem:[#allocation63_spill] sm:$0xff] %v12479_v46  ;;  %v12481_v35 = vpop.eup %9648  ;;  %9664 = vpow2.f32 %v2050_v61  ;;  %v1169_v57 = vadd.f32 %v12479_v46, %v12475_v28  ;;  %2139 = vadd.xlane.f32.xlu0 %v2138_v43 }
 0x32a   : > { %17222 = vst [vmem:[#allocation65_spill] sm:$0xff] %v12481_v35  ;;  %v12485_v39 = vpop.eup %9650  ;;  %9666 = vpow2.f32 %v2052_v40 }
 0x32b   : > { %17223 = vst [vmem:[#allocation87_spill] sm:$0xff] %v12485_v39  ;;  %v12487_v26 = vpop.eup %9652  ;;  %v1172_v10 = vadd.f32 %v12485_v39, %v12481_v35  ;;  %1170 = vadd.xlane.f32.xlu1 %v1169_v57 }
 0x32c   : > { %17224 = vst [vmem:[#allocation88_spill] sm:$0xff] %v12487_v26  ;;  %v12491_v3 = vpop.eup %9654 }
 0x32d   : > { %17225 = vst [vmem:[#allocation89_spill] sm:$0xff] %v12491_v3  ;;  %v12493_v62 = vpop.eup %9656  ;;  %v2141_v55 = vadd.f32 %v12491_v3, %v12487_v26  ;;  %1173 = vadd.xlane.f32.xlu0 %v1172_v10  ;;  %v1084_v26 = vpop.xlane.xlu0 %1083 }
 0x32e   : > { %17226 = vst [vmem:[#allocation90_spill] sm:$0xff] %v12493_v62  ;;  %v12497_v14 = vpop.eup %9658  ;;  %9668 = vrcp.f32 %v1084_v26 }
 0x32f   : > { %17227 = vst [vmem:[#allocation93_spill] sm:$0xff] %v12497_v14  ;;  %v12499_v61 = vpop.eup %9660  ;;  %v2144_v40 = vadd.f32 %v12497_v14, %v12493_v62  ;;  %2142 = vadd.xlane.f32.xlu1 %v2141_v55 }
 0x330   : > { %17228 = vst [vmem:[#allocation94_spill] sm:$0xff] %v12499_v61  ;;  %v12503_v43 = vpop.eup %9662 }
 0x331   : > { %17229 = vst [vmem:[#allocation95_spill] sm:$0xff] %v12503_v43  ;;  %v1175_v35 = vadd.f32 %v12503_v43, %v12499_v61  ;;  %2145 = vadd.xlane.f32.xlu0 %v2144_v40 }
 0x333   : > { %v12507_v57 = vpop.eup %9664  ;;  %1176 = vadd.xlane.f32.xlu1 %v1175_v35 }
 0x334   : > { %17230 = vst [vmem:[#allocation96_spill] sm:$0xff] %v12507_v57  ;;  %v12509_v39 = vpop.eup %9666 }
 0x335   : > { %17231 = vst [vmem:[#allocation97_spill] sm:$0xff] %v12509_v39  ;;  %v2147_v10 = vadd.f32 %v12509_v39, %v12507_v57  ;;  %v17232_v57 = vld [vmem:[#allocation92_spill] sm:$0xff] }
 0x337   : > { %2148 = vadd.xlane.f32.xlu1 %v2147_v10 }
 0x338   : > { %v9669_v43 = vpop.eup %9668 }
 0x339   : > { %v1211_v39 = vmul.f32 %v9669_v43, %v17232_v57 }
 0x344   : > { %v2056_v38 = vpop.xlane.xlu0 %2055 }
 0x348   : > { %v1087_v62 = vpop.xlane.xlu1 %1086  ;;  %v1090_v14 = vpop.xlane.xlu0 %1089 }
 0x349   : > { %9670 = vrcp.f32 %v1087_v62  ;;  %v1210_v62 = vmul.f32 %v9669_v43, %v17233_v13 }
 0x34a   : > { %9672 = vrcp.f32 %v2056_v38 }
 0x34c   : > { %v2059_v55 = vpop.xlane.xlu1 %2058 }
 0x34d   : > { %9674 = vrcp.f32 %v2059_v55 }
 0x34e   : > { %v2062_v61 = vpop.xlane.xlu0 %2061  ;;  %9676 = vrcp.f32 %v1090_v14 }
 0x350   : > { %v1093_v40 = vpop.xlane.xlu1 %1092 }
 0x351   : > { %9678 = vrcp.f32 %v1093_v40  ;;  %v375_v40 = vld [vmem:[%s12518_s24 + $0x8] sm:$0xff] }
 0x352   : > { %v1096_v35 = vpop.xlane.xlu0 %1095  ;;  %9680 = vrcp.f32 %v2062_v61  ;;  %v344_v61 = vld [vmem:[%s11383_s14 + $0x20] sm:$0xff]  ;;  %1338 = vmatprep.mubr.f32.mxu1 %v375_v40 }
 0x353   : > { %v9671_v3 = vpop.eup %9670 }
 0x354   : > { %v2065_v10 = vpop.xlane.xlu1 %2064  ;;  %v1213_v26 = vmul.f32 %v9671_v3, %v12039_v48  ;;  %v1212_v38 = vmul.f32 %v9671_v3, %v12037_v1  ;;  %v9673_v55 = vpop.eup %9672 }
 0x355   : > { %9682 = vrcp.f32 %v2065_v10  ;;  %v2183_v48 = vmul.f32 %v9673_v55, %v12025_v47  ;;  %v2182_v1 = vmul.f32 %v9673_v55, %v12023_v11  ;;  %v360_v10 = vmul.f32 0.35355338, %v344_v61  ;;  %v17234_v11 = vld [vmem:[#allocation19_spill] sm:$0xff] }
 0x356   : > { %v2068_v14 = vpop.xlane.xlu0 %2067  ;;  %v8796_v28 = vpack.c.bf16 %v1213_v26, %v1211_v39  ;;  %v8798_v46 = vpack.c.bf16 %v1212_v38, %v1210_v62  ;;  %9684 = vrcp.f32 %v1096_v35 }
 0x357   : > { %v9675_v45 = vpop.eup %9674 }
 0x358   : > { %v1099_v57 = vpop.xlane.xlu1 %1098  ;;  %8797 = vmatprep.subr.bf16.mxu1 %v8796_v28  ;;  %v2185_v13 = vmul.f32 %v9675_v45, %v12051_v44  ;;  %v2184_v3 = vmul.f32 %v9675_v45, %v12049_v15  ;;  %v9677_v39 = vpop.eup %9676 }
 0x359   : > { %9686 = vrcp.f32 %v1099_v57  ;;  %8799 = vmatpush1.bf16.xpose.msra.mxu1 %v8798_v46  ;;  %v1215_v28 = vmul.f32 %v9677_v39, %v12032_v21  ;;  %v1214_v44 = vmul.f32 %v9677_v39, %v12027_v23  ;;  %v17235_v21 = vld [vmem:[#allocation18_spill] sm:$0xff]  ;;  %v17237_v23 = vld [vmem:[#allocation17_spill] sm:$0xff] }
 0x35a   : > { %v1102_v43 = vpop.xlane.xlu0 %1101  ;;  %v8860_v26 = vpack.c.bf16 %v2185_v13, %v2183_v48  ;;  %v8862_v62 = vpack.c.bf16 %v2184_v3, %v2182_v1  ;;  %9688 = vrcp.f32 %v2068_v14  ;;  %v17238_v1 = vld [vmem:[#allocation40_spill] sm:$0xff] }
 0x35b   : > { %v9679_v35 = vpop.eup %9678 }
 0x35c   : > { %v2071_v38 = vpop.xlane.xlu1 %2070  ;;  %8861 = vmatprep.subr.bf16.mxu0 %v8860_v26  ;;  %v1217_v47 = vmul.f32 %v9679_v35, %v12065_v5  ;;  %v1216_v55 = vmul.f32 %v9679_v35, %v17234_v11  ;;  %v9681_v15 = vpop.eup %9680  ;;  %v17236_v5 = vld [vmem:[#allocation41_spill] sm:$0xff]  ;;  %v1348_v35 = vld [vmem:[%s12518_s24 + $0x18] sm:$0xff]  ;;  %v17240_v11 = vld [vmem:[#allocation23_spill] sm:$0xff] }
 0x35d   : > { %9690 = vrcp.f32 %v2071_v38  ;;  %8863 = vmatpush1.bf16.xpose.msra.mxu0 %v8862_v62  ;;  %v2187_v57 = vmul.f32 %v9681_v15, %v17235_v21  ;;  %v2186_v13 = vmul.f32 %v9681_v15, %v17237_v23  ;;  %2310 = vmatprep.mubr.f32.mxu0 %v1348_v35  ;;  %v17241_v15 = vld [vmem:[#allocation20_spill] sm:$0xff]  ;;  %v17245_v35 = vld [vmem:[#allocation42_spill] sm:$0xff] }
 0x35e   : > { %2321 = vxpose.xlu0.b32.start.end [1/1] (short) %v360_v10, 128  ;;  %v2074_v46 = vpop.xlane.xlu0 %2073  ;;  %v8800_v45 = vpack.c.bf16 %v1217_v47, %v1215_v28  ;;  %v8802_v40 = vpack.c.bf16 %v1216_v55, %v1214_v44  ;;  %9692 = vrcp.f32 %v1102_v43  ;;  %v346_v43 = vld [vmem:[%s11383_s14 + $0x30] sm:$0xff] }
 0x35f   : > { %v9683_v61 = vpop.eup %9682  ;;  %v17239_v47 = vld [vmem:[#allocation39_spill] sm:$0xff] }
 0x360   : > { %v1105_v14 = vpop.xlane.xlu1 %1104  ;;  %8801 = vmatprep.subr.bf16.mxu1 %v8800_v45  ;;  %v2189_v48 = vmul.f32 %v9683_v61, %v17236_v5  ;;  %v2188_v3 = vmul.f32 %v9683_v61, %v17238_v1  ;;  %v9685_v39 = vpop.eup %9684  ;;  %v17242_v61 = vld [vmem:[#allocation22_spill] sm:$0xff] }
 0x361   : > { %9694 = vrcp.f32 %v1105_v14  ;;  %8803 = vmatpush1.bf16.xpose.msra.mxu1 %v8802_v40  ;;  %v1219_v44 = vmul.f32 %v9685_v39, %v17239_v47  ;;  %v1218_v45 = vmul.f32 %v9685_v39, %v17241_v15  ;;  %v17246_v39 = vld [vmem:[#allocation45_spill] sm:$0xff] }
 0x362   : > { %v1108_v10 = vpop.xlane.xlu0 %1107  ;;  %v8864_v26 = vpack.c.bf16 %v2189_v48, %v2187_v57  ;;  %v8866_v62 = vpack.c.bf16 %v2188_v3, %v2186_v13  ;;  %9696 = vrcp.f32 %v2074_v46  ;;  %v362_v48 = vmul.f32 0.35355338, %v346_v43  ;;  %v17243_v13 = vld [vmem:[#allocation21_spill] sm:$0xff]  ;;  %v17244_v3 = vld [vmem:[#allocation46_spill] sm:$0xff] }
 0x363   : > { %v9687_v38 = vpop.eup %9686 }
 0x364   : > { %v2077_v28 = vpop.xlane.xlu1 %2076  ;;  %8865 = vmatprep.subr.bf16.mxu0 %v8864_v26  ;;  %v1221_v55 = vmul.f32 %v9687_v38, %v17240_v11  ;;  %v1220_v21 = vmul.f32 %v9687_v38, %v17242_v61  ;;  %v9689_v14 = vpop.eup %9688 }
 0x365   : > { %9698 = vrcp.f32 %v2077_v28  ;;  %8867 = vmatpush1.bf16.xpose.msra.mxu0 %v8866_v62  ;;  %v2191_v1 = vmul.f32 %v9689_v14, %v17243_v13  ;;  %v2190_v47 = vmul.f32 %v9689_v14, %v17245_v35  ;;  %v17250_v14 = vld [vmem:[#allocation26_spill] sm:$0xff] }
 0x366   : > { %v2080_v40 = vpop.xlane.xlu0 %2079  ;;  %v8804_v57 = vpack.c.bf16 %v1221_v55, %v1219_v44  ;;  %v8806_v5 = vpack.c.bf16 %v1220_v21, %v1218_v45  ;;  %9700 = vrcp.f32 %v1108_v10  ;;  %v17247_v55 = vld [vmem:[#allocation44_spill] sm:$0xff]  ;;  %v17248_v45 = vld [vmem:[#allocation27_spill] sm:$0xff] }
 0x367   : > { %v9691_v46 = vpop.eup %9690  ;;  %v17249_v21 = vld [vmem:[#allocation24_spill] sm:$0xff] }
 0x368   : > { %v1111_v23 = vpop.xlane.xlu1 %1110  ;;  %8805 = vmatprep.subr.bf16.mxu1 %v8804_v57  ;;  %v2193_v26 = vmul.f32 %v9691_v46, %v17244_v3  ;;  %v2192_v11 = vmul.f32 %v9691_v46, %v17246_v39  ;;  %v9693_v38 = vpop.eup %9692 }
 0x369   : > { %9702 = vrcp.f32 %v1111_v23  ;;  %8807 = vmatpush1.bf16.xpose.msra.mxu1 %v8806_v5  ;;  %v1223_v15 = vmul.f32 %v9693_v38, %v17247_v55  ;;  %v1222_v57 = vmul.f32 %v9693_v38, %v17249_v21 }
 0x36a   : > { %v1114_v62 = vpop.xlane.xlu0 %1113  ;;  %3293 = vxpose.xlu1.b32.start.end [1/1] (short) %v362_v48, 128  ;;  %v8868_v28 = vpack.c.bf16 %v2193_v26, %v2191_v1  ;;  %v8870_v44 = vpack.c.bf16 %v2192_v11, %v2190_v47  ;;  %9704 = vrcp.f32 %v2080_v40  ;;  %v17251_v40 = vld [vmem:[#allocation25_spill] sm:$0xff]  ;;  %v17252_v47 = vld [vmem:[#allocation48_spill] sm:$0xff]  ;;  %v17253_v11 = vld [vmem:[#allocation51_spill] sm:$0xff] }
 0x36b   : > { %v9695_v43 = vpop.eup %9694 }
 0x36c   : > { %v2083_v10 = vpop.xlane.xlu1 %2082  ;;  %8869 = vmatprep.subr.bf16.mxu0 %v8868_v28  ;;  %v1225_v61 = vmul.f32 %v9695_v43, %v17248_v45  ;;  %v1224_v13 = vmul.f32 %v9695_v43, %v17250_v14  ;;  %v9697_v46 = vpop.eup %9696  ;;  %v17257_v14 = vld [vmem:[#allocation29_spill] sm:$0xff] }
 0x36d   : > { %9706 = vrcp.f32 %v2083_v10  ;;  %8871 = vmatpush1.bf16.xpose.msra.mxu0 %v8870_v44  ;;  %v2195_v26 = vmul.f32 %v9697_v46, %v17251_v40  ;;  %v2194_v39 = vmul.f32 %v9697_v46, %v17252_v47  ;;  %v17259_v47 = vld [vmem:[#allocation52_spill] sm:$0xff] }
 0x36e   : > { %v2086_v5 = vpop.xlane.xlu0 %2085  ;;  %v8808_v23 = vpack.c.bf16 %v1225_v61, %v1223_v15  ;;  %v8810_v48 = vpack.c.bf16 %v1224_v13, %v1222_v57  ;;  %9708 = vrcp.f32 %v1114_v62  ;;  %v17254_v62 = vld [vmem:[#allocation50_spill] sm:$0xff]  ;;  %v17256_v57 = vld [vmem:[#allocation28_spill] sm:$0xff] }
 0x36f   : > { %v9699_v1 = vpop.eup %9698  ;;  %v17255_v61 = vld [vmem:[#allocation30_spill] sm:$0xff] }
 0x370   : > { %v1117_v3 = vpop.xlane.xlu1 %1116  ;;  %8809 = vmatprep.subr.bf16.mxu1 %v8808_v23  ;;  %v2197_v35 = vmul.f32 %v9699_v1, %v12145_v7  ;;  %v2196_v38 = vmul.f32 %v9699_v1, %v17253_v11  ;;  %v9701_v28 = vpop.eup %9700 }
 0x371   : > { %9710 = vrcp.f32 %v1117_v3  ;;  %8811 = vmatpush1.bf16.xpose.msra.mxu1 %v8810_v48  ;;  %v1227_v45 = vmul.f32 %v9701_v28, %v17254_v62  ;;  %v1226_v7 = vmul.f32 %v9701_v28, %v17256_v57 }
 0x372   : > { %v1120_v43 = vpop.xlane.xlu0 %1119  ;;  %v8872_v44 = vpack.c.bf16 %v2197_v35, %v2195_v26  ;;  %v8874_v10 = vpack.c.bf16 %v2196_v38, %v2194_v39  ;;  %9712 = vrcp.f32 %v2086_v5  ;;  %v17258_v5 = vld [vmem:[#allocation53_spill] sm:$0xff] }
 0x373   : > { %v9703_v55 = vpop.eup %9702 }
 0x374   : > { %v2089_v15 = vpop.xlane.xlu1 %2088  ;;  %8873 = vmatprep.subr.bf16.mxu0 %v8872_v44  ;;  %v1229_v21 = vmul.f32 %v9703_v55, %v17255_v61  ;;  %v1228_v13 = vmul.f32 %v9703_v55, %v17257_v14  ;;  %v9705_v46 = vpop.eup %9704  ;;  %v17261_v61 = vld [vmem:[#allocation31_spill] sm:$0xff] }
 0x375   : > { %9714 = vrcp.f32 %v2089_v15  ;;  %8875 = vmatpush1.bf16.xpose.msra.mxu0 %v8874_v10  ;;  %v2199_v26 = vmul.f32 %v9705_v46, %v17258_v5  ;;  %v2198_v39 = vmul.f32 %v9705_v46, %v17259_v47 }
 0x376   : > { %v2092_v23 = vpop.xlane.xlu0 %2091  ;;  %v8812_v48 = vpack.c.bf16 %v1229_v21, %v1227_v45  ;;  %v8814_v1 = vpack.c.bf16 %v1228_v13, %v1226_v7  ;;  %9716 = vrcp.f32 %v1120_v43  ;;  %v17260_v43 = vld [vmem:[#allocation32_spill] sm:$0xff] }
 0x377   : > { %v9707_v3 = vpop.eup %9706 }
 0x378   : > { %v1123_v40 = vpop.xlane.xlu1 %1122  ;;  %8813 = vmatprep.subr.bf16.mxu1 %v8812_v48  ;;  %v2201_v35 = vmul.f32 %v9707_v3, %v12177_v53  ;;  %v2200_v11 = vmul.f32 %v9707_v3, %v12175_v50  ;;  %v9709_v38 = vpop.eup %9708  ;;  %v17263_v3 = vld [vmem:[#allocation54_spill] sm:$0xff] }
 0x379   : > { %9718 = vrcp.f32 %v1123_v40  ;;  %8815 = vmatpush1.bf16.xpose.msra.mxu1 %v8814_v1  ;;  %v1231_v62 = vmul.f32 %v9709_v38, %v17260_v43  ;;  %v1230_v53 = vmul.f32 %v9709_v38, %v17261_v61  ;;  %v17266_v61 = vld [vmem:[#allocation34_spill] sm:$0xff] }
 0x37a   : > { %v1126_v28 = vpop.xlane.xlu0 %1125  ;;  %v8876_v44 = vpack.c.bf16 %v2201_v35, %v2199_v26  ;;  %v8878_v10 = vpack.c.bf16 %v2200_v11, %v2198_v39  ;;  %9720 = vrcp.f32 %v2092_v23  ;;  %v17262_v23 = vld [vmem:[#allocation55_spill] sm:$0xff]  ;;  %v17264_v11 = vld [vmem:[#allocation57_spill] sm:$0xff] }
 0x37b   : > { %v9711_v55 = vpop.eup %9710 }
 0x37c   : > { %v2095_v15 = vpop.xlane.xlu1 %2094  ;;  %8877 = vmatprep.subr.bf16.mxu0 %v8876_v44  ;;  %v1233_v45 = vmul.f32 %v9711_v55, %v12193_v22  ;;  %v1232_v21 = vmul.f32 %v9711_v55, %v12191_v0  ;;  %v9713_v57 = vpop.eup %9712  ;;  %v17265_v44 = vld [vmem:[#allocation56_spill] sm:$0xff] }
 0x37d   : > { %9722 = vrcp.f32 %v2095_v15  ;;  %8879 = vmatpush1.bf16.xpose.msra.mxu0 %v8878_v10  ;;  %v2203_v48 = vmul.f32 %v9713_v57, %v17262_v23  ;;  %v2202_v22 = vmul.f32 %v9713_v57, %v17263_v3  ;;  %v17267_v57 = vld [vmem:[#allocation33_spill] sm:$0xff] }
 0x37e   : > { %v2098_v50 = vpop.xlane.xlu0 %2097  ;;  %v8816_v7 = vpack.c.bf16 %v1233_v45, %v1231_v62  ;;  %v8818_v14 = vpack.c.bf16 %v1232_v21, %v1230_v53  ;;  %9724 = vrcp.f32 %v1126_v28 }
 0x37f   : > { %v9715_v13 = vpop.eup %9714 }
 0x380   : > { %v1129_v46 = vpop.xlane.xlu1 %1128  ;;  %8817 = vmatprep.subr.bf16.mxu1 %v8816_v7  ;;  %v2205_v1 = vmul.f32 %v9715_v13, %v12209_v59  ;;  %v2204_v40 = vmul.f32 %v9715_v13, %v12207_v17  ;;  %v9717_v5 = vpop.eup %9716 }
 0x381   : > { %9726 = vrcp.f32 %v1129_v46  ;;  %8819 = vmatpush1.bf16.xpose.msra.mxu1 %v8818_v14  ;;  %v1235_v38 = vmul.f32 %v9717_v5, %v17264_v11  ;;  %v1234_v59 = vmul.f32 %v9717_v5, %v17265_v44 }
 0x382   : > { %v1132_v0 = vpop.xlane.xlu0 %1131  ;;  %v8880_v26 = vpack.c.bf16 %v2205_v1, %v2203_v48  ;;  %v8882_v35 = vpack.c.bf16 %v2204_v40, %v2202_v22  ;;  %9728 = vrcp.f32 %v2098_v50  ;;  %v17268_v48 = vld [vmem:[#allocation58_spill] sm:$0xff]  ;;  %v17269_v22 = vld [vmem:[#allocation35_spill] sm:$0xff] }
 0x383   : > { %v9719_v47 = vpop.eup %9718 }
 0x384   : > { %v2101_v39 = vpop.xlane.xlu1 %2100  ;;  %8881 = vmatprep.subr.bf16.mxu0 %v8880_v26  ;;  %v1237_v28 = vmul.f32 %v9719_v47, %v12225_v20  ;;  %v1236_v10 = vmul.f32 %v9719_v47, %v12223_v34  ;;  %v9721_v55 = vpop.eup %9720 }
 0x385   : > { %9730 = vrcp.f32 %v2101_v39  ;;  %8883 = vmatpush1.bf16.xpose.msra.mxu0 %v8882_v35  ;;  %v2207_v53 = vmul.f32 %v9721_v55, %v17266_v61  ;;  %v2206_v20 = vmul.f32 %v9721_v55, %v17267_v57  ;;  %v17270_v39 = vld [vmem:[#allocation62_spill] sm:$0xff] }
 0x386   : > { %v2104_v17 = vpop.xlane.xlu0 %2103  ;;  %v8820_v15 = vpack.c.bf16 %v1237_v28, %v1235_v38  ;;  %v8822_v43 = vpack.c.bf16 %v1236_v10, %v1234_v59  ;;  %9732 = vrcp.f32 %v1132_v0  ;;  %v17271_v28 = vld [vmem:[#allocation60_spill] sm:$0xff] }
 0x387   : > { %v9723_v62 = vpop.eup %9722 }
 0x388   : > { %v1135_v45 = vpop.xlane.xlu1 %1134  ;;  %8821 = vmatprep.subr.bf16.mxu1 %v8820_v15  ;;  %v2209_v21 = vmul.f32 %v9723_v62, %v12241_v6  ;;  %v2208_v50 = vmul.f32 %v9723_v62, %v12239_v56  ;;  %v9725_v7 = vpop.eup %9724 }
 0x389   : > { %9734 = vrcp.f32 %v1135_v45  ;;  %8823 = vmatpush1.bf16.xpose.msra.mxu1 %v8822_v43  ;;  %v1239_v1 = vmul.f32 %v9725_v7, %v17268_v48  ;;  %v1238_v6 = vmul.f32 %v9725_v7, %v17269_v22  ;;  %v17272_v43 = vld [vmem:[#allocation36_spill] sm:$0xff] }
 0x38a   : > { %v1138_v34 = vpop.xlane.xlu0 %1137  ;;  %v8884_v14 = vpack.c.bf16 %v2209_v21, %v2207_v53  ;;  %v8886_v13 = vpack.c.bf16 %v2208_v50, %v2206_v20  ;;  %9736 = vrcp.f32 %v2104_v17  ;;  %v345_v21 = vld [vmem:[%s11383_s14 + $0x28] sm:$0xff] }
 0x38b   : > { %v9727_v46 = vpop.eup %9726 }
 0x38c   : > { %v2107_v23 = vpop.xlane.xlu1 %2106  ;;  %8885 = vmatprep.subr.bf16.mxu0 %v8884_v14  ;;  %v1241_v3 = vmul.f32 %v9727_v46, %v12257_v63  ;;  %v1240_v40 = vmul.f32 %v9727_v46, %v12255_v52  ;;  %v9729_v5 = vpop.eup %9728 }
 0x38d   : > { %9738 = vrcp.f32 %v2107_v23  ;;  %8887 = vmatpush1.bf16.xpose.msra.mxu0 %v8886_v13  ;;  %v2211_v11 = vmul.f32 %v9729_v5, %v17270_v39  ;;  %v2210_v63 = vmul.f32 %v9729_v5, %v17271_v28  ;;  %v17274_v13 = vld [vmem:[#allocation67_spill] sm:$0xff]  ;;  %v17275_v23 = vld [vmem:[#allocation66_spill] sm:$0xff] }
 0x38e   : > { %v2110_v56 = vpop.xlane.xlu0 %2109  ;;  %v8824_v0 = vpack.c.bf16 %v1241_v3, %v1239_v1  ;;  %v8826_v26 = vpack.c.bf16 %v1240_v40, %v1238_v6  ;;  %9740 = vrcp.f32 %v1138_v34  ;;  %v361_v34 = vmul.f32 0.35355338, %v345_v21  ;;  %v17279_v39 = vld [vmem:[#allocation71_spill] sm:$0xff] }
 0x38f   : > { %v9731_v35 = vpop.eup %9730 }
 0x390   : > { %v1141_v47 = vpop.xlane.xlu1 %1140  ;;  %8825 = vmatprep.subr.bf16.mxu1 %v8824_v0  ;;  %v2213_v38 = vmul.f32 %v9731_v35, %v12273_v9  ;;  %v2212_v44 = vmul.f32 %v9731_v35, %v12271_v19  ;;  %v9733_v52 = vpop.eup %9732  ;;  %v17273_v9 = vld [vmem:[#allocation64_spill] sm:$0xff] }
 0x391   : > { %9742 = vrcp.f32 %v1141_v47  ;;  %8827 = vmatpush1.bf16.xpose.msra.mxu1 %v8826_v26  ;;  %v1243_v62 = vmul.f32 %v9733_v52, %v17272_v43  ;;  %v1242_v61 = vmul.f32 %v9733_v52, %v17273_v9  ;;  %v17277_v26 = vld [vmem:[#allocation38_spill] sm:$0xff] }
 0x392   : > { %v1144_v59 = vpop.xlane.xlu0 %1143  ;;  %v8888_v10 = vpack.c.bf16 %v2213_v38, %v2211_v11  ;;  %v8890_v55 = vpack.c.bf16 %v2212_v44, %v2210_v63  ;;  %9744 = vrcp.f32 %v2110_v56  ;;  %v17276_v56 = vld [vmem:[#allocation37_spill] sm:$0xff] }
 0x393   : > { %v9735_v17 = vpop.eup %9734 }
 0x394   : > { %v2113_v15 = vpop.xlane.xlu1 %2112  ;;  %8889 = vmatprep.subr.bf16.mxu0 %v8888_v10  ;;  %v1245_v45 = vmul.f32 %v9735_v17, %v12289_v12  ;;  %v1244_v53 = vmul.f32 %v9735_v17, %v12287_v51  ;;  %v9737_v19 = vpop.eup %9736  ;;  %v17281_v17 = vld [vmem:[#allocation69_spill] sm:$0xff] }
 0x395   : > { %9746 = vrcp.f32 %v2113_v15  ;;  %8891 = vmatpush1.bf16.xpose.msra.mxu0 %v8890_v55  ;;  %v2215_v46 = vmul.f32 %v9737_v19, %v17274_v13  ;;  %v2214_v48 = vmul.f32 %v9737_v19, %v17275_v23 }
 0x396   : > { %v2116_v57 = vpop.xlane.xlu0 %2115  ;;  %v8828_v20 = vpack.c.bf16 %v1245_v45, %v1243_v62  ;;  %v8830_v50 = vpack.c.bf16 %v1244_v53, %v1242_v61  ;;  %9748 = vrcp.f32 %v1144_v59  ;;  %v17280_v59 = vld [vmem:[#allocation70_spill] sm:$0xff]  ;;  %v347_v62 = vld [vmem:[%s11383_s14 + $0x38] sm:$0xff] }
 0x397   : > { %v9739_v7 = vpop.eup %9738  ;;  %v363_v19 = vmul.f32 0.35355338, %v347_v62  ;;  %v17289_v62 = vld [vmem:[#allocation77_spill] sm:$0xff] }
 0x398   : > { %v1147_v14 = vpop.xlane.xlu1 %1146  ;;  %8829 = vmatprep.subr.bf16.mxu1 %v8828_v20  ;;  %v2217_v12 = vmul.f32 %v9739_v7, %v12305_v25  ;;  %v2216_v51 = vmul.f32 %v9739_v7, %v12303_v60  ;;  %v9741_v1 = vpop.eup %9740  ;;  %v17278_v25 = vld [vmem:[#allocation68_spill] sm:$0xff]  ;;  %v17282_v20 = vld [vmem:[#allocation73_spill] sm:$0xff] }
 0x399   : > { %9750 = vrcp.f32 %v1147_v14  ;;  %8831 = vmatpush1.bf16.xpose.msra.mxu1 %v8830_v50  ;;  %v1247_v0 = vmul.f32 %v9741_v1, %v17276_v56  ;;  %v1246_v47 = vmul.f32 %v9741_v1, %v17278_v25  ;;  %v17283_v7 = vld [vmem:[#allocation72_spill] sm:$0xff] }
 0x39a   : > { %v1150_v3 = vpop.xlane.xlu0 %1149  ;;  %v8892_v22 = vpack.c.bf16 %v2217_v12, %v2215_v46  ;;  %v8894_v6 = vpack.c.bf16 %v2216_v51, %v2214_v48  ;;  %9752 = vrcp.f32 %v2116_v57 }
 0x39b   : > { %v9743_v40 = vpop.eup %9742  ;;  %2353 = vxpose.xlu0.b32.start.end [1/1] (short) %v361_v34, 128 }
 0x39c   : > { %v2119_v5 = vpop.xlane.xlu1 %2118  ;;  %8893 = vmatprep.subr.bf16.mxu0 %v8892_v22  ;;  %v1249_v35 = vmul.f32 %v9743_v40, %v17277_v26  ;;  %v1248_v60 = vmul.f32 %v9743_v40, %v17279_v39  ;;  %v9745_v11 = vpop.eup %9744 }
 0x39d   : > { %9754 = vrcp.f32 %v2119_v5  ;;  %8895 = vmatpush1.bf16.xpose.msra.mxu0 %v8894_v6  ;;  %v2219_v10 = vmul.f32 %v9745_v11, %v17280_v59  ;;  %v2218_v15 = vmul.f32 %v9745_v11, %v17281_v17 }
 0x39e   : > { %v2122_v38 = vpop.xlane.xlu0 %2121  ;;  %v8832_v28 = vpack.c.bf16 %v1249_v35, %v1247_v0  ;;  %v8834_v63 = vpack.c.bf16 %v1248_v60, %v1246_v47  ;;  %9756 = vrcp.f32 %v1150_v3  ;;  %v17285_v35 = vld [vmem:[#allocation43_spill] sm:$0xff] }
 0x39f   : > { %v9747_v44 = vpop.eup %9746 }
 0x3a0   : > { %v1153_v52 = vpop.xlane.xlu1 %1152  ;;  %8833 = vmatprep.subr.bf16.mxu1 %v8832_v28  ;;  %v2221_v55 = vmul.f32 %v9747_v44, %v12337_v49  ;;  %v2220_v43 = vmul.f32 %v9747_v44, %v12335_v36  ;;  %v9749_v45 = vpop.eup %9748  ;;  %v17287_v44 = vld [vmem:[#allocation75_spill] sm:$0xff] }
 0x3a1   : > { %9758 = vrcp.f32 %v1153_v52  ;;  %8835 = vmatpush1.bf16.xpose.msra.mxu1 %v8834_v63  ;;  %v1251_v50 = vmul.f32 %v9749_v45, %v17282_v20  ;;  %v1250_v34 = vmul.f32 %v9749_v45, %v17283_v7  ;;  %v17286_v63 = vld [vmem:[#allocation49_spill] sm:$0xff]  ;;  %v17288_v52 = vld [vmem:[#allocation47_spill] sm:$0xff] }
 0x3a2   : > { %v1156_v9 = vpop.xlane.xlu0 %1155  ;;  %v8896_v61 = vpack.c.bf16 %v2221_v55, %v2219_v10  ;;  %v8898_v53 = vpack.c.bf16 %v2220_v43, %v2218_v15  ;;  %9760 = vrcp.f32 %v2122_v38 }
 0x3a3   : > { %v9751_v21 = vpop.eup %9750 }
 0x3a4   : > { %v2125_v57 = vpop.xlane.xlu1 %2124  ;;  %8897 = vmatprep.subr.bf16.mxu0 %v8896_v61  ;;  %v1253_v49 = vmul.f32 %v9751_v21, %v12353_v4  ;;  %v1252_v36 = vmul.f32 %v9751_v21, %v12351_v18  ;;  %v9753_v14 = vpop.eup %9752  ;;  %v17284_v4 = vld [vmem:[#allocation74_spill] sm:$0xff]  ;;  %v17291_v61 = vld [vmem:[#allocation76_spill] sm:$0xff] }
 0x3a5   : > { %9762 = vrcp.f32 %v2125_v57  ;;  %8899 = vmatpush1.bf16.xpose.msra.mxu0 %v8898_v53  ;;  %v2223_v51 = vmul.f32 %v9753_v14, %v12346_v24  ;;  %v2222_v3 = vmul.f32 %v9753_v14, %v17284_v4  ;;  %v17292_v21 = vld [vmem:[#allocation80_spill] sm:$0xff] }
 0x3a6   : > { %v2128_v13 = vpop.xlane.xlu0 %2127  ;;  %v8836_v46 = vpack.c.bf16 %v1253_v49, %v1251_v50  ;;  %v8838_v12 = vpack.c.bf16 %v1252_v36, %v1250_v34  ;;  %9764 = vrcp.f32 %v1156_v9  ;;  %v17290_v9 = vld [vmem:[#allocation81_spill] sm:$0xff]  ;;  %v17293_v36 = vld [vmem:[#allocation79_spill] sm:$0xff] }
 0x3a7   : > { %v9755_v23 = vpop.eup %9754  ;;  %3325 = vxpose.xlu1.b32.start.end [1/1] (short) %v363_v19, 128 }
 0x3a8   : > { %v1159_v48 = vpop.xlane.xlu1 %1158  ;;  %8837 = vmatprep.subr.bf16.mxu1 %v8836_v46  ;;  %v2225_v1 = vmul.f32 %v9755_v23, %v12369_v31  ;;  %v2224_v22 = vmul.f32 %v9755_v23, %v12367_v42  ;;  %v9757_v18 = vpop.eup %9756  ;;  %v17294_v46 = vld [vmem:[#allocation78_spill] sm:$0xff] }
 0x3a9   : > { %9766 = vrcp.f32 %v1159_v48  ;;  %8839 = vmatpush1.bf16.xpose.msra.mxu1 %v8838_v12  ;;  %v1255_v26 = vmul.f32 %v9757_v18, %v12362_v54  ;;  %v1254_v31 = vmul.f32 %v9757_v18, %v17285_v35  ;;  %v17295_v18 = vld [vmem:[#allocation83_spill] sm:$0xff] }
 0x3aa   : > { %v1162_v6 = vpop.xlane.xlu0 %1161  ;;  %v8900_v40 = vpack.c.bf16 %v2225_v1, %v2223_v51  ;;  %v8902_v5 = vpack.c.bf16 %v2224_v22, %v2222_v3  ;;  %9768 = vrcp.f32 %v2128_v13 }
 0x3ab   : > { %v9759_v56 = vpop.eup %9758 }
 0x3ac   : > { %v2131_v0 = vpop.xlane.xlu1 %2130  ;;  %8901 = vmatprep.subr.bf16.mxu0 %v8900_v40  ;;  %v1257_v24 = vmul.f32 %v9759_v56, %v12385_v37  ;;  %v1256_v25 = vmul.f32 %v9759_v56, %v12383_v33  ;;  %v9761_v47 = vpop.eup %9760 }
 0x3ad   : > { %9770 = vrcp.f32 %v2131_v0  ;;  %8903 = vmatpush1.bf16.xpose.msra.mxu0 %v8902_v5  ;;  %v2227_v28 = vmul.f32 %v9761_v47, %v12378_v27  ;;  %v2226_v37 = vmul.f32 %v9761_v47, %v17287_v44  ;;  %v17296_v5 = vld [vmem:[#allocation82_spill] sm:$0xff] }
 0x3ae   : > { %v2134_v42 = vpop.xlane.xlu0 %2133  ;;  %v8840_v39 = vpack.c.bf16 %v1257_v24, %v1255_v26  ;;  %v8842_v60 = vpack.c.bf16 %v1256_v25, %v1254_v31  ;;  %9772 = vrcp.f32 %v1162_v6 }
 0x3af   : > { %v9763_v11 = vpop.eup %9762 }
 0x3b0   : > { %v1165_v38 = vpop.xlane.xlu1 %1164  ;;  %8841 = vmatprep.subr.bf16.mxu1 %v8840_v39  ;;  %v2229_v54 = vmul.f32 %v9763_v11, %v17286_v63  ;;  %v2228_v59 = vmul.f32 %v9763_v11, %v17288_v52  ;;  %v9765_v10 = vpop.eup %9764 }
 0x3b1   : > { %9774 = vrcp.f32 %v1165_v38  ;;  %8843 = vmatpush1.bf16.xpose.msra.mxu1 %v8842_v60  ;;  %v1259_v45 = vmul.f32 %v9765_v10, %v17289_v62  ;;  %v1258_v53 = vmul.f32 %v9765_v10, %v17291_v61 }
 0x3b2   : > { %v1168_v33 = vpop.xlane.xlu0 %1167  ;;  %v8904_v55 = vpack.c.bf16 %v2229_v54, %v2227_v28  ;;  %v8906_v17 = vpack.c.bf16 %v2228_v59, %v2226_v37  ;;  %9776 = vrcp.f32 %v2134_v42  ;;  %v17297_v28 = vld [vmem:[#allocation85_spill] sm:$0xff]  ;;  %v17298_v54 = vld [vmem:[#allocation63_spill] sm:$0xff] }
 0x3b3   : > { %v9767_v15 = vpop.eup %9766 }
 0x3b4   : > { %v2137_v43 = vpop.xlane.xlu1 %2136  ;;  %8905 = vmatprep.subr.bf16.mxu0 %v8904_v55  ;;  %v1261_v27 = vmul.f32 %v9767_v15, %v17290_v9  ;;  %v1260_v19 = vmul.f32 %v9767_v15, %v17292_v21  ;;  %v9769_v57 = vpop.eup %9768 }
 0x3b5   : > { %9778 = vrcp.f32 %v2137_v43  ;;  %8907 = vmatpush1.bf16.xpose.msra.mxu0 %v8906_v17  ;;  %v2231_v14 = vmul.f32 %v9769_v57, %v17293_v36  ;;  %v2230_v12 = vmul.f32 %v9769_v57, %v17294_v46  ;;  %v17302_v17 = vld [vmem:[#allocation89_spill] sm:$0xff]  ;;  %v17303_v43 = vld [vmem:[#allocation86_spill] sm:$0xff] }
 0x3b6   : > { %v2140_v20 = vpop.xlane.xlu0 %2139  ;;  %v8844_v50 = vpack.c.bf16 %v1261_v27, %v1259_v45  ;;  %v8846_v49 = vpack.c.bf16 %v1260_v19, %v1258_v53  ;;  %9780 = vrcp.f32 %v1168_v33  ;;  %v17301_v33 = vld [vmem:[#allocation59_spill] sm:$0xff]  ;;  %v17304_v45 = vld [vmem:[#allocation88_spill] sm:$0xff] }
 0x3b7   : > { %v9771_v7 = vpop.eup %9770  ;;  %v17305_v19 = vld [vmem:[#allocation87_spill] sm:$0xff] }
 0x3b8   : > { %v1171_v34 = vpop.xlane.xlu1 %1170  ;;  %8845 = vmatprep.subr.bf16.mxu1 %v8844_v50  ;;  %v2233_v13 = vmul.f32 %v9771_v7, %v12433_v29  ;;  %v2232_v23 = vmul.f32 %v9771_v7, %v12431_v41  ;;  %v9773_v48 = vpop.eup %9772 }
 0x3b9   : > { %9782 = vrcp.f32 %v1171_v34  ;;  %8847 = vmatpush1.bf16.xpose.msra.mxu1 %v8846_v49  ;;  %v1263_v6 = vmul.f32 %v9773_v48, %v17295_v18  ;;  %v1262_v29 = vmul.f32 %v9773_v48, %v17296_v5  ;;  %v17307_v49 = vld [vmem:[#allocation65_spill] sm:$0xff]  ;;  %v17308_v34 = vld [vmem:[#allocation94_spill] sm:$0xff]  ;;  %v17312_v18 = vld [vmem:[#allocation96_spill] sm:$0xff] }
 0x3ba   : > { %v1174_v51 = vpop.xlane.xlu0 %1173  ;;  %v8908_v1 = vpack.c.bf16 %v2233_v13, %v2231_v14  ;;  %v8910_v4 = vpack.c.bf16 %v2232_v23, %v2230_v12  ;;  %9784 = vrcp.f32 %v2140_v20  ;;  %v17306_v20 = vld [vmem:[#allocation95_spill] sm:$0xff]  ;;  %v2318_v23 = vld [vmem:[%s11391_s17 + $0x28] sm:$0xff]  ;;  %v17309_v48 = vld [vmem:[#allocation93_spill] sm:$0xff] }
 0x3bb   : > { %v9775_v3 = vpop.eup %9774 }
 0x3bc   : > { %v2143_v22 = vpop.xlane.xlu1 %2142  ;;  %8909 = vmatprep.subr.bf16.mxu0 %v8908_v1  ;;  %v1265_v40 = vmul.f32 %v9775_v3, %v12449_v2  ;;  %v1264_v56 = vmul.f32 %v9775_v3, %v12447_v30  ;;  %v9777_v0 = vpop.eup %9776  ;;  %v17310_v1 = vld [vmem:[#allocation97_spill] sm:$0xff]  ;;  %v17311_v3 = vld [vmem:[#allocation90_spill] sm:$0xff] }
 0x3bd   : > { %9786 = vrcp.f32 %v2143_v22  ;;  %8911 = vmatpush1.bf16.xpose.msra.mxu0 %v8910_v4  ;;  %v2235_v25 = vmul.f32 %v9777_v0, %v12442_v32  ;;  %v2234_v2 = vmul.f32 %v9777_v0, %v12437_v58  ;;  %v17299_v32 = vld [vmem:[#allocation84_spill] sm:$0xff]  ;;  %v2317_v0 = vld [vmem:[%s11391_s17 + $0x20] sm:$0xff] }
 0x3be   : > { %v8848_v41 = vpack.c.bf16 %v1265_v40, %v1263_v6  ;;  %v8850_v26 = vpack.c.bf16 %v1264_v56, %v1262_v29  ;;  %9788 = vrcp.f32 %v1174_v51  ;;  %v2146_v35 = vpop.xlane.xlu0 %2145  ;;  %v3290_v29 = vld [vmem:[%s11391_s17 + $0x38] sm:$0xff]  ;;  %v374_v56 = vld [vmem:[%s12518_s24] sm:$0xff] }
 0x3bf   : > { %v9779_v24 = vpop.eup %9778 }
 0x3c0   : > { %v1177_v31 = vpop.xlane.xlu1 %1176  ;;  %8849 = vmatprep.subr.bf16.mxu1 %v8848_v41  ;;  %v2237_v47 = vmul.f32 %v9779_v24, %v12465_v8  ;;  %v2236_v42 = vmul.f32 %v9779_v24, %v12461_v16  ;;  %v9781_v39 = vpop.eup %9780  ;;  %v17300_v8 = vld [vmem:[#allocation61_spill] sm:$0xff]  ;;  %v17313_v41 = vmov 0.0   ;;  %v3289_v24 = vld [vmem:[%s11391_s17 + $0x30] sm:$0xff] }
 0x3c1   : > { %9790 = vrcp.f32 %v1177_v31  ;;  %8851 = vmatpush1.bf16.xpose.msra.mxu1 %v8850_v26  ;;  %v1267_v63 = vmul.f32 %v9781_v39, %v17297_v28  ;;  %v1266_v37 = vmul.f32 %v9781_v39, %v17299_v32  ;;  %v1347_v26 = vld [vmem:[%s12518_s24 + $0x10] sm:$0xff] }
 0x3c2   : > { %v8912_v30 = vpack.c.bf16 %v2237_v47, %v2235_v25  ;;  %v8914_v60 = vpack.c.bf16 %v2236_v42, %v2234_v2  ;;  %9792 = vrcp.f32 %v2146_v35 }
 0x3c3   : > { %v9783_v11 = vpop.eup %9782 }
 0x3c4   : > { %v2149_v38 = vpop.xlane.xlu1 %2148  ;;  %8913 = vmatprep.subr.bf16.mxu0 %v8912_v30  ;;  %v1269_v44 = vmul.f32 %v9783_v11, %v17298_v54  ;;  %v1268_v52 = vmul.f32 %v9783_v11, %v17300_v8  ;;  %v9785_v58 = vpop.eup %9784 }
 0x3c5   : > { %9794 = vrcp.f32 %v2149_v38  ;;  %8915 = vmatpush1.bf16.xpose.msra.mxu0 %v8914_v60  ;;  %v2239_v55 = vmul.f32 %v9785_v58, %v17301_v33  ;;  %v2238_v62 = vmul.f32 %v9785_v58, %v17303_v43 }
 0x3c6   : > { %v8852_v16 = vpack.c.bf16 %v1269_v44, %v1267_v63  ;;  %v8854_v59 = vpack.c.bf16 %v1268_v52, %v1266_v37 }
 0x3c7   : > { %v9787_v10 = vpop.eup %9786 }
 0x3c8   : > { %8853 = vmatprep.subr.bf16.mxu1 %v8852_v16  ;;  %v2241_v15 = vmul.f32 %v9787_v10, %v17302_v17  ;;  %v2240_v9 = vmul.f32 %v9787_v10, %v17304_v45  ;;  %v9789_v27 = vpop.eup %9788 }
 0x3c9   : > { %8855 = vmatpush1.bf16.xpose.msra.mxu1 %v8854_v59  ;;  %v1271_v57 = vmul.f32 %v9789_v27, %v17305_v19  ;;  %v1270_v7 = vmul.f32 %v9789_v27, %v17307_v49 }
 0x3ca   : > { %v8916_v61 = vpack.c.bf16 %v2241_v15, %v2239_v55  ;;  %v8918_v53 = vpack.c.bf16 %v2240_v9, %v2238_v62 }
 0x3cb   : > { %v9791_v21 = vpop.eup %9790 }
 0x3cc   : > { %8917 = vmatprep.subr.bf16.mxu0 %v8916_v61  ;;  %v1273_v50 = vmul.f32 %v9791_v21, %v17306_v20  ;;  %v1272_v36 = vmul.f32 %v9791_v21, %v17308_v34  ;;  %v9793_v14 = vpop.eup %9792 }
 0x3cd   : > { %8919 = vmatpush1.bf16.xpose.msra.mxu0 %v8918_v53  ;;  %v2243_v51 = vmul.f32 %v9793_v14, %v17309_v48  ;;  %v2242_v22 = vmul.f32 %v9793_v14, %v17311_v3 }
 0x3ce   : > { %v8856_v13 = vpack.c.bf16 %v1273_v50, %v1271_v57  ;;  %v8858_v46 = vpack.c.bf16 %v1272_v36, %v1270_v7 }
 0x3cf   : > { %v9795_v12 = vpop.eup %9794 }
 0x3d0   : > { %8857 = vmatprep.subr.bf16.mxu1 %v8856_v13  ;;  %v2245_v4 = vmul.f32 %v9795_v12, %v17310_v1  ;;  %v2244_v6 = vmul.f32 %v9795_v12, %v17312_v18 }
 0x3d1   : > { %8859 = vmatpush1.bf16.xpose.msra.mxu1 %v8858_v46 }
 0x3d2   : > { %v8920_v40 = vpack.c.bf16 %v2245_v4, %v2243_v51  ;;  %v8922_v5 = vpack.c.bf16 %v2244_v6, %v2242_v22  ;;  %2481 = vmatprep.subr.mxu1 %v2318_v23 }
 0x3d4   : > { %8921 = vmatprep.subr.bf16.mxu0 %v8920_v40 }
 0x3d5   : > { %8923 = vmatpush1.bf16.xpose.msra.mxu0 %v8922_v5 }
 0x3d6   : > { %3453 = vmatprep.subr.mxu0 %v3290_v29 }
 0x3d8   : > { %1339 = vmatmul.mubr.f32.vlgmr.msra.gmra.mrb[64].mxu1 %v374_v56 }
 0x3d9   : > { %2482 = vmatpush1.msra.mxu1 %v2317_v0  ;;  %2545 = vmatprep.mubr.f32.mxu1 %v17313_v41 }
 0x3dc   : > { %2311 = vmatmul.mubr.f32.vlgmr.msra.gmra.mrb[64].mxu0 %v1347_v26 }
 0x3dd   : > { %3454 = vmatpush1.msra.mxu0 %v3289_v24  ;;  %3517 = vmatprep.mubr.f32.mxu0 %v17313_v41 }
 0x3de   : > { %v2337_v35 = vpop.trf.xlu0 }
 0x3df   : > { %8587 = vmatmul.mubr.msk.f32.vlgmr.msra.gmra.mrb[66].mxu1 %vm440_vm0, %v2337_v35 }
 0x3e0   : > { %2551 = vmatprep.mubr.f32.mxu1 %v17313_v41 }
 0x3e2   : > { %v2338_v31 = vpop.trf.xlu0 }
 0x3e3   : > { %8588 = vmatmul.mubr.msk.f32.gmra.mrb[68].mxu1 %vm440_vm0, %v2338_v31 }
 0x3e4   : > { %2557 = vmatprep.mubr.f32.mxu1 %v17313_v41 }
 0x3e6   : > { %v2339_v25 = vpop.trf.xlu0 }
 0x3e7   : > { %8589 = vmatmul.mubr.msk.f32.gmra.mrb[70].mxu1 %vm440_vm0, %v2339_v25 }
 0x3e8   : > { %2563 = vmatprep.mubr.f32.mxu1 %v17313_v41 }
 0x3ea   : > { %v3309_v47 = vpop.trf.xlu1  ;;  %v2340_v2 = vpop.trf.xlu0 }
 0x3eb   : > { %8619 = vmatmul.mubr.msk.f32.vlgmr.msra.gmra.mrb[66].mxu0 %vm440_vm0, %v3309_v47  ;;  %8590 = vmatmul.mubr.msk.f32.gmra.mrb[72].mxu1 %vm440_vm0, %v2340_v2 }
 0x3ec   : > { %3523 = vmatprep.mubr.f32.mxu0 %v17313_v41  ;;  %2569 = vmatprep.mubr.f32.mxu1 %v17313_v41 }
 0x3ee   : > { %v3310_v42 = vpop.trf.xlu1  ;;  %v2341_v39 = vpop.trf.xlu0 }
 0x3ef   : > { %8620 = vmatmul.mubr.msk.f32.gmra.mrb[68].mxu0 %vm440_vm0, %v3310_v42  ;;  %8591 = vmatmul.mubr.msk.f32.gmra.mrb[74].mxu1 %vm440_vm0, %v2341_v39 }
 0x3f0   : > { %3529 = vmatprep.mubr.f32.mxu0 %v17313_v41  ;;  %2575 = vmatprep.mubr.f32.mxu1 %v17313_v41 }
 0x3f2   : > { %v3311_v30 = vpop.trf.xlu1  ;;  %v2342_v60 = vpop.trf.xlu0 }
 0x3f3   : > { %8621 = vmatmul.mubr.msk.f32.gmra.mrb[70].mxu0 %vm440_vm0, %v3311_v30  ;;  %8592 = vmatmul.mubr.msk.f32.gmra.mrb[76].mxu1 %vm440_vm0, %v2342_v60 }
 0x3f4   : > { %3535 = vmatprep.mubr.f32.mxu0 %v17313_v41  ;;  %2581 = vmatprep.mubr.f32.mxu1 %v17313_v41 }
 0x3f6   : > { %v3312_v11 = vpop.trf.xlu1  ;;  %v2343_v38 = vpop.trf.xlu0 }
 0x3f7   : > { %8622 = vmatmul.mubr.msk.f32.gmra.mrb[72].mxu0 %vm440_vm0, %v3312_v11  ;;  %8593 = vmatmul.mubr.msk.f32.gmra.mrb[78].mxu1 %vm440_vm0, %v2343_v38 }
 0x3f8   : > { %3541 = vmatprep.mubr.f32.mxu0 %v17313_v41  ;;  %2587 = vmatprep.mubr.f32.mxu1 %v17313_v41 }
 0x3fa   : > { %v3313_v28 = vpop.trf.xlu1  ;;  %v2344_v63 = vpop.trf.xlu0 }
 0x3fb   : > { %8623 = vmatmul.mubr.msk.f32.gmra.mrb[74].mxu0 %vm440_vm0, %v3313_v28  ;;  %8594 = vmatmul.mubr.msk.f32.gmra.mrb[80].mxu1 %vm440_vm0, %v2344_v63 }
 0x3fc   : > { %3547 = vmatprep.mubr.f32.mxu0 %v17313_v41  ;;  %2593 = vmatprep.mubr.f32.mxu1 %v17313_v41 }
 0x3fe   : > { %v3314_v54 = vpop.trf.xlu1  ;;  %v2345_v44 = vpop.trf.xlu0 }
 0x3ff   : > { %8624 = vmatmul.mubr.msk.f32.gmra.mrb[76].mxu0 %vm440_vm0, %v3314_v54  ;;  %8595 = vmatmul.mubr.msk.f32.gmra.mrb[82].mxu1 %vm440_vm0, %v2345_v44 }
 0x400   : > { %3553 = vmatprep.mubr.f32.mxu0 %v17313_v41  ;;  %2599 = vmatprep.mubr.f32.mxu1 %v17313_v41 }
 0x402   : > { %v3315_v32 = vpop.trf.xlu1  ;;  %v2346_v37 = vpop.trf.xlu0 }
 0x403   : > { %8625 = vmatmul.mubr.msk.f32.gmra.mrb[78].mxu0 %vm440_vm0, %v3315_v32  ;;  %8596 = vmatmul.mubr.msk.f32.gmra.mrb[84].mxu1 %vm440_vm0, %v2346_v37 }
 0x404   : > { %3559 = vmatprep.mubr.f32.mxu0 %v17313_v41  ;;  %2605 = vmatprep.mubr.f32.mxu1 %v17313_v41 }
 0x406   : > { %v3316_v8 = vpop.trf.xlu1  ;;  %v2347_v52 = vpop.trf.xlu0 }
 0x407   : > { %8626 = vmatmul.mubr.msk.f32.gmra.mrb[80].mxu0 %vm440_vm0, %v3316_v8  ;;  %8597 = vmatmul.mubr.msk.f32.gmra.mrb[86].mxu1 %vm440_vm0, %v2347_v52 }
 0x408   : > { %3565 = vmatprep.mubr.f32.mxu0 %v17313_v41  ;;  %2611 = vmatprep.mubr.f32.mxu1 %v17313_v41 }
 0x40a   : > { %v3317_v58 = vpop.trf.xlu1  ;;  %v2348_v16 = vpop.trf.xlu0 }
 0x40b   : > { %8627 = vmatmul.mubr.msk.f32.gmra.mrb[82].mxu0 %vm440_vm0, %v3317_v58  ;;  %8598 = vmatmul.mubr.msk.f32.gmra.mrb[88].mxu1 %vm440_vm0, %v2348_v16 }
 0x40c   : > { %3571 = vmatprep.mubr.f32.mxu0 %v17313_v41  ;;  %2617 = vmatprep.mubr.f32.mxu1 %v17313_v41 }
 0x40e   : > { %v3318_v59 = vpop.trf.xlu1  ;;  %v2349_v10 = vpop.trf.xlu0 }
 0x40f   : > { %8628 = vmatmul.mubr.msk.f32.gmra.mrb[84].mxu0 %vm440_vm0, %v3318_v59  ;;  %8599 = vmatmul.mubr.msk.f32.gmra.mrb[90].mxu1 %vm440_vm0, %v2349_v10 }
 0x410   : > { %3577 = vmatprep.mubr.f32.mxu0 %v17313_v41  ;;  %2623 = vmatprep.mubr.f32.mxu1 %v17313_v41 }
 0x412   : > { %v3319_v33 = vpop.trf.xlu1  ;;  %v2350_v55 = vpop.trf.xlu0 }
 0x413   : > { %8629 = vmatmul.mubr.msk.f32.gmra.mrb[86].mxu0 %vm440_vm0, %v3319_v33  ;;  %8600 = vmatmul.mubr.msk.f32.gmra.mrb[92].mxu1 %vm440_vm0, %v2350_v55 }
 0x414   : > { %3583 = vmatprep.mubr.f32.mxu0 %v17313_v41  ;;  %2629 = vmatprep.mubr.f32.mxu1 %v17313_v41 }
 0x416   : > { %v3320_v17 = vpop.trf.xlu1  ;;  %v2351_v15 = vpop.trf.xlu0 }
 0x417   : > { %8630 = vmatmul.mubr.msk.f32.gmra.mrb[88].mxu0 %vm440_vm0, %v3320_v17  ;;  %8601 = vmatmul.mubr.msk.f32.gmra.mrb[94].mxu1 %vm440_vm0, %v2351_v15 }
 0x418   : > { %3589 = vmatprep.mubr.f32.mxu0 %v17313_v41  ;;  %2635 = vmatprep.mubr.f32.mxu1 %v17313_v41 }
 0x41a   : > { %v3321_v43 = vpop.trf.xlu1  ;;  %v2352_v62 = vpop.trf.xlu0 }
 0x41b   : > { %8631 = vmatmul.mubr.msk.f32.gmra.mrb[90].mxu0 %vm440_vm0, %v3321_v43  ;;  %8602 = vmatmul.mubr.msk.f32.gmra.mrb[96].mxu1 %vm440_vm0, %v2352_v62 }
 0x41c   : > { %3595 = vmatprep.mubr.f32.mxu0 %v17313_v41  ;;  %2641 = vmatprep.mubr.f32.mxu1 %v17313_v41 }
 0x41e   : > { %v3322_v45 = vpop.trf.xlu1  ;;  %v2369_v9 = vpop.trf.xlu0 }
 0x41f   : > { %8632 = vmatmul.mubr.msk.f32.gmra.mrb[92].mxu0 %vm440_vm0, %v3322_v45  ;;  %8603 = vmatmul.mubr.msk.f32.gmra.mrb[98].mxu1 %vm440_vm0, %v2369_v9 }
 0x420   : > { %3601 = vmatprep.mubr.f32.mxu0 %v17313_v41  ;;  %2647 = vmatprep.mubr.f32.mxu1 %v17313_v41 }
 0x422   : > { %v3323_v27 = vpop.trf.xlu1  ;;  %v2370_v61 = vpop.trf.xlu0 }
 0x423   : > { %8633 = vmatmul.mubr.msk.f32.gmra.mrb[94].mxu0 %vm440_vm0, %v3323_v27  ;;  %8604 = vmatmul.mubr.msk.f32.gmra.mrb[100].mxu1 %vm440_vm0, %v2370_v61 }
 0x424   : > { %3607 = vmatprep.mubr.f32.mxu0 %v17313_v41  ;;  %2653 = vmatprep.mubr.f32.mxu1 %v17313_v41 }
 0x426   : > { %v3324_v53 = vpop.trf.xlu1  ;;  %v2371_v21 = vpop.trf.xlu0 }
 0x427   : > { %8634 = vmatmul.mubr.msk.f32.gmra.mrb[96].mxu0 %vm440_vm0, %v3324_v53  ;;  %8605 = vmatmul.mubr.msk.f32.gmra.mrb[102].mxu1 %vm440_vm0, %v2371_v21 }
 0x428   : > { %3613 = vmatprep.mubr.f32.mxu0 %v17313_v41  ;;  %2659 = vmatprep.mubr.f32.mxu1 %v17313_v41 }
 0x42a   : > { %v3341_v19 = vpop.trf.xlu1  ;;  %v2372_v57 = vpop.trf.xlu0 }
 0x42b   : > { %8635 = vmatmul.mubr.msk.f32.gmra.mrb[98].mxu0 %vm440_vm0, %v3341_v19  ;;  %8606 = vmatmul.mubr.msk.f32.gmra.mrb[104].mxu1 %vm440_vm0, %v2372_v57 }
 0x42c   : > { %3619 = vmatprep.mubr.f32.mxu0 %v17313_v41  ;;  %2665 = vmatprep.mubr.f32.mxu1 %v17313_v41 }
 0x42e   : > { %v3342_v20 = vpop.trf.xlu1  ;;  %v2373_v50 = vpop.trf.xlu0 }
 0x42f   : > { %8636 = vmatmul.mubr.msk.f32.gmra.mrb[100].mxu0 %vm440_vm0, %v3342_v20  ;;  %8607 = vmatmul.mubr.msk.f32.gmra.mrb[106].mxu1 %vm440_vm0, %v2373_v50 }
 0x430   : > { %3625 = vmatprep.mubr.f32.mxu0 %v17313_v41  ;;  %2671 = vmatprep.mubr.f32.mxu1 %v17313_v41 }
 0x432   : > { %v3343_v49 = vpop.trf.xlu1  ;;  %v2374_v7 = vpop.trf.xlu0 }
 0x433   : > { %8637 = vmatmul.mubr.msk.f32.gmra.mrb[102].mxu0 %vm440_vm0, %v3343_v49  ;;  %8608 = vmatmul.mubr.msk.f32.gmra.mrb[108].mxu1 %vm440_vm0, %v2374_v7 }
 0x434   : > { %3631 = vmatprep.mubr.f32.mxu0 %v17313_v41  ;;  %2677 = vmatprep.mubr.f32.mxu1 %v17313_v41 }
 0x436   : > { %v3344_v34 = vpop.trf.xlu1  ;;  %v2375_v36 = vpop.trf.xlu0 }
 0x437   : > { %8638 = vmatmul.mubr.msk.f32.gmra.mrb[104].mxu0 %vm440_vm0, %v3344_v34  ;;  %8609 = vmatmul.mubr.msk.f32.gmra.mrb[110].mxu1 %vm440_vm0, %v2375_v36 }
 0x438   : > { %3637 = vmatprep.mubr.f32.mxu0 %v17313_v41  ;;  %2683 = vmatprep.mubr.f32.mxu1 %v17313_v41 }
 0x43a   : > { %v3345_v14 = vpop.trf.xlu1  ;;  %v2376_v13 = vpop.trf.xlu0 }
 0x43b   : > { %8639 = vmatmul.mubr.msk.f32.gmra.mrb[106].mxu0 %vm440_vm0, %v3345_v14  ;;  %8610 = vmatmul.mubr.msk.f32.gmra.mrb[112].mxu1 %vm440_vm0, %v2376_v13 }
 0x43c   : > { %3643 = vmatprep.mubr.f32.mxu0 %v17313_v41  ;;  %2689 = vmatprep.mubr.f32.mxu1 %v17313_v41 }
 0x43e   : > { %v3346_v46 = vpop.trf.xlu1  ;;  %v2377_v12 = vpop.trf.xlu0 }
 0x43f   : > { %8640 = vmatmul.mubr.msk.f32.gmra.mrb[108].mxu0 %vm440_vm0, %v3346_v46  ;;  %8611 = vmatmul.mubr.msk.f32.gmra.mrb[114].mxu1 %vm440_vm0, %v2377_v12 }
 0x440   : > { %3649 = vmatprep.mubr.f32.mxu0 %v17313_v41  ;;  %2695 = vmatprep.mubr.f32.mxu1 %v17313_v41 }
 0x442   : > { %v3347_v23 = vpop.trf.xlu1  ;;  %v2378_v48 = vpop.trf.xlu0 }
 0x443   : > { %8641 = vmatmul.mubr.msk.f32.gmra.mrb[110].mxu0 %vm440_vm0, %v3347_v23  ;;  %8612 = vmatmul.mubr.msk.f32.gmra.mrb[116].mxu1 %vm440_vm0, %v2378_v48 }
 0x444   : > { %3655 = vmatprep.mubr.f32.mxu0 %v17313_v41  ;;  %2701 = vmatprep.mubr.f32.mxu1 %v17313_v41 }
 0x446   : > { %v3348_v51 = vpop.trf.xlu1  ;;  %v2379_v1 = vpop.trf.xlu0 }
 0x447   : > { %8642 = vmatmul.mubr.msk.f32.gmra.mrb[112].mxu0 %vm440_vm0, %v3348_v51  ;;  %8613 = vmatmul.mubr.msk.f32.gmra.mrb[118].mxu1 %vm440_vm0, %v2379_v1 }
 0x448   : > { %3661 = vmatprep.mubr.f32.mxu0 %v17313_v41  ;;  %2707 = vmatprep.mubr.f32.mxu1 %v17313_v41 }
 0x44a   : > { %v3349_v4 = vpop.trf.xlu1  ;;  %v2380_v3 = vpop.trf.xlu0 }
 0x44b   : > { %8643 = vmatmul.mubr.msk.f32.gmra.mrb[114].mxu0 %vm440_vm0, %v3349_v4  ;;  %8614 = vmatmul.mubr.msk.f32.gmra.mrb[120].mxu1 %vm440_vm0, %v2380_v3 }
 0x44c   : > { %3667 = vmatprep.mubr.f32.mxu0 %v17313_v41  ;;  %2713 = vmatprep.mubr.f32.mxu1 %v17313_v41 }
 0x44e   : > { %v3350_v22 = vpop.trf.xlu1  ;;  %v2381_v18 = vpop.trf.xlu0 }
 0x44f   : > { %8644 = vmatmul.mubr.msk.f32.gmra.mrb[116].mxu0 %vm440_vm0, %v3350_v22  ;;  %8615 = vmatmul.mubr.msk.f32.gmra.mrb[122].mxu1 %vm440_vm0, %v2381_v18 }
 0x450   : > { %3673 = vmatprep.mubr.f32.mxu0 %v17313_v41  ;;  %2719 = vmatprep.mubr.f32.mxu1 %v17313_v41 }
 0x452   : > { %v3351_v6 = vpop.trf.xlu1  ;;  %v2382_v40 = vpop.trf.xlu0 }
 0x453   : > { %8645 = vmatmul.mubr.msk.f32.gmra.mrb[118].mxu0 %vm440_vm0, %v3351_v6  ;;  %8616 = vmatmul.mubr.msk.f32.gmra.mrb[124].mxu1 %vm440_vm0, %v2382_v40 }
 0x454   : > { %3679 = vmatprep.mubr.f32.mxu0 %v17313_v41  ;;  %2725 = vmatprep.mubr.f32.mxu1 %v17313_v41 }
 0x456   : > { %v3352_v5 = vpop.trf.xlu1  ;;  %v2383_v29 = vpop.trf.xlu0 }
 0x457   : > { %8646 = vmatmul.mubr.msk.f32.gmra.mrb[120].mxu0 %vm440_vm0, %v3352_v5  ;;  %8617 = vmatmul.mubr.msk.f32.gmra.mrb[126].mxu1 %vm440_vm0, %v2383_v29 }
 0x458   : > { %3685 = vmatprep.mubr.f32.mxu0 %v17313_v41  ;;  %2731 = vmatprep.mubr.f32.mxu1 %v17313_v41 }
 0x45a   : > { %v3353_v56 = vpop.trf.xlu1  ;;  %v2384_v0 = vpop.trf.xlu0 }
 0x45b   : > { %8647 = vmatmul.mubr.msk.f32.gmra.mrb[122].mxu0 %vm440_vm0, %v3353_v56  ;;  %8618 = vmatmul.mubr.msk.f32.gmra.mrb[128].mxu1 %vm440_vm0, %v2384_v0 }
 0x45c   : > { %3691 = vmatprep.mubr.f32.mxu0 %v17313_v41 }
 0x45e   : > { %v3354_v26 = vpop.trf.xlu1 }
 0x45f   : > { %8648 = vmatmul.mubr.msk.f32.gmra.mrb[124].mxu0 %vm440_vm0, %v3354_v26 }
 0x460   : > { %3697 = vmatprep.mubr.f32.mxu0 %v17313_v41 }
 0x462   : > { %v3355_v24 = vpop.trf.xlu1 }
 0x463   : > { %8649 = vmatmul.mubr.msk.f32.gmra.mrb[126].mxu0 %vm440_vm0, %v3355_v24 }
 0x464   : > { %3703 = vmatprep.mubr.f32.mxu0 %v17313_v41 }
 0x466   : > { %v3356_v35 = vpop.trf.xlu1 }
 0x467   : > { %8650 = vmatmul.mubr.msk.f32.gmra.mrb[128].mxu0 %vm440_vm0, %v3356_v35 }
 0x4ab   : > { %v1340_v31 = vpop.f32.mrb[64].mxu1 }
 0x4ac   : > { %v1342_v25 = vpop.f32.mrb[65].mxu1 }
 0x4af   : > { %v2312_v47 = vpop.f32.mrb[64].mxu0 }
 0x4b0   : > { %v12784_v2 = vpack.c.bf16 %v2312_v47, %v1340_v31  ;;  %v2314_v42 = vpop.f32.mrb[65].mxu0 }
 0x4b1   : > { %v12786_v39 = vpack.c.bf16 %v2314_v42, %v1342_v25 }
 0x4b2   : > { %17314 = vst [vmem:[#allocation92_spill] sm:$0xff] %v12784_v2  ;;  %v12788_v30 = vpop.f32.mrb[66].mxu1 }
 0x4b3   : > { %17315 = vst [vmem:[#allocation91_spill] sm:$0xff] %v12786_v39  ;;  %v12790_v60 = vpop.f32.mrb[67].mxu1 }
 0x4b4   : > { %v2738_v11 = vmax.f32 %v12788_v30, %v12790_v60 }
 0x4b6   : > { %2739 = vmax.xlane.f32.xlu0 %v2738_v11  ;;  %v12794_v38 = vpop.f32.mrb[68].mxu1 }
 0x4b7   : > { %v12796_v28 = vpop.f32.mrb[69].mxu1 }
 0x4b8   : > { %v2741_v63 = vmax.f32 %v12794_v38, %v12796_v28 }
 0x4ba   : > { %2742 = vmax.xlane.f32.xlu1 %v2741_v63  ;;  %v12800_v54 = vpop.f32.mrb[70].mxu1 }
 0x4bb   : > { %v12802_v44 = vpop.f32.mrb[71].mxu1 }
 0x4bc   : > { %v2744_v32 = vmax.f32 %v12800_v54, %v12802_v44 }
 0x4be   : > { %v12806_v37 = vpop.f32.mrb[66].mxu0  ;;  %v12808_v8 = vpop.f32.mrb[72].mxu1 }
 0x4bf   : > { %v12810_v52 = vpop.f32.mrb[67].mxu0  ;;  %v12812_v58 = vpop.f32.mrb[73].mxu1 }
 0x4c0   : > { %v3710_v16 = vmax.f32 %v12806_v37, %v12810_v52  ;;  %v2747_v59 = vmax.f32 %v12808_v8, %v12812_v58 }
 0x4c2   : > { %v12818_v10 = vpop.f32.mrb[68].mxu0  ;;  %3711 = vmax.xlane.f32.xlu0 %v3710_v16  ;;  %v12820_v33 = vpop.f32.mrb[74].mxu1 }
 0x4c3   : > { %v12822_v55 = vpop.f32.mrb[69].mxu0  ;;  %v12824_v17 = vpop.f32.mrb[75].mxu1 }
 0x4c4   : > { %v3713_v15 = vmax.f32 %v12818_v10, %v12822_v55  ;;  %v2750_v43 = vmax.f32 %v12820_v33, %v12824_v17 }
 0x4c6   : > { %v12830_v62 = vpop.f32.mrb[70].mxu0  ;;  %3714 = vmax.xlane.f32.xlu1 %v3713_v15  ;;  %2745 = vmax.xlane.f32.xlu0 %v2744_v32  ;;  %v12832_v45 = vpop.f32.mrb[76].mxu1 }
 0x4c7   : > { %v12834_v9 = vpop.f32.mrb[71].mxu0  ;;  %v12836_v27 = vpop.f32.mrb[77].mxu1 }
 0x4c8   : > { %v3716_v61 = vmax.f32 %v12830_v62, %v12834_v9  ;;  %v2753_v53 = vmax.f32 %v12832_v45, %v12836_v27 }
 0x4ca   : > { %v12842_v21 = vpop.f32.mrb[72].mxu0  ;;  %3717 = vmax.xlane.f32.xlu0 %v3716_v61  ;;  %2748 = vmax.xlane.f32.xlu1 %v2747_v59  ;;  %v12844_v19 = vpop.f32.mrb[78].mxu1 }
 0x4cb   : > { %v12846_v57 = vpop.f32.mrb[73].mxu0  ;;  %v12848_v20 = vpop.f32.mrb[79].mxu1 }
 0x4cc   : > { %v3719_v50 = vmax.f32 %v12842_v21, %v12846_v57  ;;  %v2756_v49 = vmax.f32 %v12844_v19, %v12848_v20 }
 0x4ce   : > { %v12854_v7 = vpop.f32.mrb[74].mxu0  ;;  %3720 = vmax.xlane.f32.xlu1 %v3719_v50  ;;  %2751 = vmax.xlane.f32.xlu0 %v2750_v43  ;;  %v12856_v34 = vpop.f32.mrb[80].mxu1 }
 0x4cf   : > { %v12858_v36 = vpop.f32.mrb[75].mxu0  ;;  %v12860_v14 = vpop.f32.mrb[81].mxu1 }
 0x4d0   : > { %v3722_v13 = vmax.f32 %v12854_v7, %v12858_v36  ;;  %v2759_v46 = vmax.f32 %v12856_v34, %v12860_v14 }
 0x4d2   : > { %v12866_v12 = vpop.f32.mrb[76].mxu0  ;;  %3723 = vmax.xlane.f32.xlu0 %v3722_v13  ;;  %2754 = vmax.xlane.f32.xlu1 %v2753_v53  ;;  %v12868_v23 = vpop.f32.mrb[82].mxu1 }
 0x4d3   : > { %v12870_v48 = vpop.f32.mrb[77].mxu0  ;;  %v12872_v51 = vpop.f32.mrb[83].mxu1 }
 0x4d4   : > { %v3725_v1 = vmax.f32 %v12866_v12, %v12870_v48  ;;  %v2762_v4 = vmax.f32 %v12868_v23, %v12872_v51 }
 0x4d6   : > { %v12878_v3 = vpop.f32.mrb[78].mxu0  ;;  %3726 = vmax.xlane.f32.xlu1 %v3725_v1  ;;  %2757 = vmax.xlane.f32.xlu0 %v2756_v49  ;;  %v12880_v22 = vpop.f32.mrb[84].mxu1 }
 0x4d7   : > { %v12882_v18 = vpop.f32.mrb[79].mxu0  ;;  %v12884_v6 = vpop.f32.mrb[85].mxu1 }
 0x4d8   : > { %v3728_v40 = vmax.f32 %v12878_v3, %v12882_v18  ;;  %v2765_v5 = vmax.f32 %v12880_v22, %v12884_v6 }
 0x4da   : > { %v12890_v29 = vpop.f32.mrb[80].mxu0  ;;  %3729 = vmax.xlane.f32.xlu0 %v3728_v40  ;;  %2760 = vmax.xlane.f32.xlu1 %v2759_v46  ;;  %v12892_v56 = vpop.f32.mrb[86].mxu1 }
 0x4db   : > { %v12894_v0 = vpop.f32.mrb[81].mxu0  ;;  %v12896_v26 = vpop.f32.mrb[87].mxu1 }
 0x4dc   : > { %v3731_v24 = vmax.f32 %v12890_v29, %v12894_v0  ;;  %v2768_v35 = vmax.f32 %v12892_v56, %v12896_v26 }
 0x4de   : > { %v12902_v31 = vpop.f32.mrb[82].mxu0  ;;  %3732 = vmax.xlane.f32.xlu1 %v3731_v24  ;;  %2763 = vmax.xlane.f32.xlu0 %v2762_v4  ;;  %v12904_v25 = vpop.f32.mrb[88].mxu1 }
 0x4df   : > { %v12906_v47 = vpop.f32.mrb[83].mxu0  ;;  %v12908_v42 = vpop.f32.mrb[89].mxu1 }
 0x4e0   : > { %v3734_v11 = vmax.f32 %v12902_v31, %v12906_v47  ;;  %v2771_v63 = vmax.f32 %v12904_v25, %v12908_v42 }
 0x4e2   : > { %v12914_v32 = vpop.f32.mrb[84].mxu0  ;;  %3735 = vmax.xlane.f32.xlu0 %v3734_v11  ;;  %2766 = vmax.xlane.f32.xlu1 %v2765_v5  ;;  %v12916_v16 = vpop.f32.mrb[90].mxu1 }
 0x4e3   : > { %v12918_v59 = vpop.f32.mrb[85].mxu0  ;;  %v12920_v15 = vpop.f32.mrb[91].mxu1 }
 0x4e4   : > { %v3737_v43 = vmax.f32 %v12914_v32, %v12918_v59  ;;  %v2774_v61 = vmax.f32 %v12916_v16, %v12920_v15 }
 0x4e6   : > { %v12926_v53 = vpop.f32.mrb[86].mxu0  ;;  %3738 = vmax.xlane.f32.xlu1 %v3737_v43  ;;  %2769 = vmax.xlane.f32.xlu0 %v2768_v35  ;;  %v12928_v50 = vpop.f32.mrb[92].mxu1 }
 0x4e7   : > { %17316 = vst [vmem:[#allocation19_spill] sm:$0xff] %v12928_v50  ;;  %v12930_v49 = vpop.f32.mrb[87].mxu0  ;;  %v12932_v13 = vpop.f32.mrb[93].mxu1 }
 0x4e8   : > { %17317 = vst [vmem:[#allocation18_spill] sm:$0xff] %v12932_v13  ;;  %v3740_v46 = vmax.f32 %v12926_v53, %v12930_v49  ;;  %v2777_v1 = vmax.f32 %v12928_v50, %v12932_v13 }
 0x4ea   : > { %v12938_v4 = vpop.f32.mrb[88].mxu0  ;;  %3741 = vmax.xlane.f32.xlu0 %v3740_v46  ;;  %2772 = vmax.xlane.f32.xlu1 %v2771_v63  ;;  %v12940_v40 = vpop.f32.mrb[94].mxu1 }
 0x4eb   : > { %17318 = vst [vmem:[#allocation41_spill] sm:$0xff] %v12940_v40  ;;  %v12942_v5 = vpop.f32.mrb[89].mxu0  ;;  %v12944_v24 = vpop.f32.mrb[95].mxu1 }
 0x4ec   : > { %17319 = vst [vmem:[#allocation17_spill] sm:$0xff] %v12944_v24  ;;  %v3743_v35 = vmax.f32 %v12938_v4, %v12942_v5  ;;  %v2780_v11 = vmax.f32 %v12940_v40, %v12944_v24 }
 0x4ee   : > { %v12950_v43 = vpop.f32.mrb[90].mxu0  ;;  %3744 = vmax.xlane.f32.xlu1 %v3743_v35  ;;  %2775 = vmax.xlane.f32.xlu0 %v2774_v61  ;;  %v12952_v2 = vpop.f32.mrb[96].mxu1 }
 0x4ef   : > { %17320 = vst [vmem:[#allocation40_spill] sm:$0xff] %v12950_v43  ;;  %17321 = vst [vmem:[#allocation39_spill] sm:$0xff] %v12952_v2  ;;  %v12954_v46 = vpop.f32.mrb[91].mxu0  ;;  %v12956_v63 = vpop.f32.mrb[97].mxu1 }
 0x4f0   : > { %17322 = vst [vmem:[#allocation23_spill] sm:$0xff] %v12954_v46  ;;  %17323 = vst [vmem:[#allocation20_spill] sm:$0xff] %v12956_v63  ;;  %v3746_v39 = vmax.f32 %v12950_v43, %v12954_v46  ;;  %v2783_v41 = vmax.f32 %v12952_v2, %v12956_v63 }
 0x4f2   : > { %v12962_v13 = vpop.f32.mrb[92].mxu0  ;;  %3747 = vmax.xlane.f32.xlu0 %v3746_v39  ;;  %2778 = vmax.xlane.f32.xlu1 %v2777_v1  ;;  %v12964_v24 = vpop.f32.mrb[98].mxu1 }
 0x4f3   : > { %17324 = vst [vmem:[#allocation22_spill] sm:$0xff] %v12962_v13  ;;  %17325 = vst [vmem:[#allocation21_spill] sm:$0xff] %v12964_v24  ;;  %v12966_v35 = vpop.f32.mrb[93].mxu0  ;;  %v12968_v61 = vpop.f32.mrb[99].mxu1 }
 0x4f4   : > { %17326 = vst [vmem:[#allocation46_spill] sm:$0xff] %v12966_v35  ;;  %17327 = vst [vmem:[#allocation42_spill] sm:$0xff] %v12968_v61  ;;  %v3749_v40 = vmax.f32 %v12962_v13, %v12966_v35  ;;  %v2786_v50 = vmax.f32 %v12964_v24, %v12968_v61 }
 0x4f6   : > { %v12974_v46 = vpop.f32.mrb[94].mxu0  ;;  %3750 = vmax.xlane.f32.xlu1 %v3749_v40  ;;  %2781 = vmax.xlane.f32.xlu0 %v2780_v11  ;;  %v12976_v63 = vpop.f32.mrb[100].mxu1 }
 0x4f7   : > { %17328 = vst [vmem:[#allocation45_spill] sm:$0xff] %v12974_v46  ;;  %17329 = vst [vmem:[#allocation44_spill] sm:$0xff] %v12976_v63  ;;  %v12978_v39 = vpop.f32.mrb[95].mxu0  ;;  %v12980_v1 = vpop.f32.mrb[101].mxu1 }
 0x4f8   : > { %17330 = vst [vmem:[#allocation27_spill] sm:$0xff] %v12978_v39  ;;  %17331 = vst [vmem:[#allocation24_spill] sm:$0xff] %v12980_v1  ;;  %v3752_v2 = vmax.f32 %v12974_v46, %v12978_v39  ;;  %v2789_v43 = vmax.f32 %v12976_v63, %v12980_v1 }
 0x4fa   : > { %v12986_v35 = vpop.f32.mrb[96].mxu0  ;;  %3753 = vmax.xlane.f32.xlu0 %v3752_v2  ;;  %2784 = vmax.xlane.f32.xlu1 %v2783_v41  ;;  %v12988_v61 = vpop.f32.mrb[102].mxu1 }
 0x4fb   : > { %17332 = vst [vmem:[#allocation26_spill] sm:$0xff] %v12986_v35  ;;  %17333 = vst [vmem:[#allocation25_spill] sm:$0xff] %v12988_v61  ;;  %v12990_v40 = vpop.f32.mrb[97].mxu0  ;;  %v12992_v11 = vpop.f32.mrb[103].mxu1 }
 0x4fc   : > { %17334 = vst [vmem:[#allocation48_spill] sm:$0xff] %v12990_v40  ;;  %17335 = vst [vmem:[#allocation51_spill] sm:$0xff] %v12992_v11  ;;  %v3755_v24 = vmax.f32 %v12986_v35, %v12990_v40  ;;  %v2792_v13 = vmax.f32 %v12988_v61, %v12992_v11 }
 0x4fe   : > { %v12998_v39 = vpop.f32.mrb[98].mxu0  ;;  %3756 = vmax.xlane.f32.xlu1 %v3755_v24  ;;  %2787 = vmax.xlane.f32.xlu0 %v2786_v50  ;;  %v13000_v1 = vpop.f32.mrb[104].mxu1 }
 0x4ff   : > { %17336 = vst [vmem:[#allocation50_spill] sm:$0xff] %v12998_v39  ;;  %17337 = vst [vmem:[#allocation30_spill] sm:$0xff] %v13000_v1  ;;  %v13002_v2 = vpop.f32.mrb[99].mxu0  ;;  %v13004_v41 = vpop.f32.mrb[105].mxu1 }
 0x500   : > { %17338 = vst [vmem:[#allocation28_spill] sm:$0xff] %v13002_v2  ;;  %17339 = vst [vmem:[#allocation29_spill] sm:$0xff] %v13004_v41  ;;  %v3758_v63 = vmax.f32 %v12998_v39, %v13002_v2  ;;  %v2795_v46 = vmax.f32 %v13000_v1, %v13004_v41 }
 0x502   : > { %v13010_v40 = vpop.f32.mrb[100].mxu0  ;;  %3759 = vmax.xlane.f32.xlu0 %v3758_v63  ;;  %2790 = vmax.xlane.f32.xlu1 %v2789_v43  ;;  %v13012_v11 = vpop.f32.mrb[106].mxu1 }
 0x503   : > { %17340 = vst [vmem:[#allocation53_spill] sm:$0xff] %v13010_v40  ;;  %17341 = vst [vmem:[#allocation52_spill] sm:$0xff] %v13012_v11  ;;  %v13014_v24 = vpop.f32.mrb[101].mxu0  ;;  %v13016_v50 = vpop.f32.mrb[107].mxu1 }
 0x504   : > { %17342 = vst [vmem:[#allocation32_spill] sm:$0xff] %v13014_v24  ;;  %17343 = vst [vmem:[#allocation31_spill] sm:$0xff] %v13016_v50  ;;  %v3761_v61 = vmax.f32 %v13010_v40, %v13014_v24  ;;  %v2798_v35 = vmax.f32 %v13012_v11, %v13016_v50 }
 0x506   : > { %v13022_v2 = vpop.f32.mrb[102].mxu0  ;;  %3762 = vmax.xlane.f32.xlu1 %v3761_v61  ;;  %2793 = vmax.xlane.f32.xlu0 %v2792_v13  ;;  %v13024_v41 = vpop.f32.mrb[108].mxu1 }
 0x507   : > { %17344 = vst [vmem:[#allocation55_spill] sm:$0xff] %v13022_v2  ;;  %17345 = vst [vmem:[#allocation54_spill] sm:$0xff] %v13024_v41  ;;  %v13026_v63 = vpop.f32.mrb[103].mxu0  ;;  %v13028_v43 = vpop.f32.mrb[109].mxu1 }
 0x508   : > { %17346 = vst [vmem:[#allocation57_spill] sm:$0xff] %v13026_v63  ;;  %17347 = vst [vmem:[#allocation56_spill] sm:$0xff] %v13028_v43  ;;  %v3764_v1 = vmax.f32 %v13022_v2, %v13026_v63  ;;  %v2801_v39 = vmax.f32 %v13024_v41, %v13028_v43 }
 0x50a   : > { %v13034_v24 = vpop.f32.mrb[104].mxu0  ;;  %3765 = vmax.xlane.f32.xlu0 %v3764_v1  ;;  %2796 = vmax.xlane.f32.xlu1 %v2795_v46  ;;  %v13036_v50 = vpop.f32.mrb[110].mxu1 }
 0x50b   : > { %17348 = vst [vmem:[#allocation34_spill] sm:$0xff] %v13034_v24  ;;  %17349 = vst [vmem:[#allocation33_spill] sm:$0xff] %v13036_v50  ;;  %v13038_v61 = vpop.f32.mrb[105].mxu0  ;;  %v13040_v13 = vpop.f32.mrb[111].mxu1 }
 0x50c   : > { %17350 = vst [vmem:[#allocation58_spill] sm:$0xff] %v13038_v61  ;;  %17351 = vst [vmem:[#allocation35_spill] sm:$0xff] %v13040_v13  ;;  %v3767_v11 = vmax.f32 %v13034_v24, %v13038_v61  ;;  %v2804_v40 = vmax.f32 %v13036_v50, %v13040_v13 }
 0x50e   : > { %v13046_v63 = vpop.f32.mrb[106].mxu0  ;;  %3768 = vmax.xlane.f32.xlu1 %v3767_v11  ;;  %2799 = vmax.xlane.f32.xlu0 %v2798_v35  ;;  %v13048_v43 = vpop.f32.mrb[112].mxu1 }
 0x50f   : > { %17352 = vst [vmem:[#allocation62_spill] sm:$0xff] %v13046_v63  ;;  %17353 = vst [vmem:[#allocation60_spill] sm:$0xff] %v13048_v43  ;;  %v13050_v1 = vpop.f32.mrb[107].mxu0  ;;  %v13052_v46 = vpop.f32.mrb[113].mxu1 }
 0x510   : > { %17354 = vst [vmem:[#allocation36_spill] sm:$0xff] %v13050_v1  ;;  %17355 = vst [vmem:[#allocation64_spill] sm:$0xff] %v13052_v46  ;;  %v3770_v41 = vmax.f32 %v13046_v63, %v13050_v1  ;;  %v2807_v2 = vmax.f32 %v13048_v43, %v13052_v46 }
 0x512   : > { %v13058_v61 = vpop.f32.mrb[108].mxu0  ;;  %3771 = vmax.xlane.f32.xlu0 %v3770_v41  ;;  %2802 = vmax.xlane.f32.xlu1 %v2801_v39  ;;  %v13060_v13 = vpop.f32.mrb[114].mxu1 }
 0x513   : > { %17356 = vst [vmem:[#allocation67_spill] sm:$0xff] %v13058_v61  ;;  %17357 = vst [vmem:[#allocation66_spill] sm:$0xff] %v13060_v13  ;;  %v13062_v11 = vpop.f32.mrb[109].mxu0  ;;  %v13064_v35 = vpop.f32.mrb[115].mxu1 }
 0x514   : > { %17358 = vst [vmem:[#allocation37_spill] sm:$0xff] %v13062_v11  ;;  %17359 = vst [vmem:[#allocation38_spill] sm:$0xff] %v13064_v35  ;;  %v3773_v50 = vmax.f32 %v13058_v61, %v13062_v11  ;;  %v2810_v24 = vmax.f32 %v13060_v13, %v13064_v35 }
 0x516   : > { %v13070_v1 = vpop.f32.mrb[110].mxu0  ;;  %3774 = vmax.xlane.f32.xlu1 %v3773_v50  ;;  %2805 = vmax.xlane.f32.xlu0 %v2804_v40  ;;  %v13072_v46 = vpop.f32.mrb[116].mxu1 }
 0x517   : > { %17360 = vst [vmem:[#allocation68_spill] sm:$0xff] %v13070_v1  ;;  %17361 = vst [vmem:[#allocation71_spill] sm:$0xff] %v13072_v46  ;;  %v13074_v41 = vpop.f32.mrb[111].mxu0  ;;  %v13076_v39 = vpop.f32.mrb[117].mxu1 }
 0x518   : > { %17362 = vst [vmem:[#allocation70_spill] sm:$0xff] %v13074_v41  ;;  %17363 = vst [vmem:[#allocation69_spill] sm:$0xff] %v13076_v39  ;;  %v3776_v43 = vmax.f32 %v13070_v1, %v13074_v41  ;;  %v2813_v63 = vmax.f32 %v13072_v46, %v13076_v39 }
 0x51a   : > { %v13082_v11 = vpop.f32.mrb[112].mxu0  ;;  %3777 = vmax.xlane.f32.xlu0 %v3776_v43  ;;  %2808 = vmax.xlane.f32.xlu1 %v2807_v2  ;;  %v13084_v35 = vpop.f32.mrb[118].mxu1 }
 0x51b   : > { %17364 = vst [vmem:[#allocation73_spill] sm:$0xff] %v13082_v11  ;;  %17365 = vst [vmem:[#allocation72_spill] sm:$0xff] %v13084_v35  ;;  %v13086_v50 = vpop.f32.mrb[113].mxu0  ;;  %v13088_v40 = vpop.f32.mrb[119].mxu1 }
 0x51c   : > { %17366 = vst [vmem:[#allocation74_spill] sm:$0xff] %v13086_v50  ;;  %17367 = vst [vmem:[#allocation43_spill] sm:$0xff] %v13088_v40  ;;  %v3779_v13 = vmax.f32 %v13082_v11, %v13086_v50  ;;  %v2816_v61 = vmax.f32 %v13084_v35, %v13088_v40 }
 0x51e   : > { %v13094_v41 = vpop.f32.mrb[114].mxu0  ;;  %3780 = vmax.xlane.f32.xlu1 %v3779_v13  ;;  %2811 = vmax.xlane.f32.xlu0 %v2810_v24  ;;  %v13096_v39 = vpop.f32.mrb[120].mxu1 }
 0x51f   : > { %17368 = vst [vmem:[#allocation49_spill] sm:$0xff] %v13094_v41  ;;  %17369 = vst [vmem:[#allocation75_spill] sm:$0xff] %v13096_v39  ;;  %v13098_v43 = vpop.f32.mrb[115].mxu0  ;;  %v13100_v2 = vpop.f32.mrb[121].mxu1 }
 0x520   : > { %17370 = vst [vmem:[#allocation47_spill] sm:$0xff] %v13098_v43  ;;  %17371 = vst [vmem:[#allocation77_spill] sm:$0xff] %v13100_v2  ;;  %v3782_v46 = vmax.f32 %v13094_v41, %v13098_v43  ;;  %v2819_v1 = vmax.f32 %v13096_v39, %v13100_v2 }
 0x522   : > { %v13106_v50 = vpop.f32.mrb[116].mxu0  ;;  %3783 = vmax.xlane.f32.xlu0 %v3782_v46  ;;  %2814 = vmax.xlane.f32.xlu1 %v2813_v63  ;;  %v13108_v40 = vpop.f32.mrb[122].mxu1 }
 0x523   : > { %17372 = vst [vmem:[#allocation81_spill] sm:$0xff] %v13106_v50  ;;  %17373 = vst [vmem:[#allocation76_spill] sm:$0xff] %v13108_v40  ;;  %v13110_v13 = vpop.f32.mrb[117].mxu0  ;;  %v13112_v24 = vpop.f32.mrb[123].mxu1 }
 0x524   : > { %17374 = vst [vmem:[#allocation80_spill] sm:$0xff] %v13110_v13  ;;  %17375 = vst [vmem:[#allocation79_spill] sm:$0xff] %v13112_v24  ;;  %v3785_v35 = vmax.f32 %v13106_v50, %v13110_v13  ;;  %v2822_v11 = vmax.f32 %v13108_v40, %v13112_v24 }
 0x526   : > { %v13118_v43 = vpop.f32.mrb[118].mxu0  ;;  %3786 = vmax.xlane.f32.xlu1 %v3785_v35  ;;  %2817 = vmax.xlane.f32.xlu0 %v2816_v61  ;;  %v13120_v2 = vpop.f32.mrb[124].mxu1 }
 0x527   : > { %17376 = vst [vmem:[#allocation78_spill] sm:$0xff] %v13118_v43  ;;  %17377 = vst [vmem:[#allocation83_spill] sm:$0xff] %v13120_v2  ;;  %v13122_v46 = vpop.f32.mrb[119].mxu0  ;;  %v13124_v63 = vpop.f32.mrb[125].mxu1 }
 0x528   : > { %17378 = vst [vmem:[#allocation82_spill] sm:$0xff] %v13122_v46  ;;  %17379 = vst [vmem:[#allocation85_spill] sm:$0xff] %v13124_v63  ;;  %v3788_v39 = vmax.f32 %v13118_v43, %v13122_v46  ;;  %v2825_v41 = vmax.f32 %v13120_v2, %v13124_v63 }
 0x52a   : > { %v13130_v13 = vpop.f32.mrb[120].mxu0  ;;  %3789 = vmax.xlane.f32.xlu0 %v3788_v39  ;;  %2820 = vmax.xlane.f32.xlu1 %v2819_v1  ;;  %v13132_v24 = vpop.f32.mrb[126].mxu1 }
 0x52b   : > { %17380 = vst [vmem:[#allocation63_spill] sm:$0xff] %v13132_v24  ;;  %v13134_v35 = vpop.f32.mrb[121].mxu0  ;;  %v13136_v61 = vpop.f32.mrb[127].mxu1 }
 0x52c   : > { %17381 = vst [vmem:[#allocation84_spill] sm:$0xff] %v13134_v35  ;;  %17382 = vst [vmem:[#allocation61_spill] sm:$0xff] %v13136_v61  ;;  %v3791_v40 = vmax.f32 %v13130_v13, %v13134_v35  ;;  %v2828_v50 = vmax.f32 %v13132_v24, %v13136_v61 }
 0x52e   : > { %v13142_v46 = vpop.f32.mrb[122].mxu0  ;;  %3792 = vmax.xlane.f32.xlu1 %v3791_v40  ;;  %2823 = vmax.xlane.f32.xlu0 %v2822_v11  ;;  %v13144_v63 = vpop.f32.mrb[128].mxu1 }
 0x52f   : > { %17383 = vst [vmem:[#allocation59_spill] sm:$0xff] %v13142_v46  ;;  %17384 = vst [vmem:[#allocation89_spill] sm:$0xff] %v13144_v63  ;;  %v13146_v39 = vpop.f32.mrb[123].mxu0  ;;  %v13148_v1 = vpop.f32.mrb[129].mxu1 }
 0x530   : > { %17385 = vst [vmem:[#allocation86_spill] sm:$0xff] %v13146_v39  ;;  %17386 = vst [vmem:[#allocation88_spill] sm:$0xff] %v13148_v1  ;;  %v3794_v2 = vmax.f32 %v13142_v46, %v13146_v39  ;;  %v2831_v43 = vmax.f32 %v13144_v63, %v13148_v1 }
 0x532   : > { %v13154_v35 = vpop.f32.mrb[124].mxu0  ;;  %3795 = vmax.xlane.f32.xlu0 %v3794_v2  ;;  %2826 = vmax.xlane.f32.xlu1 %v2825_v41 }
 0x533   : > { %17387 = vst [vmem:[#allocation87_spill] sm:$0xff] %v13154_v35  ;;  %v13156_v61 = vpop.f32.mrb[125].mxu0 }
 0x534   : > { %17388 = vst [vmem:[#allocation95_spill] sm:$0xff] %v13156_v61  ;;  %v3797_v11 = vmax.f32 %v13154_v35, %v13156_v61 }
 0x536   : > { %v13160_v40 = vpop.f32.mrb[126].mxu0  ;;  %3798 = vmax.xlane.f32.xlu1 %v3797_v11  ;;  %2829 = vmax.xlane.f32.xlu0 %v2828_v50 }
 0x537   : > { %17389 = vst [vmem:[#allocation65_spill] sm:$0xff] %v13160_v40  ;;  %v13162_v24 = vpop.f32.mrb[127].mxu0 }
 0x538   : > { %17390 = vst [vmem:[#allocation94_spill] sm:$0xff] %v13162_v24  ;;  %v3800_v39 = vmax.f32 %v13160_v40, %v13162_v24 }
 0x53a   : > { %v13166_v46 = vpop.f32.mrb[128].mxu0  ;;  %3801 = vmax.xlane.f32.xlu0 %v3800_v39  ;;  %2832 = vmax.xlane.f32.xlu1 %v2831_v43 }
 0x53b   : > { %17391 = vst [vmem:[#allocation93_spill] sm:$0xff] %v13166_v46  ;;  %v13168_v2 = vpop.f32.mrb[129].mxu0 }
 0x53c   : > { %17392 = vst [vmem:[#allocation97_spill] sm:$0xff] %v13168_v2  ;;  %v3803_v41 = vmax.f32 %v13166_v46, %v13168_v2 }
 0x53e   : > { %3804 = vmax.xlane.f32.xlu1 %v3803_v41 }
 0x543   : > { %v2740_v1 = vpop.xlane.xlu0 %2739 }
 0x544   : > { %v2834_v63 = vsub.f32 %v12788_v30, %v2740_v1  ;;  %v2835_v50 = vsub.f32 %v12790_v60, %v2740_v1 }
 0x546   : > { %v2898_v11 = vmul.f32 1.442695, %v2834_v63  ;;  %v2900_v61 = vmul.f32 1.442695, %v2835_v50 }
 0x547   : > { %v2743_v35 = vpop.xlane.xlu1 %2742 }
 0x548   : > { %9796 = vpow2.f32 %v2898_v11  ;;  %v2836_v24 = vsub.f32 %v12794_v38, %v2743_v35  ;;  %v2837_v39 = vsub.f32 %v12796_v28, %v2743_v35 }
 0x549   : > { %9798 = vpow2.f32 %v2900_v61 }
 0x54a   : > { %v2902_v43 = vmul.f32 1.442695, %v2836_v24  ;;  %v2904_v40 = vmul.f32 1.442695, %v2837_v39 }
 0x54c   : > { %9800 = vpow2.f32 %v2902_v43 }
 0x54d   : > { %9802 = vpow2.f32 %v2904_v40 }
 0x54f   : > { %v3712_v2 = vpop.xlane.xlu0 %3711 }
 0x550   : > { %v3806_v41 = vsub.f32 %v12806_v37, %v3712_v2  ;;  %v3807_v30 = vsub.f32 %v12810_v52, %v3712_v2 }
 0x552   : > { %v13178_v46 = vpop.eup %9796  ;;  %v3870_v60 = vmul.f32 1.442695, %v3806_v41  ;;  %v3872_v63 = vmul.f32 1.442695, %v3807_v30 }
 0x553   : > { %v13180_v1 = vpop.eup %9798  ;;  %v3715_v50 = vpop.xlane.xlu1 %3714 }
 0x554   : > { %v2746_v38 = vpop.xlane.xlu0 %2745  ;;  %9804 = vpow2.f32 %v3870_v60  ;;  %v3808_v28 = vsub.f32 %v12818_v10, %v3715_v50  ;;  %v3809_v24 = vsub.f32 %v12822_v55, %v3715_v50  ;;  %v3026_v35 = vadd.f32 %v13180_v1, %v13178_v46 }
 0x555   : > { %9806 = vpow2.f32 %v3872_v63  ;;  %v2838_v37 = vsub.f32 %v12800_v54, %v2746_v38  ;;  %v2839_v52 = vsub.f32 %v12802_v44, %v2746_v38 }
 0x556   : > { %v13188_v61 = vpop.eup %9800  ;;  %v3874_v40 = vmul.f32 1.442695, %v3808_v28  ;;  %v3876_v2 = vmul.f32 1.442695, %v3809_v24  ;;  %3027 = vadd.xlane.f32.xlu0 %v3026_v35 }
 0x557   : > { %v13190_v11 = vpop.eup %9802  ;;  %v2906_v39 = vmul.f32 1.442695, %v2838_v37  ;;  %v2908_v43 = vmul.f32 1.442695, %v2839_v52  ;;  %v2749_v10 = vpop.xlane.xlu1 %2748 }
 0x558   : > { %v3718_v41 = vpop.xlane.xlu0 %3717  ;;  %9808 = vpow2.f32 %v3874_v40  ;;  %v2840_v55 = vsub.f32 %v12808_v8, %v2749_v10  ;;  %v2841_v30 = vsub.f32 %v12812_v58, %v2749_v10  ;;  %v3029_v54 = vadd.f32 %v13190_v11, %v13188_v61 }
 0x559   : > { %9810 = vpow2.f32 %v3876_v2  ;;  %v3810_v44 = vsub.f32 %v12830_v62, %v3718_v41  ;;  %v3811_v60 = vsub.f32 %v12834_v9, %v3718_v41 }
 0x55a   : > { %9812 = vpow2.f32 %v2906_v39  ;;  %v2910_v63 = vmul.f32 1.442695, %v2840_v55  ;;  %v2912_v50 = vmul.f32 1.442695, %v2841_v30  ;;  %3030 = vadd.xlane.f32.xlu1 %v3029_v54 }
 0x55b   : > { %9814 = vpow2.f32 %v2908_v43  ;;  %v3878_v38 = vmul.f32 1.442695, %v3810_v44  ;;  %v3880_v28 = vmul.f32 1.442695, %v3811_v60  ;;  %v3721_v24 = vpop.xlane.xlu1 %3720 }
 0x55c   : > { %v2752_v35 = vpop.xlane.xlu0 %2751  ;;  %9816 = vpow2.f32 %v2910_v63  ;;  %v3812_v8 = vsub.f32 %v12842_v21, %v3721_v24  ;;  %v3813_v58 = vsub.f32 %v12846_v57, %v3721_v24 }
 0x55d   : > { %v2842_v37 = vsub.f32 %v12820_v33, %v2752_v35  ;;  %9818 = vpow2.f32 %v2912_v50  ;;  %v2843_v62 = vsub.f32 %v12824_v17, %v2752_v35 }
 0x55e   : > { %v13202_v9 = vpop.eup %9804  ;;  %9820 = vpow2.f32 %v3878_v38  ;;  %v3882_v52 = vmul.f32 1.442695, %v3812_v8  ;;  %v3884_v40 = vmul.f32 1.442695, %v3813_v58 }
 0x55f   : > { %v2914_v2 = vmul.f32 1.442695, %v2842_v37  ;;  %v13204_v39 = vpop.eup %9806  ;;  %9822 = vpow2.f32 %v3880_v28  ;;  %v2916_v43 = vmul.f32 1.442695, %v2843_v62  ;;  %v2755_v10 = vpop.xlane.xlu1 %2754 }
 0x560   : > { %v3724_v41 = vpop.xlane.xlu0 %3723  ;;  %9824 = vpow2.f32 %v3882_v52  ;;  %v2844_v21 = vsub.f32 %v12832_v45, %v2755_v10  ;;  %v2845_v33 = vsub.f32 %v12836_v27, %v2755_v10  ;;  %v3998_v55 = vadd.f32 %v13204_v39, %v13202_v9 }
 0x561   : > { %v3814_v57 = vsub.f32 %v12854_v7, %v3724_v41  ;;  %9826 = vpow2.f32 %v3884_v40  ;;  %v3815_v17 = vsub.f32 %v12858_v36, %v3724_v41 }
 0x562   : > { %v13212_v30 = vpop.eup %9808  ;;  %9828 = vpow2.f32 %v2914_v2  ;;  %v2918_v54 = vmul.f32 1.442695, %v2844_v21  ;;  %v2920_v44 = vmul.f32 1.442695, %v2845_v33  ;;  %3999 = vadd.xlane.f32.xlu0 %v3998_v55 }
 0x563   : > { %v3886_v60 = vmul.f32 1.442695, %v3814_v57  ;;  %v13214_v63 = vpop.eup %9810  ;;  %9830 = vpow2.f32 %v2916_v43  ;;  %v3888_v45 = vmul.f32 1.442695, %v3815_v17  ;;  %v3727_v27 = vpop.xlane.xlu1 %3726 }
 0x564   : > { %v2758_v50 = vpop.xlane.xlu0 %2757  ;;  %v13216_v7 = vpop.eup %9812  ;;  %9832 = vpow2.f32 %v2918_v54  ;;  %v3816_v36 = vsub.f32 %v12866_v12, %v3727_v27  ;;  %v3817_v38 = vsub.f32 %v12870_v48, %v3727_v27  ;;  %v4001_v8 = vadd.f32 %v13214_v63, %v13212_v30 }
 0x565   : > { %v2846_v28 = vsub.f32 %v12844_v19, %v2758_v50  ;;  %v13221_v24 = vpop.eup %9814  ;;  %9834 = vpow2.f32 %v2920_v44  ;;  %v2847_v35 = vsub.f32 %v12848_v20, %v2758_v50 }
 0x566   : > { %v13226_v58 = vpop.eup %9816  ;;  %9836 = vpow2.f32 %v3886_v60  ;;  %v3890_v37 = vmul.f32 1.442695, %v3816_v36  ;;  %v3892_v62 = vmul.f32 1.442695, %v3817_v38  ;;  %4002 = vadd.xlane.f32.xlu1 %v4001_v8  ;;  %v3032_v19 = vadd.f32 %v13221_v24, %v13216_v7 }
 0x567   : > { %v2922_v52 = vmul.f32 1.442695, %v2846_v28  ;;  %v13228_v40 = vpop.eup %9818  ;;  %9838 = vpow2.f32 %v3888_v45  ;;  %v2924_v12 = vmul.f32 1.442695, %v2847_v35  ;;  %v2761_v48 = vpop.xlane.xlu1 %2760 }
 0x568   : > { %v3730_v2 = vpop.xlane.xlu0 %3729  ;;  %v13232_v20 = vpop.eup %9820  ;;  %9840 = vpow2.f32 %v3890_v37  ;;  %v2848_v43 = vsub.f32 %v12856_v34, %v2761_v48  ;;  %v2849_v10 = vsub.f32 %v12860_v14, %v2761_v48  ;;  %3033 = vadd.xlane.f32.xlu0 %v3032_v19  ;;  %v3035_v57 = vadd.f32 %v13228_v40, %v13226_v58 }
 0x569   : > { %v3818_v41 = vsub.f32 %v12878_v3, %v3730_v2  ;;  %v13237_v21 = vpop.eup %9822  ;;  %9842 = vpow2.f32 %v3892_v62  ;;  %v3819_v33 = vsub.f32 %v12882_v18, %v3730_v2 }
 0x56a   : > { %v13242_v17 = vpop.eup %9824  ;;  %9844 = vpow2.f32 %v2922_v52  ;;  %v2926_v55 = vmul.f32 1.442695, %v2848_v43  ;;  %v2928_v54 = vmul.f32 1.442695, %v2849_v10  ;;  %3036 = vadd.xlane.f32.xlu1 %v3035_v57  ;;  %v4004_v3 = vadd.f32 %v13237_v21, %v13232_v20 }
 0x56b   : > { %v3894_v44 = vmul.f32 1.442695, %v3818_v41  ;;  %v13244_v34 = vpop.eup %9826  ;;  %9846 = vpow2.f32 %v2924_v12  ;;  %v3896_v14 = vmul.f32 1.442695, %v3819_v33  ;;  %v3733_v60 = vpop.xlane.xlu1 %3732 }
 0x56c   : > { %v2764_v45 = vpop.xlane.xlu0 %2763  ;;  %v13248_v18 = vpop.eup %9828  ;;  %9848 = vpow2.f32 %v2926_v55  ;;  %v3820_v27 = vsub.f32 %v12890_v29, %v3733_v60  ;;  %v3821_v50 = vsub.f32 %v12894_v0, %v3733_v60  ;;  %4005 = vadd.xlane.f32.xlu0 %v4004_v3  ;;  %v4007_v35 = vadd.f32 %v13244_v34, %v13242_v17 }
 0x56d   : > { %v2850_v36 = vsub.f32 %v12868_v23, %v2764_v45  ;;  %v13253_v38 = vpop.eup %9830  ;;  %9850 = vpow2.f32 %v2928_v54  ;;  %v2851_v28 = vsub.f32 %v12872_v51, %v2764_v45 }
 0x56e   : > { %v13258_v8 = vpop.eup %9832  ;;  %9852 = vpow2.f32 %v3894_v44  ;;  %v3898_v37 = vmul.f32 1.442695, %v3820_v27  ;;  %v3900_v62 = vmul.f32 1.442695, %v3821_v50  ;;  %4008 = vadd.xlane.f32.xlu1 %v4007_v35  ;;  %v3038_v23 = vadd.f32 %v13253_v38, %v13248_v18 }
 0x56f   : > { %v2930_v52 = vmul.f32 1.442695, %v2850_v36  ;;  %v13260_v29 = vpop.eup %9834  ;;  %9854 = vpow2.f32 %v3896_v14  ;;  %v2932_v0 = vmul.f32 1.442695, %v2851_v28  ;;  %v2767_v12 = vpop.xlane.xlu1 %2766 }
 0x570   : > { %v3736_v19 = vpop.xlane.xlu0 %3735  ;;  %v13264_v51 = vpop.eup %9836  ;;  %9856 = vpow2.f32 %v3898_v37  ;;  %v2852_v48 = vsub.f32 %v12880_v22, %v2767_v12  ;;  %v2853_v2 = vsub.f32 %v12884_v6, %v2767_v12  ;;  %3039 = vadd.xlane.f32.xlu0 %v3038_v23  ;;  %v3041_v33 = vadd.f32 %v13260_v29, %v13258_v8 }
 0x571   : > { %v3822_v43 = vsub.f32 %v12902_v31, %v3736_v19  ;;  %v13269_v10 = vpop.eup %9838  ;;  %9858 = vpow2.f32 %v3900_v62  ;;  %v3823_v41 = vsub.f32 %v12906_v47, %v3736_v19 }
 0x572   : > { %v13274_v57 = vpop.eup %9840  ;;  %9860 = vpow2.f32 %v2930_v52  ;;  %v2934_v55 = vmul.f32 1.442695, %v2852_v48  ;;  %v2936_v54 = vmul.f32 1.442695, %v2853_v2  ;;  %3042 = vadd.xlane.f32.xlu1 %v3041_v33  ;;  %v4010_v31 = vadd.f32 %v13269_v10, %v13264_v51 }
 0x573   : > { %v3902_v44 = vmul.f32 1.442695, %v3822_v43  ;;  %v13276_v22 = vpop.eup %9842  ;;  %9862 = vpow2.f32 %v2932_v0  ;;  %v3904_v6 = vmul.f32 1.442695, %v3823_v41  ;;  %v3739_v14 = vpop.xlane.xlu1 %3738 }
 0x574   : > { %v2770_v3 = vpop.xlane.xlu0 %2769  ;;  %v13280_v47 = vpop.eup %9844  ;;  %9864 = vpow2.f32 %v2934_v55  ;;  %v3824_v60 = vsub.f32 %v12914_v32, %v3739_v14  ;;  %v3825_v45 = vsub.f32 %v12918_v59, %v3739_v14  ;;  %4011 = vadd.xlane.f32.xlu0 %v4010_v31  ;;  %v4013_v28 = vadd.f32 %v13276_v22, %v13274_v57 }
 0x575   : > { %v2854_v27 = vsub.f32 %v12892_v56, %v2770_v3  ;;  %v13285_v50 = vpop.eup %9846  ;;  %9866 = vpow2.f32 %v2936_v54  ;;  %v2855_v36 = vsub.f32 %v12896_v26, %v2770_v3 }
 0x576   : > { %v13290_v35 = vpop.eup %9848  ;;  %9868 = vpow2.f32 %v3902_v44  ;;  %v3906_v37 = vmul.f32 1.442695, %v3824_v60  ;;  %v3908_v62 = vmul.f32 1.442695, %v3825_v45  ;;  %4014 = vadd.xlane.f32.xlu1 %v4013_v28  ;;  %v3044_v56 = vadd.f32 %v13285_v50, %v13280_v47 }
 0x577   : > { %v2938_v52 = vmul.f32 1.442695, %v2854_v27  ;;  %v13292_v32 = vpop.eup %9850  ;;  %9870 = vpow2.f32 %v3904_v6  ;;  %v2940_v59 = vmul.f32 1.442695, %v2855_v36  ;;  %v2773_v0 = vpop.xlane.xlu1 %2772 }
 0x578   : > { %v3742_v23 = vpop.xlane.xlu0 %3741  ;;  %v13296_v26 = vpop.eup %9852  ;;  %9872 = vpow2.f32 %v3906_v37  ;;  %v2856_v12 = vsub.f32 %v12904_v25, %v2773_v0  ;;  %v2857_v19 = vsub.f32 %v12908_v42, %v2773_v0  ;;  %3045 = vadd.xlane.f32.xlu0 %v3044_v56  ;;  %v3047_v41 = vadd.f32 %v13292_v32, %v13290_v35  ;;  %v17393_v0 = vld [vmem:[#allocation19_spill] sm:$0xff] }
 0x579   : > { %v3826_v48 = vsub.f32 %v12926_v53, %v3742_v23  ;;  %v13301_v2 = vpop.eup %9854  ;;  %9874 = vpow2.f32 %v3908_v62  ;;  %v3827_v43 = vsub.f32 %v12930_v49, %v3742_v23 }
 0x57a   : > { %v13306_v33 = vpop.eup %9856  ;;  %9876 = vpow2.f32 %v2938_v52  ;;  %v2942_v55 = vmul.f32 1.442695, %v2856_v12  ;;  %v2944_v54 = vmul.f32 1.442695, %v2857_v19  ;;  %3048 = vadd.xlane.f32.xlu1 %v3047_v41  ;;  %v4016_v53 = vadd.f32 %v13301_v2, %v13296_v26  ;;  %v17394_v12 = vld [vmem:[#allocation18_spill] sm:$0xff] }
 0x57b   : > { %v3910_v44 = vmul.f32 1.442695, %v3826_v48  ;;  %v13308_v25 = vpop.eup %9858  ;;  %9878 = vpow2.f32 %v2940_v59  ;;  %v3912_v42 = vmul.f32 1.442695, %v3827_v43  ;;  %v3745_v6 = vpop.xlane.xlu1 %3744  ;;  %v17395_v48 = vld [vmem:[#allocation40_spill] sm:$0xff] }
 0x57c   : > { %v2776_v31 = vpop.xlane.xlu0 %2775  ;;  %v13312_v49 = vpop.eup %9860  ;;  %9880 = vpow2.f32 %v2942_v55  ;;  %v3828_v14 = vsub.f32 %v12938_v4, %v3745_v6  ;;  %v3829_v3 = vsub.f32 %v12942_v5, %v3745_v6  ;;  %4017 = vadd.xlane.f32.xlu0 %v4016_v53  ;;  %v4019_v36 = vadd.f32 %v13308_v25, %v13306_v33  ;;  %v17396_v55 = vld [vmem:[#allocation23_spill] sm:$0xff] }
 0x57d   : > { %v2858_v60 = vsub.f32 %v12916_v16, %v2776_v31  ;;  %v13317_v45 = vpop.eup %9862  ;;  %9882 = vpow2.f32 %v2944_v54  ;;  %v2859_v27 = vsub.f32 %v12920_v15, %v2776_v31 }
 0x57e   : > { %v13322_v28 = vpop.eup %9864  ;;  %9884 = vpow2.f32 %v3910_v44  ;;  %v3914_v37 = vmul.f32 1.442695, %v3828_v14  ;;  %v3916_v62 = vmul.f32 1.442695, %v3829_v3  ;;  %4020 = vadd.xlane.f32.xlu1 %v4019_v36  ;;  %v3050_v16 = vadd.f32 %v13317_v45, %v13312_v49 }
 0x57f   : > { %v2946_v52 = vmul.f32 1.442695, %v2858_v60  ;;  %v13324_v4 = vpop.eup %9866  ;;  %9886 = vpow2.f32 %v3912_v42  ;;  %v2948_v5 = vmul.f32 1.442695, %v2859_v27  ;;  %v2779_v59 = vpop.xlane.xlu1 %2778 }
 0x580   : > { %v3748_v56 = vpop.xlane.xlu0 %3747  ;;  %v13328_v15 = vpop.eup %9868  ;;  %9888 = vpow2.f32 %v3914_v37  ;;  %v2860_v23 = vsub.f32 %v17393_v0, %v2779_v59  ;;  %v2861_v19 = vsub.f32 %v17394_v12, %v2779_v59  ;;  %3051 = vadd.xlane.f32.xlu0 %v3050_v16  ;;  %v3053_v44 = vadd.f32 %v13324_v4, %v13322_v28  ;;  %v17399_v59 = vld [vmem:[#allocation46_spill] sm:$0xff] }
 0x581   : > { %v3830_v43 = vsub.f32 %v17395_v48, %v3748_v56  ;;  %v13333_v41 = vpop.eup %9870  ;;  %9890 = vpow2.f32 %v3916_v62  ;;  %v3831_v54 = vsub.f32 %v17396_v55, %v3748_v56  ;;  %v17398_v62 = vld [vmem:[#allocation22_spill] sm:$0xff]  ;;  %v17400_v56 = vld [vmem:[#allocation41_spill] sm:$0xff] }
 0x582   : > { %v13338_v42 = vpop.eup %9872  ;;  %9892 = vpow2.f32 %v2946_v52  ;;  %v2950_v53 = vmul.f32 1.442695, %v2860_v23  ;;  %v2952_v6 = vmul.f32 1.442695, %v2861_v19  ;;  %3054 = vadd.xlane.f32.xlu1 %v3053_v44  ;;  %v4022_v60 = vadd.f32 %v13333_v41, %v13328_v15 }
 0x583   : > { %v3918_v31 = vmul.f32 1.442695, %v3830_v43  ;;  %v13340_v14 = vpop.eup %9874  ;;  %9894 = vpow2.f32 %v2948_v5  ;;  %v3920_v3 = vmul.f32 1.442695, %v3831_v54  ;;  %v3751_v27 = vpop.xlane.xlu1 %3750  ;;  %v17402_v5 = vld [vmem:[#allocation17_spill] sm:$0xff] }
 0x584   : > { %v2782_v36 = vpop.xlane.xlu0 %2781  ;;  %v13344_v37 = vpop.eup %9876  ;;  %9896 = vpow2.f32 %v2950_v53  ;;  %v3832_v16 = vsub.f32 %v17398_v62, %v3751_v27  ;;  %v3833_v52 = vsub.f32 %v17399_v59, %v3751_v27  ;;  %4023 = vadd.xlane.f32.xlu0 %v4022_v60  ;;  %v4025_v19 = vadd.f32 %v13340_v14, %v13338_v42  ;;  %v17406_v62 = vld [vmem:[#allocation39_spill] sm:$0xff] }
 0x585   : > { %17397 = vst [vmem:[#allocation90_spill] sm:$0xff] %v13344_v37  ;;  %v2862_v0 = vsub.f32 %v17400_v56, %v2782_v36  ;;  %v13349_v23 = vpop.eup %9878  ;;  %9898 = vpow2.f32 %v2952_v6  ;;  %v2863_v12 = vsub.f32 %v17402_v5, %v2782_v36  ;;  %v17407_v56 = vld [vmem:[#allocation20_spill] sm:$0xff] }
 0x586   : > { %17401 = vst [vmem:[#allocation96_spill] sm:$0xff] %v13349_v23  ;;  %v13354_v48 = vpop.eup %9880  ;;  %9900 = vpow2.f32 %v3918_v31  ;;  %v3922_v43 = vmul.f32 1.442695, %v3832_v16  ;;  %v3924_v55 = vmul.f32 1.442695, %v3833_v52  ;;  %4026 = vadd.xlane.f32.xlu1 %v4025_v19  ;;  %v3056_v6 = vadd.f32 %v13349_v23, %v13344_v37  ;;  %v17408_v16 = vld [vmem:[#allocation45_spill] sm:$0xff] }
 0x587   : > { %17403 = vst [vmem:[#allocation19_spill] sm:$0xff] %v13354_v48  ;;  %v2954_v54 = vmul.f32 1.442695, %v2862_v0  ;;  %v13356_v44 = vpop.eup %9882  ;;  %9902 = vpow2.f32 %v3920_v3  ;;  %v2956_v53 = vmul.f32 1.442695, %v2863_v12  ;;  %v2785_v60 = vpop.xlane.xlu1 %2784  ;;  %v17410_v3 = vld [vmem:[#allocation27_spill] sm:$0xff] }
 0x588   : > { %17404 = vst [vmem:[#allocation18_spill] sm:$0xff] %v13356_v44  ;;  %v3754_v27 = vpop.xlane.xlu0 %3753  ;;  %v13360_v36 = vpop.eup %9884  ;;  %9904 = vpow2.f32 %v3922_v43  ;;  %v2864_v59 = vsub.f32 %v17406_v62, %v2785_v60  ;;  %v2865_v31 = vsub.f32 %v17407_v56, %v2785_v60  ;;  %3057 = vadd.xlane.f32.xlu0 %v3056_v6  ;;  %v3059_v12 = vadd.f32 %v13356_v44, %v13354_v48  ;;  %v17415_v48 = vld [vmem:[#allocation48_spill] sm:$0xff] }
 0x589   : > { %17405 = vst [vmem:[#allocation40_spill] sm:$0xff] %v13360_v36  ;;  %v3834_v52 = vsub.f32 %v17408_v16, %v3754_v27  ;;  %v13365_v0 = vpop.eup %9886  ;;  %9906 = vpow2.f32 %v3924_v55  ;;  %v3835_v5 = vsub.f32 %v17410_v3, %v3754_v27  ;;  %v17414_v16 = vld [vmem:[#allocation26_spill] sm:$0xff] }
 0x58a   : > { %17409 = vst [vmem:[#allocation23_spill] sm:$0xff] %v13365_v0  ;;  %v13370_v19 = vpop.eup %9888  ;;  %9908 = vpow2.f32 %v2954_v54  ;;  %v2958_v37 = vmul.f32 1.442695, %v2864_v59  ;;  %v2960_v43 = vmul.f32 1.442695, %v2865_v31  ;;  %3060 = vadd.xlane.f32.xlu1 %v3059_v12  ;;  %v4028_v55 = vadd.f32 %v13365_v0, %v13360_v36  ;;  %v17416_v59 = vld [vmem:[#allocation21_spill] sm:$0xff] }
 0x58b   : > { %17411 = vst [vmem:[#allocation22_spill] sm:$0xff] %v13370_v19  ;;  %v3926_v23 = vmul.f32 1.442695, %v3834_v52  ;;  %v13372_v62 = vpop.eup %9890  ;;  %9910 = vpow2.f32 %v2956_v53  ;;  %v3928_v60 = vmul.f32 1.442695, %v3835_v5  ;;  %v3757_v6 = vpop.xlane.xlu1 %3756  ;;  %v17418_v53 = vld [vmem:[#allocation42_spill] sm:$0xff] }
 0x58c   : > { %17412 = vst [vmem:[#allocation46_spill] sm:$0xff] %v13372_v62  ;;  %v2788_v56 = vpop.xlane.xlu0 %2787  ;;  %v13376_v27 = vpop.eup %9892  ;;  %9912 = vpow2.f32 %v2958_v37  ;;  %v3836_v3 = vsub.f32 %v17414_v16, %v3757_v6  ;;  %v3837_v54 = vsub.f32 %v17415_v48, %v3757_v6  ;;  %4029 = vadd.xlane.f32.xlu0 %v4028_v55  ;;  %v4031_v12 = vadd.f32 %v13372_v62, %v13370_v19  ;;  %v17423_v19 = vld [vmem:[#allocation24_spill] sm:$0xff] }
 0x58d   : > { %17413 = vst [vmem:[#allocation41_spill] sm:$0xff] %v13376_v27  ;;  %v2866_v31 = vsub.f32 %v17416_v59, %v2788_v56  ;;  %v13381_v52 = vpop.eup %9894  ;;  %9914 = vpow2.f32 %v2960_v43  ;;  %v2867_v5 = vsub.f32 %v17418_v53, %v2788_v56  ;;  %v17422_v59 = vld [vmem:[#allocation44_spill] sm:$0xff] }
 0x58e   : > { %17417 = vst [vmem:[#allocation17_spill] sm:$0xff] %v13381_v52  ;;  %v13386_v36 = vpop.eup %9896  ;;  %9916 = vpow2.f32 %v3926_v23  ;;  %v3930_v0 = vmul.f32 1.442695, %v3836_v3  ;;  %v3932_v37 = vmul.f32 1.442695, %v3837_v54  ;;  %4032 = vadd.xlane.f32.xlu1 %v4031_v12  ;;  %v3062_v43 = vadd.f32 %v13381_v52, %v13376_v27  ;;  %v17424_v3 = vld [vmem:[#allocation50_spill] sm:$0xff] }
 0x58f   : > { %17419 = vst [vmem:[#allocation39_spill] sm:$0xff] %v13386_v36  ;;  %v2962_v44 = vmul.f32 1.442695, %v2866_v31  ;;  %v13388_v16 = vpop.eup %9898  ;;  %9918 = vpow2.f32 %v3928_v60  ;;  %v2964_v48 = vmul.f32 1.442695, %v2867_v5  ;;  %v2791_v55 = vpop.xlane.xlu1 %2790  ;;  %v17426_v60 = vld [vmem:[#allocation28_spill] sm:$0xff] }
 0x590   : > { %17420 = vst [vmem:[#allocation20_spill] sm:$0xff] %v13388_v16  ;;  %v3760_v6 = vpop.xlane.xlu0 %3759  ;;  %v13392_v56 = vpop.eup %9900  ;;  %9920 = vpow2.f32 %v3930_v0  ;;  %v2868_v53 = vsub.f32 %v17422_v59, %v2791_v55  ;;  %v2869_v23 = vsub.f32 %v17423_v19, %v2791_v55  ;;  %3063 = vadd.xlane.f32.xlu0 %v3062_v43  ;;  %v3065_v12 = vadd.f32 %v13388_v16, %v13386_v36  ;;  %v17431_v36 = vld [vmem:[#allocation32_spill] sm:$0xff] }
 0x591   : > { %17421 = vst [vmem:[#allocation45_spill] sm:$0xff] %v13392_v56  ;;  %v3838_v54 = vsub.f32 %v17424_v3, %v3760_v6  ;;  %v13397_v31 = vpop.eup %9902  ;;  %9922 = vpow2.f32 %v3932_v37  ;;  %v3839_v5 = vsub.f32 %v17426_v60, %v3760_v6  ;;  %v17430_v3 = vld [vmem:[#allocation53_spill] sm:$0xff] }
 0x592   : > { %17425 = vst [vmem:[#allocation27_spill] sm:$0xff] %v13397_v31  ;;  %v13402_v27 = vpop.eup %9904  ;;  %9924 = vpow2.f32 %v2962_v44  ;;  %v2966_v52 = vmul.f32 1.442695, %v2868_v53  ;;  %v2968_v0 = vmul.f32 1.442695, %v2869_v23  ;;  %3066 = vadd.xlane.f32.xlu1 %v3065_v12  ;;  %v4034_v37 = vadd.f32 %v13397_v31, %v13392_v56  ;;  %v17432_v53 = vld [vmem:[#allocation25_spill] sm:$0xff] }
 0x593   : > { %17427 = vst [vmem:[#allocation26_spill] sm:$0xff] %v13402_v27  ;;  %v3934_v62 = vmul.f32 1.442695, %v3838_v54  ;;  %v13404_v59 = vpop.eup %9906  ;;  %9926 = vpow2.f32 %v2964_v48  ;;  %v3936_v19 = vmul.f32 1.442695, %v3839_v5  ;;  %v3763_v43 = vpop.xlane.xlu1 %3762  ;;  %v17434_v48 = vld [vmem:[#allocation51_spill] sm:$0xff] }
 0x594   : > { %17428 = vst [vmem:[#allocation48_spill] sm:$0xff] %v13404_v59  ;;  %v2794_v55 = vpop.xlane.xlu0 %2793  ;;  %v13408_v6 = vpop.eup %9908  ;;  %9928 = vpow2.f32 %v2966_v52  ;;  %v3840_v60 = vsub.f32 %v17430_v3, %v3763_v43  ;;  %v3841_v44 = vsub.f32 %v17431_v36, %v3763_v43  ;;  %4035 = vadd.xlane.f32.xlu0 %v4034_v37  ;;  %v4037_v12 = vadd.f32 %v13404_v59, %v13402_v27  ;;  %v17439_v27 = vld [vmem:[#allocation29_spill] sm:$0xff] }
 0x595   : > { %17429 = vst [vmem:[#allocation21_spill] sm:$0xff] %v13408_v6  ;;  %v2870_v23 = vsub.f32 %v17432_v53, %v2794_v55  ;;  %v13413_v54 = vpop.eup %9910  ;;  %9930 = vpow2.f32 %v2968_v0  ;;  %v2871_v5 = vsub.f32 %v17434_v48, %v2794_v55  ;;  %v17438_v53 = vld [vmem:[#allocation30_spill] sm:$0xff] }
 0x596   : > { %17433 = vst [vmem:[#allocation42_spill] sm:$0xff] %v13413_v54  ;;  %v13418_v56 = vpop.eup %9912  ;;  %9932 = vpow2.f32 %v3934_v62  ;;  %v3938_v31 = vmul.f32 1.442695, %v3840_v60  ;;  %v3940_v52 = vmul.f32 1.442695, %v3841_v44  ;;  %4038 = vadd.xlane.f32.xlu1 %v4037_v12  ;;  %v3068_v0 = vadd.f32 %v13413_v54, %v13408_v6  ;;  %v17440_v60 = vld [vmem:[#allocation55_spill] sm:$0xff] }
 0x597   : > { %17435 = vst [vmem:[#allocation44_spill] sm:$0xff] %v13418_v56  ;;  %v2970_v16 = vmul.f32 1.442695, %v2870_v23  ;;  %v13420_v3 = vpop.eup %9914  ;;  %9934 = vpow2.f32 %v3936_v19  ;;  %v2972_v36 = vmul.f32 1.442695, %v2871_v5  ;;  %v2797_v37 = vpop.xlane.xlu1 %2796  ;;  %v17442_v19 = vld [vmem:[#allocation57_spill] sm:$0xff] }
 0x598   : > { %17436 = vst [vmem:[#allocation24_spill] sm:$0xff] %v13420_v3  ;;  %v3766_v43 = vpop.xlane.xlu0 %3765  ;;  %v13424_v55 = vpop.eup %9916  ;;  %9936 = vpow2.f32 %v3938_v31  ;;  %v2872_v48 = vsub.f32 %v17438_v53, %v2797_v37  ;;  %v2873_v62 = vsub.f32 %v17439_v27, %v2797_v37  ;;  %3069 = vadd.xlane.f32.xlu0 %v3068_v0  ;;  %v3071_v12 = vadd.f32 %v13420_v3, %v13418_v56  ;;  %v17447_v56 = vld [vmem:[#allocation58_spill] sm:$0xff] }
 0x599   : > { %17437 = vst [vmem:[#allocation50_spill] sm:$0xff] %v13424_v55  ;;  %v3842_v44 = vsub.f32 %v17440_v60, %v3766_v43  ;;  %v13429_v23 = vpop.eup %9918  ;;  %9938 = vpow2.f32 %v3940_v52  ;;  %v3843_v5 = vsub.f32 %v17442_v19, %v3766_v43  ;;  %v17446_v60 = vld [vmem:[#allocation34_spill] sm:$0xff] }
 0x59a   : > { %17441 = vst [vmem:[#allocation28_spill] sm:$0xff] %v13429_v23  ;;  %v13434_v6 = vpop.eup %9920  ;;  %9940 = vpow2.f32 %v2970_v16  ;;  %v2974_v54 = vmul.f32 1.442695, %v2872_v48  ;;  %v2976_v31 = vmul.f32 1.442695, %v2873_v62  ;;  %3072 = vadd.xlane.f32.xlu1 %v3071_v12  ;;  %v4040_v52 = vadd.f32 %v13429_v23, %v13424_v55  ;;  %v17448_v48 = vld [vmem:[#allocation52_spill] sm:$0xff] }
 0x59b   : > { %17443 = vst [vmem:[#allocation53_spill] sm:$0xff] %v13434_v6  ;;  %v3942_v59 = vmul.f32 1.442695, %v3842_v44  ;;  %v13436_v53 = vpop.eup %9922  ;;  %9942 = vpow2.f32 %v2972_v36  ;;  %v3944_v27 = vmul.f32 1.442695, %v3843_v5  ;;  %v3769_v0 = vpop.xlane.xlu1 %3768  ;;  %v17450_v36 = vld [vmem:[#allocation31_spill] sm:$0xff] }
 0x59c   : > { %17444 = vst [vmem:[#allocation32_spill] sm:$0xff] %v13436_v53  ;;  %v2800_v37 = vpop.xlane.xlu0 %2799  ;;  %v13440_v43 = vpop.eup %9924  ;;  %9944 = vpow2.f32 %v2974_v54  ;;  %v3844_v19 = vsub.f32 %v17446_v60, %v3769_v0  ;;  %v3845_v16 = vsub.f32 %v17447_v56, %v3769_v0  ;;  %4041 = vadd.xlane.f32.xlu0 %v4040_v52  ;;  %v4043_v12 = vadd.f32 %v13436_v53, %v13434_v6  ;;  %v17455_v6 = vld [vmem:[#allocation56_spill] sm:$0xff] }
 0x59d   : > { %17445 = vst [vmem:[#allocation25_spill] sm:$0xff] %v13440_v43  ;;  %v2874_v62 = vsub.f32 %v17448_v48, %v2800_v37  ;;  %v13445_v44 = vpop.eup %9926  ;;  %9946 = vpow2.f32 %v2976_v31  ;;  %v2875_v5 = vsub.f32 %v17450_v36, %v2800_v37  ;;  %v17454_v48 = vld [vmem:[#allocation54_spill] sm:$0xff] }
 0x59e   : > { %17449 = vst [vmem:[#allocation51_spill] sm:$0xff] %v13445_v44  ;;  %v13450_v55 = vpop.eup %9928  ;;  %9948 = vpow2.f32 %v3942_v59  ;;  %v3946_v23 = vmul.f32 1.442695, %v3844_v19  ;;  %v3948_v54 = vmul.f32 1.442695, %v3845_v16  ;;  %4044 = vadd.xlane.f32.xlu1 %v4043_v12  ;;  %v3074_v31 = vadd.f32 %v13445_v44, %v13440_v43  ;;  %v17456_v19 = vld [vmem:[#allocation62_spill] sm:$0xff] }
 0x59f   : > { %17451 = vst [vmem:[#allocation30_spill] sm:$0xff] %v13450_v55  ;;  %v2978_v3 = vmul.f32 1.442695, %v2874_v62  ;;  %v13452_v60 = vpop.eup %9930  ;;  %9950 = vpow2.f32 %v3944_v27  ;;  %v2980_v56 = vmul.f32 1.442695, %v2875_v5  ;;  %v2803_v52 = vpop.xlane.xlu1 %2802  ;;  %v17458_v27 = vld [vmem:[#allocation36_spill] sm:$0xff] }
 0x5a0   : > { %17452 = vst [vmem:[#allocation29_spill] sm:$0xff] %v13452_v60  ;;  %v3772_v0 = vpop.xlane.xlu0 %3771  ;;  %v13456_v37 = vpop.eup %9932  ;;  %9952 = vpow2.f32 %v3946_v23  ;;  %v2876_v36 = vsub.f32 %v17454_v48, %v2803_v52  ;;  %v2877_v59 = vsub.f32 %v17455_v6, %v2803_v52  ;;  %3075 = vadd.xlane.f32.xlu0 %v3074_v31  ;;  %v3077_v12 = vadd.f32 %v13452_v60, %v13450_v55  ;;  %v17463_v55 = vld [vmem:[#allocation37_spill] sm:$0xff] }
 0x5a1   : > { %17453 = vst [vmem:[#allocation55_spill] sm:$0xff] %v13456_v37  ;;  %v3846_v16 = vsub.f32 %v17456_v19, %v3772_v0  ;;  %v13461_v62 = vpop.eup %9934  ;;  %9954 = vpow2.f32 %v3948_v54  ;;  %v3847_v5 = vsub.f32 %v17458_v27, %v3772_v0  ;;  %v17462_v19 = vld [vmem:[#allocation67_spill] sm:$0xff] }
 0x5a2   : > { %17457 = vst [vmem:[#allocation57_spill] sm:$0xff] %v13461_v62  ;;  %v13466_v43 = vpop.eup %9936  ;;  %9956 = vpow2.f32 %v2978_v3  ;;  %v2982_v44 = vmul.f32 1.442695, %v2876_v36  ;;  %v2984_v23 = vmul.f32 1.442695, %v2877_v59  ;;  %3078 = vadd.xlane.f32.xlu1 %v3077_v12  ;;  %v4046_v54 = vadd.f32 %v13461_v62, %v13456_v37  ;;  %v17464_v36 = vld [vmem:[#allocation33_spill] sm:$0xff] }
 0x5a3   : > { %17459 = vst [vmem:[#allocation34_spill] sm:$0xff] %v13466_v43  ;;  %v3950_v53 = vmul.f32 1.442695, %v3846_v16  ;;  %v13468_v48 = vpop.eup %9938  ;;  %9958 = vpow2.f32 %v2980_v56  ;;  %v3952_v6 = vmul.f32 1.442695, %v3847_v5  ;;  %v3775_v31 = vpop.xlane.xlu1 %3774  ;;  %v17466_v56 = vld [vmem:[#allocation35_spill] sm:$0xff] }
 0x5a4   : > { %17460 = vst [vmem:[#allocation58_spill] sm:$0xff] %v13468_v48  ;;  %v2806_v52 = vpop.xlane.xlu0 %2805  ;;  %v13472_v0 = vpop.eup %9940  ;;  %9960 = vpow2.f32 %v2982_v44  ;;  %v3848_v27 = vsub.f32 %v17462_v19, %v3775_v31  ;;  %v3849_v3 = vsub.f32 %v17463_v55, %v3775_v31  ;;  %4047 = vadd.xlane.f32.xlu0 %v4046_v54  ;;  %v4049_v12 = vadd.f32 %v13468_v48, %v13466_v43  ;;  %v17471_v43 = vld [vmem:[#allocation64_spill] sm:$0xff] }
 0x5a5   : > { %17461 = vst [vmem:[#allocation52_spill] sm:$0xff] %v13472_v0  ;;  %v2878_v59 = vsub.f32 %v17464_v36, %v2806_v52  ;;  %v13477_v16 = vpop.eup %9942  ;;  %9962 = vpow2.f32 %v2984_v23  ;;  %v2879_v5 = vsub.f32 %v17466_v56, %v2806_v52  ;;  %v17470_v36 = vld [vmem:[#allocation60_spill] sm:$0xff] }
 0x5a6   : > { %17465 = vst [vmem:[#allocation31_spill] sm:$0xff] %v13477_v16  ;;  %v13482_v37 = vpop.eup %9944  ;;  %9964 = vpow2.f32 %v3950_v53  ;;  %v3954_v62 = vmul.f32 1.442695, %v3848_v27  ;;  %v3956_v44 = vmul.f32 1.442695, %v3849_v3  ;;  %4050 = vadd.xlane.f32.xlu1 %v4049_v12  ;;  %v3080_v23 = vadd.f32 %v13477_v16, %v13472_v0  ;;  %v17472_v27 = vld [vmem:[#allocation68_spill] sm:$0xff] }
 0x5a7   : > { %17467 = vst [vmem:[#allocation54_spill] sm:$0xff] %v13482_v37  ;;  %v2986_v60 = vmul.f32 1.442695, %v2878_v59  ;;  %v13484_v19 = vpop.eup %9946  ;;  %9966 = vpow2.f32 %v3952_v6  ;;  %v2988_v55 = vmul.f32 1.442695, %v2879_v5  ;;  %v2809_v54 = vpop.xlane.xlu1 %2808  ;;  %v17474_v6 = vld [vmem:[#allocation70_spill] sm:$0xff] }
 0x5a8   : > { %17468 = vst [vmem:[#allocation56_spill] sm:$0xff] %v13484_v19  ;;  %v3778_v31 = vpop.xlane.xlu0 %3777  ;;  %v13488_v52 = vpop.eup %9948  ;;  %9968 = vpow2.f32 %v3954_v62  ;;  %v2880_v56 = vsub.f32 %v17470_v36, %v2809_v54  ;;  %v2881_v53 = vsub.f32 %v17471_v43, %v2809_v54  ;;  %3081 = vadd.xlane.f32.xlu0 %v3080_v23  ;;  %v3083_v12 = vadd.f32 %v13484_v19, %v13482_v37  ;;  %v17479_v37 = vld [vmem:[#allocation74_spill] sm:$0xff] }
 0x5a9   : > { %17469 = vst [vmem:[#allocation62_spill] sm:$0xff] %v13488_v52  ;;  %v3850_v3 = vsub.f32 %v17472_v27, %v3778_v31  ;;  %v13493_v59 = vpop.eup %9950  ;;  %9970 = vpow2.f32 %v3956_v44  ;;  %v3851_v5 = vsub.f32 %v17474_v6, %v3778_v31  ;;  %v17478_v27 = vld [vmem:[#allocation73_spill] sm:$0xff] }
 0x5aa   : > { %17473 = vst [vmem:[#allocation36_spill] sm:$0xff] %v13493_v59  ;;  %v13498_v0 = vpop.eup %9952  ;;  %9972 = vpow2.f32 %v2986_v60  ;;  %v2990_v16 = vmul.f32 1.442695, %v2880_v56  ;;  %v2992_v62 = vmul.f32 1.442695, %v2881_v53  ;;  %3084 = vadd.xlane.f32.xlu1 %v3083_v12  ;;  %v4052_v44 = vadd.f32 %v13493_v59, %v13488_v52  ;;  %v17480_v56 = vld [vmem:[#allocation66_spill] sm:$0xff] }
 0x5ab   : > { %17475 = vst [vmem:[#allocation67_spill] sm:$0xff] %v13498_v0  ;;  %v3958_v48 = vmul.f32 1.442695, %v3850_v3  ;;  %v13500_v36 = vpop.eup %9954  ;;  %9974 = vpow2.f32 %v2988_v55  ;;  %v3960_v43 = vmul.f32 1.442695, %v3851_v5  ;;  %v3781_v23 = vpop.xlane.xlu1 %3780  ;;  %v17482_v55 = vld [vmem:[#allocation38_spill] sm:$0xff] }
 0x5ac   : > { %17476 = vst [vmem:[#allocation37_spill] sm:$0xff] %v13500_v36  ;;  %v2812_v54 = vpop.xlane.xlu0 %2811  ;;  %v13504_v31 = vpop.eup %9956  ;;  %9976 = vpow2.f32 %v2990_v16  ;;  %v3852_v6 = vsub.f32 %v17478_v27, %v3781_v23  ;;  %v3853_v60 = vsub.f32 %v17479_v37, %v3781_v23  ;;  %4053 = vadd.xlane.f32.xlu0 %v4052_v44  ;;  %v4055_v12 = vadd.f32 %v13500_v36, %v13498_v0  ;;  %v17487_v0 = vld [vmem:[#allocation69_spill] sm:$0xff] }
 0x5ad   : > { %17477 = vst [vmem:[#allocation33_spill] sm:$0xff] %v13504_v31  ;;  %v2882_v53 = vsub.f32 %v17480_v56, %v2812_v54  ;;  %v13509_v3 = vpop.eup %9958  ;;  %9978 = vpow2.f32 %v2992_v62  ;;  %v2883_v5 = vsub.f32 %v17482_v55, %v2812_v54  ;;  %v17486_v56 = vld [vmem:[#allocation71_spill] sm:$0xff] }
 0x5ae   : > { %17481 = vst [vmem:[#allocation35_spill] sm:$0xff] %v13509_v3  ;;  %v13514_v52 = vpop.eup %9960  ;;  %9980 = vpow2.f32 %v3958_v48  ;;  %v3962_v59 = vmul.f32 1.442695, %v3852_v6  ;;  %v3964_v16 = vmul.f32 1.442695, %v3853_v60  ;;  %4056 = vadd.xlane.f32.xlu1 %v4055_v12  ;;  %v3086_v62 = vadd.f32 %v13509_v3, %v13504_v31  ;;  %v17488_v6 = vld [vmem:[#allocation49_spill] sm:$0xff] }
 0x5af   : > { %17483 = vst [vmem:[#allocation60_spill] sm:$0xff] %v13514_v52  ;;  %v2994_v19 = vmul.f32 1.442695, %v2882_v53  ;;  %v13516_v27 = vpop.eup %9962  ;;  %9982 = vpow2.f32 %v3960_v43  ;;  %v2996_v37 = vmul.f32 1.442695, %v2883_v5  ;;  %v2815_v44 = vpop.xlane.xlu1 %2814  ;;  %v17490_v43 = vld [vmem:[#allocation47_spill] sm:$0xff] }
 0x5b0   : > { %17484 = vst [vmem:[#allocation64_spill] sm:$0xff] %v13516_v27  ;;  %v3784_v23 = vpop.xlane.xlu0 %3783  ;;  %v13520_v54 = vpop.eup %9964  ;;  %9984 = vpow2.f32 %v3962_v59  ;;  %v2884_v55 = vsub.f32 %v17486_v56, %v2815_v44  ;;  %v2885_v48 = vsub.f32 %v17487_v0, %v2815_v44  ;;  %3087 = vadd.xlane.f32.xlu0 %v3086_v62  ;;  %v3089_v12 = vadd.f32 %v13516_v27, %v13514_v52  ;;  %v17495_v52 = vld [vmem:[#allocation80_spill] sm:$0xff] }
 0x5b1   : > { %17485 = vst [vmem:[#allocation68_spill] sm:$0xff] %v13520_v54  ;;  %v3854_v60 = vsub.f32 %v17488_v6, %v3784_v23  ;;  %v13525_v53 = vpop.eup %9966  ;;  %9986 = vpow2.f32 %v3964_v16  ;;  %v3855_v5 = vsub.f32 %v17490_v43, %v3784_v23  ;;  %v17494_v6 = vld [vmem:[#allocation81_spill] sm:$0xff] }
 0x5b2   : > { %17489 = vst [vmem:[#allocation70_spill] sm:$0xff] %v13525_v53  ;;  %v13530_v31 = vpop.eup %9968  ;;  %9988 = vpow2.f32 %v2994_v19  ;;  %v2998_v3 = vmul.f32 1.442695, %v2884_v55  ;;  %v3000_v59 = vmul.f32 1.442695, %v2885_v48  ;;  %3090 = vadd.xlane.f32.xlu1 %v3089_v12  ;;  %v4058_v16 = vadd.f32 %v13525_v53, %v13520_v54  ;;  %v17496_v55 = vld [vmem:[#allocation72_spill] sm:$0xff] }
 0x5b3   : > { %17491 = vst [vmem:[#allocation73_spill] sm:$0xff] %v13530_v31  ;;  %v3966_v36 = vmul.f32 1.442695, %v3854_v60  ;;  %v13532_v56 = vpop.eup %9970  ;;  %9990 = vpow2.f32 %v2996_v37  ;;  %v3968_v0 = vmul.f32 1.442695, %v3855_v5  ;;  %v3787_v62 = vpop.xlane.xlu1 %3786  ;;  %v17498_v37 = vld [vmem:[#allocation43_spill] sm:$0xff] }
 0x5b4   : > { %17492 = vst [vmem:[#allocation74_spill] sm:$0xff] %v13532_v56  ;;  %v2818_v44 = vpop.xlane.xlu0 %2817  ;;  %v13536_v23 = vpop.eup %9972  ;;  %9992 = vpow2.f32 %v2998_v3  ;;  %v3856_v43 = vsub.f32 %v17494_v6, %v3787_v62  ;;  %v3857_v19 = vsub.f32 %v17495_v52, %v3787_v62  ;;  %4059 = vadd.xlane.f32.xlu0 %v4058_v16  ;;  %v4061_v12 = vadd.f32 %v13532_v56, %v13530_v31  ;;  %v17502_v31 = vld [vmem:[#allocation77_spill] sm:$0xff] }
 0x5b5   : > { %17493 = vst [vmem:[#allocation66_spill] sm:$0xff] %v13536_v23  ;;  %v2886_v48 = vsub.f32 %v17496_v55, %v2818_v44  ;;  %v13541_v60 = vpop.eup %9974  ;;  %9994 = vpow2.f32 %v3000_v59  ;;  %v2887_v5 = vsub.f32 %v17498_v37, %v2818_v44  ;;  %v17501_v55 = vld [vmem:[#allocation75_spill] sm:$0xff] }
 0x5b6   : > { %17497 = vst [vmem:[#allocation38_spill] sm:$0xff] %v13541_v60  ;;  %v13546_v54 = vpop.eup %9976  ;;  %9996 = vpow2.f32 %v3966_v36  ;;  %v3970_v53 = vmul.f32 1.442695, %v3856_v43  ;;  %v3972_v3 = vmul.f32 1.442695, %v3857_v19  ;;  %4062 = vadd.xlane.f32.xlu1 %v4061_v12  ;;  %v3092_v59 = vadd.f32 %v13541_v60, %v13536_v23  ;;  %v17503_v43 = vld [vmem:[#allocation78_spill] sm:$0xff] }
 0x5b7   : > { %17499 = vst [vmem:[#allocation71_spill] sm:$0xff] %v13546_v54  ;;  %v3002_v27 = vmul.f32 1.442695, %v2886_v48  ;;  %v13548_v6 = vpop.eup %9978  ;;  %9998 = vpow2.f32 %v3968_v0  ;;  %v3004_v52 = vmul.f32 1.442695, %v2887_v5  ;;  %v2821_v16 = vpop.xlane.xlu1 %2820  ;;  %v17505_v0 = vld [vmem:[#allocation82_spill] sm:$0xff] }
 0x5b8   : > { %v3790_v62 = vpop.xlane.xlu0 %3789  ;;  %v13552_v44 = vpop.eup %9980  ;;  %10000 = vpow2.f32 %v3970_v53  ;;  %v2888_v37 = vsub.f32 %v17501_v55, %v2821_v16  ;;  %v2889_v36 = vsub.f32 %v17502_v31, %v2821_v16  ;;  %3093 = vadd.xlane.f32.xlu0 %v3092_v59  ;;  %v3095_v12 = vadd.f32 %v13548_v6, %v13546_v54 }
 0x5b9   : > { %17500 = vst [vmem:[#allocation69_spill] sm:$0xff] %v13552_v44  ;;  %v3858_v19 = vsub.f32 %v17503_v43, %v3790_v62  ;;  %v13557_v48 = vpop.eup %9982  ;;  %10002 = vpow2.f32 %v3972_v3  ;;  %v3859_v5 = vsub.f32 %v17505_v0, %v3790_v62  ;;  %v17509_v0 = vld [vmem:[#allocation84_spill] sm:$0xff] }
 0x5ba   : > { %17504 = vst [vmem:[#allocation49_spill] sm:$0xff] %v13557_v48  ;;  %v13562_v23 = vpop.eup %9984  ;;  %10004 = vpow2.f32 %v3002_v27  ;;  %v3006_v60 = vmul.f32 1.442695, %v2888_v37  ;;  %v3008_v53 = vmul.f32 1.442695, %v2889_v36  ;;  %3096 = vadd.xlane.f32.xlu1 %v3095_v12  ;;  %v4064_v3 = vadd.f32 %v13557_v48, %v13552_v44  ;;  %v17510_v37 = vld [vmem:[#allocation76_spill] sm:$0xff] }
 0x5bb   : > { %17506 = vst [vmem:[#allocation47_spill] sm:$0xff] %v13562_v23  ;;  %v3974_v56 = vmul.f32 1.442695, %v3858_v19  ;;  %v13564_v55 = vpop.eup %9986  ;;  %10006 = vpow2.f32 %v3004_v52  ;;  %v3976_v31 = vmul.f32 1.442695, %v3859_v5  ;;  %v3793_v59 = vpop.xlane.xlu1 %3792  ;;  %v17512_v52 = vld [vmem:[#allocation79_spill] sm:$0xff] }
 0x5bc   : > { %17507 = vst [vmem:[#allocation81_spill] sm:$0xff] %v13564_v55  ;;  %v2824_v16 = vpop.xlane.xlu0 %2823  ;;  %v13568_v62 = vpop.eup %9988  ;;  %10008 = vpow2.f32 %v3006_v60  ;;  %v3860_v43 = vsub.f32 %v13130_v13, %v3793_v59  ;;  %v3861_v27 = vsub.f32 %v17509_v0, %v3793_v59  ;;  %4065 = vadd.xlane.f32.xlu0 %v4064_v3  ;;  %v4067_v12 = vadd.f32 %v13564_v55, %v13562_v23  ;;  %v17517_v23 = vld [vmem:[#allocation85_spill] sm:$0xff] }
 0x5bd   : > { %17508 = vst [vmem:[#allocation80_spill] sm:$0xff] %v13568_v62  ;;  %v2890_v36 = vsub.f32 %v17510_v37, %v2824_v16  ;;  %v13573_v19 = vpop.eup %9990  ;;  %10010 = vpow2.f32 %v3008_v53  ;;  %v2891_v5 = vsub.f32 %v17512_v52, %v2824_v16  ;;  %v17516_v37 = vld [vmem:[#allocation83_spill] sm:$0xff] }
 0x5be   : > { %17511 = vst [vmem:[#allocation72_spill] sm:$0xff] %v13573_v19  ;;  %v13578_v44 = vpop.eup %9992  ;;  %10012 = vpow2.f32 %v3974_v56  ;;  %v3978_v48 = vmul.f32 1.442695, %v3860_v43  ;;  %v3980_v60 = vmul.f32 1.442695, %v3861_v27  ;;  %4068 = vadd.xlane.f32.xlu1 %v4067_v12  ;;  %v3098_v53 = vadd.f32 %v13573_v19, %v13568_v62  ;;  %v17518_v43 = vld [vmem:[#allocation59_spill] sm:$0xff] }
 0x5bf   : > { %17513 = vst [vmem:[#allocation43_spill] sm:$0xff] %v13578_v44  ;;  %v3010_v54 = vmul.f32 1.442695, %v2890_v36  ;;  %v13580_v13 = vpop.eup %9994  ;;  %10014 = vpow2.f32 %v3976_v31  ;;  %v3012_v59 = vmul.f32 1.442695, %v2891_v5  ;;  %v2827_v3 = vpop.xlane.xlu1 %2826  ;;  %v17520_v31 = vld [vmem:[#allocation86_spill] sm:$0xff] }
 0x5c0   : > { %17514 = vst [vmem:[#allocation75_spill] sm:$0xff] %v13580_v13  ;;  %v3796_v0 = vpop.xlane.xlu0 %3795  ;;  %v13584_v16 = vpop.eup %9996  ;;  %10016 = vpow2.f32 %v3978_v48  ;;  %v2892_v52 = vsub.f32 %v17516_v37, %v2827_v3  ;;  %v2893_v56 = vsub.f32 %v17517_v23, %v2827_v3  ;;  %3099 = vadd.xlane.f32.xlu0 %v3098_v53  ;;  %v3101_v12 = vadd.f32 %v13580_v13, %v13578_v44  ;;  %v17525_v44 = vld [vmem:[#allocation95_spill] sm:$0xff] }
 0x5c1   : > { %17515 = vst [vmem:[#allocation77_spill] sm:$0xff] %v13584_v16  ;;  %v3862_v27 = vsub.f32 %v17518_v43, %v3796_v0  ;;  %v13589_v36 = vpop.eup %9998  ;;  %10018 = vpow2.f32 %v3980_v60  ;;  %v3863_v5 = vsub.f32 %v17520_v31, %v3796_v0  ;;  %v17524_v43 = vld [vmem:[#allocation87_spill] sm:$0xff] }
 0x5c2   : > { %17519 = vst [vmem:[#allocation78_spill] sm:$0xff] %v13589_v36  ;;  %v13594_v62 = vpop.eup %10000  ;;  %10020 = vpow2.f32 %v3010_v54  ;;  %v3014_v19 = vmul.f32 1.442695, %v2892_v52  ;;  %v3016_v48 = vmul.f32 1.442695, %v2893_v56  ;;  %3102 = vadd.xlane.f32.xlu1 %v3101_v12  ;;  %v4070_v60 = vadd.f32 %v13589_v36, %v13584_v16  ;;  %v17526_v52 = vld [vmem:[#allocation63_spill] sm:$0xff] }
 0x5c3   : > { %17521 = vst [vmem:[#allocation82_spill] sm:$0xff] %v13594_v62  ;;  %v3982_v55 = vmul.f32 1.442695, %v3862_v27  ;;  %v13596_v37 = vpop.eup %10002  ;;  %10022 = vpow2.f32 %v3012_v59  ;;  %v3984_v23 = vmul.f32 1.442695, %v3863_v5  ;;  %v3799_v53 = vpop.xlane.xlu1 %3798  ;;  %v17528_v59 = vld [vmem:[#allocation61_spill] sm:$0xff] }
 0x5c4   : > { %17522 = vst [vmem:[#allocation84_spill] sm:$0xff] %v13596_v37  ;;  %v2830_v3 = vpop.xlane.xlu0 %2829  ;;  %v13600_v0 = vpop.eup %10004  ;;  %10024 = vpow2.f32 %v3014_v19  ;;  %v3864_v31 = vsub.f32 %v17524_v43, %v3799_v53  ;;  %v3865_v54 = vsub.f32 %v17525_v44, %v3799_v53  ;;  %4071 = vadd.xlane.f32.xlu0 %v4070_v60  ;;  %v4073_v12 = vadd.f32 %v13596_v37, %v13594_v62  ;;  %v17531_v62 = vld [vmem:[#allocation88_spill] sm:$0xff] }
 0x5c5   : > { %17523 = vst [vmem:[#allocation76_spill] sm:$0xff] %v13600_v0  ;;  %v2894_v56 = vsub.f32 %v17526_v52, %v2830_v3  ;;  %v13605_v27 = vpop.eup %10006  ;;  %10026 = vpow2.f32 %v3016_v48  ;;  %v2895_v5 = vsub.f32 %v17528_v59, %v2830_v3  ;;  %v17530_v52 = vld [vmem:[#allocation89_spill] sm:$0xff] }
 0x5c6   : > { %17527 = vst [vmem:[#allocation79_spill] sm:$0xff] %v13605_v27  ;;  %v13610_v16 = vpop.eup %10008  ;;  %10028 = vpow2.f32 %v3982_v55  ;;  %v3986_v36 = vmul.f32 1.442695, %v3864_v31  ;;  %v3988_v19 = vmul.f32 1.442695, %v3865_v54  ;;  %4074 = vadd.xlane.f32.xlu1 %v4073_v12  ;;  %v3104_v48 = vadd.f32 %v13605_v27, %v13600_v0  ;;  %v17532_v31 = vld [vmem:[#allocation65_spill] sm:$0xff] }
 0x5c7   : > { %17529 = vst [vmem:[#allocation83_spill] sm:$0xff] %v13610_v16  ;;  %v3018_v13 = vmul.f32 1.442695, %v2894_v56  ;;  %v13612_v43 = vpop.eup %10010  ;;  %10030 = vpow2.f32 %v3984_v23  ;;  %v3020_v44 = vmul.f32 1.442695, %v2895_v5  ;;  %v2833_v60 = vpop.xlane.xlu1 %2832  ;;  %v17533_v23 = vld [vmem:[#allocation94_spill] sm:$0xff] }
 0x5c8   : > { %v3802_v53 = vpop.xlane.xlu0 %3801  ;;  %v13616_v3 = vpop.eup %10012  ;;  %10032 = vpow2.f32 %v3986_v36  ;;  %v2896_v59 = vsub.f32 %v17530_v52, %v2833_v60  ;;  %v2897_v55 = vsub.f32 %v17531_v62, %v2833_v60  ;;  %3105 = vadd.xlane.f32.xlu0 %v3104_v48  ;;  %v3107_v12 = vadd.f32 %v13612_v43, %v13610_v16 }
 0x5c9   : > { %v3866_v54 = vsub.f32 %v17532_v31, %v3802_v53  ;;  %v13621_v56 = vpop.eup %10014  ;;  %10034 = vpow2.f32 %v3988_v19  ;;  %v3867_v5 = vsub.f32 %v17533_v23, %v3802_v53  ;;  %v17534_v53 = vld [vmem:[#allocation93_spill] sm:$0xff] }
 0x5ca   : > { %v13626_v0 = vpop.eup %10016  ;;  %10036 = vpow2.f32 %v3018_v13  ;;  %v3022_v27 = vmul.f32 1.442695, %v2896_v59  ;;  %v3024_v36 = vmul.f32 1.442695, %v2897_v55  ;;  %3108 = vadd.xlane.f32.xlu1 %v3107_v12  ;;  %v4076_v19 = vadd.f32 %v13621_v56, %v13616_v3  ;;  %v17535_v23 = vld [vmem:[#allocation97_spill] sm:$0xff] }
 0x5cb   : > { %v3990_v37 = vmul.f32 1.442695, %v3866_v54  ;;  %v13628_v52 = vpop.eup %10018  ;;  %10038 = vpow2.f32 %v3020_v44  ;;  %v3992_v62 = vmul.f32 1.442695, %v3867_v5  ;;  %v3805_v48 = vpop.xlane.xlu1 %3804 }
 0x5cc   : > { %v13632_v60 = vpop.eup %10020  ;;  %10040 = vpow2.f32 %v3022_v27  ;;  %v3868_v31 = vsub.f32 %v17534_v53, %v3805_v48  ;;  %v3869_v16 = vsub.f32 %v17535_v23, %v3805_v48  ;;  %v4079_v13 = vadd.f32 %v13628_v52, %v13626_v0  ;;  %4077 = vadd.xlane.f32.xlu0 %v4076_v19 }
 0x5cd   : > { %v13638_v59 = vpop.eup %10022  ;;  %10042 = vpow2.f32 %v3024_v36 }
 0x5ce   : > { %v13640_v44 = vpop.eup %10024  ;;  %10044 = vpow2.f32 %v3990_v37  ;;  %v3994_v55 = vmul.f32 1.442695, %v3868_v31  ;;  %v3996_v54 = vmul.f32 1.442695, %v3869_v16  ;;  %v3110_v5 = vadd.f32 %v13638_v59, %v13632_v60  ;;  %4080 = vadd.xlane.f32.xlu1 %v4079_v13 }
 0x5cf   : > { %v13644_v27 = vpop.eup %10026  ;;  %10046 = vpow2.f32 %v3992_v62 }
 0x5d0   : > { %v13646_v12 = vpop.eup %10028  ;;  %10048 = vpow2.f32 %v3994_v55  ;;  %v3113_v48 = vadd.f32 %v13644_v27, %v13640_v44  ;;  %3111 = vadd.xlane.f32.xlu0 %v3110_v5 }
 0x5d1   : > { %17536 = vst [vmem:[#allocation85_spill] sm:$0xff] %v13646_v12  ;;  %v13650_v36 = vpop.eup %10030  ;;  %10050 = vpow2.f32 %v3996_v54 }
 0x5d2   : > { %v13652_v37 = vpop.eup %10032  ;;  %v4082_v16 = vadd.f32 %v13650_v36, %v13646_v12  ;;  %3114 = vadd.xlane.f32.xlu1 %v3113_v48 }
 0x5d3   : > { %17537 = vst [vmem:[#allocation59_spill] sm:$0xff] %v13652_v37  ;;  %v13656_v19 = vpop.eup %10034 }
 0x5d4   : > { %17538 = vst [vmem:[#allocation86_spill] sm:$0xff] %v13656_v19  ;;  %v13658_v62 = vpop.eup %10036  ;;  %v4085_v53 = vadd.f32 %v13656_v19, %v13652_v37  ;;  %4083 = vadd.xlane.f32.xlu0 %v4082_v16 }
 0x5d5   : > { %17539 = vst [vmem:[#allocation87_spill] sm:$0xff] %v13658_v62  ;;  %v13662_v31 = vpop.eup %10038 }
 0x5d6   : > { %17540 = vst [vmem:[#allocation95_spill] sm:$0xff] %v13662_v31  ;;  %v13664_v23 = vpop.eup %10040  ;;  %v3116_v13 = vadd.f32 %v13662_v31, %v13658_v62  ;;  %4086 = vadd.xlane.f32.xlu1 %v4085_v53 }
 0x5d7   : > { %17541 = vst [vmem:[#allocation63_spill] sm:$0xff] %v13664_v23  ;;  %v13668_v55 = vpop.eup %10042 }
 0x5d8   : > { %17542 = vst [vmem:[#allocation61_spill] sm:$0xff] %v13668_v55  ;;  %v13670_v54 = vpop.eup %10044  ;;  %v3119_v5 = vadd.f32 %v13668_v55, %v13664_v23  ;;  %3117 = vadd.xlane.f32.xlu0 %v3116_v13 }
 0x5d9   : > { %17543 = vst [vmem:[#allocation89_spill] sm:$0xff] %v13670_v54  ;;  %v13674_v48 = vpop.eup %10046 }
 0x5da   : > { %17544 = vst [vmem:[#allocation88_spill] sm:$0xff] %v13674_v48  ;;  %v13676_v37 = vpop.eup %10048  ;;  %v4088_v16 = vadd.f32 %v13674_v48, %v13670_v54  ;;  %3120 = vadd.xlane.f32.xlu1 %v3119_v5 }
 0x5db   : > { %17545 = vst [vmem:[#allocation65_spill] sm:$0xff] %v13676_v37  ;;  %v13680_v12 = vpop.eup %10050 }
 0x5dc   : > { %17546 = vst [vmem:[#allocation94_spill] sm:$0xff] %v13680_v12  ;;  %v4091_v62 = vadd.f32 %v13680_v12, %v13676_v37  ;;  %4089 = vadd.xlane.f32.xlu0 %v4088_v16 }
 0x5de   : > { %4092 = vadd.xlane.f32.xlu1 %v4091_v62 }
 0x5e3   : > { %v3028_v53 = vpop.xlane.xlu0 %3027 }
 0x5e4   : > { %10052 = vrcp.f32 %v3028_v53 }
 0x5e7   : > { %v3031_v31 = vpop.xlane.xlu1 %3030 }
 0x5e8   : > { %10054 = vrcp.f32 %v3031_v31 }
 0x5ee   : > { %v10053_v23 = vpop.eup %10052 }
 0x5ef   : > { %v4000_v55 = vpop.xlane.xlu0 %3999  ;;  %v3155_v19 = vmul.f32 %v10053_v23, %v13180_v1  ;;  %v3154_v48 = vmul.f32 %v10053_v23, %v13178_v46 }
 0x5f0   : > { %10056 = vrcp.f32 %v4000_v55 }
 0x5f2   : > { %v10055_v13 = vpop.eup %10054 }
 0x5f3   : > { %v3157_v54 = vmul.f32 %v10055_v13, %v13190_v11  ;;  %v3156_v5 = vmul.f32 %v10055_v13, %v13188_v61  ;;  %v4003_v37 = vpop.xlane.xlu1 %4002  ;;  %v2320_v11 = vld [vmem:[%s12518_s24 + $0x28] sm:$0xff] }
 0x5f4   : > { %10058 = vrcp.f32 %v4003_v37  ;;  %3282 = vmatprep.mubr.f32.mxu1 %v2320_v11 }
 0x5f5   : > { %v8924_v62 = vpack.c.bf16 %v3157_v54, %v3155_v19  ;;  %v8926_v16 = vpack.c.bf16 %v3156_v5, %v3154_v48  ;;  %v3034_v53 = vpop.xlane.xlu0 %3033 }
 0x5f6   : > { %10060 = vrcp.f32 %v3034_v53  ;;  %v348_v53 = vld [vmem:[%s11383_s14 + $0x40] sm:$0xff] }
 0x5f7   : > { %8925 = vmatprep.subr.bf16.mxu1 %v8924_v62  ;;  %v3037_v31 = vpop.xlane.xlu1 %3036  ;;  %v364_v11 = vmul.f32 0.35355338, %v348_v53 }
 0x5f8   : > { %8927 = vmatpush1.bf16.xpose.msra.mxu1 %v8926_v16  ;;  %10062 = vrcp.f32 %v3037_v31 }
 0x5f9   : > { %v4006_v12 = vpop.xlane.xlu0 %4005 }
 0x5fa   : > { %10064 = vrcp.f32 %v4006_v12  ;;  %v10057_v55 = vpop.eup %10056 }
 0x5fb   : > { %v4009_v1 = vpop.xlane.xlu1 %4008  ;;  %v4127_v19 = vmul.f32 %v10057_v55, %v13204_v39  ;;  %v4126_v54 = vmul.f32 %v10057_v55, %v13202_v9 }
 0x5fc   : > { %10066 = vrcp.f32 %v4009_v1 }
 0x5fd   : > { %v3040_v46 = vpop.xlane.xlu0 %3039 }
 0x5fe   : > { %v10059_v61 = vpop.eup %10058  ;;  %10068 = vrcp.f32 %v3040_v46 }
 0x5ff   : > { %v3043_v37 = vpop.xlane.xlu1 %3042  ;;  %v4129_v23 = vmul.f32 %v10059_v61, %v13214_v63  ;;  %v4128_v48 = vmul.f32 %v10059_v61, %v13212_v30 }
 0x600   : > { %v10061_v13 = vpop.eup %10060  ;;  %10070 = vrcp.f32 %v3043_v37 }
 0x601   : > { %v4012_v12 = vpop.xlane.xlu0 %4011  ;;  %v8988_v5 = vpack.c.bf16 %v4129_v23, %v4127_v19  ;;  %v8990_v62 = vpack.c.bf16 %v4128_v48, %v4126_v54  ;;  %v3159_v1 = vmul.f32 %v10061_v13, %v13221_v24  ;;  %v3158_v63 = vmul.f32 %v10061_v13, %v13216_v7 }
 0x602   : > { %v10063_v16 = vpop.eup %10062  ;;  %10072 = vrcp.f32 %v4012_v12  ;;  %v3292_v12 = vld [vmem:[%s12518_s24 + $0x38] sm:$0xff] }
 0x603   : > { %v4015_v31 = vpop.xlane.xlu1 %4014  ;;  %8989 = vmatprep.subr.bf16.mxu0 %v8988_v5  ;;  %v3161_v39 = vmul.f32 %v10063_v16, %v13228_v40  ;;  %v3160_v9 = vmul.f32 %v10063_v16, %v13226_v58  ;;  %4254 = vmatprep.mubr.f32.mxu0 %v3292_v12 }
 0x604   : > { %v10065_v55 = vpop.eup %10064  ;;  %10074 = vrcp.f32 %v4015_v31  ;;  %8991 = vmatpush1.bf16.xpose.msra.mxu0 %v8990_v62  ;;  %v350_v62 = vld [vmem:[%s11383_s14 + $0x50] sm:$0xff] }
 0x605   : > { %v3046_v30 = vpop.xlane.xlu0 %3045  ;;  %v8928_v46 = vpack.c.bf16 %v3161_v39, %v3159_v1  ;;  %v8930_v61 = vpack.c.bf16 %v3160_v9, %v3158_v63  ;;  %v4131_v24 = vmul.f32 %v10065_v55, %v13237_v21  ;;  %v4130_v7 = vmul.f32 %v10065_v55, %v13232_v20 }
 0x606   : > { %v10067_v37 = vpop.eup %10066  ;;  %10076 = vrcp.f32 %v3046_v30  ;;  %v366_v63 = vmul.f32 0.35355338, %v350_v62 }
 0x607   : > { %v3049_v19 = vpop.xlane.xlu1 %3048  ;;  %8929 = vmatprep.subr.bf16.mxu1 %v8928_v46  ;;  %v4133_v40 = vmul.f32 %v10067_v37, %v13244_v34  ;;  %v4132_v58 = vmul.f32 %v10067_v37, %v13242_v17 }
 0x608   : > { %v10069_v23 = vpop.eup %10068  ;;  %10078 = vrcp.f32 %v3049_v19  ;;  %8931 = vmatpush1.bf16.xpose.msra.mxu1 %v8930_v61 }
 0x609   : > { %4265 = vxpose.xlu0.b32.start.end [1/1] (short) %v364_v11, 128  ;;  %v4018_v54 = vpop.xlane.xlu0 %4017  ;;  %v8992_v48 = vpack.c.bf16 %v4133_v40, %v4131_v24  ;;  %v8994_v13 = vpack.c.bf16 %v4132_v58, %v4130_v7  ;;  %v3163_v21 = vmul.f32 %v10069_v23, %v13253_v38  ;;  %v3162_v17 = vmul.f32 %v10069_v23, %v13248_v18 }
 0x60a   : > { %v10071_v5 = vpop.eup %10070  ;;  %10080 = vrcp.f32 %v4018_v54 }
 0x60b   : > { %v4021_v16 = vpop.xlane.xlu1 %4020  ;;  %8993 = vmatprep.subr.bf16.mxu0 %v8992_v48  ;;  %v3165_v20 = vmul.f32 %v10071_v5, %v13260_v29  ;;  %v3164_v34 = vmul.f32 %v10071_v5, %v13258_v8 }
 0x60c   : > { %v10073_v53 = vpop.eup %10072  ;;  %10082 = vrcp.f32 %v4021_v16  ;;  %8995 = vmatpush1.bf16.xpose.msra.mxu0 %v8994_v13 }
 0x60d   : > { %v3052_v31 = vpop.xlane.xlu0 %3051  ;;  %v8932_v1 = vpack.c.bf16 %v3165_v20, %v3163_v21  ;;  %v8934_v39 = vpack.c.bf16 %v3164_v34, %v3162_v17  ;;  %v4135_v30 = vmul.f32 %v10073_v53, %v13269_v10  ;;  %v4134_v29 = vmul.f32 %v10073_v53, %v13264_v51 }
 0x60e   : > { %v10075_v9 = vpop.eup %10074  ;;  %10084 = vrcp.f32 %v3052_v31 }
 0x60f   : > { %v3055_v55 = vpop.xlane.xlu1 %3054  ;;  %8933 = vmatprep.subr.bf16.mxu1 %v8932_v1  ;;  %v4137_v38 = vmul.f32 %v10075_v9, %v13276_v22  ;;  %v4136_v18 = vmul.f32 %v10075_v9, %v13274_v57 }
 0x610   : > { %v10077_v8 = vpop.eup %10076  ;;  %10086 = vrcp.f32 %v3055_v55  ;;  %8935 = vmatpush1.bf16.xpose.msra.mxu1 %v8934_v39 }
 0x611   : > { %v4024_v11 = vpop.xlane.xlu0 %4023  ;;  %5237 = vxpose.xlu1.b32.start.end [1/1] (short) %v366_v63, 128  ;;  %v8996_v46 = vpack.c.bf16 %v4137_v38, %v4135_v30  ;;  %v8998_v61 = vpack.c.bf16 %v4136_v18, %v4134_v29  ;;  %v3167_v24 = vmul.f32 %v10077_v8, %v13285_v50  ;;  %v3166_v22 = vmul.f32 %v10077_v8, %v13280_v47  ;;  %v17547_v38 = vld [vmem:[#allocation96_spill] sm:$0xff]  ;;  %v17548_v18 = vld [vmem:[#allocation18_spill] sm:$0xff] }
 0x612   : > { %v10079_v37 = vpop.eup %10078  ;;  %10088 = vrcp.f32 %v4024_v11  ;;  %v17549_v8 = vld [vmem:[#allocation90_spill] sm:$0xff]  ;;  %v17550_v11 = vld [vmem:[#allocation19_spill] sm:$0xff] }
 0x613   : > { %v4027_v19 = vpop.xlane.xlu1 %4026  ;;  %8997 = vmatprep.subr.bf16.mxu0 %v8996_v46  ;;  %v3169_v10 = vmul.f32 %v10079_v37, %v13292_v32  ;;  %v3168_v51 = vmul.f32 %v10079_v37, %v13290_v35 }
 0x614   : > { %v10081_v57 = vpop.eup %10080  ;;  %10090 = vrcp.f32 %v4027_v19  ;;  %8999 = vmatpush1.bf16.xpose.msra.mxu0 %v8998_v61 }
 0x615   : > { %v3058_v40 = vpop.xlane.xlu0 %3057  ;;  %v8936_v7 = vpack.c.bf16 %v3169_v10, %v3167_v24  ;;  %v8938_v58 = vpack.c.bf16 %v3168_v51, %v3166_v22  ;;  %v4139_v48 = vmul.f32 %v10081_v57, %v13301_v2  ;;  %v4138_v32 = vmul.f32 %v10081_v57, %v13296_v26  ;;  %v17551_v10 = vld [vmem:[#allocation23_spill] sm:$0xff]  ;;  %v17552_v51 = vld [vmem:[#allocation46_spill] sm:$0xff] }
 0x616   : > { %v10083_v23 = vpop.eup %10082  ;;  %10092 = vrcp.f32 %v3058_v40  ;;  %v17553_v40 = vld [vmem:[#allocation40_spill] sm:$0xff] }
 0x617   : > { %v3061_v54 = vpop.xlane.xlu1 %3060  ;;  %8937 = vmatprep.subr.bf16.mxu1 %v8936_v7  ;;  %v4141_v50 = vmul.f32 %v10083_v23, %v13308_v25  ;;  %v4140_v47 = vmul.f32 %v10083_v23, %v13306_v33 }
 0x618   : > { %v10085_v13 = vpop.eup %10084  ;;  %10094 = vrcp.f32 %v3061_v54  ;;  %8939 = vmatpush1.bf16.xpose.msra.mxu1 %v8938_v58  ;;  %v17554_v58 = vld [vmem:[#allocation22_spill] sm:$0xff] }
 0x619   : > { %v4030_v35 = vpop.xlane.xlu0 %4029  ;;  %v9000_v12 = vpack.c.bf16 %v4141_v50, %v4139_v48  ;;  %v9002_v5 = vpack.c.bf16 %v4140_v47, %v4138_v32  ;;  %v3171_v21 = vmul.f32 %v10085_v13, %v13317_v45  ;;  %v3170_v25 = vmul.f32 %v10085_v13, %v13312_v49 }
 0x61a   : > { %v10087_v62 = vpop.eup %10086  ;;  %10096 = vrcp.f32 %v4030_v35  ;;  %v17555_v35 = vld [vmem:[#allocation17_spill] sm:$0xff] }
 0x61b   : > { %v4033_v16 = vpop.xlane.xlu1 %4032  ;;  %9001 = vmatprep.subr.bf16.mxu0 %v9000_v12  ;;  %v3173_v2 = vmul.f32 %v10087_v62, %v13324_v4  ;;  %v3172_v26 = vmul.f32 %v10087_v62, %v13322_v28 }
 0x61c   : > { %v10089_v20 = vpop.eup %10088  ;;  %10098 = vrcp.f32 %v4033_v16  ;;  %9003 = vmatpush1.bf16.xpose.msra.mxu0 %v9002_v5  ;;  %v17556_v5 = vld [vmem:[#allocation20_spill] sm:$0xff]  ;;  %v17557_v16 = vld [vmem:[#allocation41_spill] sm:$0xff] }
 0x61d   : > { %v3064_v33 = vpop.xlane.xlu0 %3063  ;;  %v8940_v17 = vpack.c.bf16 %v3173_v2, %v3171_v21  ;;  %v8942_v34 = vpack.c.bf16 %v3172_v26, %v3170_v25  ;;  %v4143_v1 = vmul.f32 %v10089_v20, %v13333_v41  ;;  %v4142_v4 = vmul.f32 %v10089_v20, %v13328_v15  ;;  %v17558_v2 = vld [vmem:[#allocation39_spill] sm:$0xff] }
 0x61e   : > { %v10091_v53 = vpop.eup %10090  ;;  %10100 = vrcp.f32 %v3064_v33 }
 0x61f   : > { %v3067_v31 = vpop.xlane.xlu1 %3066  ;;  %8941 = vmatprep.subr.bf16.mxu1 %v8940_v17  ;;  %v4145_v45 = vmul.f32 %v10091_v53, %v13340_v14  ;;  %v4144_v49 = vmul.f32 %v10091_v53, %v13338_v42 }
 0x620   : > { %v10093_v39 = vpop.eup %10092  ;;  %10102 = vrcp.f32 %v3067_v31  ;;  %8943 = vmatpush1.bf16.xpose.msra.mxu1 %v8942_v34  ;;  %v17559_v31 = vld [vmem:[#allocation27_spill] sm:$0xff] }
 0x621   : > { %v4036_v28 = vpop.xlane.xlu0 %4035  ;;  %v9004_v63 = vpack.c.bf16 %v4145_v45, %v4143_v1  ;;  %v9006_v9 = vpack.c.bf16 %v4144_v49, %v4142_v4  ;;  %v3175_v29 = vmul.f32 %v10093_v39, %v17547_v38  ;;  %v3174_v14 = vmul.f32 %v10093_v39, %v17549_v8  ;;  %v17560_v45 = vld [vmem:[#allocation48_spill] sm:$0xff]  ;;  %v17561_v49 = vld [vmem:[#allocation45_spill] sm:$0xff] }
 0x622   : > { %v10095_v55 = vpop.eup %10094  ;;  %10104 = vrcp.f32 %v4036_v28  ;;  %v17562_v28 = vld [vmem:[#allocation26_spill] sm:$0xff] }
 0x623   : > { %v4039_v30 = vpop.xlane.xlu1 %4038  ;;  %9005 = vmatprep.subr.bf16.mxu0 %v9004_v63  ;;  %v3177_v41 = vmul.f32 %v10095_v55, %v17548_v18  ;;  %v3176_v15 = vmul.f32 %v10095_v55, %v17550_v11 }
 0x624   : > { %v10097_v46 = vpop.eup %10096  ;;  %10106 = vrcp.f32 %v4039_v30  ;;  %9007 = vmatpush1.bf16.xpose.msra.mxu0 %v9006_v9 }
 0x625   : > { %v3070_v42 = vpop.xlane.xlu0 %3069  ;;  %v8944_v61 = vpack.c.bf16 %v3177_v41, %v3175_v29  ;;  %v8946_v37 = vpack.c.bf16 %v3176_v15, %v3174_v14  ;;  %v4147_v22 = vmul.f32 %v10097_v46, %v17551_v10  ;;  %v4146_v7 = vmul.f32 %v10097_v46, %v17553_v40  ;;  %v17563_v41 = vld [vmem:[#allocation42_spill] sm:$0xff]  ;;  %v17564_v14 = vld [vmem:[#allocation24_spill] sm:$0xff]  ;;  %v17565_v15 = vld [vmem:[#allocation21_spill] sm:$0xff] }
 0x626   : > { %v10099_v19 = vpop.eup %10098  ;;  %10108 = vrcp.f32 %v3070_v42  ;;  %v17566_v42 = vld [vmem:[#allocation44_spill] sm:$0xff] }
 0x627   : > { %v3073_v24 = vpop.xlane.xlu1 %3072  ;;  %8945 = vmatprep.subr.bf16.mxu1 %v8944_v61  ;;  %v4149_v57 = vmul.f32 %v10099_v19, %v17552_v51  ;;  %v4148_v23 = vmul.f32 %v10099_v19, %v17554_v58 }
 0x628   : > { %v10101_v54 = vpop.eup %10100  ;;  %10110 = vrcp.f32 %v3073_v24  ;;  %8947 = vmatpush1.bf16.xpose.msra.mxu1 %v8946_v37 }
 0x629   : > { %v4042_v48 = vpop.xlane.xlu0 %4041  ;;  %v9008_v50 = vpack.c.bf16 %v4149_v57, %v4147_v22  ;;  %v9010_v32 = vpack.c.bf16 %v4148_v23, %v4146_v7  ;;  %v3179_v12 = vmul.f32 %v10101_v54, %v17555_v35  ;;  %v3178_v21 = vmul.f32 %v10101_v54, %v17557_v16  ;;  %v17567_v57 = vld [vmem:[#allocation28_spill] sm:$0xff]  ;;  %v17569_v23 = vld [vmem:[#allocation50_spill] sm:$0xff] }
 0x62a   : > { %v10103_v47 = vpop.eup %10102  ;;  %10112 = vrcp.f32 %v4042_v48  ;;  %v17568_v7 = vld [vmem:[#allocation32_spill] sm:$0xff]  ;;  %v17570_v48 = vld [vmem:[#allocation53_spill] sm:$0xff] }
 0x62b   : > { %v4045_v13 = vpop.xlane.xlu1 %4044  ;;  %9009 = vmatprep.subr.bf16.mxu0 %v9008_v50  ;;  %v3181_v62 = vmul.f32 %v10103_v47, %v17556_v5  ;;  %v3180_v25 = vmul.f32 %v10103_v47, %v17558_v2 }
 0x62c   : > { %v10105_v26 = vpop.eup %10104  ;;  %10114 = vrcp.f32 %v4045_v13  ;;  %9011 = vmatpush1.bf16.xpose.msra.mxu0 %v9010_v32 }
 0x62d   : > { %v3076_v20 = vpop.xlane.xlu0 %3075  ;;  %v8948_v33 = vpack.c.bf16 %v3181_v62, %v3179_v12  ;;  %v8950_v17 = vpack.c.bf16 %v3180_v25, %v3178_v21  ;;  %v4151_v1 = vmul.f32 %v10105_v26, %v17559_v31  ;;  %v4150_v39 = vmul.f32 %v10105_v26, %v17561_v49  ;;  %v17571_v62 = vld [vmem:[#allocation51_spill] sm:$0xff]  ;;  %v17572_v21 = vld [vmem:[#allocation29_spill] sm:$0xff] }
 0x62e   : > { %v10107_v34 = vpop.eup %10106  ;;  %10116 = vrcp.f32 %v3076_v20  ;;  %v17573_v25 = vld [vmem:[#allocation25_spill] sm:$0xff]  ;;  %v17574_v20 = vld [vmem:[#allocation30_spill] sm:$0xff] }
 0x62f   : > { %v3079_v53 = vpop.xlane.xlu1 %3078  ;;  %8949 = vmatprep.subr.bf16.mxu1 %v8948_v33  ;;  %v4153_v4 = vmul.f32 %v10107_v34, %v17560_v45  ;;  %v4152_v63 = vmul.f32 %v10107_v34, %v17562_v28 }
 0x630   : > { %v10109_v9 = vpop.eup %10108  ;;  %10118 = vrcp.f32 %v3079_v53  ;;  %8951 = vmatpush1.bf16.xpose.msra.mxu1 %v8950_v17 }
 0x631   : > { %v4048_v55 = vpop.xlane.xlu0 %4047  ;;  %v9012_v30 = vpack.c.bf16 %v4153_v4, %v4151_v1  ;;  %v9014_v38 = vpack.c.bf16 %v4152_v63, %v4150_v39  ;;  %v3183_v8 = vmul.f32 %v10109_v9, %v17563_v41  ;;  %v3182_v46 = vmul.f32 %v10109_v9, %v17565_v15  ;;  %v17575_v4 = vld [vmem:[#allocation57_spill] sm:$0xff]  ;;  %v17576_v39 = vld [vmem:[#allocation58_spill] sm:$0xff]  ;;  %v17577_v63 = vld [vmem:[#allocation55_spill] sm:$0xff] }
 0x632   : > { %v10111_v29 = vpop.eup %10110  ;;  %10120 = vrcp.f32 %v4048_v55  ;;  %v17578_v55 = vld [vmem:[#allocation34_spill] sm:$0xff] }
 0x633   : > { %v4051_v18 = vpop.xlane.xlu1 %4050  ;;  %9013 = vmatprep.subr.bf16.mxu0 %v9012_v30  ;;  %v3185_v11 = vmul.f32 %v10111_v29, %v17564_v14  ;;  %v3184_v61 = vmul.f32 %v10111_v29, %v17566_v42 }
 0x634   : > { %v10113_v37 = vpop.eup %10112  ;;  %10122 = vrcp.f32 %v4051_v18  ;;  %9015 = vmatpush1.bf16.xpose.msra.mxu0 %v9014_v38  ;;  %v349_v38 = vld [vmem:[%s11383_s14 + $0x48] sm:$0xff] }
 0x635   : > { %v3082_v19 = vpop.xlane.xlu0 %3081  ;;  %v8952_v24 = vpack.c.bf16 %v3185_v11, %v3183_v8  ;;  %v8954_v10 = vpack.c.bf16 %v3184_v61, %v3182_v46  ;;  %v4155_v40 = vmul.f32 %v10113_v37, %v17567_v57  ;;  %v4154_v54 = vmul.f32 %v10113_v37, %v17569_v23  ;;  %v17579_v46 = vld [vmem:[#allocation31_spill] sm:$0xff]  ;;  %v17580_v61 = vld [vmem:[#allocation56_spill] sm:$0xff] }
 0x636   : > { %v10115_v22 = vpop.eup %10114  ;;  %10124 = vrcp.f32 %v3082_v19  ;;  %v365_v11 = vmul.f32 0.35355338, %v349_v38  ;;  %v17581_v19 = vld [vmem:[#allocation52_spill] sm:$0xff] }
 0x637   : > { %v3085_v51 = vpop.xlane.xlu1 %3084  ;;  %8953 = vmatprep.subr.bf16.mxu1 %v8952_v24  ;;  %v4157_v58 = vmul.f32 %v10115_v22, %v17568_v7  ;;  %v4156_v50 = vmul.f32 %v10115_v22, %v17570_v48 }
 0x638   : > { %v10117_v32 = vpop.eup %10116  ;;  %10126 = vrcp.f32 %v3085_v51  ;;  %8955 = vmatpush1.bf16.xpose.msra.mxu1 %v8954_v10  ;;  %v17582_v10 = vld [vmem:[#allocation54_spill] sm:$0xff] }
 0x639   : > { %v4054_v47 = vpop.xlane.xlu0 %4053  ;;  %v9016_v13 = vpack.c.bf16 %v4157_v58, %v4155_v40  ;;  %v9018_v35 = vpack.c.bf16 %v4156_v50, %v4154_v54  ;;  %v3187_v16 = vmul.f32 %v10117_v32, %v17571_v62  ;;  %v3186_v26 = vmul.f32 %v10117_v32, %v17573_v25  ;;  %v17583_v54 = vld [vmem:[#allocation36_spill] sm:$0xff]  ;;  %v17584_v50 = vld [vmem:[#allocation37_spill] sm:$0xff] }
 0x63a   : > { %v10119_v12 = vpop.eup %10118  ;;  %10128 = vrcp.f32 %v4054_v47  ;;  %v17585_v47 = vld [vmem:[#allocation62_spill] sm:$0xff] }
 0x63b   : > { %v4057_v5 = vpop.xlane.xlu1 %4056  ;;  %9017 = vmatprep.subr.bf16.mxu0 %v9016_v13  ;;  %v3189_v2 = vmul.f32 %v10119_v12, %v17572_v21  ;;  %v3188_v33 = vmul.f32 %v10119_v12, %v17574_v20 }
 0x63c   : > { %v10121_v17 = vpop.eup %10120  ;;  %10130 = vrcp.f32 %v4057_v5  ;;  %9019 = vmatpush1.bf16.xpose.msra.mxu0 %v9018_v35  ;;  %v17586_v35 = vld [vmem:[#allocation67_spill] sm:$0xff]  ;;  %v351_v5 = vld [vmem:[%s11383_s14 + $0x58] sm:$0xff] }
 0x63d   : > { %v3088_v34 = vpop.xlane.xlu0 %3087  ;;  %v8956_v53 = vpack.c.bf16 %v3189_v2, %v3187_v16  ;;  %v8958_v31 = vpack.c.bf16 %v3188_v33, %v3186_v26  ;;  %v4159_v49 = vmul.f32 %v10121_v17, %v17575_v4  ;;  %v4158_v9 = vmul.f32 %v10121_v17, %v17577_v63  ;;  %v17587_v33 = vld [vmem:[#allocation35_spill] sm:$0xff] }
 0x63e   : > { %v10123_v1 = vpop.eup %10122  ;;  %10132 = vrcp.f32 %v3088_v34  ;;  %v367_v26 = vmul.f32 0.35355338, %v351_v5  ;;  %v17588_v34 = vld [vmem:[#allocation64_spill] sm:$0xff]  ;;  %v17600_v5 = vld [vmem:[#allocation69_spill] sm:$0xff] }
 0x63f   : > { %v3091_v45 = vpop.xlane.xlu1 %3090  ;;  %8957 = vmatprep.subr.bf16.mxu1 %v8956_v53  ;;  %v4161_v28 = vmul.f32 %v10123_v1, %v17576_v39  ;;  %v4160_v30 = vmul.f32 %v10123_v1, %v17578_v55 }
 0x640   : > { %v10125_v29 = vpop.eup %10124  ;;  %10134 = vrcp.f32 %v3091_v45  ;;  %8959 = vmatpush1.bf16.xpose.msra.mxu1 %v8958_v31  ;;  %v17589_v31 = vld [vmem:[#allocation33_spill] sm:$0xff]  ;;  %v17590_v45 = vld [vmem:[#allocation60_spill] sm:$0xff] }
 0x641   : > { %v4060_v18 = vpop.xlane.xlu0 %4059  ;;  %v9020_v41 = vpack.c.bf16 %v4161_v28, %v4159_v49  ;;  %v9022_v8 = vpack.c.bf16 %v4160_v30, %v4158_v9  ;;  %v3191_v42 = vmul.f32 %v10125_v29, %v17579_v46  ;;  %v3190_v24 = vmul.f32 %v10125_v29, %v17581_v19  ;;  %v17591_v30 = vld [vmem:[#allocation70_spill] sm:$0xff] }
 0x642   : > { %v10127_v14 = vpop.eup %10126  ;;  %10136 = vrcp.f32 %v4060_v18  ;;  %v17592_v29 = vld [vmem:[#allocation74_spill] sm:$0xff] }
 0x643   : > { %v4063_v15 = vpop.xlane.xlu1 %4062  ;;  %9021 = vmatprep.subr.bf16.mxu0 %v9020_v41  ;;  %v3193_v37 = vmul.f32 %v10127_v14, %v17580_v61  ;;  %v3192_v22 = vmul.f32 %v10127_v14, %v17582_v10  ;;  %v17593_v41 = vld [vmem:[#allocation68_spill] sm:$0xff]  ;;  %v17594_v14 = vld [vmem:[#allocation73_spill] sm:$0xff] }
 0x644   : > { %v10129_v51 = vpop.eup %10128  ;;  %10138 = vrcp.f32 %v4063_v15  ;;  %9023 = vmatpush1.bf16.xpose.msra.mxu0 %v9022_v8 }
 0x645   : > { %v3094_v57 = vpop.xlane.xlu0 %3093  ;;  %v8960_v40 = vpack.c.bf16 %v3193_v37, %v3191_v42  ;;  %v8962_v7 = vpack.c.bf16 %v3192_v22, %v3190_v24  ;;  %v4163_v48 = vmul.f32 %v10129_v51, %v17583_v54  ;;  %v4162_v13 = vmul.f32 %v10129_v51, %v17585_v47  ;;  %v17595_v24 = vld [vmem:[#allocation38_spill] sm:$0xff]  ;;  %v17598_v47 = vld [vmem:[#allocation49_spill] sm:$0xff] }
 0x646   : > { %v10131_v58 = vpop.eup %10130  ;;  %10140 = vrcp.f32 %v3094_v57  ;;  %4297 = vxpose.xlu0.b32.start.end [1/1] (short) %v365_v11, 128  ;;  %v17596_v51 = vld [vmem:[#allocation66_spill] sm:$0xff] }
 0x647   : > { %v3097_v23 = vpop.xlane.xlu1 %3096  ;;  %8961 = vmatprep.subr.bf16.mxu1 %v8960_v40  ;;  %v4165_v32 = vmul.f32 %v10131_v58, %v17584_v50  ;;  %v4164_v12 = vmul.f32 %v10131_v58, %v17586_v35  ;;  %v17597_v40 = vld [vmem:[#allocation71_spill] sm:$0xff]  ;;  %v17599_v35 = vld [vmem:[#allocation81_spill] sm:$0xff] }
 0x648   : > { %v10133_v62 = vpop.eup %10132  ;;  %10142 = vrcp.f32 %v3097_v23  ;;  %8963 = vmatpush1.bf16.xpose.msra.mxu1 %v8962_v7 }
 0x649   : > { %v4066_v16 = vpop.xlane.xlu0 %4065  ;;  %v9024_v21 = vpack.c.bf16 %v4165_v32, %v4163_v48  ;;  %v9026_v2 = vpack.c.bf16 %v4164_v12, %v4162_v13  ;;  %v3195_v17 = vmul.f32 %v10133_v62, %v17587_v33  ;;  %v3194_v1 = vmul.f32 %v10133_v62, %v17589_v31  ;;  %v17601_v62 = vld [vmem:[#allocation47_spill] sm:$0xff] }
 0x64a   : > { %v10135_v25 = vpop.eup %10134  ;;  %10144 = vrcp.f32 %v4066_v16 }
 0x64b   : > { %v4069_v20 = vpop.xlane.xlu1 %4068  ;;  %9025 = vmatprep.subr.bf16.mxu0 %v9024_v21  ;;  %v3197_v53 = vmul.f32 %v10135_v25, %v17588_v34  ;;  %v3196_v4 = vmul.f32 %v10135_v25, %v17590_v45 }
 0x64c   : > { %v10137_v49 = vpop.eup %10136  ;;  %10146 = vrcp.f32 %v4069_v20  ;;  %9027 = vmatpush1.bf16.xpose.msra.mxu0 %v9026_v2 }
 0x64d   : > { %v3100_v39 = vpop.xlane.xlu0 %3099  ;;  %v8964_v28 = vpack.c.bf16 %v3197_v53, %v3195_v17  ;;  %v8966_v63 = vpack.c.bf16 %v3196_v4, %v3194_v1  ;;  %v4167_v38 = vmul.f32 %v10137_v49, %v17591_v30  ;;  %v4166_v8 = vmul.f32 %v10137_v49, %v17593_v41  ;;  %v17602_v17 = vld [vmem:[#allocation72_spill] sm:$0xff]  ;;  %v17603_v53 = vld [vmem:[#allocation75_spill] sm:$0xff] }
 0x64e   : > { %v10139_v9 = vpop.eup %10138  ;;  %10148 = vrcp.f32 %v3100_v39  ;;  %5269 = vxpose.xlu1.b32.start.end [1/1] (short) %v367_v26, 128  ;;  %v17604_v1 = vld [vmem:[#allocation80_spill] sm:$0xff]  ;;  %v17605_v4 = vld [vmem:[#allocation43_spill] sm:$0xff] }
 0x64f   : > { %v3103_v55 = vpop.xlane.xlu1 %3102  ;;  %8965 = vmatprep.subr.bf16.mxu1 %v8964_v28  ;;  %v4169_v18 = vmul.f32 %v10139_v9, %v17592_v29  ;;  %v4168_v11 = vmul.f32 %v10139_v9, %v17594_v14 }
 0x650   : > { %v10141_v15 = vpop.eup %10140  ;;  %10150 = vrcp.f32 %v3103_v55  ;;  %8967 = vmatpush1.bf16.xpose.msra.mxu1 %v8966_v63 }
 0x651   : > { %v4072_v46 = vpop.xlane.xlu0 %4071  ;;  %v9028_v42 = vpack.c.bf16 %v4169_v18, %v4167_v38  ;;  %v9030_v61 = vpack.c.bf16 %v4168_v11, %v4166_v8  ;;  %v3199_v10 = vmul.f32 %v10141_v15, %v17595_v24  ;;  %v3198_v57 = vmul.f32 %v10141_v15, %v17596_v51  ;;  %v17606_v38 = vld [vmem:[#allocation78_spill] sm:$0xff]  ;;  %v17607_v18 = vld [vmem:[#allocation84_spill] sm:$0xff]  ;;  %v17608_v8 = vld [vmem:[#allocation77_spill] sm:$0xff] }
 0x652   : > { %v10143_v37 = vpop.eup %10142  ;;  %10152 = vrcp.f32 %v4072_v46  ;;  %v17609_v11 = vld [vmem:[#allocation82_spill] sm:$0xff] }
 0x653   : > { %v4075_v19 = vpop.xlane.xlu1 %4074  ;;  %9029 = vmatprep.subr.bf16.mxu0 %v9028_v42  ;;  %v3201_v22 = vmul.f32 %v10143_v37, %v13548_v6  ;;  %v3200_v7 = vmul.f32 %v10143_v37, %v17597_v40 }
 0x654   : > { %v10145_v58 = vpop.eup %10144  ;;  %10154 = vrcp.f32 %v4075_v19  ;;  %9031 = vmatpush1.bf16.xpose.msra.mxu0 %v9030_v61 }
 0x655   : > { %v3106_v23 = vpop.xlane.xlu0 %3105  ;;  %v8968_v54 = vpack.c.bf16 %v3201_v22, %v3199_v10  ;;  %v8970_v48 = vpack.c.bf16 %v3200_v7, %v3198_v57  ;;  %v4171_v13 = vmul.f32 %v10145_v58, %v17598_v47  ;;  %v4170_v6 = vmul.f32 %v10145_v58, %v17600_v5  ;;  %v17610_v10 = vld [vmem:[#allocation79_spill] sm:$0xff]  ;;  %v17611_v57 = vld [vmem:[#allocation76_spill] sm:$0xff] }
 0x656   : > { %v10147_v50 = vpop.eup %10146  ;;  %10156 = vrcp.f32 %v3106_v23  ;;  %v17612_v7 = vld [vmem:[#allocation83_spill] sm:$0xff] }
 0x657   : > { %v3109_v32 = vpop.xlane.xlu1 %3108  ;;  %8969 = vmatprep.subr.bf16.mxu1 %v8968_v54  ;;  %v4173_v12 = vmul.f32 %v10147_v50, %v17599_v35  ;;  %v4172_v16 = vmul.f32 %v10147_v50, %v17601_v62 }
 0x658   : > { %v10149_v21 = vpop.eup %10148  ;;  %10158 = vrcp.f32 %v3109_v32  ;;  %8971 = vmatpush1.bf16.xpose.msra.mxu1 %v8970_v48 }
 0x659   : > { %v4078_v2 = vpop.xlane.xlu0 %4077  ;;  %v9032_v25 = vpack.c.bf16 %v4173_v12, %v4171_v13  ;;  %v9034_v26 = vpack.c.bf16 %v4172_v16, %v4170_v6  ;;  %v3203_v34 = vmul.f32 %v10149_v21, %v17602_v17  ;;  %v3202_v45 = vmul.f32 %v10149_v21, %v17604_v1 }
 0x65a   : > { %v10151_v20 = vpop.eup %10150  ;;  %10160 = vrcp.f32 %v4078_v2 }
 0x65b   : > { %v4081_v33 = vpop.xlane.xlu1 %4080  ;;  %9033 = vmatprep.subr.bf16.mxu0 %v9032_v25  ;;  %v3205_v31 = vmul.f32 %v10151_v20, %v17603_v53  ;;  %v3204_v49 = vmul.f32 %v10151_v20, %v17605_v4 }
 0x65c   : > { %v10153_v39 = vpop.eup %10152  ;;  %10162 = vrcp.f32 %v4081_v33  ;;  %9035 = vmatpush1.bf16.xpose.msra.mxu0 %v9034_v26 }
 0x65d   : > { %v3112_v28 = vpop.xlane.xlu0 %3111  ;;  %v8972_v63 = vpack.c.bf16 %v3205_v31, %v3203_v34  ;;  %v8974_v9 = vpack.c.bf16 %v3204_v49, %v3202_v45  ;;  %v4175_v29 = vmul.f32 %v10153_v39, %v17606_v38  ;;  %v4174_v14 = vmul.f32 %v10153_v39, %v17608_v8  ;;  %v17613_v34 = vld [vmem:[#allocation86_spill] sm:$0xff]  ;;  %v17614_v31 = vld [vmem:[#allocation85_spill] sm:$0xff]  ;;  %v17616_v49 = vld [vmem:[#allocation95_spill] sm:$0xff] }
 0x65e   : > { %v10155_v55 = vpop.eup %10154  ;;  %10164 = vrcp.f32 %v3112_v28  ;;  %v17617_v28 = vld [vmem:[#allocation61_spill] sm:$0xff]  ;;  %v4262_v8 = vld [vmem:[%s11391_s17 + $0x48] sm:$0xff] }
 0x65f   : > { %v3115_v30 = vpop.xlane.xlu1 %3114  ;;  %8973 = vmatprep.subr.bf16.mxu1 %v8972_v63  ;;  %v4177_v41 = vmul.f32 %v10155_v55, %v17607_v18  ;;  %v4176_v15 = vmul.f32 %v10155_v55, %v17609_v11 }
 0x660   : > { %v10157_v46 = vpop.eup %10156  ;;  %10166 = vrcp.f32 %v3115_v30  ;;  %8975 = vmatpush1.bf16.xpose.msra.mxu1 %v8974_v9  ;;  %v17618_v9 = vld [vmem:[#allocation87_spill] sm:$0xff] }
 0x661   : > { %v4084_v42 = vpop.xlane.xlu0 %4083  ;;  %v9036_v61 = vpack.c.bf16 %v4177_v41, %v4175_v29  ;;  %v9038_v37 = vpack.c.bf16 %v4176_v15, %v4174_v14  ;;  %v3207_v22 = vmul.f32 %v10157_v46, %v17610_v10  ;;  %v3206_v40 = vmul.f32 %v10157_v46, %v17611_v57  ;;  %v17620_v14 = vld [vmem:[#allocation88_spill] sm:$0xff]  ;;  %v17621_v15 = vld [vmem:[#allocation94_spill] sm:$0xff]  ;;  %v4261_v57 = vld [vmem:[%s11391_s17 + $0x40] sm:$0xff] }
 0x662   : > { %v10159_v19 = vpop.eup %10158  ;;  %10168 = vrcp.f32 %v4084_v42  ;;  %v17622_v42 = vld [vmem:[#allocation89_spill] sm:$0xff] }
 0x663   : > { %v4087_v24 = vpop.xlane.xlu1 %4086  ;;  %9037 = vmatprep.subr.bf16.mxu0 %v9036_v61  ;;  %v3209_v51 = vmul.f32 %v10159_v19, %v13612_v43  ;;  %v3208_v58 = vmul.f32 %v10159_v19, %v17612_v7  ;;  %v3291_v7 = vld [vmem:[%s12518_s24 + $0x30] sm:$0xff] }
 0x664   : > { %v10161_v23 = vpop.eup %10160  ;;  %10170 = vrcp.f32 %v4087_v24  ;;  %9039 = vmatpush1.bf16.xpose.msra.mxu0 %v9038_v37  ;;  %v17623_v37 = vld [vmem:[#allocation65_spill] sm:$0xff] }
 0x665   : > { %v3118_v54 = vpop.xlane.xlu0 %3117  ;;  %v8976_v48 = vpack.c.bf16 %v3209_v51, %v3207_v22  ;;  %v8978_v50 = vpack.c.bf16 %v3208_v58, %v3206_v40  ;;  %v4179_v13 = vmul.f32 %v10161_v23, %v13621_v56  ;;  %v4178_v43 = vmul.f32 %v10161_v23, %v13616_v3  ;;  %v5234_v22 = vld [vmem:[%s11391_s17 + $0x58] sm:$0xff]  ;;  %v2319_v51 = vld [vmem:[%s12518_s24 + $0x20] sm:$0xff]  ;;  %v5233_v58 = vld [vmem:[%s11391_s17 + $0x50] sm:$0xff] }
 0x666   : > { %v10163_v32 = vpop.eup %10162  ;;  %10172 = vrcp.f32 %v3118_v54  ;;  %v17624_v40 = vmov 0.0  }
 0x667   : > { %v3121_v47 = vpop.xlane.xlu1 %3120  ;;  %8977 = vmatprep.subr.bf16.mxu1 %v8976_v48  ;;  %v4181_v35 = vmul.f32 %v10163_v32, %v13628_v52  ;;  %v4180_v12 = vmul.f32 %v10163_v32, %v13626_v0 }
 0x668   : > { %v10165_v5 = vpop.eup %10164  ;;  %10174 = vrcp.f32 %v3121_v47  ;;  %8979 = vmatpush1.bf16.xpose.msra.mxu1 %v8978_v50 }
 0x669   : > { %v4090_v6 = vpop.xlane.xlu0 %4089  ;;  %v9040_v62 = vpack.c.bf16 %v4181_v35, %v4179_v13  ;;  %v9042_v16 = vpack.c.bf16 %v4180_v12, %v4178_v43  ;;  %v3211_v25 = vmul.f32 %v10165_v5, %v13638_v59  ;;  %v3210_v52 = vmul.f32 %v10165_v5, %v13632_v60  ;;  %v17615_v59 = vld [vmem:[#allocation59_spill] sm:$0xff] }
 0x66a   : > { %v10167_v21 = vpop.eup %10166  ;;  %10176 = vrcp.f32 %v4090_v6 }
 0x66b   : > { %v4093_v2 = vpop.xlane.xlu1 %4092  ;;  %9041 = vmatprep.subr.bf16.mxu0 %v9040_v62  ;;  %v3213_v56 = vmul.f32 %v10167_v21, %v13644_v27  ;;  %v3212_v3 = vmul.f32 %v10167_v21, %v13640_v44 }
 0x66c   : > { %v10169_v26 = vpop.eup %10168  ;;  %10178 = vrcp.f32 %v4093_v2  ;;  %9043 = vmatpush1.bf16.xpose.msra.mxu0 %v9042_v16 }
 0x66d   : > { %v8980_v0 = vpack.c.bf16 %v3213_v56, %v3211_v25  ;;  %v8982_v20 = vpack.c.bf16 %v3212_v3, %v3210_v52  ;;  %v4183_v17 = vmul.f32 %v10169_v26, %v13650_v36  ;;  %v4182_v1 = vmul.f32 %v10169_v26, %v17614_v31  ;;  %v17619_v36 = vld [vmem:[#allocation63_spill] sm:$0xff] }
 0x66e   : > { %v10171_v33 = vpop.eup %10170 }
 0x66f   : > { %8981 = vmatprep.subr.bf16.mxu1 %v8980_v0  ;;  %v4185_v53 = vmul.f32 %v10171_v33, %v17613_v34  ;;  %v4184_v45 = vmul.f32 %v10171_v33, %v17615_v59 }
 0x670   : > { %v10173_v27 = vpop.eup %10172  ;;  %8983 = vmatpush1.bf16.xpose.msra.mxu1 %v8982_v20 }
 0x671   : > { %v9044_v60 = vpack.c.bf16 %v4185_v53, %v4183_v17  ;;  %v9046_v44 = vpack.c.bf16 %v4184_v45, %v4182_v1  ;;  %v3215_v39 = vmul.f32 %v10173_v27, %v17616_v49  ;;  %v3214_v55 = vmul.f32 %v10173_v27, %v17618_v9 }
 0x672   : > { %v10175_v4 = vpop.eup %10174 }
 0x673   : > { %9045 = vmatprep.subr.bf16.mxu0 %v9044_v60  ;;  %v3217_v63 = vmul.f32 %v10175_v4, %v17617_v28  ;;  %v3216_v30 = vmul.f32 %v10175_v4, %v17619_v36 }
 0x674   : > { %v10177_v38 = vpop.eup %10176  ;;  %9047 = vmatpush1.bf16.xpose.msra.mxu0 %v9046_v44 }
 0x675   : > { %v8984_v29 = vpack.c.bf16 %v3217_v63, %v3215_v39  ;;  %v8986_v18 = vpack.c.bf16 %v3216_v30, %v3214_v55  ;;  %v4187_v11 = vmul.f32 %v10177_v38, %v17620_v14  ;;  %v4186_v61 = vmul.f32 %v10177_v38, %v17622_v42 }
 0x676   : > { %v10179_v41 = vpop.eup %10178 }
 0x677   : > { %8985 = vmatprep.subr.bf16.mxu1 %v8984_v29  ;;  %v4189_v46 = vmul.f32 %v10179_v41, %v17621_v15  ;;  %v4188_v19 = vmul.f32 %v10179_v41, %v17623_v37 }
 0x678   : > { %8987 = vmatpush1.bf16.xpose.msra.mxu1 %v8986_v18 }
 0x679   : > { %v9048_v24 = vpack.c.bf16 %v4189_v46, %v4187_v11  ;;  %v9050_v10 = vpack.c.bf16 %v4188_v19, %v4186_v61  ;;  %4425 = vmatprep.subr.mxu1 %v4262_v8 }
 0x67b   : > { %9049 = vmatprep.subr.bf16.mxu0 %v9048_v24 }
 0x67c   : > { %9051 = vmatpush1.bf16.xpose.msra.mxu0 %v9050_v10 }
 0x67d   : > { %5397 = vmatprep.subr.mxu0 %v5234_v22 }
 0x67f   : > { %3283 = vmatmul.mubr.f32.vlgmr.msra.gmra.mrb[130].mxu1 %v2319_v51 }
 0x680   : > { %4426 = vmatpush1.msra.mxu1 %v4261_v57  ;;  %4489 = vmatprep.mubr.f32.mxu1 %v17624_v40 }
 0x683   : > { %4255 = vmatmul.mubr.f32.vlgmr.msra.gmra.mrb[130].mxu0 %v3291_v7 }
 0x684   : > { %5398 = vmatpush1.msra.mxu0 %v5233_v58  ;;  %5461 = vmatprep.mubr.f32.mxu0 %v17624_v40 }
 0x689   : > { %v4281_v23 = vpop.trf.xlu0 }
 0x68a   : > { %8651 = vmatmul.mubr.msk.f32.vlgmr.msra.gmra.mrb[132].mxu1 %vm440_vm0, %v4281_v23 }
 0x68b   : > { %4495 = vmatprep.mubr.f32.mxu1 %v17624_v40 }
 0x68d   : > { %v4282_v54 = vpop.trf.xlu0 }
 0x68e   : > { %8652 = vmatmul.mubr.msk.f32.gmra.mrb[134].mxu1 %vm440_vm0, %v4282_v54 }
 0x68f   : > { %4501 = vmatprep.mubr.f32.mxu1 %v17624_v40 }
 0x691   : > { %v5253_v48 = vpop.trf.xlu1  ;;  %v4283_v50 = vpop.trf.xlu0 }
 0x692   : > { %8683 = vmatmul.mubr.msk.f32.vlgmr.msra.gmra.mrb[132].mxu0 %vm440_vm0, %v5253_v48  ;;  %8653 = vmatmul.mubr.msk.f32.gmra.mrb[136].mxu1 %vm440_vm0, %v4283_v50 }
 0x693   : > { %5467 = vmatprep.mubr.f32.mxu0 %v17624_v40  ;;  %4507 = vmatprep.mubr.f32.mxu1 %v17624_v40 }
 0x695   : > { %v5254_v32 = vpop.trf.xlu1  ;;  %v4284_v47 = vpop.trf.xlu0 }
 0x696   : > { %8684 = vmatmul.mubr.msk.f32.gmra.mrb[134].mxu0 %vm440_vm0, %v5254_v32  ;;  %8654 = vmatmul.mubr.msk.f32.gmra.mrb[138].mxu1 %vm440_vm0, %v4284_v47 }
 0x697   : > { %5473 = vmatprep.mubr.f32.mxu0 %v17624_v40  ;;  %4513 = vmatprep.mubr.f32.mxu1 %v17624_v40 }
 0x699   : > { %v5255_v13 = vpop.trf.xlu1  ;;  %v4285_v35 = vpop.trf.xlu0 }
 0x69a   : > { %8685 = vmatmul.mubr.msk.f32.gmra.mrb[136].mxu0 %vm440_vm0, %v5255_v13  ;;  %8655 = vmatmul.mubr.msk.f32.gmra.mrb[140].mxu1 %vm440_vm0, %v4285_v35 }
 0x69b   : > { %5479 = vmatprep.mubr.f32.mxu0 %v17624_v40  ;;  %4519 = vmatprep.mubr.f32.mxu1 %v17624_v40 }
 0x69d   : > { %v5256_v43 = vpop.trf.xlu1  ;;  %v4286_v12 = vpop.trf.xlu0 }
 0x69e   : > { %8686 = vmatmul.mubr.msk.f32.gmra.mrb[138].mxu0 %vm440_vm0, %v5256_v43  ;;  %8656 = vmatmul.mubr.msk.f32.gmra.mrb[142].mxu1 %vm440_vm0, %v4286_v12 }
 0x69f   : > { %5485 = vmatprep.mubr.f32.mxu0 %v17624_v40  ;;  %4525 = vmatprep.mubr.f32.mxu1 %v17624_v40 }
 0x6a1   : > { %v5257_v5 = vpop.trf.xlu1  ;;  %v4287_v6 = vpop.trf.xlu0 }
 0x6a2   : > { %8687 = vmatmul.mubr.msk.f32.gmra.mrb[140].mxu0 %vm440_vm0, %v5257_v5  ;;  %8657 = vmatmul.mubr.msk.f32.gmra.mrb[144].mxu1 %vm440_vm0, %v4287_v6 }
 0x6a3   : > { %5491 = vmatprep.mubr.f32.mxu0 %v17624_v40  ;;  %4531 = vmatprep.mubr.f32.mxu1 %v17624_v40 }
 0x6a5   : > { %v5258_v62 = vpop.trf.xlu1  ;;  %v4288_v16 = vpop.trf.xlu0 }
 0x6a6   : > { %8688 = vmatmul.mubr.msk.f32.gmra.mrb[142].mxu0 %vm440_vm0, %v5258_v62  ;;  %8658 = vmatmul.mubr.msk.f32.gmra.mrb[146].mxu1 %vm440_vm0, %v4288_v16 }
 0x6a7   : > { %5497 = vmatprep.mubr.f32.mxu0 %v17624_v40  ;;  %4537 = vmatprep.mubr.f32.mxu1 %v17624_v40 }
 0x6a9   : > { %v5259_v21 = vpop.trf.xlu1  ;;  %v4289_v2 = vpop.trf.xlu0 }
 0x6aa   : > { %8689 = vmatmul.mubr.msk.f32.gmra.mrb[144].mxu0 %vm440_vm0, %v5259_v21  ;;  %8659 = vmatmul.mubr.msk.f32.gmra.mrb[148].mxu1 %vm440_vm0, %v4289_v2 }
 0x6ab   : > { %5503 = vmatprep.mubr.f32.mxu0 %v17624_v40  ;;  %4543 = vmatprep.mubr.f32.mxu1 %v17624_v40 }
 0x6ad   : > { %v5260_v25 = vpop.trf.xlu1  ;;  %v4290_v56 = vpop.trf.xlu0 }
 0x6ae   : > { %8690 = vmatmul.mubr.msk.f32.gmra.mrb[146].mxu0 %vm440_vm0, %v5260_v25  ;;  %8660 = vmatmul.mubr.msk.f32.gmra.mrb[150].mxu1 %vm440_vm0, %v4290_v56 }
 0x6af   : > { %5509 = vmatprep.mubr.f32.mxu0 %v17624_v40  ;;  %4549 = vmatprep.mubr.f32.mxu1 %v17624_v40 }
 0x6b1   : > { %v5261_v52 = vpop.trf.xlu1  ;;  %v4291_v3 = vpop.trf.xlu0 }
 0x6b2   : > { %8691 = vmatmul.mubr.msk.f32.gmra.mrb[148].mxu0 %vm440_vm0, %v5261_v52  ;;  %8661 = vmatmul.mubr.msk.f32.gmra.mrb[152].mxu1 %vm440_vm0, %v4291_v3 }
 0x6b3   : > { %5515 = vmatprep.mubr.f32.mxu0 %v17624_v40  ;;  %4555 = vmatprep.mubr.f32.mxu1 %v17624_v40 }
 0x6b5   : > { %v5262_v26 = vpop.trf.xlu1  ;;  %v4292_v0 = vpop.trf.xlu0 }
 0x6b6   : > { %8692 = vmatmul.mubr.msk.f32.gmra.mrb[150].mxu0 %vm440_vm0, %v5262_v26  ;;  %8662 = vmatmul.mubr.msk.f32.gmra.mrb[154].mxu1 %vm440_vm0, %v4292_v0 }
 0x6b7   : > { %5521 = vmatprep.mubr.f32.mxu0 %v17624_v40  ;;  %4561 = vmatprep.mubr.f32.mxu1 %v17624_v40 }
 0x6b9   : > { %v5263_v20 = vpop.trf.xlu1  ;;  %v4293_v33 = vpop.trf.xlu0 }
 0x6ba   : > { %8693 = vmatmul.mubr.msk.f32.gmra.mrb[152].mxu0 %vm440_vm0, %v5263_v20  ;;  %8663 = vmatmul.mubr.msk.f32.gmra.mrb[156].mxu1 %vm440_vm0, %v4293_v33 }
 0x6bb   : > { %5527 = vmatprep.mubr.f32.mxu0 %v17624_v40  ;;  %4567 = vmatprep.mubr.f32.mxu1 %v17624_v40 }
 0x6bd   : > { %v5264_v17 = vpop.trf.xlu1  ;;  %v4294_v34 = vpop.trf.xlu0 }
 0x6be   : > { %8694 = vmatmul.mubr.msk.f32.gmra.mrb[154].mxu0 %vm440_vm0, %v5264_v17  ;;  %8664 = vmatmul.mubr.msk.f32.gmra.mrb[158].mxu1 %vm440_vm0, %v4294_v34 }
 0x6bf   : > { %5533 = vmatprep.mubr.f32.mxu0 %v17624_v40  ;;  %4573 = vmatprep.mubr.f32.mxu1 %v17624_v40 }
 0x6c1   : > { %v5265_v53 = vpop.trf.xlu1  ;;  %v4295_v31 = vpop.trf.xlu0 }
 0x6c2   : > { %8695 = vmatmul.mubr.msk.f32.gmra.mrb[156].mxu0 %vm440_vm0, %v5265_v53  ;;  %8665 = vmatmul.mubr.msk.f32.gmra.mrb[160].mxu1 %vm440_vm0, %v4295_v31 }
 0x6c3   : > { %5539 = vmatprep.mubr.f32.mxu0 %v17624_v40  ;;  %4579 = vmatprep.mubr.f32.mxu1 %v17624_v40 }
 0x6c5   : > { %v5266_v1 = vpop.trf.xlu1  ;;  %v4296_v59 = vpop.trf.xlu0 }
 0x6c6   : > { %8696 = vmatmul.mubr.msk.f32.gmra.mrb[158].mxu0 %vm440_vm0, %v5266_v1  ;;  %8666 = vmatmul.mubr.msk.f32.gmra.mrb[162].mxu1 %vm440_vm0, %v4296_v59 }
 0x6c7   : > { %5545 = vmatprep.mubr.f32.mxu0 %v17624_v40  ;;  %4585 = vmatprep.mubr.f32.mxu1 %v17624_v40 }
 0x6c9   : > { %v5267_v45 = vpop.trf.xlu1  ;;  %v4313_v27 = vpop.trf.xlu0 }
 0x6ca   : > { %8697 = vmatmul.mubr.msk.f32.gmra.mrb[160].mxu0 %vm440_vm0, %v5267_v45  ;;  %8667 = vmatmul.mubr.msk.f32.gmra.mrb[164].mxu1 %vm440_vm0, %v4313_v27 }
 0x6cb   : > { %5551 = vmatprep.mubr.f32.mxu0 %v17624_v40  ;;  %4591 = vmatprep.mubr.f32.mxu1 %v17624_v40 }
 0x6cd   : > { %v5268_v60 = vpop.trf.xlu1  ;;  %v4314_v44 = vpop.trf.xlu0 }
 0x6ce   : > { %8698 = vmatmul.mubr.msk.f32.gmra.mrb[162].mxu0 %vm440_vm0, %v5268_v60  ;;  %8668 = vmatmul.mubr.msk.f32.gmra.mrb[166].mxu1 %vm440_vm0, %v4314_v44 }
 0x6cf   : > { %5557 = vmatprep.mubr.f32.mxu0 %v17624_v40  ;;  %4597 = vmatprep.mubr.f32.mxu1 %v17624_v40 }
 0x6d1   : > { %v5285_v4 = vpop.trf.xlu1  ;;  %v4315_v49 = vpop.trf.xlu0 }
 0x6d2   : > { %8699 = vmatmul.mubr.msk.f32.gmra.mrb[164].mxu0 %vm440_vm0, %v5285_v4  ;;  %8669 = vmatmul.mubr.msk.f32.gmra.mrb[168].mxu1 %vm440_vm0, %v4315_v49 }
 0x6d3   : > { %5563 = vmatprep.mubr.f32.mxu0 %v17624_v40  ;;  %4603 = vmatprep.mubr.f32.mxu1 %v17624_v40 }
 0x6d5   : > { %v5286_v39 = vpop.trf.xlu1  ;;  %v4316_v28 = vpop.trf.xlu0 }
 0x6d6   : > { %8700 = vmatmul.mubr.msk.f32.gmra.mrb[166].mxu0 %vm440_vm0, %v5286_v39  ;;  %8670 = vmatmul.mubr.msk.f32.gmra.mrb[170].mxu1 %vm440_vm0, %v4316_v28 }
 0x6d7   : > { %5569 = vmatprep.mubr.f32.mxu0 %v17624_v40  ;;  %4609 = vmatprep.mubr.f32.mxu1 %v17624_v40 }
 0x6d9   : > { %v5287_v63 = vpop.trf.xlu1  ;;  %v4317_v9 = vpop.trf.xlu0 }
 0x6da   : > { %8701 = vmatmul.mubr.msk.f32.gmra.mrb[168].mxu0 %vm440_vm0, %v5287_v63  ;;  %8671 = vmatmul.mubr.msk.f32.gmra.mrb[172].mxu1 %vm440_vm0, %v4317_v9 }
 0x6db   : > { %5575 = vmatprep.mubr.f32.mxu0 %v17624_v40  ;;  %4615 = vmatprep.mubr.f32.mxu1 %v17624_v40 }
 0x6dd   : > { %v5288_v55 = vpop.trf.xlu1  ;;  %v4318_v36 = vpop.trf.xlu0 }
 0x6de   : > { %8702 = vmatmul.mubr.msk.f32.gmra.mrb[170].mxu0 %vm440_vm0, %v5288_v55  ;;  %8672 = vmatmul.mubr.msk.f32.gmra.mrb[174].mxu1 %vm440_vm0, %v4318_v36 }
 0x6df   : > { %5581 = vmatprep.mubr.f32.mxu0 %v17624_v40  ;;  %4621 = vmatprep.mubr.f32.mxu1 %v17624_v40 }
 0x6e1   : > { %v5289_v30 = vpop.trf.xlu1  ;;  %v4319_v38 = vpop.trf.xlu0 }
 0x6e2   : > { %8703 = vmatmul.mubr.msk.f32.gmra.mrb[172].mxu0 %vm440_vm0, %v5289_v30  ;;  %8673 = vmatmul.mubr.msk.f32.gmra.mrb[176].mxu1 %vm440_vm0, %v4319_v38 }
 0x6e3   : > { %5587 = vmatprep.mubr.f32.mxu0 %v17624_v40  ;;  %4627 = vmatprep.mubr.f32.mxu1 %v17624_v40 }
 0x6e5   : > { %v5290_v29 = vpop.trf.xlu1  ;;  %v4320_v18 = vpop.trf.xlu0 }
 0x6e6   : > { %8704 = vmatmul.mubr.msk.f32.gmra.mrb[174].mxu0 %vm440_vm0, %v5290_v29  ;;  %8674 = vmatmul.mubr.msk.f32.gmra.mrb[178].mxu1 %vm440_vm0, %v4320_v18 }
 0x6e7   : > { %5593 = vmatprep.mubr.f32.mxu0 %v17624_v40  ;;  %4633 = vmatprep.mubr.f32.mxu1 %v17624_v40 }
 0x6e9   : > { %v5291_v41 = vpop.trf.xlu1  ;;  %v4321_v8 = vpop.trf.xlu0 }
 0x6ea   : > { %8705 = vmatmul.mubr.msk.f32.gmra.mrb[176].mxu0 %vm440_vm0, %v5291_v41  ;;  %8675 = vmatmul.mubr.msk.f32.gmra.mrb[180].mxu1 %vm440_vm0, %v4321_v8 }
 0x6eb   : > { %5599 = vmatprep.mubr.f32.mxu0 %v17624_v40  ;;  %4639 = vmatprep.mubr.f32.mxu1 %v17624_v40 }
 0x6ed   : > { %v5292_v14 = vpop.trf.xlu1  ;;  %v4322_v11 = vpop.trf.xlu0 }
 0x6ee   : > { %8706 = vmatmul.mubr.msk.f32.gmra.mrb[178].mxu0 %vm440_vm0, %v5292_v14  ;;  %8676 = vmatmul.mubr.msk.f32.gmra.mrb[182].mxu1 %vm440_vm0, %v4322_v11 }
 0x6ef   : > { %5605 = vmatprep.mubr.f32.mxu0 %v17624_v40  ;;  %4645 = vmatprep.mubr.f32.mxu1 %v17624_v40 }
 0x6f1   : > { %v5293_v15 = vpop.trf.xlu1  ;;  %v4323_v46 = vpop.trf.xlu0 }
 0x6f2   : > { %8707 = vmatmul.mubr.msk.f32.gmra.mrb[180].mxu0 %vm440_vm0, %v5293_v15  ;;  %8677 = vmatmul.mubr.msk.f32.gmra.mrb[184].mxu1 %vm440_vm0, %v4323_v46 }
 0x6f3   : > { %5611 = vmatprep.mubr.f32.mxu0 %v17624_v40  ;;  %4651 = vmatprep.mubr.f32.mxu1 %v17624_v40 }
 0x6f5   : > { %v5294_v42 = vpop.trf.xlu1  ;;  %v4324_v61 = vpop.trf.xlu0 }
 0x6f6   : > { %8708 = vmatmul.mubr.msk.f32.gmra.mrb[182].mxu0 %vm440_vm0, %v5294_v42  ;;  %8678 = vmatmul.mubr.msk.f32.gmra.mrb[186].mxu1 %vm440_vm0, %v4324_v61 }
 0x6f7   : > { %5617 = vmatprep.mubr.f32.mxu0 %v17624_v40  ;;  %4657 = vmatprep.mubr.f32.mxu1 %v17624_v40 }
 0x6f9   : > { %v5295_v37 = vpop.trf.xlu1  ;;  %v4325_v19 = vpop.trf.xlu0 }
 0x6fa   : > { %8709 = vmatmul.mubr.msk.f32.gmra.mrb[184].mxu0 %vm440_vm0, %v5295_v37  ;;  %8679 = vmatmul.mubr.msk.f32.gmra.mrb[188].mxu1 %vm440_vm0, %v4325_v19 }
 0x6fb   : > { %5623 = vmatprep.mubr.f32.mxu0 %v17624_v40  ;;  %4663 = vmatprep.mubr.f32.mxu1 %v17624_v40 }
 0x6fd   : > { %v5296_v24 = vpop.trf.xlu1  ;;  %v4326_v10 = vpop.trf.xlu0 }
 0x6fe   : > { %8710 = vmatmul.mubr.msk.f32.gmra.mrb[186].mxu0 %vm440_vm0, %v5296_v24  ;;  %8680 = vmatmul.mubr.msk.f32.gmra.mrb[190].mxu1 %vm440_vm0, %v4326_v10 }
 0x6ff   : > { %5629 = vmatprep.mubr.f32.mxu0 %v17624_v40  ;;  %4669 = vmatprep.mubr.f32.mxu1 %v17624_v40 }
 0x701   : > { %v5297_v22 = vpop.trf.xlu1  ;;  %v4327_v51 = vpop.trf.xlu0 }
 0x702   : > { %8711 = vmatmul.mubr.msk.f32.gmra.mrb[188].mxu0 %vm440_vm0, %v5297_v22  ;;  %8681 = vmatmul.mubr.msk.f32.gmra.mrb[192].mxu1 %vm440_vm0, %v4327_v51 }
 0x703   : > { %5635 = vmatprep.mubr.f32.mxu0 %v17624_v40  ;;  %4675 = vmatprep.mubr.f32.mxu1 %v17624_v40 }
 0x705   : > { %v5298_v57 = vpop.trf.xlu1  ;;  %v4328_v7 = vpop.trf.xlu0 }
 0x706   : > { %8712 = vmatmul.mubr.msk.f32.gmra.mrb[190].mxu0 %vm440_vm0, %v5298_v57  ;;  %8682 = vmatmul.mubr.msk.f32.gmra.mrb[194].mxu1 %vm440_vm0, %v4328_v7 }
 0x707   : > { %5641 = vmatprep.mubr.f32.mxu0 %v17624_v40 }
 0x709   : > { %v5299_v58 = vpop.trf.xlu1 }
 0x70a   : > { %8713 = vmatmul.mubr.msk.f32.gmra.mrb[192].mxu0 %vm440_vm0, %v5299_v58 }
 0x70b   : > { %5647 = vmatprep.mubr.f32.mxu0 %v17624_v40 }
 0x70d   : > { %v5300_v23 = vpop.trf.xlu1 }
 0x70e   : > { %8714 = vmatmul.mubr.msk.f32.gmra.mrb[194].mxu0 %vm440_vm0, %v5300_v23 }
 0x752   : > { %v3284_v54 = vpop.f32.mrb[130].mxu1 }
 0x753   : > { %v3286_v48 = vpop.f32.mrb[131].mxu1 }
 0x756   : > { %v4256_v50 = vpop.f32.mrb[130].mxu0 }
 0x757   : > { %v13952_v32 = vpack.c.bf16 %v4256_v50, %v3284_v54  ;;  %v4258_v47 = vpop.f32.mrb[131].mxu0 }
 0x758   : > { %v13954_v13 = vpack.c.bf16 %v4258_v47, %v3286_v48 }
 0x759   : > { %17625 = vst [vmem:[#allocation93_spill] sm:$0xff] %v13952_v32 }
 0x75a   : > { %17626 = vst [vmem:[#allocation97_spill] sm:$0xff] %v13954_v13 }
 0x75d   : > { %v13956_v35 = vpop.f32.mrb[132].mxu1 }
 0x75e   : > { %v13958_v43 = vpop.f32.mrb[133].mxu1 }
 0x75f   : > { %v4682_v12 = vmax.f32 %v13956_v35, %v13958_v43 }
 0x761   : > { %4683 = vmax.xlane.f32.xlu0 %v4682_v12  ;;  %v13962_v5 = vpop.f32.mrb[134].mxu1 }
 0x762   : > { %v13964_v6 = vpop.f32.mrb[135].mxu1 }
 0x763   : > { %v4685_v62 = vmax.f32 %v13962_v5, %v13964_v6 }
 0x765   : > { %4686 = vmax.xlane.f32.xlu1 %v4685_v62  ;;  %v13968_v16 = vpop.f32.mrb[132].mxu0  ;;  %v13970_v21 = vpop.f32.mrb[136].mxu1 }
 0x766   : > { %v13972_v2 = vpop.f32.mrb[133].mxu0  ;;  %v13974_v25 = vpop.f32.mrb[137].mxu1 }
 0x767   : > { %v5654_v56 = vmax.f32 %v13968_v16, %v13972_v2  ;;  %v4688_v52 = vmax.f32 %v13970_v21, %v13974_v25 }
 0x769   : > { %v13980_v3 = vpop.f32.mrb[134].mxu0  ;;  %5655 = vmax.xlane.f32.xlu0 %v5654_v56  ;;  %v13982_v26 = vpop.f32.mrb[138].mxu1 }
 0x76a   : > { %v13984_v0 = vpop.f32.mrb[135].mxu0  ;;  %v13986_v20 = vpop.f32.mrb[139].mxu1 }
 0x76b   : > { %v5657_v33 = vmax.f32 %v13980_v3, %v13984_v0  ;;  %v4691_v17 = vmax.f32 %v13982_v26, %v13986_v20 }
 0x76d   : > { %v13992_v34 = vpop.f32.mrb[136].mxu0  ;;  %5658 = vmax.xlane.f32.xlu1 %v5657_v33  ;;  %4689 = vmax.xlane.f32.xlu0 %v4688_v52  ;;  %v13994_v53 = vpop.f32.mrb[140].mxu1 }
 0x76e   : > { %v13996_v31 = vpop.f32.mrb[137].mxu0  ;;  %v13998_v1 = vpop.f32.mrb[141].mxu1 }
 0x76f   : > { %v5660_v59 = vmax.f32 %v13992_v34, %v13996_v31  ;;  %v4694_v45 = vmax.f32 %v13994_v53, %v13998_v1 }
 0x771   : > { %v14004_v27 = vpop.f32.mrb[138].mxu0  ;;  %5661 = vmax.xlane.f32.xlu0 %v5660_v59  ;;  %4692 = vmax.xlane.f32.xlu1 %v4691_v17  ;;  %v14006_v60 = vpop.f32.mrb[142].mxu1 }
 0x772   : > { %v14008_v44 = vpop.f32.mrb[139].mxu0  ;;  %v14010_v4 = vpop.f32.mrb[143].mxu1 }
 0x773   : > { %v5663_v49 = vmax.f32 %v14004_v27, %v14008_v44  ;;  %v4697_v39 = vmax.f32 %v14006_v60, %v14010_v4 }
 0x775   : > { %v14016_v28 = vpop.f32.mrb[140].mxu0  ;;  %5664 = vmax.xlane.f32.xlu1 %v5663_v49  ;;  %4695 = vmax.xlane.f32.xlu0 %v4694_v45  ;;  %v14018_v63 = vpop.f32.mrb[144].mxu1 }
 0x776   : > { %v14020_v9 = vpop.f32.mrb[141].mxu0  ;;  %v14022_v55 = vpop.f32.mrb[145].mxu1 }
 0x777   : > { %v5666_v36 = vmax.f32 %v14016_v28, %v14020_v9  ;;  %v4700_v30 = vmax.f32 %v14018_v63, %v14022_v55 }
 0x779   : > { %v14028_v38 = vpop.f32.mrb[142].mxu0  ;;  %5667 = vmax.xlane.f32.xlu0 %v5666_v36  ;;  %4698 = vmax.xlane.f32.xlu1 %v4697_v39  ;;  %v14030_v29 = vpop.f32.mrb[146].mxu1 }
 0x77a   : > { %v14032_v18 = vpop.f32.mrb[143].mxu0  ;;  %v14034_v41 = vpop.f32.mrb[147].mxu1 }
 0x77b   : > { %v5669_v8 = vmax.f32 %v14028_v38, %v14032_v18  ;;  %v4703_v14 = vmax.f32 %v14030_v29, %v14034_v41 }
 0x77d   : > { %v14040_v11 = vpop.f32.mrb[144].mxu0  ;;  %5670 = vmax.xlane.f32.xlu1 %v5669_v8  ;;  %4701 = vmax.xlane.f32.xlu0 %v4700_v30  ;;  %v14042_v15 = vpop.f32.mrb[148].mxu1 }
 0x77e   : > { %v14044_v46 = vpop.f32.mrb[145].mxu0  ;;  %v14046_v42 = vpop.f32.mrb[149].mxu1 }
 0x77f   : > { %v5672_v61 = vmax.f32 %v14040_v11, %v14044_v46  ;;  %v4706_v37 = vmax.f32 %v14042_v15, %v14046_v42 }
 0x781   : > { %v14052_v19 = vpop.f32.mrb[146].mxu0  ;;  %5673 = vmax.xlane.f32.xlu0 %v5672_v61  ;;  %4704 = vmax.xlane.f32.xlu1 %v4703_v14  ;;  %v14054_v24 = vpop.f32.mrb[150].mxu1 }
 0x782   : > { %v14056_v10 = vpop.f32.mrb[147].mxu0  ;;  %v14058_v22 = vpop.f32.mrb[151].mxu1 }
 0x783   : > { %v5675_v51 = vmax.f32 %v14052_v19, %v14056_v10  ;;  %v4709_v57 = vmax.f32 %v14054_v24, %v14058_v22 }
 0x785   : > { %v14064_v7 = vpop.f32.mrb[148].mxu0  ;;  %5676 = vmax.xlane.f32.xlu1 %v5675_v51  ;;  %4707 = vmax.xlane.f32.xlu0 %v4706_v37  ;;  %v14066_v58 = vpop.f32.mrb[152].mxu1 }
 0x786   : > { %v14068_v23 = vpop.f32.mrb[149].mxu0  ;;  %v14070_v54 = vpop.f32.mrb[153].mxu1 }
 0x787   : > { %v5678_v48 = vmax.f32 %v14064_v7, %v14068_v23  ;;  %v4712_v50 = vmax.f32 %v14066_v58, %v14070_v54 }
 0x789   : > { %v14076_v47 = vpop.f32.mrb[150].mxu0  ;;  %5679 = vmax.xlane.f32.xlu0 %v5678_v48  ;;  %4710 = vmax.xlane.f32.xlu1 %v4709_v57  ;;  %v14078_v12 = vpop.f32.mrb[154].mxu1 }
 0x78a   : > { %v14080_v62 = vpop.f32.mrb[151].mxu0  ;;  %v14082_v56 = vpop.f32.mrb[155].mxu1 }
 0x78b   : > { %v5681_v52 = vmax.f32 %v14076_v47, %v14080_v62  ;;  %v4715_v33 = vmax.f32 %v14078_v12, %v14082_v56 }
 0x78d   : > { %v14088_v17 = vpop.f32.mrb[152].mxu0  ;;  %5682 = vmax.xlane.f32.xlu1 %v5681_v52  ;;  %4713 = vmax.xlane.f32.xlu0 %v4712_v50  ;;  %v14090_v59 = vpop.f32.mrb[156].mxu1 }
 0x78e   : > { %v14092_v45 = vpop.f32.mrb[153].mxu0  ;;  %v14094_v49 = vpop.f32.mrb[157].mxu1 }
 0x78f   : > { %v5684_v39 = vmax.f32 %v14088_v17, %v14092_v45  ;;  %v4718_v36 = vmax.f32 %v14090_v59, %v14094_v49 }
 0x791   : > { %v14100_v30 = vpop.f32.mrb[154].mxu0  ;;  %5685 = vmax.xlane.f32.xlu0 %v5684_v39  ;;  %4716 = vmax.xlane.f32.xlu1 %v4715_v33  ;;  %v14102_v8 = vpop.f32.mrb[158].mxu1 }
 0x792   : > { %17627 = vst [vmem:[#allocation96_spill] sm:$0xff] %v14102_v8  ;;  %v14104_v14 = vpop.f32.mrb[155].mxu0  ;;  %v14106_v61 = vpop.f32.mrb[159].mxu1 }
 0x793   : > { %17628 = vst [vmem:[#allocation18_spill] sm:$0xff] %v14106_v61  ;;  %v5687_v37 = vmax.f32 %v14100_v30, %v14104_v14  ;;  %v4721_v51 = vmax.f32 %v14102_v8, %v14106_v61 }
 0x795   : > { %v14112_v57 = vpop.f32.mrb[156].mxu0  ;;  %5688 = vmax.xlane.f32.xlu1 %v5687_v37  ;;  %4719 = vmax.xlane.f32.xlu0 %v4718_v36  ;;  %v14114_v48 = vpop.f32.mrb[160].mxu1 }
 0x796   : > { %17629 = vst [vmem:[#allocation90_spill] sm:$0xff] %v14112_v57  ;;  %17630 = vst [vmem:[#allocation19_spill] sm:$0xff] %v14114_v48  ;;  %v14116_v50 = vpop.f32.mrb[157].mxu0  ;;  %v14118_v52 = vpop.f32.mrb[161].mxu1 }
 0x797   : > { %17631 = vst [vmem:[#allocation23_spill] sm:$0xff] %v14116_v50  ;;  %17632 = vst [vmem:[#allocation46_spill] sm:$0xff] %v14118_v52  ;;  %v5690_v33 = vmax.f32 %v14112_v57, %v14116_v50  ;;  %v4724_v39 = vmax.f32 %v14114_v48, %v14118_v52 }
 0x799   : > { %v14124_v32 = vpop.f32.mrb[158].mxu0  ;;  %5691 = vmax.xlane.f32.xlu0 %v5690_v33  ;;  %4722 = vmax.xlane.f32.xlu1 %v4721_v51  ;;  %v14126_v13 = vpop.f32.mrb[162].mxu1 }
 0x79a   : > { %17633 = vst [vmem:[#allocation40_spill] sm:$0xff] %v14124_v32  ;;  %17634 = vst [vmem:[#allocation22_spill] sm:$0xff] %v14126_v13  ;;  %v14128_v37 = vpop.f32.mrb[159].mxu0  ;;  %v14130_v36 = vpop.f32.mrb[163].mxu1 }
 0x79b   : > { %17635 = vst [vmem:[#allocation17_spill] sm:$0xff] %v14128_v37  ;;  %17636 = vst [vmem:[#allocation20_spill] sm:$0xff] %v14130_v36  ;;  %v5693_v40 = vmax.f32 %v14124_v32, %v14128_v37  ;;  %v4727_v61 = vmax.f32 %v14126_v13, %v14130_v36 }
 0x79d   : > { %v14136_v50 = vpop.f32.mrb[160].mxu0  ;;  %5694 = vmax.xlane.f32.xlu1 %v5693_v40  ;;  %4725 = vmax.xlane.f32.xlu0 %v4724_v39  ;;  %v14138_v52 = vpop.f32.mrb[164].mxu1 }
 0x79e   : > { %17637 = vst [vmem:[#allocation41_spill] sm:$0xff] %v14136_v50  ;;  %17638 = vst [vmem:[#allocation39_spill] sm:$0xff] %v14138_v52  ;;  %v14140_v33 = vpop.f32.mrb[161].mxu0  ;;  %v14142_v51 = vpop.f32.mrb[165].mxu1 }
 0x79f   : > { %17639 = vst [vmem:[#allocation27_spill] sm:$0xff] %v14140_v33  ;;  %17640 = vst [vmem:[#allocation48_spill] sm:$0xff] %v14142_v51  ;;  %v5696_v48 = vmax.f32 %v14136_v50, %v14140_v33  ;;  %v4730_v57 = vmax.f32 %v14138_v52, %v14142_v51 }
 0x7a1   : > { %v14148_v37 = vpop.f32.mrb[162].mxu0  ;;  %5697 = vmax.xlane.f32.xlu0 %v5696_v48  ;;  %4728 = vmax.xlane.f32.xlu1 %v4727_v61  ;;  %v14150_v36 = vpop.f32.mrb[166].mxu1 }
 0x7a2   : > { %17641 = vst [vmem:[#allocation45_spill] sm:$0xff] %v14148_v37  ;;  %17642 = vst [vmem:[#allocation26_spill] sm:$0xff] %v14150_v36  ;;  %v14152_v40 = vpop.f32.mrb[163].mxu0  ;;  %v14154_v39 = vpop.f32.mrb[167].mxu1 }
 0x7a3   : > { %17643 = vst [vmem:[#allocation42_spill] sm:$0xff] %v14152_v40  ;;  %17644 = vst [vmem:[#allocation24_spill] sm:$0xff] %v14154_v39  ;;  %v5699_v13 = vmax.f32 %v14148_v37, %v14152_v40  ;;  %v4733_v32 = vmax.f32 %v14150_v36, %v14154_v39 }
 0x7a5   : > { %v14160_v33 = vpop.f32.mrb[164].mxu0  ;;  %5700 = vmax.xlane.f32.xlu1 %v5699_v13  ;;  %4731 = vmax.xlane.f32.xlu0 %v4730_v57  ;;  %v14162_v51 = vpop.f32.mrb[168].mxu1 }
 0x7a6   : > { %17645 = vst [vmem:[#allocation21_spill] sm:$0xff] %v14160_v33  ;;  %17646 = vst [vmem:[#allocation44_spill] sm:$0xff] %v14162_v51  ;;  %v14164_v48 = vpop.f32.mrb[165].mxu0  ;;  %v14166_v61 = vpop.f32.mrb[169].mxu1 }
 0x7a7   : > { %17647 = vst [vmem:[#allocation28_spill] sm:$0xff] %v14164_v48  ;;  %17648 = vst [vmem:[#allocation32_spill] sm:$0xff] %v14166_v61  ;;  %v5702_v52 = vmax.f32 %v14160_v33, %v14164_v48  ;;  %v4736_v50 = vmax.f32 %v14162_v51, %v14166_v61 }
 0x7a9   : > { %v14172_v40 = vpop.f32.mrb[166].mxu0  ;;  %5703 = vmax.xlane.f32.xlu0 %v5702_v52  ;;  %4734 = vmax.xlane.f32.xlu1 %v4733_v32  ;;  %v14174_v39 = vpop.f32.mrb[170].mxu1 }
 0x7aa   : > { %17649 = vst [vmem:[#allocation50_spill] sm:$0xff] %v14172_v40  ;;  %17650 = vst [vmem:[#allocation53_spill] sm:$0xff] %v14174_v39  ;;  %v14176_v13 = vpop.f32.mrb[167].mxu0  ;;  %v14178_v57 = vpop.f32.mrb[171].mxu1 }
 0x7ab   : > { %17651 = vst [vmem:[#allocation51_spill] sm:$0xff] %v14176_v13  ;;  %17652 = vst [vmem:[#allocation29_spill] sm:$0xff] %v14178_v57  ;;  %v5705_v36 = vmax.f32 %v14172_v40, %v14176_v13  ;;  %v4739_v37 = vmax.f32 %v14174_v39, %v14178_v57 }
 0x7ad   : > { %v14184_v48 = vpop.f32.mrb[168].mxu0  ;;  %5706 = vmax.xlane.f32.xlu1 %v5705_v36  ;;  %4737 = vmax.xlane.f32.xlu0 %v4736_v50  ;;  %v14186_v61 = vpop.f32.mrb[172].mxu1 }
 0x7ae   : > { %17653 = vst [vmem:[#allocation25_spill] sm:$0xff] %v14184_v48  ;;  %17654 = vst [vmem:[#allocation30_spill] sm:$0xff] %v14186_v61  ;;  %v14188_v52 = vpop.f32.mrb[169].mxu0  ;;  %v14190_v32 = vpop.f32.mrb[173].mxu1 }
 0x7af   : > { %17655 = vst [vmem:[#allocation57_spill] sm:$0xff] %v14188_v52  ;;  %17656 = vst [vmem:[#allocation58_spill] sm:$0xff] %v14190_v32  ;;  %v5708_v51 = vmax.f32 %v14184_v48, %v14188_v52  ;;  %v4742_v33 = vmax.f32 %v14186_v61, %v14190_v32 }
 0x7b1   : > { %v14196_v13 = vpop.f32.mrb[170].mxu0  ;;  %5709 = vmax.xlane.f32.xlu0 %v5708_v51  ;;  %4740 = vmax.xlane.f32.xlu1 %v4739_v37  ;;  %v14198_v57 = vpop.f32.mrb[174].mxu1 }
 0x7b2   : > { %17657 = vst [vmem:[#allocation55_spill] sm:$0xff] %v14196_v13  ;;  %17658 = vst [vmem:[#allocation34_spill] sm:$0xff] %v14198_v57  ;;  %v14200_v36 = vpop.f32.mrb[171].mxu0  ;;  %v14202_v50 = vpop.f32.mrb[175].mxu1 }
 0x7b3   : > { %17659 = vst [vmem:[#allocation31_spill] sm:$0xff] %v14200_v36  ;;  %17660 = vst [vmem:[#allocation56_spill] sm:$0xff] %v14202_v50  ;;  %v5711_v39 = vmax.f32 %v14196_v13, %v14200_v36  ;;  %v4745_v40 = vmax.f32 %v14198_v57, %v14202_v50 }
 0x7b5   : > { %v14208_v52 = vpop.f32.mrb[172].mxu0  ;;  %5712 = vmax.xlane.f32.xlu1 %v5711_v39  ;;  %4743 = vmax.xlane.f32.xlu0 %v4742_v33  ;;  %v14210_v32 = vpop.f32.mrb[176].mxu1 }
 0x7b6   : > { %17661 = vst [vmem:[#allocation52_spill] sm:$0xff] %v14208_v52  ;;  %17662 = vst [vmem:[#allocation54_spill] sm:$0xff] %v14210_v32  ;;  %v14212_v51 = vpop.f32.mrb[173].mxu0  ;;  %v14214_v37 = vpop.f32.mrb[177].mxu1 }
 0x7b7   : > { %17663 = vst [vmem:[#allocation36_spill] sm:$0xff] %v14212_v51  ;;  %17664 = vst [vmem:[#allocation37_spill] sm:$0xff] %v14214_v37  ;;  %v5714_v61 = vmax.f32 %v14208_v52, %v14212_v51  ;;  %v4748_v48 = vmax.f32 %v14210_v32, %v14214_v37 }
 0x7b9   : > { %v14220_v36 = vpop.f32.mrb[174].mxu0  ;;  %5715 = vmax.xlane.f32.xlu0 %v5714_v61  ;;  %4746 = vmax.xlane.f32.xlu1 %v4745_v40  ;;  %v14222_v50 = vpop.f32.mrb[178].mxu1 }
 0x7ba   : > { %17665 = vst [vmem:[#allocation62_spill] sm:$0xff] %v14220_v36  ;;  %17666 = vst [vmem:[#allocation67_spill] sm:$0xff] %v14222_v50  ;;  %v14224_v39 = vpop.f32.mrb[175].mxu0  ;;  %v14226_v33 = vpop.f32.mrb[179].mxu1 }
 0x7bb   : > { %17667 = vst [vmem:[#allocation35_spill] sm:$0xff] %v14224_v39  ;;  %17668 = vst [vmem:[#allocation64_spill] sm:$0xff] %v14226_v33  ;;  %v5717_v57 = vmax.f32 %v14220_v36, %v14224_v39  ;;  %v4751_v13 = vmax.f32 %v14222_v50, %v14226_v33 }
 0x7bd   : > { %v14232_v51 = vpop.f32.mrb[176].mxu0  ;;  %5718 = vmax.xlane.f32.xlu1 %v5717_v57  ;;  %4749 = vmax.xlane.f32.xlu0 %v4748_v48  ;;  %v14234_v37 = vpop.f32.mrb[180].mxu1 }
 0x7be   : > { %17669 = vst [vmem:[#allocation33_spill] sm:$0xff] %v14232_v51  ;;  %17670 = vst [vmem:[#allocation60_spill] sm:$0xff] %v14234_v37  ;;  %v14236_v61 = vpop.f32.mrb[177].mxu0  ;;  %v14238_v40 = vpop.f32.mrb[181].mxu1 }
 0x7bf   : > { %17671 = vst [vmem:[#allocation70_spill] sm:$0xff] %v14236_v61  ;;  %17672 = vst [vmem:[#allocation74_spill] sm:$0xff] %v14238_v40  ;;  %v5720_v32 = vmax.f32 %v14232_v51, %v14236_v61  ;;  %v4754_v52 = vmax.f32 %v14234_v37, %v14238_v40 }
 0x7c1   : > { %v14244_v39 = vpop.f32.mrb[178].mxu0  ;;  %5721 = vmax.xlane.f32.xlu0 %v5720_v32  ;;  %4752 = vmax.xlane.f32.xlu1 %v4751_v13  ;;  %v14246_v33 = vpop.f32.mrb[182].mxu1 }
 0x7c2   : > { %17673 = vst [vmem:[#allocation68_spill] sm:$0xff] %v14244_v39  ;;  %17674 = vst [vmem:[#allocation73_spill] sm:$0xff] %v14246_v33  ;;  %v14248_v57 = vpop.f32.mrb[179].mxu0  ;;  %v14250_v48 = vpop.f32.mrb[183].mxu1 }
 0x7c3   : > { %17675 = vst [vmem:[#allocation38_spill] sm:$0xff] %v14248_v57  ;;  %17676 = vst [vmem:[#allocation66_spill] sm:$0xff] %v14250_v48  ;;  %v5723_v50 = vmax.f32 %v14244_v39, %v14248_v57  ;;  %v4757_v36 = vmax.f32 %v14246_v33, %v14250_v48 }
 0x7c5   : > { %v14256_v61 = vpop.f32.mrb[180].mxu0  ;;  %5724 = vmax.xlane.f32.xlu1 %v5723_v50  ;;  %4755 = vmax.xlane.f32.xlu0 %v4754_v52  ;;  %v14258_v40 = vpop.f32.mrb[184].mxu1 }
 0x7c6   : > { %17677 = vst [vmem:[#allocation71_spill] sm:$0xff] %v14256_v61  ;;  %17678 = vst [vmem:[#allocation49_spill] sm:$0xff] %v14258_v40  ;;  %v14260_v32 = vpop.f32.mrb[181].mxu0  ;;  %v14262_v13 = vpop.f32.mrb[185].mxu1 }
 0x7c7   : > { %17679 = vst [vmem:[#allocation81_spill] sm:$0xff] %v14260_v32  ;;  %17680 = vst [vmem:[#allocation69_spill] sm:$0xff] %v14262_v13  ;;  %v5726_v37 = vmax.f32 %v14256_v61, %v14260_v32  ;;  %v4760_v51 = vmax.f32 %v14258_v40, %v14262_v13 }
 0x7c9   : > { %v14268_v57 = vpop.f32.mrb[182].mxu0  ;;  %5727 = vmax.xlane.f32.xlu0 %v5726_v37  ;;  %4758 = vmax.xlane.f32.xlu1 %v4757_v36  ;;  %v14270_v48 = vpop.f32.mrb[186].mxu1 }
 0x7ca   : > { %17681 = vst [vmem:[#allocation47_spill] sm:$0xff] %v14268_v57  ;;  %17682 = vst [vmem:[#allocation72_spill] sm:$0xff] %v14270_v48  ;;  %v14272_v50 = vpop.f32.mrb[183].mxu0  ;;  %v14274_v52 = vpop.f32.mrb[187].mxu1 }
 0x7cb   : > { %17683 = vst [vmem:[#allocation75_spill] sm:$0xff] %v14272_v50  ;;  %17684 = vst [vmem:[#allocation80_spill] sm:$0xff] %v14274_v52  ;;  %v5729_v33 = vmax.f32 %v14268_v57, %v14272_v50  ;;  %v4763_v39 = vmax.f32 %v14270_v48, %v14274_v52 }
 0x7cd   : > { %v14280_v32 = vpop.f32.mrb[184].mxu0  ;;  %5730 = vmax.xlane.f32.xlu1 %v5729_v33  ;;  %4761 = vmax.xlane.f32.xlu0 %v4760_v51  ;;  %v14282_v13 = vpop.f32.mrb[188].mxu1 }
 0x7ce   : > { %17685 = vst [vmem:[#allocation43_spill] sm:$0xff] %v14280_v32  ;;  %17686 = vst [vmem:[#allocation78_spill] sm:$0xff] %v14282_v13  ;;  %v14284_v37 = vpop.f32.mrb[185].mxu0  ;;  %v14286_v36 = vpop.f32.mrb[189].mxu1 }
 0x7cf   : > { %17687 = vst [vmem:[#allocation84_spill] sm:$0xff] %v14284_v37  ;;  %17688 = vst [vmem:[#allocation77_spill] sm:$0xff] %v14286_v36  ;;  %v5732_v40 = vmax.f32 %v14280_v32, %v14284_v37  ;;  %v4766_v61 = vmax.f32 %v14282_v13, %v14286_v36 }
 0x7d1   : > { %v14292_v50 = vpop.f32.mrb[186].mxu0  ;;  %5733 = vmax.xlane.f32.xlu0 %v5732_v40  ;;  %4764 = vmax.xlane.f32.xlu1 %v4763_v39  ;;  %v14294_v52 = vpop.f32.mrb[190].mxu1 }
 0x7d2   : > { %17689 = vst [vmem:[#allocation82_spill] sm:$0xff] %v14292_v50  ;;  %17690 = vst [vmem:[#allocation79_spill] sm:$0xff] %v14294_v52  ;;  %v14296_v33 = vpop.f32.mrb[187].mxu0  ;;  %v14298_v51 = vpop.f32.mrb[191].mxu1 }
 0x7d3   : > { %17691 = vst [vmem:[#allocation76_spill] sm:$0xff] %v14296_v33  ;;  %17692 = vst [vmem:[#allocation83_spill] sm:$0xff] %v14298_v51  ;;  %v5735_v48 = vmax.f32 %v14292_v50, %v14296_v33  ;;  %v4769_v57 = vmax.f32 %v14294_v52, %v14298_v51 }
 0x7d5   : > { %v14304_v37 = vpop.f32.mrb[188].mxu0  ;;  %5736 = vmax.xlane.f32.xlu1 %v5735_v48  ;;  %4767 = vmax.xlane.f32.xlu0 %v4766_v61  ;;  %v14306_v36 = vpop.f32.mrb[192].mxu1 }
 0x7d6   : > { %17693 = vst [vmem:[#allocation86_spill] sm:$0xff] %v14304_v37  ;;  %17694 = vst [vmem:[#allocation85_spill] sm:$0xff] %v14306_v36  ;;  %v14308_v40 = vpop.f32.mrb[189].mxu0  ;;  %v14310_v39 = vpop.f32.mrb[193].mxu1 }
 0x7d7   : > { %17695 = vst [vmem:[#allocation59_spill] sm:$0xff] %v14308_v40  ;;  %17696 = vst [vmem:[#allocation95_spill] sm:$0xff] %v14310_v39  ;;  %v5738_v13 = vmax.f32 %v14304_v37, %v14308_v40  ;;  %v4772_v32 = vmax.f32 %v14306_v36, %v14310_v39 }
 0x7d9   : > { %v14316_v33 = vpop.f32.mrb[190].mxu0  ;;  %5739 = vmax.xlane.f32.xlu0 %v5738_v13  ;;  %4770 = vmax.xlane.f32.xlu1 %v4769_v57  ;;  %v14318_v51 = vpop.f32.mrb[194].mxu1 }
 0x7da   : > { %17697 = vst [vmem:[#allocation61_spill] sm:$0xff] %v14316_v33  ;;  %17698 = vst [vmem:[#allocation87_spill] sm:$0xff] %v14318_v51  ;;  %v14320_v48 = vpop.f32.mrb[191].mxu0  ;;  %v14322_v61 = vpop.f32.mrb[195].mxu1 }
 0x7db   : > { %17699 = vst [vmem:[#allocation63_spill] sm:$0xff] %v14320_v48  ;;  %17700 = vst [vmem:[#allocation88_spill] sm:$0xff] %v14322_v61  ;;  %v5741_v52 = vmax.f32 %v14316_v33, %v14320_v48  ;;  %v4775_v50 = vmax.f32 %v14318_v51, %v14322_v61 }
 0x7dd   : > { %v14328_v40 = vpop.f32.mrb[192].mxu0  ;;  %5742 = vmax.xlane.f32.xlu1 %v5741_v52  ;;  %4773 = vmax.xlane.f32.xlu0 %v4772_v32 }
 0x7de   : > { %17701 = vst [vmem:[#allocation94_spill] sm:$0xff] %v14328_v40  ;;  %v14330_v39 = vpop.f32.mrb[193].mxu0 }
 0x7df   : > { %17702 = vst [vmem:[#allocation89_spill] sm:$0xff] %v14330_v39  ;;  %v5744_v57 = vmax.f32 %v14328_v40, %v14330_v39 }
 0x7e1   : > { %v14334_v13 = vpop.f32.mrb[194].mxu0  ;;  %5745 = vmax.xlane.f32.xlu0 %v5744_v57  ;;  %4776 = vmax.xlane.f32.xlu1 %v4775_v50 }
 0x7e2   : > { %v14336_v36 = vpop.f32.mrb[195].mxu0 }
 0x7e3   : > { %17703 = vst [vmem:[#allocation65_spill] sm:$0xff] %v14336_v36  ;;  %v5747_v48 = vmax.f32 %v14334_v13, %v14336_v36 }
 0x7e5   : > { %5748 = vmax.xlane.f32.xlu1 %v5747_v48 }
 0x7ee   : > { %v4684_v61 = vpop.xlane.xlu0 %4683 }
 0x7ef   : > { %v4778_v51 = vsub.f32 %v13956_v35, %v4684_v61  ;;  %v4779_v32 = vsub.f32 %v13958_v43, %v4684_v61 }
 0x7f1   : > { %v4842_v52 = vmul.f32 1.442695, %v4778_v51  ;;  %v4844_v33 = vmul.f32 1.442695, %v4779_v32 }
 0x7f2   : > { %v4687_v37 = vpop.xlane.xlu1 %4686 }
 0x7f3   : > { %10180 = vpow2.f32 %v4842_v52  ;;  %v4780_v39 = vsub.f32 %v13962_v5, %v4687_v37  ;;  %v4781_v57 = vsub.f32 %v13964_v6, %v4687_v37 }
 0x7f4   : > { %10182 = vpow2.f32 %v4844_v33 }
 0x7f5   : > { %v4846_v50 = vmul.f32 1.442695, %v4780_v39  ;;  %v4848_v40 = vmul.f32 1.442695, %v4781_v57 }
 0x7f6   : > { %v5656_v8 = vpop.xlane.xlu0 %5655 }
 0x7f7   : > { %10184 = vpow2.f32 %v4846_v50  ;;  %v5750_v48 = vsub.f32 %v13968_v16, %v5656_v8  ;;  %v5751_v36 = vsub.f32 %v13972_v2, %v5656_v8 }
 0x7f8   : > { %10186 = vpow2.f32 %v4848_v40 }
 0x7f9   : > { %v5814_v35 = vmul.f32 1.442695, %v5750_v48  ;;  %v5816_v43 = vmul.f32 1.442695, %v5751_v36 }
 0x7fa   : > { %v5659_v51 = vpop.xlane.xlu1 %5658  ;;  %v4690_v61 = vpop.xlane.xlu0 %4689 }
 0x7fb   : > { %10188 = vpow2.f32 %v5814_v35  ;;  %v5752_v32 = vsub.f32 %v13980_v3, %v5659_v51  ;;  %v5753_v5 = vsub.f32 %v13984_v0, %v5659_v51  ;;  %v4782_v6 = vsub.f32 %v13970_v21, %v4690_v61 }
 0x7fc   : > { %10190 = vpow2.f32 %v5816_v43  ;;  %v4783_v37 = vsub.f32 %v13974_v25, %v4690_v61 }
 0x7fd   : > { %v14350_v33 = vpop.eup %10180  ;;  %v5818_v16 = vmul.f32 1.442695, %v5752_v32  ;;  %v5820_v39 = vmul.f32 1.442695, %v5753_v5  ;;  %v4850_v2 = vmul.f32 1.442695, %v4782_v6 }
 0x7fe   : > { %v14352_v8 = vpop.eup %10182  ;;  %v4852_v36 = vmul.f32 1.442695, %v4783_v37  ;;  %v4693_v40 = vpop.xlane.xlu1 %4692 }
 0x7ff   : > { %v5662_v52 = vpop.xlane.xlu0 %5661  ;;  %10192 = vpow2.f32 %v5818_v16  ;;  %v4784_v3 = vsub.f32 %v13982_v26, %v4693_v40  ;;  %v4785_v0 = vsub.f32 %v13986_v20, %v4693_v40  ;;  %v4970_v21 = vadd.f32 %v14352_v8, %v14350_v33 }
 0x800   : > { %10194 = vpow2.f32 %v5820_v39  ;;  %v5754_v25 = vsub.f32 %v13992_v34, %v5662_v52  ;;  %v5755_v57 = vsub.f32 %v13996_v31, %v5662_v52 }
 0x801   : > { %v14360_v50 = vpop.eup %10184  ;;  %10196 = vpow2.f32 %v4850_v2  ;;  %v4854_v48 = vmul.f32 1.442695, %v4784_v3  ;;  %v4856_v35 = vmul.f32 1.442695, %v4785_v0  ;;  %4971 = vadd.xlane.f32.xlu0 %v4970_v21 }
 0x802   : > { %v14362_v43 = vpop.eup %10186  ;;  %10198 = vpow2.f32 %v4852_v36  ;;  %v5822_v26 = vmul.f32 1.442695, %v5754_v25  ;;  %v5824_v51 = vmul.f32 1.442695, %v5755_v57  ;;  %v5665_v20 = vpop.xlane.xlu1 %5664 }
 0x803   : > { %v4696_v61 = vpop.xlane.xlu0 %4695  ;;  %10200 = vpow2.f32 %v4854_v48  ;;  %v5756_v32 = vsub.f32 %v14004_v27, %v5665_v20  ;;  %v5757_v34 = vsub.f32 %v14008_v44, %v5665_v20  ;;  %v4973_v31 = vadd.f32 %v14362_v43, %v14360_v50 }
 0x804   : > { %10202 = vpow2.f32 %v4856_v35  ;;  %v4786_v5 = vsub.f32 %v13994_v53, %v4696_v61  ;;  %v4787_v6 = vsub.f32 %v13998_v1, %v4696_v61 }
 0x805   : > { %v14370_v37 = vpop.eup %10188  ;;  %10204 = vpow2.f32 %v5822_v26  ;;  %v5826_v16 = vmul.f32 1.442695, %v5756_v32  ;;  %v5828_v39 = vmul.f32 1.442695, %v5757_v34  ;;  %4974 = vadd.xlane.f32.xlu1 %v4973_v31 }
 0x806   : > { %v14372_v2 = vpop.eup %10190  ;;  %10206 = vpow2.f32 %v5824_v51  ;;  %v4858_v27 = vmul.f32 1.442695, %v4786_v5  ;;  %v4860_v36 = vmul.f32 1.442695, %v4787_v6  ;;  %v4699_v44 = vpop.xlane.xlu1 %4698 }
 0x807   : > { %v5668_v40 = vpop.xlane.xlu0 %5667  ;;  %10208 = vpow2.f32 %v5826_v16  ;;  %v4788_v52 = vsub.f32 %v14006_v60, %v4699_v44  ;;  %v4789_v53 = vsub.f32 %v14010_v4, %v4699_v44  ;;  %v5942_v0 = vadd.f32 %v14372_v2, %v14370_v37 }
 0x808   : > { %v5758_v1 = vsub.f32 %v14016_v28, %v5668_v40  ;;  %10210 = vpow2.f32 %v5828_v39  ;;  %v5759_v3 = vsub.f32 %v14020_v9, %v5668_v40 }
 0x809   : > { %v14380_v21 = vpop.eup %10192  ;;  %10212 = vpow2.f32 %v4858_v27  ;;  %v4862_v25 = vmul.f32 1.442695, %v4788_v52  ;;  %v4864_v57 = vmul.f32 1.442695, %v4789_v53  ;;  %5943 = vadd.xlane.f32.xlu0 %v5942_v0 }
 0x80a   : > { %v5830_v48 = vmul.f32 1.442695, %v5758_v1  ;;  %v14382_v35 = vpop.eup %10194  ;;  %10214 = vpow2.f32 %v4860_v36  ;;  %v5832_v60 = vmul.f32 1.442695, %v5759_v3  ;;  %v5671_v4 = vpop.xlane.xlu1 %5670 }
 0x80b   : > { %v4702_v26 = vpop.xlane.xlu0 %4701  ;;  %v14384_v28 = vpop.eup %10196  ;;  %10216 = vpow2.f32 %v4862_v25  ;;  %v5760_v9 = vsub.f32 %v14028_v38, %v5671_v4  ;;  %v5761_v51 = vsub.f32 %v14032_v18, %v5671_v4  ;;  %v5945_v34 = vadd.f32 %v14382_v35, %v14380_v21 }
 0x80c   : > { %v4790_v20 = vsub.f32 %v14018_v63, %v4702_v26  ;;  %v14389_v61 = vpop.eup %10198  ;;  %10218 = vpow2.f32 %v4864_v57  ;;  %v4791_v32 = vsub.f32 %v14022_v55, %v4702_v26 }
 0x80d   : > { %v14394_v31 = vpop.eup %10200  ;;  %10220 = vpow2.f32 %v5830_v48  ;;  %v5834_v5 = vmul.f32 1.442695, %v5760_v9  ;;  %v5836_v6 = vmul.f32 1.442695, %v5761_v51  ;;  %5946 = vadd.xlane.f32.xlu1 %v5945_v34  ;;  %v4976_v63 = vadd.f32 %v14389_v61, %v14384_v28 }
 0x80e   : > { %v4866_v16 = vmul.f32 1.442695, %v4790_v20  ;;  %v14396_v39 = vpop.eup %10202  ;;  %10222 = vpow2.f32 %v5832_v60  ;;  %v4868_v38 = vmul.f32 1.442695, %v4791_v32  ;;  %v4705_v18 = vpop.xlane.xlu1 %4704 }
 0x80f   : > { %v5674_v27 = vpop.xlane.xlu0 %5673  ;;  %v14400_v55 = vpop.eup %10204  ;;  %10224 = vpow2.f32 %v5834_v5  ;;  %v4792_v36 = vsub.f32 %v14030_v29, %v4705_v18  ;;  %v4793_v44 = vsub.f32 %v14034_v41, %v4705_v18  ;;  %4977 = vadd.xlane.f32.xlu0 %v4976_v63  ;;  %v4979_v1 = vadd.f32 %v14396_v39, %v14394_v31 }
 0x810   : > { %v5762_v40 = vsub.f32 %v14040_v11, %v5674_v27  ;;  %v14405_v52 = vpop.eup %10206  ;;  %10226 = vpow2.f32 %v5836_v6  ;;  %v5763_v53 = vsub.f32 %v14044_v46, %v5674_v27 }
 0x811   : > { %v14410_v3 = vpop.eup %10208  ;;  %10228 = vpow2.f32 %v4866_v16  ;;  %v4870_v0 = vmul.f32 1.442695, %v4792_v36  ;;  %v4872_v25 = vmul.f32 1.442695, %v4793_v44  ;;  %4980 = vadd.xlane.f32.xlu1 %v4979_v1  ;;  %v5948_v11 = vadd.f32 %v14405_v52, %v14400_v55 }
 0x812   : > { %v5838_v57 = vmul.f32 1.442695, %v5762_v40  ;;  %v14412_v29 = vpop.eup %10210  ;;  %10230 = vpow2.f32 %v4868_v38  ;;  %v5840_v41 = vmul.f32 1.442695, %v5763_v53  ;;  %v5677_v48 = vpop.xlane.xlu1 %5676 }
 0x813   : > { %v4708_v60 = vpop.xlane.xlu0 %4707  ;;  %v14416_v46 = vpop.eup %10212  ;;  %10232 = vpow2.f32 %v4870_v0  ;;  %v5764_v4 = vsub.f32 %v14052_v19, %v5677_v48  ;;  %v5765_v26 = vsub.f32 %v14056_v10, %v5677_v48  ;;  %5949 = vadd.xlane.f32.xlu0 %v5948_v11  ;;  %v5951_v32 = vadd.f32 %v14412_v29, %v14410_v3 }
 0x814   : > { %v4794_v9 = vsub.f32 %v14042_v15, %v4708_v60  ;;  %v14421_v51 = vpop.eup %10214  ;;  %10234 = vpow2.f32 %v4872_v25  ;;  %v4795_v20 = vsub.f32 %v14046_v42, %v4708_v60 }
 0x815   : > { %v14426_v34 = vpop.eup %10216  ;;  %10236 = vpow2.f32 %v5838_v57  ;;  %v5842_v5 = vmul.f32 1.442695, %v5764_v4  ;;  %v5844_v6 = vmul.f32 1.442695, %v5765_v26  ;;  %5952 = vadd.xlane.f32.xlu1 %v5951_v32  ;;  %v4982_v15 = vadd.f32 %v14421_v51, %v14416_v46 }
 0x816   : > { %v4874_v16 = vmul.f32 1.442695, %v4794_v9  ;;  %v14428_v19 = vpop.eup %10218  ;;  %10238 = vpow2.f32 %v5840_v41  ;;  %v4876_v10 = vmul.f32 1.442695, %v4795_v20  ;;  %v4711_v38 = vpop.xlane.xlu1 %4710 }
 0x817   : > { %v5680_v63 = vpop.xlane.xlu0 %5679  ;;  %v14432_v42 = vpop.eup %10220  ;;  %10240 = vpow2.f32 %v5842_v5  ;;  %v4796_v18 = vsub.f32 %v14054_v24, %v4711_v38  ;;  %v4797_v27 = vsub.f32 %v14058_v22, %v4711_v38  ;;  %4983 = vadd.xlane.f32.xlu0 %v4982_v15  ;;  %v4985_v53 = vadd.f32 %v14428_v19, %v14426_v34 }
 0x818   : > { %v5766_v36 = vsub.f32 %v14064_v7, %v5680_v63  ;;  %v14437_v44 = vpop.eup %10222  ;;  %10242 = vpow2.f32 %v5844_v6  ;;  %v5767_v40 = vsub.f32 %v14068_v23, %v5680_v63 }
 0x819   : > { %v14442_v1 = vpop.eup %10224  ;;  %10244 = vpow2.f32 %v4874_v16  ;;  %v4878_v0 = vmul.f32 1.442695, %v4796_v18  ;;  %v4880_v25 = vmul.f32 1.442695, %v4797_v27  ;;  %4986 = vadd.xlane.f32.xlu1 %v4985_v53  ;;  %v5954_v7 = vadd.f32 %v14437_v44, %v14432_v42 }
 0x81a   : > { %v5846_v57 = vmul.f32 1.442695, %v5766_v36  ;;  %v14444_v24 = vpop.eup %10226  ;;  %10246 = vpow2.f32 %v4876_v10  ;;  %v5848_v22 = vmul.f32 1.442695, %v5767_v40  ;;  %v5683_v41 = vpop.xlane.xlu1 %5682 }
 0x81b   : > { %v4714_v11 = vpop.xlane.xlu0 %4713  ;;  %v14448_v23 = vpop.eup %10228  ;;  %10248 = vpow2.f32 %v4878_v0  ;;  %v5768_v48 = vsub.f32 %v14076_v47, %v5683_v41  ;;  %v5769_v60 = vsub.f32 %v14080_v62, %v5683_v41  ;;  %5955 = vadd.xlane.f32.xlu0 %v5954_v7  ;;  %v5957_v20 = vadd.f32 %v14444_v24, %v14442_v1 }
 0x81c   : > { %v4798_v4 = vsub.f32 %v14066_v58, %v4714_v11  ;;  %v14453_v26 = vpop.eup %10230  ;;  %10250 = vpow2.f32 %v4880_v25  ;;  %v4799_v9 = vsub.f32 %v14070_v54, %v4714_v11 }
 0x81d   : > { %v14458_v32 = vpop.eup %10232  ;;  %10252 = vpow2.f32 %v5846_v57  ;;  %v5850_v5 = vmul.f32 1.442695, %v5768_v48  ;;  %v5852_v6 = vmul.f32 1.442695, %v5769_v60  ;;  %5958 = vadd.xlane.f32.xlu1 %v5957_v20  ;;  %v4988_v58 = vadd.f32 %v14453_v26, %v14448_v23 }
 0x81e   : > { %v4882_v16 = vmul.f32 1.442695, %v4798_v4  ;;  %v14460_v47 = vpop.eup %10234  ;;  %10254 = vpow2.f32 %v5848_v22  ;;  %v4884_v62 = vmul.f32 1.442695, %v4799_v9  ;;  %v4717_v10 = vpop.xlane.xlu1 %4716 }
 0x81f   : > { %v5686_v15 = vpop.xlane.xlu0 %5685  ;;  %v14464_v54 = vpop.eup %10236  ;;  %10256 = vpow2.f32 %v5850_v5  ;;  %v4800_v38 = vsub.f32 %v14078_v12, %v4717_v10  ;;  %v4801_v63 = vsub.f32 %v14082_v56, %v4717_v10  ;;  %4989 = vadd.xlane.f32.xlu0 %v4988_v58  ;;  %v4991_v40 = vadd.f32 %v14460_v47, %v14458_v32  ;;  %v17704_v10 = vld [vmem:[#allocation96_spill] sm:$0xff] }
 0x820   : > { %v5770_v18 = vsub.f32 %v14088_v17, %v5686_v15  ;;  %v14469_v27 = vpop.eup %10238  ;;  %10258 = vpow2.f32 %v5852_v6  ;;  %v5771_v36 = vsub.f32 %v14092_v45, %v5686_v15 }
 0x821   : > { %v14474_v53 = vpop.eup %10240  ;;  %10260 = vpow2.f32 %v4882_v16  ;;  %v4886_v0 = vmul.f32 1.442695, %v4800_v38  ;;  %v4888_v25 = vmul.f32 1.442695, %v4801_v63  ;;  %4992 = vadd.xlane.f32.xlu1 %v4991_v40  ;;  %v5960_v17 = vadd.f32 %v14469_v27, %v14464_v54  ;;  %v17705_v38 = vld [vmem:[#allocation18_spill] sm:$0xff] }
 0x822   : > { %v5854_v57 = vmul.f32 1.442695, %v5770_v18  ;;  %v14476_v12 = vpop.eup %10242  ;;  %10262 = vpow2.f32 %v4884_v62  ;;  %v5856_v56 = vmul.f32 1.442695, %v5771_v36  ;;  %v5689_v22 = vpop.xlane.xlu1 %5688  ;;  %v17706_v18 = vld [vmem:[#allocation90_spill] sm:$0xff] }
 0x823   : > { %v4720_v7 = vpop.xlane.xlu0 %4719  ;;  %v14480_v45 = vpop.eup %10244  ;;  %10264 = vpow2.f32 %v4886_v0  ;;  %v5772_v41 = vsub.f32 %v14100_v30, %v5689_v22  ;;  %v5773_v11 = vsub.f32 %v14104_v14, %v5689_v22  ;;  %5961 = vadd.xlane.f32.xlu0 %v5960_v17  ;;  %v5963_v9 = vadd.f32 %v14476_v12, %v14474_v53  ;;  %v17707_v0 = vld [vmem:[#allocation23_spill] sm:$0xff] }
 0x824   : > { %v4802_v48 = vsub.f32 %v14090_v59, %v4720_v7  ;;  %v14485_v60 = vpop.eup %10246  ;;  %10266 = vpow2.f32 %v4888_v25  ;;  %v4803_v4 = vsub.f32 %v14094_v49, %v4720_v7 }
 0x825   : > { %v14490_v20 = vpop.eup %10248  ;;  %10268 = vpow2.f32 %v5854_v57  ;;  %v5858_v5 = vmul.f32 1.442695, %v5772_v41  ;;  %v5860_v6 = vmul.f32 1.442695, %v5773_v11  ;;  %5964 = vadd.xlane.f32.xlu1 %v5963_v9  ;;  %v4994_v59 = vadd.f32 %v14485_v60, %v14480_v45 }
 0x826   : > { %v4890_v16 = vmul.f32 1.442695, %v4802_v48  ;;  %v14492_v30 = vpop.eup %10250  ;;  %10270 = vpow2.f32 %v5856_v56  ;;  %v4892_v14 = vmul.f32 1.442695, %v4803_v4  ;;  %v4723_v62 = vpop.xlane.xlu1 %4722 }
 0x827   : > { %v5692_v58 = vpop.xlane.xlu0 %5691  ;;  %v14496_v49 = vpop.eup %10252  ;;  %10272 = vpow2.f32 %v5858_v5  ;;  %v4804_v15 = vsub.f32 %v17704_v10, %v4723_v62  ;;  %v4805_v63 = vsub.f32 %v17705_v38, %v4723_v62  ;;  %4995 = vadd.xlane.f32.xlu0 %v4994_v59  ;;  %v4997_v57 = vadd.f32 %v14492_v30, %v14490_v20  ;;  %v17710_v62 = vld [vmem:[#allocation17_spill] sm:$0xff] }
 0x828   : > { %v5774_v36 = vsub.f32 %v17706_v18, %v5692_v58  ;;  %v14501_v40 = vpop.eup %10254  ;;  %10274 = vpow2.f32 %v5860_v6  ;;  %v5775_v25 = vsub.f32 %v17707_v0, %v5692_v58  ;;  %v17709_v6 = vld [vmem:[#allocation40_spill] sm:$0xff]  ;;  %v17711_v58 = vld [vmem:[#allocation19_spill] sm:$0xff] }
 0x829   : > { %v14506_v56 = vpop.eup %10256  ;;  %10276 = vpow2.f32 %v4890_v16  ;;  %v4894_v17 = vmul.f32 1.442695, %v4804_v15  ;;  %v4896_v22 = vmul.f32 1.442695, %v4805_v63  ;;  %4998 = vadd.xlane.f32.xlu1 %v4997_v57  ;;  %v5966_v48 = vadd.f32 %v14501_v40, %v14496_v49 }
 0x82a   : > { %v5862_v7 = vmul.f32 1.442695, %v5774_v36  ;;  %v14508_v41 = vpop.eup %10258  ;;  %10278 = vpow2.f32 %v4892_v14  ;;  %v5864_v11 = vmul.f32 1.442695, %v5775_v25  ;;  %v5695_v4 = vpop.xlane.xlu1 %5694  ;;  %v17713_v14 = vld [vmem:[#allocation46_spill] sm:$0xff] }
 0x82b   : > { %v4726_v9 = vpop.xlane.xlu0 %4725  ;;  %v14512_v5 = vpop.eup %10260  ;;  %10280 = vpow2.f32 %v4894_v17  ;;  %v5776_v59 = vsub.f32 %v17709_v6, %v5695_v4  ;;  %v5777_v16 = vsub.f32 %v17710_v62, %v5695_v4  ;;  %5967 = vadd.xlane.f32.xlu0 %v5966_v48  ;;  %v5969_v63 = vadd.f32 %v14508_v41, %v14506_v56  ;;  %v17717_v6 = vld [vmem:[#allocation22_spill] sm:$0xff] }
 0x82c   : > { %17708 = vst [vmem:[#allocation96_spill] sm:$0xff] %v14512_v5  ;;  %v4806_v10 = vsub.f32 %v17711_v58, %v4726_v9  ;;  %v14517_v15 = vpop.eup %10262  ;;  %10282 = vpow2.f32 %v4896_v22  ;;  %v4807_v38 = vsub.f32 %v17713_v14, %v4726_v9  ;;  %v17718_v58 = vld [vmem:[#allocation20_spill] sm:$0xff] }
 0x82d   : > { %17712 = vst [vmem:[#allocation18_spill] sm:$0xff] %v14517_v15  ;;  %v14522_v18 = vpop.eup %10264  ;;  %10284 = vpow2.f32 %v5862_v7  ;;  %v5866_v36 = vmul.f32 1.442695, %v5776_v59  ;;  %v5868_v0 = vmul.f32 1.442695, %v5777_v16  ;;  %5970 = vadd.xlane.f32.xlu1 %v5969_v63  ;;  %v5000_v22 = vadd.f32 %v14517_v15, %v14512_v5  ;;  %v17719_v59 = vld [vmem:[#allocation41_spill] sm:$0xff] }
 0x82e   : > { %17714 = vst [vmem:[#allocation90_spill] sm:$0xff] %v14522_v18  ;;  %v4898_v25 = vmul.f32 1.442695, %v4806_v10  ;;  %v14524_v57 = vpop.eup %10266  ;;  %10286 = vpow2.f32 %v5864_v11  ;;  %v4900_v17 = vmul.f32 1.442695, %v4807_v38  ;;  %v4729_v48 = vpop.xlane.xlu1 %4728  ;;  %v17721_v11 = vld [vmem:[#allocation27_spill] sm:$0xff] }
 0x82f   : > { %17715 = vst [vmem:[#allocation23_spill] sm:$0xff] %v14524_v57  ;;  %v5698_v4 = vpop.xlane.xlu0 %5697  ;;  %v14528_v9 = vpop.eup %10268  ;;  %10288 = vpow2.f32 %v5866_v36  ;;  %v4808_v62 = vsub.f32 %v17717_v6, %v4729_v48  ;;  %v4809_v7 = vsub.f32 %v17718_v58, %v4729_v48  ;;  %5001 = vadd.xlane.f32.xlu0 %v5000_v22  ;;  %v5003_v38 = vadd.f32 %v14524_v57, %v14522_v18  ;;  %v17726_v18 = vld [vmem:[#allocation42_spill] sm:$0xff] }
 0x830   : > { %17716 = vst [vmem:[#allocation40_spill] sm:$0xff] %v14528_v9  ;;  %v5778_v16 = vsub.f32 %v17719_v59, %v5698_v4  ;;  %v14533_v10 = vpop.eup %10270  ;;  %10290 = vpow2.f32 %v5868_v0  ;;  %v5779_v14 = vsub.f32 %v17721_v11, %v5698_v4  ;;  %v17725_v59 = vld [vmem:[#allocation45_spill] sm:$0xff] }
 0x831   : > { %17720 = vst [vmem:[#allocation17_spill] sm:$0xff] %v14533_v10  ;;  %v14538_v63 = vpop.eup %10272  ;;  %10292 = vpow2.f32 %v4898_v25  ;;  %v4902_v5 = vmul.f32 1.442695, %v4808_v62  ;;  %v4904_v36 = vmul.f32 1.442695, %v4809_v7  ;;  %5004 = vadd.xlane.f32.xlu1 %v5003_v38  ;;  %v5972_v0 = vadd.f32 %v14533_v10, %v14528_v9  ;;  %v17727_v62 = vld [vmem:[#allocation39_spill] sm:$0xff] }
 0x832   : > { %17722 = vst [vmem:[#allocation19_spill] sm:$0xff] %v14538_v63  ;;  %v5870_v15 = vmul.f32 1.442695, %v5778_v16  ;;  %v14540_v6 = vpop.eup %10274  ;;  %10294 = vpow2.f32 %v4900_v17  ;;  %v5872_v48 = vmul.f32 1.442695, %v5779_v14  ;;  %v5701_v22 = vpop.xlane.xlu1 %5700  ;;  %v17729_v17 = vld [vmem:[#allocation48_spill] sm:$0xff] }
 0x833   : > { %17723 = vst [vmem:[#allocation46_spill] sm:$0xff] %v14540_v6  ;;  %v4732_v58 = vpop.xlane.xlu0 %4731  ;;  %v14544_v4 = vpop.eup %10276  ;;  %10296 = vpow2.f32 %v4902_v5  ;;  %v5780_v11 = vsub.f32 %v17725_v59, %v5701_v22  ;;  %v5781_v25 = vsub.f32 %v17726_v18, %v5701_v22  ;;  %5973 = vadd.xlane.f32.xlu0 %v5972_v0  ;;  %v5975_v38 = vadd.f32 %v14540_v6, %v14538_v63  ;;  %v17734_v63 = vld [vmem:[#allocation24_spill] sm:$0xff] }
 0x834   : > { %17724 = vst [vmem:[#allocation22_spill] sm:$0xff] %v14544_v4  ;;  %v4810_v7 = vsub.f32 %v17727_v62, %v4732_v58  ;;  %v14549_v16 = vpop.eup %10278  ;;  %10298 = vpow2.f32 %v4904_v36  ;;  %v4811_v14 = vsub.f32 %v17729_v17, %v4732_v58  ;;  %v17733_v62 = vld [vmem:[#allocation26_spill] sm:$0xff] }
 0x835   : > { %17728 = vst [vmem:[#allocation20_spill] sm:$0xff] %v14549_v16  ;;  %v14554_v9 = vpop.eup %10280  ;;  %10300 = vpow2.f32 %v5870_v15  ;;  %v5874_v10 = vmul.f32 1.442695, %v5780_v11  ;;  %v5876_v5 = vmul.f32 1.442695, %v5781_v25  ;;  %5976 = vadd.xlane.f32.xlu1 %v5975_v38  ;;  %v5006_v36 = vadd.f32 %v14549_v16, %v14544_v4  ;;  %v17735_v11 = vld [vmem:[#allocation21_spill] sm:$0xff] }
 0x836   : > { %17730 = vst [vmem:[#allocation41_spill] sm:$0xff] %v14554_v9  ;;  %v4906_v57 = vmul.f32 1.442695, %v4810_v7  ;;  %v14556_v59 = vpop.eup %10282  ;;  %10302 = vpow2.f32 %v5872_v48  ;;  %v4908_v18 = vmul.f32 1.442695, %v4811_v14  ;;  %v4735_v0 = vpop.xlane.xlu1 %4734  ;;  %v17737_v48 = vld [vmem:[#allocation28_spill] sm:$0xff] }
 0x837   : > { %17731 = vst [vmem:[#allocation27_spill] sm:$0xff] %v14556_v59  ;;  %v5704_v22 = vpop.xlane.xlu0 %5703  ;;  %v14560_v58 = vpop.eup %10284  ;;  %10304 = vpow2.f32 %v5874_v10  ;;  %v4812_v17 = vsub.f32 %v17733_v62, %v4735_v0  ;;  %v4813_v15 = vsub.f32 %v17734_v63, %v4735_v0  ;;  %5007 = vadd.xlane.f32.xlu0 %v5006_v36  ;;  %v5009_v38 = vadd.f32 %v14556_v59, %v14554_v9  ;;  %v17742_v9 = vld [vmem:[#allocation51_spill] sm:$0xff] }
 0x838   : > { %17732 = vst [vmem:[#allocation45_spill] sm:$0xff] %v14560_v58  ;;  %v5782_v25 = vsub.f32 %v17735_v11, %v5704_v22  ;;  %v14565_v7 = vpop.eup %10286  ;;  %10306 = vpow2.f32 %v5876_v5  ;;  %v5783_v14 = vsub.f32 %v17737_v48, %v5704_v22  ;;  %v17741_v11 = vld [vmem:[#allocation50_spill] sm:$0xff] }
 0x839   : > { %17736 = vst [vmem:[#allocation42_spill] sm:$0xff] %v14565_v7  ;;  %v14570_v4 = vpop.eup %10288  ;;  %10308 = vpow2.f32 %v4906_v57  ;;  %v4910_v16 = vmul.f32 1.442695, %v4812_v17  ;;  %v4912_v10 = vmul.f32 1.442695, %v4813_v15  ;;  %5010 = vadd.xlane.f32.xlu1 %v5009_v38  ;;  %v5978_v5 = vadd.f32 %v14565_v7, %v14560_v58  ;;  %v17743_v17 = vld [vmem:[#allocation44_spill] sm:$0xff] }
 0x83a   : > { %17738 = vst [vmem:[#allocation39_spill] sm:$0xff] %v14570_v4  ;;  %v5878_v6 = vmul.f32 1.442695, %v5782_v25  ;;  %v14572_v62 = vpop.eup %10290  ;;  %10310 = vpow2.f32 %v4908_v18  ;;  %v5880_v63 = vmul.f32 1.442695, %v5783_v14  ;;  %v5707_v36 = vpop.xlane.xlu1 %5706  ;;  %v17745_v18 = vld [vmem:[#allocation32_spill] sm:$0xff] }
 0x83b   : > { %17739 = vst [vmem:[#allocation48_spill] sm:$0xff] %v14572_v62  ;;  %v4738_v0 = vpop.xlane.xlu0 %4737  ;;  %v14576_v22 = vpop.eup %10292  ;;  %10312 = vpow2.f32 %v4910_v16  ;;  %v5784_v48 = vsub.f32 %v17741_v11, %v5707_v36  ;;  %v5785_v57 = vsub.f32 %v17742_v9, %v5707_v36  ;;  %5979 = vadd.xlane.f32.xlu0 %v5978_v5  ;;  %v5981_v38 = vadd.f32 %v14572_v62, %v14570_v4  ;;  %v17750_v4 = vld [vmem:[#allocation29_spill] sm:$0xff] }
 0x83c   : > { %17740 = vst [vmem:[#allocation26_spill] sm:$0xff] %v14576_v22  ;;  %v4814_v15 = vsub.f32 %v17743_v17, %v4738_v0  ;;  %v14581_v25 = vpop.eup %10294  ;;  %10314 = vpow2.f32 %v4912_v10  ;;  %v4815_v14 = vsub.f32 %v17745_v18, %v4738_v0  ;;  %v17749_v17 = vld [vmem:[#allocation53_spill] sm:$0xff] }
 0x83d   : > { %17744 = vst [vmem:[#allocation24_spill] sm:$0xff] %v14581_v25  ;;  %v14586_v58 = vpop.eup %10296  ;;  %10316 = vpow2.f32 %v5878_v6  ;;  %v5882_v7 = vmul.f32 1.442695, %v5784_v48  ;;  %v5884_v16 = vmul.f32 1.442695, %v5785_v57  ;;  %5982 = vadd.xlane.f32.xlu1 %v5981_v38  ;;  %v5012_v10 = vadd.f32 %v14581_v25, %v14576_v22  ;;  %v17751_v48 = vld [vmem:[#allocation25_spill] sm:$0xff] }
 0x83e   : > { %17746 = vst [vmem:[#allocation21_spill] sm:$0xff] %v14586_v58  ;;  %v4914_v59 = vmul.f32 1.442695, %v4814_v15  ;;  %v14588_v11 = vpop.eup %10298  ;;  %10318 = vpow2.f32 %v5880_v63  ;;  %v4916_v9 = vmul.f32 1.442695, %v4815_v14  ;;  %v4741_v5 = vpop.xlane.xlu1 %4740  ;;  %v17753_v63 = vld [vmem:[#allocation57_spill] sm:$0xff] }
 0x83f   : > { %17747 = vst [vmem:[#allocation28_spill] sm:$0xff] %v14588_v11  ;;  %v5710_v36 = vpop.xlane.xlu0 %5709  ;;  %v14592_v0 = vpop.eup %10300  ;;  %10320 = vpow2.f32 %v5882_v7  ;;  %v4816_v18 = vsub.f32 %v17749_v17, %v4741_v5  ;;  %v4817_v6 = vsub.f32 %v17750_v4, %v4741_v5  ;;  %5013 = vadd.xlane.f32.xlu0 %v5012_v10  ;;  %v5015_v38 = vadd.f32 %v14588_v11, %v14586_v58  ;;  %v17758_v58 = vld [vmem:[#allocation31_spill] sm:$0xff] }
 0x840   : > { %17748 = vst [vmem:[#allocation50_spill] sm:$0xff] %v14592_v0  ;;  %v5786_v57 = vsub.f32 %v17751_v48, %v5710_v36  ;;  %v14597_v15 = vpop.eup %10302  ;;  %10322 = vpow2.f32 %v5884_v16  ;;  %v5787_v14 = vsub.f32 %v17753_v63, %v5710_v36  ;;  %v17757_v48 = vld [vmem:[#allocation55_spill] sm:$0xff] }
 0x841   : > { %17752 = vst [vmem:[#allocation51_spill] sm:$0xff] %v14597_v15  ;;  %v14602_v22 = vpop.eup %10304  ;;  %10324 = vpow2.f32 %v4914_v59  ;;  %v4918_v25 = vmul.f32 1.442695, %v4816_v18  ;;  %v4920_v7 = vmul.f32 1.442695, %v4817_v6  ;;  %5016 = vadd.xlane.f32.xlu1 %v5015_v38  ;;  %v5984_v16 = vadd.f32 %v14597_v15, %v14592_v0  ;;  %v17759_v18 = vld [vmem:[#allocation30_spill] sm:$0xff] }
 0x842   : > { %17754 = vst [vmem:[#allocation44_spill] sm:$0xff] %v14602_v22  ;;  %v5886_v62 = vmul.f32 1.442695, %v5786_v57  ;;  %v14604_v17 = vpop.eup %10306  ;;  %10326 = vpow2.f32 %v4916_v9  ;;  %v5888_v4 = vmul.f32 1.442695, %v5787_v14  ;;  %v5713_v10 = vpop.xlane.xlu1 %5712  ;;  %v17761_v9 = vld [vmem:[#allocation58_spill] sm:$0xff] }
 0x843   : > { %17755 = vst [vmem:[#allocation32_spill] sm:$0xff] %v14604_v17  ;;  %v4744_v5 = vpop.xlane.xlu0 %4743  ;;  %v14608_v36 = vpop.eup %10308  ;;  %10328 = vpow2.f32 %v4918_v25  ;;  %v5788_v63 = vsub.f32 %v17757_v48, %v5713_v10  ;;  %v5789_v59 = vsub.f32 %v17758_v58, %v5713_v10  ;;  %5985 = vadd.xlane.f32.xlu0 %v5984_v16  ;;  %v5987_v38 = vadd.f32 %v14604_v17, %v14602_v22  ;;  %v17766_v22 = vld [vmem:[#allocation56_spill] sm:$0xff] }
 0x844   : > { %17756 = vst [vmem:[#allocation53_spill] sm:$0xff] %v14608_v36  ;;  %v4818_v6 = vsub.f32 %v17759_v18, %v4744_v5  ;;  %v14613_v57 = vpop.eup %10310  ;;  %10330 = vpow2.f32 %v4920_v7  ;;  %v4819_v14 = vsub.f32 %v17761_v9, %v4744_v5  ;;  %v17765_v18 = vld [vmem:[#allocation34_spill] sm:$0xff] }
 0x845   : > { %17760 = vst [vmem:[#allocation29_spill] sm:$0xff] %v14613_v57  ;;  %v14618_v0 = vpop.eup %10312  ;;  %10332 = vpow2.f32 %v5886_v62  ;;  %v5890_v15 = vmul.f32 1.442695, %v5788_v63  ;;  %v5892_v25 = vmul.f32 1.442695, %v5789_v59  ;;  %5988 = vadd.xlane.f32.xlu1 %v5987_v38  ;;  %v5018_v7 = vadd.f32 %v14613_v57, %v14608_v36  ;;  %v17767_v63 = vld [vmem:[#allocation52_spill] sm:$0xff] }
 0x846   : > { %17762 = vst [vmem:[#allocation25_spill] sm:$0xff] %v14618_v0  ;;  %v4922_v11 = vmul.f32 1.442695, %v4818_v6  ;;  %v14620_v48 = vpop.eup %10314  ;;  %10334 = vpow2.f32 %v5888_v4  ;;  %v4924_v58 = vmul.f32 1.442695, %v4819_v14  ;;  %v4747_v16 = vpop.xlane.xlu1 %4746  ;;  %v17769_v4 = vld [vmem:[#allocation36_spill] sm:$0xff] }
 0x847   : > { %17763 = vst [vmem:[#allocation57_spill] sm:$0xff] %v14620_v48  ;;  %v5716_v10 = vpop.xlane.xlu0 %5715  ;;  %v14624_v5 = vpop.eup %10316  ;;  %10336 = vpow2.f32 %v5890_v15  ;;  %v4820_v9 = vsub.f32 %v17765_v18, %v4747_v16  ;;  %v4821_v62 = vsub.f32 %v17766_v22, %v4747_v16  ;;  %5019 = vadd.xlane.f32.xlu0 %v5018_v7  ;;  %v5021_v38 = vadd.f32 %v14620_v48, %v14618_v0  ;;  %v17774_v0 = vld [vmem:[#allocation35_spill] sm:$0xff] }
 0x848   : > { %17764 = vst [vmem:[#allocation55_spill] sm:$0xff] %v14624_v5  ;;  %v5790_v59 = vsub.f32 %v17767_v63, %v5716_v10  ;;  %v14629_v6 = vpop.eup %10318  ;;  %10338 = vpow2.f32 %v5892_v25  ;;  %v5791_v14 = vsub.f32 %v17769_v4, %v5716_v10  ;;  %v17773_v63 = vld [vmem:[#allocation62_spill] sm:$0xff] }
 0x849   : > { %17768 = vst [vmem:[#allocation31_spill] sm:$0xff] %v14629_v6  ;;  %v14634_v36 = vpop.eup %10320  ;;  %10340 = vpow2.f32 %v4922_v11  ;;  %v4926_v57 = vmul.f32 1.442695, %v4820_v9  ;;  %v4928_v15 = vmul.f32 1.442695, %v4821_v62  ;;  %5022 = vadd.xlane.f32.xlu1 %v5021_v38  ;;  %v5990_v25 = vadd.f32 %v14629_v6, %v14624_v5  ;;  %v17775_v9 = vld [vmem:[#allocation54_spill] sm:$0xff] }
 0x84a   : > { %17770 = vst [vmem:[#allocation30_spill] sm:$0xff] %v14634_v36  ;;  %v5894_v17 = vmul.f32 1.442695, %v5790_v59  ;;  %v14636_v18 = vpop.eup %10322  ;;  %10342 = vpow2.f32 %v4924_v58  ;;  %v5896_v22 = vmul.f32 1.442695, %v5791_v14  ;;  %v5719_v7 = vpop.xlane.xlu1 %5718  ;;  %v17777_v58 = vld [vmem:[#allocation37_spill] sm:$0xff] }
 0x84b   : > { %17771 = vst [vmem:[#allocation58_spill] sm:$0xff] %v14636_v18  ;;  %v4750_v16 = vpop.xlane.xlu0 %4749  ;;  %v14640_v10 = vpop.eup %10324  ;;  %10344 = vpow2.f32 %v4926_v57  ;;  %v5792_v4 = vsub.f32 %v17773_v63, %v5719_v7  ;;  %v5793_v11 = vsub.f32 %v17774_v0, %v5719_v7  ;;  %5991 = vadd.xlane.f32.xlu0 %v5990_v25  ;;  %v5993_v38 = vadd.f32 %v14636_v18, %v14634_v36  ;;  %v17782_v36 = vld [vmem:[#allocation64_spill] sm:$0xff] }
 0x84c   : > { %17772 = vst [vmem:[#allocation34_spill] sm:$0xff] %v14640_v10  ;;  %v4822_v62 = vsub.f32 %v17775_v9, %v4750_v16  ;;  %v14645_v59 = vpop.eup %10326  ;;  %10346 = vpow2.f32 %v4928_v15  ;;  %v4823_v14 = vsub.f32 %v17777_v58, %v4750_v16  ;;  %v17781_v9 = vld [vmem:[#allocation67_spill] sm:$0xff] }
 0x84d   : > { %17776 = vst [vmem:[#allocation56_spill] sm:$0xff] %v14645_v59  ;;  %v14650_v5 = vpop.eup %10328  ;;  %10348 = vpow2.f32 %v5894_v17  ;;  %v5898_v6 = vmul.f32 1.442695, %v5792_v4  ;;  %v5900_v57 = vmul.f32 1.442695, %v5793_v11  ;;  %5994 = vadd.xlane.f32.xlu1 %v5993_v38  ;;  %v5024_v15 = vadd.f32 %v14645_v59, %v14640_v10  ;;  %v17783_v4 = vld [vmem:[#allocation33_spill] sm:$0xff] }
 0x84e   : > { %17778 = vst [vmem:[#allocation52_spill] sm:$0xff] %v14650_v5  ;;  %v4930_v48 = vmul.f32 1.442695, %v4822_v62  ;;  %v14652_v63 = vpop.eup %10330  ;;  %10350 = vpow2.f32 %v5896_v22  ;;  %v4932_v0 = vmul.f32 1.442695, %v4823_v14  ;;  %v4753_v25 = vpop.xlane.xlu1 %4752  ;;  %v17785_v22 = vld [vmem:[#allocation70_spill] sm:$0xff] }
 0x84f   : > { %17779 = vst [vmem:[#allocation36_spill] sm:$0xff] %v14652_v63  ;;  %v5722_v7 = vpop.xlane.xlu0 %5721  ;;  %v14656_v16 = vpop.eup %10332  ;;  %10352 = vpow2.f32 %v5898_v6  ;;  %v4824_v58 = vsub.f32 %v17781_v9, %v4753_v25  ;;  %v4825_v17 = vsub.f32 %v17782_v36, %v4753_v25  ;;  %5025 = vadd.xlane.f32.xlu0 %v5024_v15  ;;  %v5027_v38 = vadd.f32 %v14652_v63, %v14650_v5  ;;  %v17790_v5 = vld [vmem:[#allocation38_spill] sm:$0xff] }
 0x850   : > { %17780 = vst [vmem:[#allocation62_spill] sm:$0xff] %v14656_v16  ;;  %v5794_v11 = vsub.f32 %v17783_v4, %v5722_v7  ;;  %v14661_v62 = vpop.eup %10334  ;;  %10354 = vpow2.f32 %v5900_v57  ;;  %v5795_v14 = vsub.f32 %v17785_v22, %v5722_v7  ;;  %v17789_v4 = vld [vmem:[#allocation68_spill] sm:$0xff] }
 0x851   : > { %17784 = vst [vmem:[#allocation35_spill] sm:$0xff] %v14661_v62  ;;  %v14666_v10 = vpop.eup %10336  ;;  %10356 = vpow2.f32 %v4930_v48  ;;  %v4934_v59 = vmul.f32 1.442695, %v4824_v58  ;;  %v4936_v6 = vmul.f32 1.442695, %v4825_v17  ;;  %5028 = vadd.xlane.f32.xlu1 %v5027_v38  ;;  %v5996_v57 = vadd.f32 %v14661_v62, %v14656_v16  ;;  %v17791_v58 = vld [vmem:[#allocation60_spill] sm:$0xff] }
 0x852   : > { %17786 = vst [vmem:[#allocation54_spill] sm:$0xff] %v14666_v10  ;;  %v5902_v18 = vmul.f32 1.442695, %v5794_v11  ;;  %v14668_v9 = vpop.eup %10338  ;;  %10358 = vpow2.f32 %v4932_v0  ;;  %v5904_v36 = vmul.f32 1.442695, %v5795_v14  ;;  %v5725_v15 = vpop.xlane.xlu1 %5724  ;;  %v17793_v0 = vld [vmem:[#allocation74_spill] sm:$0xff] }
 0x853   : > { %17787 = vst [vmem:[#allocation37_spill] sm:$0xff] %v14668_v9  ;;  %v4756_v25 = vpop.xlane.xlu0 %4755  ;;  %v14672_v7 = vpop.eup %10340  ;;  %10360 = vpow2.f32 %v4934_v59  ;;  %v5796_v22 = vsub.f32 %v17789_v4, %v5725_v15  ;;  %v5797_v48 = vsub.f32 %v17790_v5, %v5725_v15  ;;  %5997 = vadd.xlane.f32.xlu0 %v5996_v57  ;;  %v5999_v38 = vadd.f32 %v14668_v9, %v14666_v10  ;;  %v17798_v10 = vld [vmem:[#allocation66_spill] sm:$0xff] }
 0x854   : > { %17788 = vst [vmem:[#allocation67_spill] sm:$0xff] %v14672_v7  ;;  %v4826_v17 = vsub.f32 %v17791_v58, %v4756_v25  ;;  %v14677_v11 = vpop.eup %10342  ;;  %10362 = vpow2.f32 %v4936_v6  ;;  %v4827_v14 = vsub.f32 %v17793_v0, %v4756_v25  ;;  %v17797_v58 = vld [vmem:[#allocation73_spill] sm:$0xff] }
 0x855   : > { %17792 = vst [vmem:[#allocation64_spill] sm:$0xff] %v14677_v11  ;;  %v14682_v16 = vpop.eup %10344  ;;  %10364 = vpow2.f32 %v5902_v18  ;;  %v5906_v62 = vmul.f32 1.442695, %v5796_v22  ;;  %v5908_v59 = vmul.f32 1.442695, %v5797_v48  ;;  %6000 = vadd.xlane.f32.xlu1 %v5999_v38  ;;  %v5030_v6 = vadd.f32 %v14677_v11, %v14672_v7  ;;  %v17799_v22 = vld [vmem:[#allocation71_spill] sm:$0xff] }
 0x856   : > { %17794 = vst [vmem:[#allocation33_spill] sm:$0xff] %v14682_v16  ;;  %v4938_v63 = vmul.f32 1.442695, %v4826_v17  ;;  %v14684_v4 = vpop.eup %10346  ;;  %10366 = vpow2.f32 %v5904_v36  ;;  %v4940_v5 = vmul.f32 1.442695, %v4827_v14  ;;  %v4759_v57 = vpop.xlane.xlu1 %4758  ;;  %v17801_v36 = vld [vmem:[#allocation81_spill] sm:$0xff] }
 0x857   : > { %17795 = vst [vmem:[#allocation70_spill] sm:$0xff] %v14684_v4  ;;  %v5728_v15 = vpop.xlane.xlu0 %5727  ;;  %v14688_v25 = vpop.eup %10348  ;;  %10368 = vpow2.f32 %v5906_v62  ;;  %v4828_v0 = vsub.f32 %v17797_v58, %v4759_v57  ;;  %v4829_v18 = vsub.f32 %v17798_v10, %v4759_v57  ;;  %5031 = vadd.xlane.f32.xlu0 %v5030_v6  ;;  %v5033_v38 = vadd.f32 %v14684_v4, %v14682_v16  ;;  %v17806_v16 = vld [vmem:[#allocation75_spill] sm:$0xff] }
 0x858   : > { %17796 = vst [vmem:[#allocation68_spill] sm:$0xff] %v14688_v25  ;;  %v5798_v48 = vsub.f32 %v17799_v22, %v5728_v15  ;;  %v14693_v17 = vpop.eup %10350  ;;  %10370 = vpow2.f32 %v5908_v59  ;;  %v5799_v14 = vsub.f32 %v17801_v36, %v5728_v15  ;;  %v17805_v22 = vld [vmem:[#allocation47_spill] sm:$0xff] }
 0x859   : > { %17800 = vst [vmem:[#allocation38_spill] sm:$0xff] %v14693_v17  ;;  %v14698_v7 = vpop.eup %10352  ;;  %10372 = vpow2.f32 %v4938_v63  ;;  %v4942_v11 = vmul.f32 1.442695, %v4828_v0  ;;  %v4944_v62 = vmul.f32 1.442695, %v4829_v18  ;;  %5034 = vadd.xlane.f32.xlu1 %v5033_v38  ;;  %v6002_v59 = vadd.f32 %v14693_v17, %v14688_v25  ;;  %v17807_v0 = vld [vmem:[#allocation49_spill] sm:$0xff] }
 0x85a   : > { %17802 = vst [vmem:[#allocation60_spill] sm:$0xff] %v14698_v7  ;;  %v5910_v9 = vmul.f32 1.442695, %v5798_v48  ;;  %v14700_v58 = vpop.eup %10354  ;;  %10374 = vpow2.f32 %v4940_v5  ;;  %v5912_v10 = vmul.f32 1.442695, %v5799_v14  ;;  %v5731_v6 = vpop.xlane.xlu1 %5730  ;;  %v17809_v5 = vld [vmem:[#allocation69_spill] sm:$0xff] }
 0x85b   : > { %17803 = vst [vmem:[#allocation74_spill] sm:$0xff] %v14700_v58  ;;  %v4762_v57 = vpop.xlane.xlu0 %4761  ;;  %v14704_v15 = vpop.eup %10356  ;;  %10376 = vpow2.f32 %v4942_v11  ;;  %v5800_v36 = vsub.f32 %v17805_v22, %v5731_v6  ;;  %v5801_v63 = vsub.f32 %v17806_v16, %v5731_v6  ;;  %6003 = vadd.xlane.f32.xlu0 %v6002_v59  ;;  %v6005_v38 = vadd.f32 %v14700_v58, %v14698_v7  ;;  %v17814_v7 = vld [vmem:[#allocation80_spill] sm:$0xff] }
 0x85c   : > { %17804 = vst [vmem:[#allocation73_spill] sm:$0xff] %v14704_v15  ;;  %v4830_v18 = vsub.f32 %v17807_v0, %v4762_v57  ;;  %v14709_v48 = vpop.eup %10358  ;;  %10378 = vpow2.f32 %v4944_v62  ;;  %v4831_v14 = vsub.f32 %v17809_v5, %v4762_v57  ;;  %v17813_v0 = vld [vmem:[#allocation72_spill] sm:$0xff] }
 0x85d   : > { %17808 = vst [vmem:[#allocation66_spill] sm:$0xff] %v14709_v48  ;;  %v14714_v25 = vpop.eup %10360  ;;  %10380 = vpow2.f32 %v5910_v9  ;;  %v5914_v17 = vmul.f32 1.442695, %v5800_v36  ;;  %v5916_v11 = vmul.f32 1.442695, %v5801_v63  ;;  %6006 = vadd.xlane.f32.xlu1 %v6005_v38  ;;  %v5036_v62 = vadd.f32 %v14709_v48, %v14704_v15  ;;  %v17815_v36 = vld [vmem:[#allocation43_spill] sm:$0xff] }
 0x85e   : > { %17810 = vst [vmem:[#allocation71_spill] sm:$0xff] %v14714_v25  ;;  %v4946_v4 = vmul.f32 1.442695, %v4830_v18  ;;  %v14716_v22 = vpop.eup %10362  ;;  %10382 = vpow2.f32 %v5912_v10  ;;  %v4948_v16 = vmul.f32 1.442695, %v4831_v14  ;;  %v4765_v59 = vpop.xlane.xlu1 %4764  ;;  %v17817_v10 = vld [vmem:[#allocation84_spill] sm:$0xff] }
 0x85f   : > { %17811 = vst [vmem:[#allocation81_spill] sm:$0xff] %v14716_v22  ;;  %v5734_v6 = vpop.xlane.xlu0 %5733  ;;  %v14720_v57 = vpop.eup %10364  ;;  %10384 = vpow2.f32 %v5914_v17  ;;  %v4832_v5 = vsub.f32 %v17813_v0, %v4765_v59  ;;  %v4833_v9 = vsub.f32 %v17814_v7, %v4765_v59  ;;  %5037 = vadd.xlane.f32.xlu0 %v5036_v62  ;;  %v5039_v38 = vadd.f32 %v14716_v22, %v14714_v25  ;;  %v17822_v25 = vld [vmem:[#allocation76_spill] sm:$0xff] }
 0x860   : > { %17812 = vst [vmem:[#allocation47_spill] sm:$0xff] %v14720_v57  ;;  %v5802_v63 = vsub.f32 %v17815_v36, %v5734_v6  ;;  %v14725_v18 = vpop.eup %10366  ;;  %10386 = vpow2.f32 %v5916_v11  ;;  %v5803_v14 = vsub.f32 %v17817_v10, %v5734_v6  ;;  %v17821_v36 = vld [vmem:[#allocation82_spill] sm:$0xff] }
 0x861   : > { %17816 = vst [vmem:[#allocation75_spill] sm:$0xff] %v14725_v18  ;;  %v14730_v15 = vpop.eup %10368  ;;  %10388 = vpow2.f32 %v4946_v4  ;;  %v4950_v48 = vmul.f32 1.442695, %v4832_v5  ;;  %v4952_v17 = vmul.f32 1.442695, %v4833_v9  ;;  %5040 = vadd.xlane.f32.xlu1 %v5039_v38  ;;  %v6008_v11 = vadd.f32 %v14725_v18, %v14720_v57  ;;  %v17823_v5 = vld [vmem:[#allocation78_spill] sm:$0xff] }
 0x862   : > { %17818 = vst [vmem:[#allocation49_spill] sm:$0xff] %v14730_v15  ;;  %v5918_v58 = vmul.f32 1.442695, %v5802_v63  ;;  %v14732_v0 = vpop.eup %10370  ;;  %10390 = vpow2.f32 %v4948_v16  ;;  %v5920_v7 = vmul.f32 1.442695, %v5803_v14  ;;  %v5737_v62 = vpop.xlane.xlu1 %5736  ;;  %v17825_v16 = vld [vmem:[#allocation77_spill] sm:$0xff] }
 0x863   : > { %17819 = vst [vmem:[#allocation69_spill] sm:$0xff] %v14732_v0  ;;  %v4768_v59 = vpop.xlane.xlu0 %4767  ;;  %v14736_v6 = vpop.eup %10372  ;;  %10392 = vpow2.f32 %v4950_v48  ;;  %v5804_v10 = vsub.f32 %v17821_v36, %v5737_v62  ;;  %v5805_v4 = vsub.f32 %v17822_v25, %v5737_v62  ;;  %6009 = vadd.xlane.f32.xlu0 %v6008_v11  ;;  %v6011_v38 = vadd.f32 %v14732_v0, %v14730_v15  ;;  %v17830_v15 = vld [vmem:[#allocation83_spill] sm:$0xff] }
 0x864   : > { %17820 = vst [vmem:[#allocation72_spill] sm:$0xff] %v14736_v6  ;;  %v4834_v9 = vsub.f32 %v17823_v5, %v4768_v59  ;;  %v14741_v63 = vpop.eup %10374  ;;  %10394 = vpow2.f32 %v4952_v17  ;;  %v4835_v14 = vsub.f32 %v17825_v16, %v4768_v59  ;;  %v17829_v5 = vld [vmem:[#allocation79_spill] sm:$0xff] }
 0x865   : > { %17824 = vst [vmem:[#allocation80_spill] sm:$0xff] %v14741_v63  ;;  %v14746_v57 = vpop.eup %10376  ;;  %10396 = vpow2.f32 %v5918_v58  ;;  %v5922_v18 = vmul.f32 1.442695, %v5804_v10  ;;  %v5924_v48 = vmul.f32 1.442695, %v5805_v4  ;;  %6012 = vadd.xlane.f32.xlu1 %v6011_v38  ;;  %v5042_v17 = vadd.f32 %v14741_v63, %v14736_v6  ;;  %v17831_v10 = vld [vmem:[#allocation86_spill] sm:$0xff] }
 0x866   : > { %17826 = vst [vmem:[#allocation43_spill] sm:$0xff] %v14746_v57  ;;  %v4954_v22 = vmul.f32 1.442695, %v4834_v9  ;;  %v14748_v36 = vpop.eup %10378  ;;  %10398 = vpow2.f32 %v5920_v7  ;;  %v4956_v25 = vmul.f32 1.442695, %v4835_v14  ;;  %v4771_v11 = vpop.xlane.xlu1 %4770  ;;  %v17833_v7 = vld [vmem:[#allocation59_spill] sm:$0xff] }
 0x867   : > { %17827 = vst [vmem:[#allocation84_spill] sm:$0xff] %v14748_v36  ;;  %v5740_v62 = vpop.xlane.xlu0 %5739  ;;  %v14752_v59 = vpop.eup %10380  ;;  %10400 = vpow2.f32 %v5922_v18  ;;  %v4836_v16 = vsub.f32 %v17829_v5, %v4771_v11  ;;  %v4837_v58 = vsub.f32 %v17830_v15, %v4771_v11  ;;  %5043 = vadd.xlane.f32.xlu0 %v5042_v17  ;;  %v5045_v38 = vadd.f32 %v14748_v36, %v14746_v57  ;;  %v17838_v57 = vld [vmem:[#allocation63_spill] sm:$0xff] }
 0x868   : > { %17828 = vst [vmem:[#allocation82_spill] sm:$0xff] %v14752_v59  ;;  %v5806_v4 = vsub.f32 %v17831_v10, %v5740_v62  ;;  %v14757_v9 = vpop.eup %10382  ;;  %10402 = vpow2.f32 %v5924_v48  ;;  %v5807_v14 = vsub.f32 %v17833_v7, %v5740_v62  ;;  %v17837_v10 = vld [vmem:[#allocation61_spill] sm:$0xff] }
 0x869   : > { %17832 = vst [vmem:[#allocation76_spill] sm:$0xff] %v14757_v9  ;;  %v14762_v6 = vpop.eup %10384  ;;  %10404 = vpow2.f32 %v4954_v22  ;;  %v4958_v63 = vmul.f32 1.442695, %v4836_v16  ;;  %v4960_v18 = vmul.f32 1.442695, %v4837_v58  ;;  %5046 = vadd.xlane.f32.xlu1 %v5045_v38  ;;  %v6014_v48 = vadd.f32 %v14757_v9, %v14752_v59  ;;  %v17839_v16 = vld [vmem:[#allocation85_spill] sm:$0xff] }
 0x86a   : > { %17834 = vst [vmem:[#allocation78_spill] sm:$0xff] %v14762_v6  ;;  %v5926_v0 = vmul.f32 1.442695, %v5806_v4  ;;  %v14764_v5 = vpop.eup %10386  ;;  %10406 = vpow2.f32 %v4956_v25  ;;  %v5928_v15 = vmul.f32 1.442695, %v5807_v14  ;;  %v5743_v17 = vpop.xlane.xlu1 %5742  ;;  %v17841_v25 = vld [vmem:[#allocation95_spill] sm:$0xff] }
 0x86b   : > { %17835 = vst [vmem:[#allocation77_spill] sm:$0xff] %v14764_v5  ;;  %v4774_v11 = vpop.xlane.xlu0 %4773  ;;  %v14768_v62 = vpop.eup %10388  ;;  %10408 = vpow2.f32 %v4958_v63  ;;  %v5808_v7 = vsub.f32 %v17837_v10, %v5743_v17  ;;  %v5809_v22 = vsub.f32 %v17838_v57, %v5743_v17  ;;  %6015 = vadd.xlane.f32.xlu0 %v6014_v48  ;;  %v6017_v38 = vadd.f32 %v14764_v5, %v14762_v6  ;;  %v17843_v6 = vld [vmem:[#allocation88_spill] sm:$0xff] }
 0x86c   : > { %17836 = vst [vmem:[#allocation79_spill] sm:$0xff] %v14768_v62  ;;  %v4838_v58 = vsub.f32 %v17839_v16, %v4774_v11  ;;  %v14773_v4 = vpop.eup %10390  ;;  %10410 = vpow2.f32 %v4960_v18  ;;  %v4839_v14 = vsub.f32 %v17841_v25, %v4774_v11  ;;  %v17842_v16 = vld [vmem:[#allocation87_spill] sm:$0xff] }
 0x86d   : > { %17840 = vst [vmem:[#allocation83_spill] sm:$0xff] %v14773_v4  ;;  %v14778_v59 = vpop.eup %10392  ;;  %10412 = vpow2.f32 %v5926_v0  ;;  %v5930_v9 = vmul.f32 1.442695, %v5808_v7  ;;  %v5932_v63 = vmul.f32 1.442695, %v5809_v22  ;;  %6018 = vadd.xlane.f32.xlu1 %v6017_v38  ;;  %v5048_v18 = vadd.f32 %v14773_v4, %v14768_v62  ;;  %v17844_v7 = vld [vmem:[#allocation94_spill] sm:$0xff] }
 0x86e   : > { %v4962_v36 = vmul.f32 1.442695, %v4838_v58  ;;  %v14780_v10 = vpop.eup %10394  ;;  %10414 = vpow2.f32 %v5928_v15  ;;  %v4964_v57 = vmul.f32 1.442695, %v4839_v14  ;;  %v4777_v48 = vpop.xlane.xlu1 %4776  ;;  %v17845_v15 = vld [vmem:[#allocation89_spill] sm:$0xff] }
 0x86f   : > { %v5746_v17 = vpop.xlane.xlu0 %5745  ;;  %v14784_v11 = vpop.eup %10396  ;;  %10416 = vpow2.f32 %v5930_v9  ;;  %v4840_v25 = vsub.f32 %v17842_v16, %v4777_v48  ;;  %v4841_v0 = vsub.f32 %v17843_v6, %v4777_v48  ;;  %5049 = vadd.xlane.f32.xlu0 %v5048_v18  ;;  %v5051_v38 = vadd.f32 %v14780_v10, %v14778_v59 }
 0x870   : > { %v5810_v22 = vsub.f32 %v17844_v7, %v5746_v17  ;;  %v14789_v58 = vpop.eup %10398  ;;  %10418 = vpow2.f32 %v5932_v63  ;;  %v5811_v14 = vsub.f32 %v17845_v15, %v5746_v17  ;;  %v17846_v7 = vld [vmem:[#allocation65_spill] sm:$0xff] }
 0x871   : > { %v14794_v62 = vpop.eup %10400  ;;  %10420 = vpow2.f32 %v4962_v36  ;;  %v4966_v4 = vmul.f32 1.442695, %v4840_v25  ;;  %v4968_v9 = vmul.f32 1.442695, %v4841_v0  ;;  %5052 = vadd.xlane.f32.xlu1 %v5051_v38  ;;  %v6020_v63 = vadd.f32 %v14789_v58, %v14784_v11 }
 0x872   : > { %v5934_v5 = vmul.f32 1.442695, %v5810_v22  ;;  %v14796_v16 = vpop.eup %10402  ;;  %10422 = vpow2.f32 %v4964_v57  ;;  %v5936_v6 = vmul.f32 1.442695, %v5811_v14  ;;  %v5749_v18 = vpop.xlane.xlu1 %5748 }
 0x873   : > { %v14800_v48 = vpop.eup %10404  ;;  %10424 = vpow2.f32 %v4966_v4  ;;  %v5812_v17 = vsub.f32 %v14334_v13, %v5749_v18  ;;  %v5813_v15 = vsub.f32 %v17846_v7, %v5749_v18  ;;  %v6023_v36 = vadd.f32 %v14796_v16, %v14794_v62  ;;  %6021 = vadd.xlane.f32.xlu0 %v6020_v63 }
 0x874   : > { %v14806_v25 = vpop.eup %10406  ;;  %10426 = vpow2.f32 %v4968_v9 }
 0x875   : > { %v14808_v57 = vpop.eup %10408  ;;  %10428 = vpow2.f32 %v5934_v5  ;;  %v5938_v0 = vmul.f32 1.442695, %v5812_v17  ;;  %v5940_v22 = vmul.f32 1.442695, %v5813_v15  ;;  %v5054_v14 = vadd.f32 %v14806_v25, %v14800_v48  ;;  %6024 = vadd.xlane.f32.xlu1 %v6023_v36 }
 0x876   : > { %v14812_v4 = vpop.eup %10410  ;;  %10430 = vpow2.f32 %v5936_v6 }
 0x877   : > { %v14814_v13 = vpop.eup %10412  ;;  %10432 = vpow2.f32 %v5938_v0  ;;  %v5057_v38 = vadd.f32 %v14812_v4, %v14808_v57  ;;  %5055 = vadd.xlane.f32.xlu0 %v5054_v14 }
 0x878   : > { %17847 = vst [vmem:[#allocation86_spill] sm:$0xff] %v14814_v13  ;;  %v14818_v9 = vpop.eup %10414  ;;  %10434 = vpow2.f32 %v5940_v22 }
 0x879   : > { %17848 = vst [vmem:[#allocation59_spill] sm:$0xff] %v14818_v9  ;;  %v14820_v5 = vpop.eup %10416  ;;  %v6026_v63 = vadd.f32 %v14818_v9, %v14814_v13  ;;  %5058 = vadd.xlane.f32.xlu1 %v5057_v38 }
 0x87a   : > { %17849 = vst [vmem:[#allocation61_spill] sm:$0xff] %v14820_v5  ;;  %v14824_v18 = vpop.eup %10418 }
 0x87b   : > { %17850 = vst [vmem:[#allocation63_spill] sm:$0xff] %v14824_v18  ;;  %v14826_v6 = vpop.eup %10420  ;;  %v6029_v17 = vadd.f32 %v14824_v18, %v14820_v5  ;;  %6027 = vadd.xlane.f32.xlu0 %v6026_v63 }
 0x87c   : > { %17851 = vst [vmem:[#allocation85_spill] sm:$0xff] %v14826_v6  ;;  %v14830_v7 = vpop.eup %10422 }
 0x87d   : > { %17852 = vst [vmem:[#allocation95_spill] sm:$0xff] %v14830_v7  ;;  %v14832_v15 = vpop.eup %10424  ;;  %v5060_v36 = vadd.f32 %v14830_v7, %v14826_v6  ;;  %6030 = vadd.xlane.f32.xlu1 %v6029_v17 }
 0x87e   : > { %17853 = vst [vmem:[#allocation87_spill] sm:$0xff] %v14832_v15  ;;  %v14836_v0 = vpop.eup %10426 }
 0x87f   : > { %17854 = vst [vmem:[#allocation88_spill] sm:$0xff] %v14836_v0  ;;  %v14838_v22 = vpop.eup %10428  ;;  %v5063_v14 = vadd.f32 %v14836_v0, %v14832_v15  ;;  %5061 = vadd.xlane.f32.xlu0 %v5060_v36 }
 0x880   : > { %17855 = vst [vmem:[#allocation94_spill] sm:$0xff] %v14838_v22  ;;  %v14842_v38 = vpop.eup %10430 }
 0x881   : > { %17856 = vst [vmem:[#allocation89_spill] sm:$0xff] %v14842_v38  ;;  %v14844_v5 = vpop.eup %10432  ;;  %v6032_v63 = vadd.f32 %v14842_v38, %v14838_v22  ;;  %5064 = vadd.xlane.f32.xlu1 %v5063_v14 }
 0x882   : > { %17857 = vst [vmem:[#allocation65_spill] sm:$0xff] %v14844_v5  ;;  %v14848_v13 = vpop.eup %10434 }
 0x883   : > { %17858 = vst [vmem:[#allocation98_spill] sm:$0xff] %v14848_v13  ;;  %v6035_v6 = vadd.f32 %v14848_v13, %v14844_v5  ;;  %6033 = vadd.xlane.f32.xlu0 %v6032_v63 }
 0x885   : > { %6036 = vadd.xlane.f32.xlu1 %v6035_v6 }
 0x88e   : > { %v4972_v17 = vpop.xlane.xlu0 %4971 }
 0x88f   : > { %10436 = vrcp.f32 %v4972_v17 }
 0x892   : > { %v4975_v7 = vpop.xlane.xlu1 %4974 }
 0x893   : > { %10438 = vrcp.f32 %v4975_v7 }
 0x896   : > { %v5944_v15 = vpop.xlane.xlu0 %5943 }
 0x897   : > { %10440 = vrcp.f32 %v5944_v15 }
 0x899   : > { %v10437_v0 = vpop.eup %10436 }
 0x89a   : > { %v5947_v36 = vpop.xlane.xlu1 %5946  ;;  %v5099_v22 = vmul.f32 %v10437_v0, %v14352_v8  ;;  %v5098_v63 = vmul.f32 %v10437_v0, %v14350_v33  ;;  %v4264_v8 = vld [vmem:[%s12518_s24 + $0x48] sm:$0xff] }
 0x89b   : > { %10442 = vrcp.f32 %v5947_v36  ;;  %5226 = vmatprep.mubr.f32.mxu1 %v4264_v8 }
 0x89c   : > { %v4978_v9 = vpop.xlane.xlu0 %4977 }
 0x89d   : > { %v10439_v18 = vpop.eup %10438  ;;  %10444 = vrcp.f32 %v4978_v9 }
 0x89e   : > { %v5101_v14 = vmul.f32 %v10439_v18, %v14362_v43  ;;  %v5100_v6 = vmul.f32 %v10439_v18, %v14360_v50  ;;  %v4981_v17 = vpop.xlane.xlu1 %4980 }
 0x89f   : > { %10446 = vrcp.f32 %v4981_v17 }
 0x8a0   : > { %v9052_v7 = vpack.c.bf16 %v5101_v14, %v5099_v22  ;;  %v9054_v5 = vpack.c.bf16 %v5100_v6, %v5098_v63  ;;  %v5950_v13 = vpop.xlane.xlu0 %5949  ;;  %v352_v6 = vld [vmem:[%s11383_s14 + $0x60] sm:$0xff] }
 0x8a1   : > { %10448 = vrcp.f32 %v5950_v13  ;;  %v10441_v36 = vpop.eup %10440 }
 0x8a2   : > { %9053 = vmatprep.subr.bf16.mxu1 %v9052_v7  ;;  %v5953_v15 = vpop.xlane.xlu1 %5952  ;;  %v6071_v50 = vmul.f32 %v10441_v36, %v14372_v2  ;;  %v6070_v18 = vmul.f32 %v10441_v36, %v14370_v37 }
 0x8a3   : > { %9055 = vmatpush1.bf16.xpose.msra.mxu1 %v9054_v5  ;;  %10450 = vrcp.f32 %v5953_v15  ;;  %v368_v15 = vmul.f32 0.35355338, %v352_v6 }
 0x8a4   : > { %v4984_v38 = vpop.xlane.xlu0 %4983 }
 0x8a5   : > { %v10443_v43 = vpop.eup %10442  ;;  %10452 = vrcp.f32 %v4984_v38 }
 0x8a6   : > { %v4987_v33 = vpop.xlane.xlu1 %4986  ;;  %v6073_v9 = vmul.f32 %v10443_v43, %v14382_v35  ;;  %v6072_v13 = vmul.f32 %v10443_v43, %v14380_v21 }
 0x8a7   : > { %v10445_v0 = vpop.eup %10444  ;;  %10454 = vrcp.f32 %v4987_v33 }
 0x8a8   : > { %v5956_v5 = vpop.xlane.xlu0 %5955  ;;  %v9116_v22 = vpack.c.bf16 %v6073_v9, %v6071_v50  ;;  %v9118_v14 = vpack.c.bf16 %v6072_v13, %v6070_v18  ;;  %v5103_v38 = vmul.f32 %v10445_v0, %v14389_v61  ;;  %v5102_v35 = vmul.f32 %v10445_v0, %v14384_v28  ;;  %v5236_v0 = vld [vmem:[%s12518_s24 + $0x58] sm:$0xff] }
 0x8a9   : > { %v10447_v63 = vpop.eup %10446  ;;  %10456 = vrcp.f32 %v5956_v5  ;;  %6198 = vmatprep.mubr.f32.mxu0 %v5236_v0 }
 0x8aa   : > { %v5959_v17 = vpop.xlane.xlu1 %5958  ;;  %9117 = vmatprep.subr.bf16.mxu0 %v9116_v22  ;;  %v5105_v2 = vmul.f32 %v10447_v63, %v14396_v39  ;;  %v5104_v37 = vmul.f32 %v10447_v63, %v14394_v31  ;;  %v354_v22 = vld [vmem:[%s11383_s14 + $0x70] sm:$0xff] }
 0x8ab   : > { %v10449_v7 = vpop.eup %10448  ;;  %10458 = vrcp.f32 %v5959_v17  ;;  %9119 = vmatpush1.bf16.xpose.msra.mxu0 %v9118_v14 }
 0x8ac   : > { %v4990_v21 = vpop.xlane.xlu0 %4989  ;;  %v9056_v36 = vpack.c.bf16 %v5105_v2, %v5103_v38  ;;  %v9058_v8 = vpack.c.bf16 %v5104_v37, %v5102_v35  ;;  %v6075_v61 = vmul.f32 %v10449_v7, %v14405_v52  ;;  %v6074_v28 = vmul.f32 %v10449_v7, %v14400_v55 }
 0x8ad   : > { %v10451_v43 = vpop.eup %10450  ;;  %10460 = vrcp.f32 %v4990_v21  ;;  %v370_v2 = vmul.f32 0.35355338, %v354_v22 }
 0x8ae   : > { %v4993_v33 = vpop.xlane.xlu1 %4992  ;;  %9057 = vmatprep.subr.bf16.mxu1 %v9056_v36  ;;  %v6077_v39 = vmul.f32 %v10451_v43, %v14412_v29  ;;  %v6076_v31 = vmul.f32 %v10451_v43, %v14410_v3 }
 0x8af   : > { %v10453_v50 = vpop.eup %10452  ;;  %10462 = vrcp.f32 %v4993_v33  ;;  %9059 = vmatpush1.bf16.xpose.msra.mxu1 %v9058_v8 }
 0x8b0   : > { %6209 = vxpose.xlu0.b32.start.end [1/1] (short) %v368_v15, 128  ;;  %v5962_v9 = vpop.xlane.xlu0 %5961  ;;  %v9120_v18 = vpack.c.bf16 %v6077_v39, %v6075_v61  ;;  %v9122_v13 = vpack.c.bf16 %v6076_v31, %v6074_v28  ;;  %v5107_v52 = vmul.f32 %v10453_v50, %v14421_v51  ;;  %v5106_v3 = vmul.f32 %v10453_v50, %v14416_v46 }
 0x8b1   : > { %v10455_v5 = vpop.eup %10454  ;;  %10464 = vrcp.f32 %v5962_v9 }
 0x8b2   : > { %v5965_v14 = vpop.xlane.xlu1 %5964  ;;  %9121 = vmatprep.subr.bf16.mxu0 %v9120_v18  ;;  %v5109_v55 = vmul.f32 %v10455_v5, %v14428_v19  ;;  %v5108_v29 = vmul.f32 %v10455_v5, %v14426_v34 }
 0x8b3   : > { %v10457_v63 = vpop.eup %10456  ;;  %10466 = vrcp.f32 %v5965_v14  ;;  %9123 = vmatpush1.bf16.xpose.msra.mxu0 %v9122_v13 }
 0x8b4   : > { %v4996_v6 = vpop.xlane.xlu0 %4995  ;;  %v9060_v17 = vpack.c.bf16 %v5109_v55, %v5107_v52  ;;  %v9062_v38 = vpack.c.bf16 %v5108_v29, %v5106_v3  ;;  %v6079_v7 = vmul.f32 %v10457_v63, %v14437_v44  ;;  %v6078_v19 = vmul.f32 %v10457_v63, %v14432_v42 }
 0x8b5   : > { %v10459_v35 = vpop.eup %10458  ;;  %10468 = vrcp.f32 %v4996_v6 }
 0x8b6   : > { %v4999_v37 = vpop.xlane.xlu1 %4998  ;;  %9061 = vmatprep.subr.bf16.mxu1 %v9060_v17  ;;  %v6081_v51 = vmul.f32 %v10459_v35, %v14444_v24  ;;  %v6080_v46 = vmul.f32 %v10459_v35, %v14442_v1 }
 0x8b7   : > { %v10461_v34 = vpop.eup %10460  ;;  %10470 = vrcp.f32 %v4999_v37  ;;  %9063 = vmatpush1.bf16.xpose.msra.mxu1 %v9062_v38 }
 0x8b8   : > { %v5968_v21 = vpop.xlane.xlu0 %5967  ;;  %7181 = vxpose.xlu1.b32.start.end [1/1] (short) %v370_v2, 128  ;;  %v9124_v15 = vpack.c.bf16 %v6081_v51, %v6079_v7  ;;  %v9126_v36 = vpack.c.bf16 %v6080_v46, %v6078_v19  ;;  %v5111_v33 = vmul.f32 %v10461_v34, %v14453_v26  ;;  %v5110_v24 = vmul.f32 %v10461_v34, %v14448_v23  ;;  %v17859_v7 = vld [vmem:[#allocation18_spill] sm:$0xff]  ;;  %v17860_v19 = vld [vmem:[#allocation23_spill] sm:$0xff]  ;;  %v17861_v46 = vld [vmem:[#allocation96_spill] sm:$0xff] }
 0x8b9   : > { %v10463_v8 = vpop.eup %10462  ;;  %10472 = vrcp.f32 %v5968_v21  ;;  %v17862_v34 = vld [vmem:[#allocation90_spill] sm:$0xff] }
 0x8ba   : > { %v5971_v43 = vpop.xlane.xlu1 %5970  ;;  %9125 = vmatprep.subr.bf16.mxu0 %v9124_v15  ;;  %v5113_v44 = vmul.f32 %v10463_v8, %v14460_v47  ;;  %v5112_v42 = vmul.f32 %v10463_v8, %v14458_v32 }
 0x8bb   : > { %v10465_v1 = vpop.eup %10464  ;;  %10474 = vrcp.f32 %v5971_v43  ;;  %9127 = vmatpush1.bf16.xpose.msra.mxu0 %v9126_v36 }
 0x8bc   : > { %v5002_v61 = vpop.xlane.xlu0 %5001  ;;  %v9064_v39 = vpack.c.bf16 %v5113_v44, %v5111_v33  ;;  %v9066_v28 = vpack.c.bf16 %v5112_v42, %v5110_v24  ;;  %v6083_v9 = vmul.f32 %v10465_v1, %v14469_v27  ;;  %v6082_v47 = vmul.f32 %v10465_v1, %v14464_v54  ;;  %v17863_v33 = vld [vmem:[#allocation17_spill] sm:$0xff]  ;;  %v17864_v24 = vld [vmem:[#allocation46_spill] sm:$0xff]  ;;  %v17865_v1 = vld [vmem:[#allocation40_spill] sm:$0xff] }
 0x8bd   : > { %v10467_v31 = vpop.eup %10466  ;;  %10476 = vrcp.f32 %v5002_v61 }
 0x8be   : > { %v5005_v50 = vpop.xlane.xlu1 %5004  ;;  %9065 = vmatprep.subr.bf16.mxu1 %v9064_v39  ;;  %v6085_v26 = vmul.f32 %v10467_v31, %v14476_v12  ;;  %v6084_v23 = vmul.f32 %v10467_v31, %v14474_v53  ;;  %v17866_v39 = vld [vmem:[#allocation19_spill] sm:$0xff] }
 0x8bf   : > { %v10469_v18 = vpop.eup %10468  ;;  %10478 = vrcp.f32 %v5005_v50  ;;  %9067 = vmatpush1.bf16.xpose.msra.mxu1 %v9066_v28 }
 0x8c0   : > { %v5974_v32 = vpop.xlane.xlu0 %5973  ;;  %v9128_v13 = vpack.c.bf16 %v6085_v26, %v6083_v9  ;;  %v9130_v0 = vpack.c.bf16 %v6084_v23, %v6082_v47  ;;  %v5115_v14 = vmul.f32 %v10469_v18, %v14485_v60  ;;  %v5114_v12 = vmul.f32 %v10469_v18, %v14480_v45  ;;  %v17867_v18 = vld [vmem:[#allocation20_spill] sm:$0xff] }
 0x8c1   : > { %v10471_v5 = vpop.eup %10470  ;;  %10480 = vrcp.f32 %v5974_v32 }
 0x8c2   : > { %v5977_v22 = vpop.xlane.xlu1 %5976  ;;  %9129 = vmatprep.subr.bf16.mxu0 %v9128_v13  ;;  %v5117_v27 = vmul.f32 %v10471_v5, %v14492_v30  ;;  %v5116_v54 = vmul.f32 %v10471_v5, %v14490_v20  ;;  %v17868_v13 = vld [vmem:[#allocation27_spill] sm:$0xff]  ;;  %v17869_v5 = vld [vmem:[#allocation22_spill] sm:$0xff] }
 0x8c3   : > { %v10473_v52 = vpop.eup %10472  ;;  %10482 = vrcp.f32 %v5977_v22  ;;  %9131 = vmatpush1.bf16.xpose.msra.mxu0 %v9130_v0 }
 0x8c4   : > { %v5008_v53 = vpop.xlane.xlu0 %5007  ;;  %v9068_v55 = vpack.c.bf16 %v5117_v27, %v5115_v14  ;;  %v9070_v3 = vpack.c.bf16 %v5116_v54, %v5114_v12  ;;  %v6087_v6 = vmul.f32 %v10473_v52, %v14501_v40  ;;  %v6086_v30 = vmul.f32 %v10473_v52, %v14496_v49  ;;  %v17870_v14 = vld [vmem:[#allocation41_spill] sm:$0xff] }
 0x8c5   : > { %v10475_v29 = vpop.eup %10474  ;;  %10484 = vrcp.f32 %v5008_v53 }
 0x8c6   : > { %v5011_v63 = vpop.xlane.xlu1 %5010  ;;  %9069 = vmatprep.subr.bf16.mxu1 %v9068_v55  ;;  %v6089_v60 = vmul.f32 %v10475_v29, %v14508_v41  ;;  %v6088_v45 = vmul.f32 %v10475_v29, %v14506_v56  ;;  %v17871_v29 = vld [vmem:[#allocation42_spill] sm:$0xff] }
 0x8c7   : > { %v10477_v17 = vpop.eup %10476  ;;  %10486 = vrcp.f32 %v5011_v63  ;;  %9071 = vmatpush1.bf16.xpose.msra.mxu1 %v9070_v3 }
 0x8c8   : > { %v5980_v20 = vpop.xlane.xlu0 %5979  ;;  %v9132_v38 = vpack.c.bf16 %v6089_v60, %v6087_v6  ;;  %v9134_v2 = vpack.c.bf16 %v6088_v45, %v6086_v30  ;;  %v5119_v51 = vmul.f32 %v10477_v17, %v17859_v7  ;;  %v5118_v41 = vmul.f32 %v10477_v17, %v17861_v46  ;;  %v17872_v6 = vld [vmem:[#allocation48_spill] sm:$0xff]  ;;  %v17873_v30 = vld [vmem:[#allocation45_spill] sm:$0xff]  ;;  %v17874_v17 = vld [vmem:[#allocation39_spill] sm:$0xff] }
 0x8c9   : > { %v10479_v35 = vpop.eup %10478  ;;  %10488 = vrcp.f32 %v5980_v20  ;;  %v17876_v46 = vld [vmem:[#allocation28_spill] sm:$0xff] }
 0x8ca   : > { %v5983_v37 = vpop.xlane.xlu1 %5982  ;;  %9133 = vmatprep.subr.bf16.mxu0 %v9132_v38  ;;  %v5121_v40 = vmul.f32 %v10479_v35, %v17860_v19  ;;  %v5120_v49 = vmul.f32 %v10479_v35, %v17862_v34  ;;  %v17875_v19 = vld [vmem:[#allocation24_spill] sm:$0xff]  ;;  %v17877_v34 = vld [vmem:[#allocation26_spill] sm:$0xff] }
 0x8cb   : > { %v10481_v21 = vpop.eup %10480  ;;  %10490 = vrcp.f32 %v5983_v37  ;;  %9135 = vmatpush1.bf16.xpose.msra.mxu0 %v9134_v2 }
 0x8cc   : > { %v5014_v56 = vpop.xlane.xlu0 %5013  ;;  %v9072_v15 = vpack.c.bf16 %v5121_v40, %v5119_v51  ;;  %v9074_v36 = vpack.c.bf16 %v5120_v49, %v5118_v41  ;;  %v6091_v44 = vmul.f32 %v10481_v21, %v17863_v33  ;;  %v6090_v61 = vmul.f32 %v10481_v21, %v17865_v1  ;;  %v17878_v21 = vld [vmem:[#allocation21_spill] sm:$0xff]  ;;  %v17880_v1 = vld [vmem:[#allocation32_spill] sm:$0xff] }
 0x8cd   : > { %v10483_v8 = vpop.eup %10482  ;;  %10492 = vrcp.f32 %v5014_v56 }
 0x8ce   : > { %v5017_v43 = vpop.xlane.xlu1 %5016  ;;  %9073 = vmatprep.subr.bf16.mxu1 %v9072_v15  ;;  %v6093_v42 = vmul.f32 %v10483_v8, %v17864_v24  ;;  %v6092_v28 = vmul.f32 %v10483_v8, %v17866_v39  ;;  %v17879_v24 = vld [vmem:[#allocation51_spill] sm:$0xff]  ;;  %v17881_v39 = vld [vmem:[#allocation50_spill] sm:$0xff] }
 0x8cf   : > { %v10485_v31 = vpop.eup %10484  ;;  %10494 = vrcp.f32 %v5017_v43  ;;  %9075 = vmatpush1.bf16.xpose.msra.mxu1 %v9074_v36 }
 0x8d0   : > { %v5986_v50 = vpop.xlane.xlu0 %5985  ;;  %v9136_v9 = vpack.c.bf16 %v6093_v42, %v6091_v44  ;;  %v9138_v26 = vpack.c.bf16 %v6092_v28, %v6090_v61  ;;  %v5123_v32 = vmul.f32 %v10485_v31, %v17867_v18  ;;  %v5122_v22 = vmul.f32 %v10485_v31, %v17869_v5  ;;  %v17882_v31 = vld [vmem:[#allocation44_spill] sm:$0xff]  ;;  %v17884_v5 = vld [vmem:[#allocation57_spill] sm:$0xff] }
 0x8d1   : > { %v10487_v47 = vpop.eup %10486  ;;  %10496 = vrcp.f32 %v5986_v50 }
 0x8d2   : > { %v5989_v23 = vpop.xlane.xlu1 %5988  ;;  %9137 = vmatprep.subr.bf16.mxu0 %v9136_v9  ;;  %v5125_v0 = vmul.f32 %v10487_v47, %v17868_v13  ;;  %v5124_v27 = vmul.f32 %v10487_v47, %v17870_v14  ;;  %v17883_v13 = vld [vmem:[#allocation29_spill] sm:$0xff] }
 0x8d3   : > { %v10489_v12 = vpop.eup %10488  ;;  %10498 = vrcp.f32 %v5989_v23  ;;  %9139 = vmatpush1.bf16.xpose.msra.mxu0 %v9138_v26  ;;  %v17885_v14 = vld [vmem:[#allocation53_spill] sm:$0xff] }
 0x8d4   : > { %v5020_v54 = vpop.xlane.xlu0 %5019  ;;  %v9076_v52 = vpack.c.bf16 %v5125_v0, %v5123_v32  ;;  %v9078_v53 = vpack.c.bf16 %v5124_v27, %v5122_v22  ;;  %v6095_v63 = vmul.f32 %v10489_v12, %v17871_v29  ;;  %v6094_v45 = vmul.f32 %v10489_v12, %v17873_v30  ;;  %v17886_v12 = vld [vmem:[#allocation25_spill] sm:$0xff]  ;;  %v17888_v30 = vld [vmem:[#allocation58_spill] sm:$0xff] }
 0x8d5   : > { %v10491_v55 = vpop.eup %10490  ;;  %10500 = vrcp.f32 %v5020_v54 }
 0x8d6   : > { %v5023_v3 = vpop.xlane.xlu1 %5022  ;;  %9077 = vmatprep.subr.bf16.mxu1 %v9076_v52  ;;  %v6097_v60 = vmul.f32 %v10491_v55, %v17872_v6  ;;  %v6096_v20 = vmul.f32 %v10491_v55, %v17874_v17  ;;  %v17887_v6 = vld [vmem:[#allocation31_spill] sm:$0xff] }
 0x8d7   : > { %v10493_v38 = vpop.eup %10492  ;;  %10502 = vrcp.f32 %v5023_v3  ;;  %9079 = vmatpush1.bf16.xpose.msra.mxu1 %v9078_v53  ;;  %v17889_v17 = vld [vmem:[#allocation55_spill] sm:$0xff] }
 0x8d8   : > { %v5992_v2 = vpop.xlane.xlu0 %5991  ;;  %v9140_v35 = vpack.c.bf16 %v6097_v60, %v6095_v63  ;;  %v9142_v37 = vpack.c.bf16 %v6096_v20, %v6094_v45  ;;  %v5127_v40 = vmul.f32 %v10493_v38, %v17875_v19  ;;  %v5126_v49 = vmul.f32 %v10493_v38, %v17877_v34  ;;  %v17890_v38 = vld [vmem:[#allocation30_spill] sm:$0xff]  ;;  %v17891_v34 = vld [vmem:[#allocation56_spill] sm:$0xff] }
 0x8d9   : > { %v10495_v7 = vpop.eup %10494  ;;  %10504 = vrcp.f32 %v5992_v2 }
 0x8da   : > { %v5995_v51 = vpop.xlane.xlu1 %5994  ;;  %9141 = vmatprep.subr.bf16.mxu0 %v9140_v35  ;;  %v5129_v41 = vmul.f32 %v10495_v7, %v17876_v46  ;;  %v5128_v56 = vmul.f32 %v10495_v7, %v17878_v21  ;;  %v353_v35 = vld [vmem:[%s11383_s14 + $0x68] sm:$0xff]  ;;  %v17892_v21 = vld [vmem:[#allocation36_spill] sm:$0xff] }
 0x8db   : > { %v10497_v15 = vpop.eup %10496  ;;  %10506 = vrcp.f32 %v5995_v51  ;;  %9143 = vmatpush1.bf16.xpose.msra.mxu0 %v9142_v37  ;;  %v369_v46 = vmul.f32 0.35355338, %v353_v35  ;;  %v17904_v35 = vld [vmem:[#allocation74_spill] sm:$0xff] }
 0x8dc   : > { %v5026_v36 = vpop.xlane.xlu0 %5025  ;;  %v9080_v8 = vpack.c.bf16 %v5129_v41, %v5127_v40  ;;  %v9082_v43 = vpack.c.bf16 %v5128_v56, %v5126_v49  ;;  %v6099_v42 = vmul.f32 %v10497_v15, %v17879_v24  ;;  %v6098_v28 = vmul.f32 %v10497_v15, %v17881_v39  ;;  %v17893_v15 = vld [vmem:[#allocation34_spill] sm:$0xff]  ;;  %v17895_v39 = vld [vmem:[#allocation35_spill] sm:$0xff] }
 0x8dd   : > { %v10499_v33 = vpop.eup %10498  ;;  %10508 = vrcp.f32 %v5026_v36 }
 0x8de   : > { %v5029_v44 = vpop.xlane.xlu1 %5028  ;;  %9081 = vmatprep.subr.bf16.mxu1 %v9080_v8  ;;  %v6101_v61 = vmul.f32 %v10499_v33, %v17880_v1  ;;  %v6100_v50 = vmul.f32 %v10499_v33, %v17882_v31  ;;  %v17894_v8 = vld [vmem:[#allocation52_spill] sm:$0xff]  ;;  %v17896_v31 = vld [vmem:[#allocation37_spill] sm:$0xff] }
 0x8df   : > { %v10501_v9 = vpop.eup %10500  ;;  %10510 = vrcp.f32 %v5029_v44  ;;  %9083 = vmatpush1.bf16.xpose.msra.mxu1 %v9082_v43 }
 0x8e0   : > { %v5998_v26 = vpop.xlane.xlu0 %5997  ;;  %v9144_v47 = vpack.c.bf16 %v6101_v61, %v6099_v42  ;;  %v9146_v23 = vpack.c.bf16 %v6100_v50, %v6098_v28  ;;  %v5131_v0 = vmul.f32 %v10501_v9, %v17883_v13  ;;  %v5130_v27 = vmul.f32 %v10501_v9, %v17885_v14  ;;  %v17897_v9 = vld [vmem:[#allocation62_spill] sm:$0xff] }
 0x8e1   : > { %v10503_v18 = vpop.eup %10502  ;;  %10512 = vrcp.f32 %v5998_v26 }
 0x8e2   : > { %v6001_v32 = vpop.xlane.xlu1 %6000  ;;  %9145 = vmatprep.subr.bf16.mxu0 %v9144_v47  ;;  %v5133_v22 = vmul.f32 %v10503_v18, %v17884_v5  ;;  %v5132_v54 = vmul.f32 %v10503_v18, %v17886_v12  ;;  %v17898_v47 = vld [vmem:[#allocation54_spill] sm:$0xff]  ;;  %v355_v18 = vld [vmem:[%s11383_s14 + $0x78] sm:$0xff]  ;;  %s8375_s14 = sshll.u32 %s16229_s12, 4  ;;  %s16250_s14 = int_to_ptr.vmem [resolvable:$true] %s8375_s14 }
 0x8e3   : > { %v10505_v52 = vpop.eup %10504  ;;  %10514 = vrcp.f32 %v6001_v32  ;;  %9147 = vmatpush1.bf16.xpose.msra.mxu0 %v9146_v23  ;;  %v371_v14 = vmul.f32 0.35355338, %v355_v18  ;;  %v17899_v12 = vld [vmem:[#allocation64_spill] sm:$0xff]  ;;  %v17913_v18 = vld [vmem:[#allocation47_spill] sm:$0xff]  ;;  %p11045_p12 = scmp.lt.s32.totalorder %s16250_s14, %s11043_s23 }
 0x8e4   : > { %v5032_v53 = vpop.xlane.xlu0 %5031  ;;  %v9084_v55 = vpack.c.bf16 %v5133_v22, %v5131_v0  ;;  %v9086_v3 = vpack.c.bf16 %v5132_v54, %v5130_v27  ;;  %v6103_v60 = vmul.f32 %v10505_v52, %v17887_v6  ;;  %v6102_v20 = vmul.f32 %v10505_v52, %v17889_v17  ;;  %v17900_v52 = vld [vmem:[#allocation70_spill] sm:$0xff] }
 0x8e5   : > { %v10507_v29 = vpop.eup %10506  ;;  %10516 = vrcp.f32 %v5032_v53 }
 0x8e6   : > { %v5035_v63 = vpop.xlane.xlu1 %5034  ;;  %9085 = vmatprep.subr.bf16.mxu1 %v9084_v55  ;;  %v6105_v45 = vmul.f32 %v10507_v29, %v17888_v30  ;;  %v6104_v2 = vmul.f32 %v10507_v29, %v17890_v38  ;;  %v17901_v55 = vld [vmem:[#allocation67_spill] sm:$0xff]  ;;  %v17902_v29 = vld [vmem:[#allocation33_spill] sm:$0xff]  ;;  %v17903_v38 = vld [vmem:[#allocation38_spill] sm:$0xff] }
 0x8e7   : > { %v10509_v37 = vpop.eup %10508  ;;  %10518 = vrcp.f32 %v5035_v63  ;;  %9087 = vmatpush1.bf16.xpose.msra.mxu1 %v9086_v3 }
 0x8e8   : > { %v6004_v7 = vpop.xlane.xlu0 %6003  ;;  %v9148_v51 = vpack.c.bf16 %v6105_v45, %v6103_v60  ;;  %v9150_v19 = vpack.c.bf16 %v6104_v2, %v6102_v20  ;;  %v5135_v49 = vmul.f32 %v10509_v37, %v17891_v34  ;;  %v5134_v36 = vmul.f32 %v10509_v37, %v17893_v15  ;;  %v17907_v15 = vld [vmem:[#allocation66_spill] sm:$0xff] }
 0x8e9   : > { %v10511_v40 = vpop.eup %10510  ;;  %10520 = vrcp.f32 %v6004_v7  ;;  %v17905_v7 = vld [vmem:[#allocation68_spill] sm:$0xff] }
 0x8ea   : > { %v6007_v41 = vpop.xlane.xlu1 %6006  ;;  %9149 = vmatprep.subr.bf16.mxu0 %v9148_v51  ;;  %v5137_v56 = vmul.f32 %v10511_v40, %v17892_v21  ;;  %v5136_v43 = vmul.f32 %v10511_v40, %v17894_v8  ;;  %v17908_v8 = vld [vmem:[#allocation81_spill] sm:$0xff] }
 0x8eb   : > { %v10513_v33 = vpop.eup %10512  ;;  %10522 = vrcp.f32 %v6007_v41  ;;  %9151 = vmatpush1.bf16.xpose.msra.mxu0 %v9150_v19  ;;  %v17906_v19 = vld [vmem:[#allocation60_spill] sm:$0xff] }
 0x8ec   : > { %v5038_v44 = vpop.xlane.xlu0 %5037  ;;  %v9088_v24 = vpack.c.bf16 %v5137_v56, %v5135_v49  ;;  %v9090_v42 = vpack.c.bf16 %v5136_v43, %v5134_v36  ;;  %v6107_v28 = vmul.f32 %v10513_v33, %v17895_v39  ;;  %v6106_v26 = vmul.f32 %v10513_v33, %v17897_v9  ;;  %v17909_v33 = vld [vmem:[#allocation73_spill] sm:$0xff]  ;;  %v17911_v9 = vld [vmem:[#allocation75_spill] sm:$0xff] }
 0x8ed   : > { %v10515_v1 = vpop.eup %10514  ;;  %10524 = vrcp.f32 %v5038_v44  ;;  %6241 = vxpose.xlu0.b32.start.end [1/1] (short) %v369_v46, 128 }
 0x8ee   : > { %v5041_v61 = vpop.xlane.xlu1 %5040  ;;  %9089 = vmatprep.subr.bf16.mxu1 %v9088_v24  ;;  %v6109_v50 = vmul.f32 %v10515_v1, %v17896_v31  ;;  %v6108_v23 = vmul.f32 %v10515_v1, %v17898_v47  ;;  %v17910_v24 = vld [vmem:[#allocation71_spill] sm:$0xff]  ;;  %v17912_v47 = vld [vmem:[#allocation69_spill] sm:$0xff] }
 0x8ef   : > { %v10517_v32 = vpop.eup %10516  ;;  %10526 = vrcp.f32 %v5041_v61  ;;  %9091 = vmatpush1.bf16.xpose.msra.mxu1 %v9090_v42 }
 0x8f0   : > { %v6010_v13 = vpop.xlane.xlu0 %6009  ;;  %v9152_v0 = vpack.c.bf16 %v6109_v50, %v6107_v28  ;;  %v9154_v5 = vpack.c.bf16 %v6108_v23, %v6106_v26  ;;  %v5139_v54 = vmul.f32 %v10517_v32, %v17899_v12  ;;  %v5138_v3 = vmul.f32 %v10517_v32, %v17901_v55  ;;  %v17916_v55 = vld [vmem:[#allocation84_spill] sm:$0xff] }
 0x8f1   : > { %v10519_v22 = vpop.eup %10518  ;;  %10528 = vrcp.f32 %v6010_v13  ;;  %v17914_v13 = vld [vmem:[#allocation49_spill] sm:$0xff] }
 0x8f2   : > { %v6013_v27 = vpop.xlane.xlu1 %6012  ;;  %9153 = vmatprep.subr.bf16.mxu0 %v9152_v0  ;;  %v5141_v53 = vmul.f32 %v10519_v22, %v17900_v52  ;;  %v5140_v63 = vmul.f32 %v10519_v22, %v17902_v29  ;;  %v17915_v52 = vld [vmem:[#allocation80_spill] sm:$0xff] }
 0x8f3   : > { %v10521_v6 = vpop.eup %10520  ;;  %10530 = vrcp.f32 %v6013_v27  ;;  %9155 = vmatpush1.bf16.xpose.msra.mxu0 %v9154_v5  ;;  %v17917_v29 = vld [vmem:[#allocation72_spill] sm:$0xff] }
 0x8f4   : > { %v5044_v60 = vpop.xlane.xlu0 %5043  ;;  %v9092_v30 = vpack.c.bf16 %v5141_v53, %v5139_v54  ;;  %v9094_v45 = vpack.c.bf16 %v5140_v63, %v5138_v3  ;;  %v6111_v2 = vmul.f32 %v10521_v6, %v17903_v38  ;;  %v6110_v51 = vmul.f32 %v10521_v6, %v17905_v7  ;;  %v17918_v6 = vld [vmem:[#allocation43_spill] sm:$0xff]  ;;  %v17920_v7 = vld [vmem:[#allocation77_spill] sm:$0xff] }
 0x8f5   : > { %v10523_v17 = vpop.eup %10522  ;;  %10532 = vrcp.f32 %v5044_v60  ;;  %7213 = vxpose.xlu1.b32.start.end [1/1] (short) %v371_v14, 128 }
 0x8f6   : > { %v5047_v20 = vpop.xlane.xlu1 %5046  ;;  %9093 = vmatprep.subr.bf16.mxu1 %v9092_v30  ;;  %v6113_v37 = vmul.f32 %v10523_v17, %v17904_v35  ;;  %v6112_v40 = vmul.f32 %v10523_v17, %v17906_v19  ;;  %v17919_v35 = vld [vmem:[#allocation76_spill] sm:$0xff]  ;;  %v17921_v19 = vld [vmem:[#allocation82_spill] sm:$0xff] }
 0x8f7   : > { %v10525_v46 = vpop.eup %10524  ;;  %10534 = vrcp.f32 %v5047_v20  ;;  %9095 = vmatpush1.bf16.xpose.msra.mxu1 %v9094_v45 }
 0x8f8   : > { %v6016_v41 = vpop.xlane.xlu0 %6015  ;;  %v9156_v34 = vpack.c.bf16 %v6113_v37, %v6111_v2  ;;  %v9158_v49 = vpack.c.bf16 %v6112_v40, %v6110_v51  ;;  %v5143_v36 = vmul.f32 %v10525_v46, %v17907_v15  ;;  %v5142_v44 = vmul.f32 %v10525_v46, %v17909_v33  ;;  %v17922_v46 = vld [vmem:[#allocation78_spill] sm:$0xff] }
 0x8f9   : > { %v10527_v21 = vpop.eup %10526  ;;  %10536 = vrcp.f32 %v6016_v41 }
 0x8fa   : > { %v6019_v56 = vpop.xlane.xlu1 %6018  ;;  %9157 = vmatprep.subr.bf16.mxu0 %v9156_v34  ;;  %v5145_v43 = vmul.f32 %v10527_v21, %v17908_v8  ;;  %v5144_v42 = vmul.f32 %v10527_v21, %v17910_v24  ;;  %v17923_v8 = vld [vmem:[#allocation83_spill] sm:$0xff] }
 0x8fb   : > { %v10529_v1 = vpop.eup %10528  ;;  %10538 = vrcp.f32 %v6019_v56  ;;  %9159 = vmatpush1.bf16.xpose.msra.mxu0 %v9158_v49 }
 0x8fc   : > { %v5050_v61 = vpop.xlane.xlu0 %5049  ;;  %v9096_v39 = vpack.c.bf16 %v5145_v43, %v5143_v36  ;;  %v9098_v28 = vpack.c.bf16 %v5144_v42, %v5142_v44  ;;  %v6115_v26 = vmul.f32 %v10529_v1, %v17911_v9  ;;  %v6114_v32 = vmul.f32 %v10529_v1, %v17913_v18  ;;  %v17924_v44 = vld [vmem:[#allocation79_spill] sm:$0xff] }
 0x8fd   : > { %v10531_v31 = vpop.eup %10530  ;;  %10540 = vrcp.f32 %v5050_v61 }
 0x8fe   : > { %v5053_v50 = vpop.xlane.xlu1 %5052  ;;  %9097 = vmatprep.subr.bf16.mxu1 %v9096_v39  ;;  %v6117_v23 = vmul.f32 %v10531_v31, %v17912_v47  ;;  %v6116_v0 = vmul.f32 %v10531_v31, %v17914_v13 }
 0x8ff   : > { %v10533_v5 = vpop.eup %10532  ;;  %10542 = vrcp.f32 %v5053_v50  ;;  %9099 = vmatpush1.bf16.xpose.msra.mxu1 %v9098_v28 }
 0x900   : > { %v6022_v22 = vpop.xlane.xlu0 %6021  ;;  %v9160_v14 = vpack.c.bf16 %v6117_v23, %v6115_v26  ;;  %v9162_v27 = vpack.c.bf16 %v6116_v0, %v6114_v32  ;;  %v5147_v53 = vmul.f32 %v10533_v5, %v17915_v52  ;;  %v5146_v63 = vmul.f32 %v10533_v5, %v17917_v29  ;;  %v17926_v52 = vld [vmem:[#allocation63_spill] sm:$0xff] }
 0x901   : > { %v10535_v12 = vpop.eup %10534  ;;  %10544 = vrcp.f32 %v6022_v22 }
 0x902   : > { %v6025_v54 = vpop.xlane.xlu1 %6024  ;;  %9161 = vmatprep.subr.bf16.mxu0 %v9160_v14  ;;  %v5149_v3 = vmul.f32 %v10535_v12, %v17916_v55  ;;  %v5148_v60 = vmul.f32 %v10535_v12, %v17918_v6  ;;  %v17925_v12 = vld [vmem:[#allocation59_spill] sm:$0xff]  ;;  %v17927_v55 = vld [vmem:[#allocation86_spill] sm:$0xff] }
 0x903   : > { %v10537_v30 = vpop.eup %10536  ;;  %10546 = vrcp.f32 %v6025_v54  ;;  %9163 = vmatpush1.bf16.xpose.msra.mxu0 %v9162_v27  ;;  %v17929_v6 = vld [vmem:[#allocation95_spill] sm:$0xff] }
 0x904   : > { %v5056_v45 = vpop.xlane.xlu0 %5055  ;;  %v9100_v17 = vpack.c.bf16 %v5149_v3, %v5147_v53  ;;  %v9102_v20 = vpack.c.bf16 %v5148_v60, %v5146_v63  ;;  %v6119_v37 = vmul.f32 %v10537_v30, %v17919_v35  ;;  %v6118_v40 = vmul.f32 %v10537_v30, %v17921_v19  ;;  %v17930_v30 = vld [vmem:[#allocation88_spill] sm:$0xff]  ;;  %v6206_v19 = vld [vmem:[%s11391_s17 + $0x68] sm:$0xff] }
 0x905   : > { %v10539_v38 = vpop.eup %10538  ;;  %10548 = vrcp.f32 %v5056_v45 }
 0x906   : > { %v5059_v2 = vpop.xlane.xlu1 %5058  ;;  %9101 = vmatprep.subr.bf16.mxu1 %v9100_v17  ;;  %v6121_v51 = vmul.f32 %v10539_v38, %v17920_v7  ;;  %v6120_v41 = vmul.f32 %v10539_v38, %v17922_v46  ;;  %v17931_v17 = vld [vmem:[#allocation85_spill] sm:$0xff]  ;;  %v17932_v38 = vld [vmem:[#allocation87_spill] sm:$0xff] }
 0x907   : > { %v10541_v34 = vpop.eup %10540  ;;  %10550 = vrcp.f32 %v5059_v2  ;;  %9103 = vmatpush1.bf16.xpose.msra.mxu1 %v9102_v20 }
 0x908   : > { %v6028_v49 = vpop.xlane.xlu0 %6027  ;;  %v9164_v21 = vpack.c.bf16 %v6121_v51, %v6119_v37  ;;  %v9166_v56 = vpack.c.bf16 %v6120_v41, %v6118_v40  ;;  %v5151_v43 = vmul.f32 %v10541_v34, %v17923_v8  ;;  %v5150_v24 = vmul.f32 %v10541_v34, %v17924_v44  ;;  %v17933_v40 = vld [vmem:[#allocation89_spill] sm:$0xff]  ;;  %v17934_v41 = vld [vmem:[#allocation98_spill] sm:$0xff] }
 0x909   : > { %v10543_v15 = vpop.eup %10542  ;;  %10552 = vrcp.f32 %v6028_v49  ;;  %v17935_v49 = vld [vmem:[#allocation94_spill] sm:$0xff]  ;;  %v6205_v44 = vld [vmem:[%s11391_s17 + $0x60] sm:$0xff] }
 0x90a   : > { %v6031_v36 = vpop.xlane.xlu1 %6030  ;;  %9165 = vmatprep.subr.bf16.mxu0 %v9164_v21  ;;  %v5153_v33 = vmul.f32 %v10543_v15, %v14780_v10  ;;  %v5152_v42 = vmul.f32 %v10543_v15, %v14778_v59 }
 0x90b   : > { %v10545_v1 = vpop.eup %10544  ;;  %10554 = vrcp.f32 %v6031_v36  ;;  %9167 = vmatpush1.bf16.xpose.msra.mxu0 %v9166_v56  ;;  %v17936_v56 = vld [vmem:[#allocation65_spill] sm:$0xff] }
 0x90c   : > { %v5062_v61 = vpop.xlane.xlu0 %5061  ;;  %v9104_v39 = vpack.c.bf16 %v5153_v33, %v5151_v43  ;;  %v9106_v28 = vpack.c.bf16 %v5152_v42, %v5150_v24  ;;  %v6123_v9 = vmul.f32 %v10545_v1, %v14789_v58  ;;  %v6122_v10 = vmul.f32 %v10545_v1, %v14784_v11  ;;  %v7178_v43 = vld [vmem:[%s11391_s17 + $0x78] sm:$0xff]  ;;  %v4263_v33 = vld [vmem:[%s12518_s24 + $0x40] sm:$0xff]  ;;  %v5235_v42 = vld [vmem:[%s12518_s24 + $0x50] sm:$0xff] }
 0x90d   : > { %v10547_v31 = vpop.eup %10546  ;;  %10556 = vrcp.f32 %v5062_v61  ;;  %v17937_v24 = vmov 0.0   ;;  %v7177_v1 = vld [vmem:[%s11391_s17 + $0x70] sm:$0xff]  ;;  %s8360_s17 = scalar_lea.sflag [#allocation4], %s11376_s29 }
 0x90e   : > { %v5065_v50 = vpop.xlane.xlu1 %5064  ;;  %9105 = vmatprep.subr.bf16.mxu1 %v9104_v39  ;;  %v6125_v26 = vmul.f32 %v10547_v31, %v14796_v16  ;;  %v6124_v47 = vmul.f32 %v10547_v31, %v14794_v62 }
 0x90f   : > { %v10549_v23 = vpop.eup %10548  ;;  %10558 = vrcp.f32 %v5065_v50  ;;  %9107 = vmatpush1.bf16.xpose.msra.mxu1 %v9106_v28 }
 0x910   : > { %v6034_v59 = vpop.xlane.xlu0 %6033  ;;  %v9168_v18 = vpack.c.bf16 %v6125_v26, %v6123_v9  ;;  %v9170_v32 = vpack.c.bf16 %v6124_v47, %v6122_v10  ;;  %v5155_v5 = vmul.f32 %v10549_v23, %v14806_v25  ;;  %v5154_v16 = vmul.f32 %v10549_v23, %v14800_v48  ;;  %v17928_v25 = vld [vmem:[#allocation61_spill] sm:$0xff] }
 0x911   : > { %v10551_v13 = vpop.eup %10550  ;;  %10560 = vrcp.f32 %v6034_v59 }
 0x912   : > { %v6037_v0 = vpop.xlane.xlu1 %6036  ;;  %9169 = vmatprep.subr.bf16.mxu0 %v9168_v18  ;;  %v5157_v58 = vmul.f32 %v10551_v13, %v14812_v4  ;;  %v5156_v11 = vmul.f32 %v10551_v13, %v14808_v57 }
 0x913   : > { %v10553_v22 = vpop.eup %10552  ;;  %10562 = vrcp.f32 %v6037_v0  ;;  %9171 = vmatpush1.bf16.xpose.msra.mxu0 %v9170_v32 }
 0x914   : > { %v9108_v62 = vpack.c.bf16 %v5157_v58, %v5155_v5  ;;  %v9110_v14 = vpack.c.bf16 %v5156_v11, %v5154_v16  ;;  %v6127_v54 = vmul.f32 %v10553_v22, %v17925_v12  ;;  %v6126_v3 = vmul.f32 %v10553_v22, %v17927_v55 }
 0x915   : > { %v10555_v27 = vpop.eup %10554 }
 0x916   : > { %9109 = vmatprep.subr.bf16.mxu1 %v9108_v62  ;;  %v6129_v53 = vmul.f32 %v10555_v27, %v17926_v52  ;;  %v6128_v29 = vmul.f32 %v10555_v27, %v17928_v25 }
 0x917   : > { %v10557_v4 = vpop.eup %10556  ;;  %9111 = vmatpush1.bf16.xpose.msra.mxu1 %v9110_v14 }
 0x918   : > { %v9172_v48 = vpack.c.bf16 %v6129_v53, %v6127_v54  ;;  %v9174_v57 = vpack.c.bf16 %v6128_v29, %v6126_v3  ;;  %v5159_v60 = vmul.f32 %v10557_v4, %v17929_v6  ;;  %v5158_v20 = vmul.f32 %v10557_v4, %v17931_v17 }
 0x919   : > { %v10559_v63 = vpop.eup %10558 }
 0x91a   : > { %9173 = vmatprep.subr.bf16.mxu0 %v9172_v48  ;;  %v5161_v45 = vmul.f32 %v10559_v63, %v17930_v30  ;;  %v5160_v2 = vmul.f32 %v10559_v63, %v17932_v38 }
 0x91b   : > { %v10561_v35 = vpop.eup %10560  ;;  %9175 = vmatpush1.bf16.xpose.msra.mxu0 %v9174_v57 }
 0x91c   : > { %v9112_v37 = vpack.c.bf16 %v5161_v45, %v5159_v60  ;;  %v9114_v7 = vpack.c.bf16 %v5160_v2, %v5158_v20  ;;  %v6131_v46 = vmul.f32 %v10561_v35, %v17933_v40  ;;  %v6130_v21 = vmul.f32 %v10561_v35, %v17935_v49 }
 0x91d   : > { %v10563_v51 = vpop.eup %10562 }
 0x91e   : > { %9113 = vmatprep.subr.bf16.mxu1 %v9112_v37  ;;  %v6133_v34 = vmul.f32 %v10563_v51, %v17934_v41  ;;  %v6132_v15 = vmul.f32 %v10563_v51, %v17936_v56 }
 0x91f   : > { %9115 = vmatpush1.bf16.xpose.msra.mxu1 %v9114_v7 }
 0x920   : > { %v9176_v36 = vpack.c.bf16 %v6133_v34, %v6131_v46  ;;  %v9178_v8 = vpack.c.bf16 %v6132_v15, %v6130_v21  ;;  %6369 = vmatprep.subr.mxu1 %v6206_v19 }
 0x922   : > { %9177 = vmatprep.subr.bf16.mxu0 %v9176_v36 }
 0x923   : > { %9179 = vmatpush1.bf16.xpose.msra.mxu0 %v9178_v8 }
 0x924   : > { %7341 = vmatprep.subr.mxu0 %v7178_v43 }
 0x926   : > { %5227 = vmatmul.mubr.f32.vlgmr.msra.gmra.mrb[196].mxu1 %v4263_v33 }
 0x927   : > { %6370 = vmatpush1.msra.mxu1 %v6205_v44  ;;  %6433 = vmatprep.mubr.f32.mxu1 %v17937_v24 }
 0x92a   : > { %6199 = vmatmul.mubr.f32.vlgmr.msra.gmra.mrb[196].mxu0 %v5235_v42 }
 0x92b   : > { %7342 = vmatpush1.msra.mxu0 %v7177_v1  ;;  %7405 = vmatprep.mubr.f32.mxu0 %v17937_v24 }
 0x930   : > { %v6225_v61 = vpop.trf.xlu0 }
 0x931   : > { %8715 = vmatmul.mubr.msk.f32.vlgmr.msra.gmra.mrb[198].mxu1 %vm440_vm0, %v6225_v61 }
 0x932   : > { %6439 = vmatprep.mubr.f32.mxu1 %v17937_v24 }
 0x934   : > { %v6226_v39 = vpop.trf.xlu0 }
 0x935   : > { %8716 = vmatmul.mubr.msk.f32.gmra.mrb[200].mxu1 %vm440_vm0, %v6226_v39 }
 0x936   : > { %6445 = vmatprep.mubr.f32.mxu1 %v17937_v24 }
 0x938   : > { %v7197_v28 = vpop.trf.xlu1  ;;  %v6227_v31 = vpop.trf.xlu0 }
 0x939   : > { %8747 = vmatmul.mubr.msk.f32.vlgmr.msra.gmra.mrb[198].mxu0 %vm440_vm0, %v7197_v28  ;;  %8717 = vmatmul.mubr.msk.f32.gmra.mrb[202].mxu1 %vm440_vm0, %v6227_v31 }
 0x93a   : > { %7411 = vmatprep.mubr.f32.mxu0 %v17937_v24  ;;  %6451 = vmatprep.mubr.f32.mxu1 %v17937_v24 }
 0x93c   : > { %v7198_v50 = vpop.trf.xlu1  ;;  %v6228_v9 = vpop.trf.xlu0 }
 0x93d   : > { %8748 = vmatmul.mubr.msk.f32.gmra.mrb[200].mxu0 %vm440_vm0, %v7198_v50  ;;  %8718 = vmatmul.mubr.msk.f32.gmra.mrb[204].mxu1 %vm440_vm0, %v6228_v9 }
 0x93e   : > { %7417 = vmatprep.mubr.f32.mxu0 %v17937_v24  ;;  %6457 = vmatprep.mubr.f32.mxu1 %v17937_v24 }
 0x940   : > { %v7199_v26 = vpop.trf.xlu1  ;;  %v6229_v10 = vpop.trf.xlu0 }
 0x941   : > { %8749 = vmatmul.mubr.msk.f32.gmra.mrb[202].mxu0 %vm440_vm0, %v7199_v26  ;;  %8719 = vmatmul.mubr.msk.f32.gmra.mrb[206].mxu1 %vm440_vm0, %v6229_v10 }
 0x942   : > { %7423 = vmatprep.mubr.f32.mxu0 %v17937_v24  ;;  %6463 = vmatprep.mubr.f32.mxu1 %v17937_v24 }
 0x944   : > { %v7200_v47 = vpop.trf.xlu1  ;;  %v6230_v23 = vpop.trf.xlu0 }
 0x945   : > { %8750 = vmatmul.mubr.msk.f32.gmra.mrb[204].mxu0 %vm440_vm0, %v7200_v47  ;;  %8720 = vmatmul.mubr.msk.f32.gmra.mrb[208].mxu1 %vm440_vm0, %v6230_v23 }
 0x946   : > { %7429 = vmatprep.mubr.f32.mxu0 %v17937_v24  ;;  %6469 = vmatprep.mubr.f32.mxu1 %v17937_v24 }
 0x948   : > { %v7201_v59 = vpop.trf.xlu1  ;;  %v6231_v18 = vpop.trf.xlu0 }
 0x949   : > { %8751 = vmatmul.mubr.msk.f32.gmra.mrb[206].mxu0 %vm440_vm0, %v7201_v59  ;;  %8721 = vmatmul.mubr.msk.f32.gmra.mrb[210].mxu1 %vm440_vm0, %v6231_v18 }
 0x94a   : > { %7435 = vmatprep.mubr.f32.mxu0 %v17937_v24  ;;  %6475 = vmatprep.mubr.f32.mxu1 %v17937_v24 }
 0x94c   : > { %v7202_v32 = vpop.trf.xlu1  ;;  %v6232_v13 = vpop.trf.xlu0 }
 0x94d   : > { %8752 = vmatmul.mubr.msk.f32.gmra.mrb[208].mxu0 %vm440_vm0, %v7202_v32  ;;  %8722 = vmatmul.mubr.msk.f32.gmra.mrb[212].mxu1 %vm440_vm0, %v6232_v13 }
 0x94e   : > { %7441 = vmatprep.mubr.f32.mxu0 %v17937_v24  ;;  %6481 = vmatprep.mubr.f32.mxu1 %v17937_v24 }
 0x950   : > { %v7203_v0 = vpop.trf.xlu1  ;;  %v6233_v5 = vpop.trf.xlu0 }
 0x951   : > { %8753 = vmatmul.mubr.msk.f32.gmra.mrb[210].mxu0 %vm440_vm0, %v7203_v0  ;;  %8723 = vmatmul.mubr.msk.f32.gmra.mrb[214].mxu1 %vm440_vm0, %v6233_v5 }
 0x952   : > { %7447 = vmatprep.mubr.f32.mxu0 %v17937_v24  ;;  %6487 = vmatprep.mubr.f32.mxu1 %v17937_v24 }
 0x954   : > { %v7204_v58 = vpop.trf.xlu1  ;;  %v6234_v16 = vpop.trf.xlu0 }
 0x955   : > { %8754 = vmatmul.mubr.msk.f32.gmra.mrb[212].mxu0 %vm440_vm0, %v7204_v58  ;;  %8724 = vmatmul.mubr.msk.f32.gmra.mrb[216].mxu1 %vm440_vm0, %v6234_v16 }
 0x956   : > { %7453 = vmatprep.mubr.f32.mxu0 %v17937_v24  ;;  %6493 = vmatprep.mubr.f32.mxu1 %v17937_v24 }
 0x958   : > { %v7205_v11 = vpop.trf.xlu1  ;;  %v6235_v22 = vpop.trf.xlu0 }
 0x959   : > { %8755 = vmatmul.mubr.msk.f32.gmra.mrb[214].mxu0 %vm440_vm0, %v7205_v11  ;;  %8725 = vmatmul.mubr.msk.f32.gmra.mrb[218].mxu1 %vm440_vm0, %v6235_v22 }
 0x95a   : > { %7459 = vmatprep.mubr.f32.mxu0 %v17937_v24  ;;  %6499 = vmatprep.mubr.f32.mxu1 %v17937_v24 }
 0x95c   : > { %v7206_v62 = vpop.trf.xlu1  ;;  %v6236_v14 = vpop.trf.xlu0 }
 0x95d   : > { %8756 = vmatmul.mubr.msk.f32.gmra.mrb[216].mxu0 %vm440_vm0, %v7206_v62  ;;  %8726 = vmatmul.mubr.msk.f32.gmra.mrb[220].mxu1 %vm440_vm0, %v6236_v14 }
 0x95e   : > { %7465 = vmatprep.mubr.f32.mxu0 %v17937_v24  ;;  %6505 = vmatprep.mubr.f32.mxu1 %v17937_v24 }
 0x960   : > { %v7207_v27 = vpop.trf.xlu1  ;;  %v6237_v12 = vpop.trf.xlu0 }
 0x961   : > { %8757 = vmatmul.mubr.msk.f32.gmra.mrb[218].mxu0 %vm440_vm0, %v7207_v27  ;;  %8727 = vmatmul.mubr.msk.f32.gmra.mrb[222].mxu1 %vm440_vm0, %v6237_v12 }
 0x962   : > { %7471 = vmatprep.mubr.f32.mxu0 %v17937_v24  ;;  %6511 = vmatprep.mubr.f32.mxu1 %v17937_v24 }
 0x964   : > { %v7208_v54 = vpop.trf.xlu1  ;;  %v6238_v52 = vpop.trf.xlu0 }
 0x965   : > { %8758 = vmatmul.mubr.msk.f32.gmra.mrb[220].mxu0 %vm440_vm0, %v7208_v54  ;;  %8728 = vmatmul.mubr.msk.f32.gmra.mrb[224].mxu1 %vm440_vm0, %v6238_v52 }
 0x966   : > { %7477 = vmatprep.mubr.f32.mxu0 %v17937_v24  ;;  %6517 = vmatprep.mubr.f32.mxu1 %v17937_v24 }
 0x968   : > { %v7209_v53 = vpop.trf.xlu1  ;;  %v6239_v55 = vpop.trf.xlu0 }
 0x969   : > { %8759 = vmatmul.mubr.msk.f32.gmra.mrb[222].mxu0 %vm440_vm0, %v7209_v53  ;;  %8729 = vmatmul.mubr.msk.f32.gmra.mrb[226].mxu1 %vm440_vm0, %v6239_v55 }
 0x96a   : > { %7483 = vmatprep.mubr.f32.mxu0 %v17937_v24  ;;  %6523 = vmatprep.mubr.f32.mxu1 %v17937_v24 }
 0x96c   : > { %v7210_v3 = vpop.trf.xlu1  ;;  %v6240_v25 = vpop.trf.xlu0 }
 0x96d   : > { %8760 = vmatmul.mubr.msk.f32.gmra.mrb[224].mxu0 %vm440_vm0, %v7210_v3  ;;  %8730 = vmatmul.mubr.msk.f32.gmra.mrb[228].mxu1 %vm440_vm0, %v6240_v25 }
 0x96e   : > { %7489 = vmatprep.mubr.f32.mxu0 %v17937_v24  ;;  %6529 = vmatprep.mubr.f32.mxu1 %v17937_v24 }
 0x970   : > { %v7211_v29 = vpop.trf.xlu1  ;;  %v6257_v4 = vpop.trf.xlu0 }
 0x971   : > { %8761 = vmatmul.mubr.msk.f32.gmra.mrb[226].mxu0 %vm440_vm0, %v7211_v29  ;;  %8731 = vmatmul.mubr.msk.f32.gmra.mrb[230].mxu1 %vm440_vm0, %v6257_v4 }
 0x972   : > { %7495 = vmatprep.mubr.f32.mxu0 %v17937_v24  ;;  %6535 = vmatprep.mubr.f32.mxu1 %v17937_v24 }
 0x974   : > { %v7212_v48 = vpop.trf.xlu1  ;;  %v6258_v57 = vpop.trf.xlu0 }
 0x975   : > { %8762 = vmatmul.mubr.msk.f32.gmra.mrb[228].mxu0 %vm440_vm0, %v7212_v48  ;;  %8732 = vmatmul.mubr.msk.f32.gmra.mrb[232].mxu1 %vm440_vm0, %v6258_v57 }
 0x976   : > { %7501 = vmatprep.mubr.f32.mxu0 %v17937_v24  ;;  %6541 = vmatprep.mubr.f32.mxu1 %v17937_v24 }
 0x978   : > { %v7229_v63 = vpop.trf.xlu1  ;;  %v6259_v6 = vpop.trf.xlu0 }
 0x979   : > { %8763 = vmatmul.mubr.msk.f32.gmra.mrb[230].mxu0 %vm440_vm0, %v7229_v63  ;;  %8733 = vmatmul.mubr.msk.f32.gmra.mrb[234].mxu1 %vm440_vm0, %v6259_v6 }
 0x97a   : > { %7507 = vmatprep.mubr.f32.mxu0 %v17937_v24  ;;  %6547 = vmatprep.mubr.f32.mxu1 %v17937_v24 }
 0x97c   : > { %v7230_v60 = vpop.trf.xlu1  ;;  %v6260_v30 = vpop.trf.xlu0 }
 0x97d   : > { %8764 = vmatmul.mubr.msk.f32.gmra.mrb[232].mxu0 %vm440_vm0, %v7230_v60  ;;  %8734 = vmatmul.mubr.msk.f32.gmra.mrb[236].mxu1 %vm440_vm0, %v6260_v30 }
 0x97e   : > { %7513 = vmatprep.mubr.f32.mxu0 %v17937_v24  ;;  %6553 = vmatprep.mubr.f32.mxu1 %v17937_v24 }
 0x980   : > { %v7231_v45 = vpop.trf.xlu1  ;;  %v6261_v17 = vpop.trf.xlu0 }
 0x981   : > { %8765 = vmatmul.mubr.msk.f32.gmra.mrb[234].mxu0 %vm440_vm0, %v7231_v45  ;;  %8735 = vmatmul.mubr.msk.f32.gmra.mrb[238].mxu1 %vm440_vm0, %v6261_v17 }
 0x982   : > { %7519 = vmatprep.mubr.f32.mxu0 %v17937_v24  ;;  %6559 = vmatprep.mubr.f32.mxu1 %v17937_v24 }
 0x984   : > { %v7232_v20 = vpop.trf.xlu1  ;;  %v6262_v38 = vpop.trf.xlu0 }
 0x985   : > { %8766 = vmatmul.mubr.msk.f32.gmra.mrb[236].mxu0 %vm440_vm0, %v7232_v20  ;;  %8736 = vmatmul.mubr.msk.f32.gmra.mrb[240].mxu1 %vm440_vm0, %v6262_v38 }
 0x986   : > { %7525 = vmatprep.mubr.f32.mxu0 %v17937_v24  ;;  %6565 = vmatprep.mubr.f32.mxu1 %v17937_v24 }
 0x988   : > { %v7233_v2 = vpop.trf.xlu1  ;;  %v6263_v35 = vpop.trf.xlu0 }
 0x989   : > { %8767 = vmatmul.mubr.msk.f32.gmra.mrb[238].mxu0 %vm440_vm0, %v7233_v2  ;;  %8737 = vmatmul.mubr.msk.f32.gmra.mrb[242].mxu1 %vm440_vm0, %v6263_v35 }
 0x98a   : > { %7531 = vmatprep.mubr.f32.mxu0 %v17937_v24  ;;  %6571 = vmatprep.mubr.f32.mxu1 %v17937_v24 }
 0x98c   : > { %v7234_v37 = vpop.trf.xlu1  ;;  %v6264_v7 = vpop.trf.xlu0 }
 0x98d   : > { %8768 = vmatmul.mubr.msk.f32.gmra.mrb[240].mxu0 %vm440_vm0, %v7234_v37  ;;  %8738 = vmatmul.mubr.msk.f32.gmra.mrb[244].mxu1 %vm440_vm0, %v6264_v7 }
 0x98e   : > { %7537 = vmatprep.mubr.f32.mxu0 %v17937_v24  ;;  %6577 = vmatprep.mubr.f32.mxu1 %v17937_v24 }
 0x990   : > { %v7235_v51 = vpop.trf.xlu1  ;;  %v6265_v19 = vpop.trf.xlu0 }
 0x991   : > { %8769 = vmatmul.mubr.msk.f32.gmra.mrb[242].mxu0 %vm440_vm0, %v7235_v51  ;;  %8739 = vmatmul.mubr.msk.f32.gmra.mrb[246].mxu1 %vm440_vm0, %v6265_v19 }
 0x992   : > { %7543 = vmatprep.mubr.f32.mxu0 %v17937_v24  ;;  %6583 = vmatprep.mubr.f32.mxu1 %v17937_v24 }
 0x994   : > { %v7236_v40 = vpop.trf.xlu1  ;;  %v6266_v46 = vpop.trf.xlu0 }
 0x995   : > { %8770 = vmatmul.mubr.msk.f32.gmra.mrb[244].mxu0 %vm440_vm0, %v7236_v40  ;;  %8740 = vmatmul.mubr.msk.f32.gmra.mrb[248].mxu1 %vm440_vm0, %v6266_v46 }
 0x996   : > { %7549 = vmatprep.mubr.f32.mxu0 %v17937_v24  ;;  %6589 = vmatprep.mubr.f32.mxu1 %v17937_v24 }
 0x998   : > { %v7237_v41 = vpop.trf.xlu1  ;;  %v6267_v34 = vpop.trf.xlu0 }
 0x999   : > { %8771 = vmatmul.mubr.msk.f32.gmra.mrb[246].mxu0 %vm440_vm0, %v7237_v41  ;;  %8741 = vmatmul.mubr.msk.f32.gmra.mrb[250].mxu1 %vm440_vm0, %v6267_v34 }
 0x99a   : > { %7555 = vmatprep.mubr.f32.mxu0 %v17937_v24  ;;  %6595 = vmatprep.mubr.f32.mxu1 %v17937_v24 }
 0x99c   : > { %v7238_v49 = vpop.trf.xlu1  ;;  %v6268_v21 = vpop.trf.xlu0 }
 0x99d   : > { %8772 = vmatmul.mubr.msk.f32.gmra.mrb[248].mxu0 %vm440_vm0, %v7238_v49  ;;  %8742 = vmatmul.mubr.msk.f32.gmra.mrb[252].mxu1 %vm440_vm0, %v6268_v21 }
 0x99e   : > { %7561 = vmatprep.mubr.f32.mxu0 %v17937_v24  ;;  %6601 = vmatprep.mubr.f32.mxu1 %v17937_v24 }
 0x9a0   : > { %v7239_v56 = vpop.trf.xlu1  ;;  %v6269_v15 = vpop.trf.xlu0 }
 0x9a1   : > { %8773 = vmatmul.mubr.msk.f32.gmra.mrb[250].mxu0 %vm440_vm0, %v7239_v56  ;;  %8743 = vmatmul.mubr.msk.f32.gmra.mrb[254].mxu1 %vm440_vm0, %v6269_v15 }
 0x9a2   : > { %7567 = vmatprep.mubr.f32.mxu0 %v17937_v24  ;;  %6607 = vmatprep.mubr.f32.mxu1 %v17937_v24 }
 0x9a4   : > { %v7240_v36 = vpop.trf.xlu1  ;;  %v6270_v8 = vpop.trf.xlu0 }
 0x9a5   : > { %8774 = vmatmul.mubr.msk.f32.gmra.mrb[252].mxu0 %vm440_vm0, %v7240_v36  ;;  %8744 = vmatmul.mubr.msk.f32.gmra.mrb[0].mxu1 %vm440_vm0, %v6270_v8 }
 0x9a6   : > { %7573 = vmatprep.mubr.f32.mxu0 %v17937_v24  ;;  %6613 = vmatprep.mubr.f32.mxu1 %v17937_v24 }
 0x9a8   : > { %v7241_v43 = vpop.trf.xlu1  ;;  %v6271_v33 = vpop.trf.xlu0 }
 0x9a9   : > { %8775 = vmatmul.mubr.msk.f32.gmra.mrb[254].mxu0 %vm440_vm0, %v7241_v43  ;;  %8745 = vmatmul.mubr.msk.f32.gmra.mrb[2].mxu1 %vm440_vm0, %v6271_v33 }
 0x9aa   : > { %7579 = vmatprep.mubr.f32.mxu0 %v17937_v24  ;;  %6619 = vmatprep.mubr.f32.mxu1 %v17937_v24 }
 0x9ac   : > { %v7242_v44 = vpop.trf.xlu1  ;;  %v6272_v42 = vpop.trf.xlu0 }
 0x9ad   : > { %8776 = vmatmul.mubr.msk.f32.gmra.mrb[0].mxu0 %vm440_vm0, %v7242_v44  ;;  %8746 = vmatmul.mubr.msk.f32.gmra.mrb[4].mxu1 %vm440_vm0, %v6272_v42 }
 0x9ae   : > { %7585 = vmatprep.mubr.f32.mxu0 %v17937_v24 }
 0x9b0   : > { %v7243_v1 = vpop.trf.xlu1 }
 0x9b1   : > { %8777 = vmatmul.mubr.msk.f32.gmra.mrb[2].mxu0 %vm440_vm0, %v7243_v1 }
 0x9b2   : > { %7591 = vmatprep.mubr.f32.mxu0 %v17937_v24 }
 0x9b4   : > { %v7244_v61 = vpop.trf.xlu1 }
 0x9b5   : > { %8778 = vmatmul.mubr.msk.f32.gmra.mrb[4].mxu0 %vm440_vm0, %v7244_v61 }
 0x9f9   : > { %v5228_v39 = vpop.f32.mrb[196].mxu1 }
 0x9fa   : > { %v5230_v28 = vpop.f32.mrb[197].mxu1 }
 0x9fd   : > { %v6200_v31 = vpop.f32.mrb[196].mxu0 }
 0x9fe   : > { %v15120_v50 = vpack.c.bf16 %v6200_v31, %v5228_v39  ;;  %v6202_v9 = vpop.f32.mrb[197].mxu0 }
 0x9ff   : > { %v15122_v26 = vpack.c.bf16 %v6202_v9, %v5230_v28 }
 0xa00   : > { %17938 = vst [vmem:[#allocation18_spill] sm:$0xff] %v15120_v50 }
 0xa01   : > { %17939 = vst [vmem:[#allocation23_spill] sm:$0xff] %v15122_v26 }
 0xa04   : > { %v15124_v10 = vpop.f32.mrb[198].mxu1 }
 0xa05   : > { %v15126_v47 = vpop.f32.mrb[199].mxu1 }
 0xa06   : > { %v6626_v23 = vmax.f32 %v15124_v10, %v15126_v47 }
 0xa08   : > { %6627 = vmax.xlane.f32.xlu0 %v6626_v23  ;;  %v15130_v59 = vpop.f32.mrb[200].mxu1 }
 0xa09   : > { %v15132_v18 = vpop.f32.mrb[201].mxu1 }
 0xa0a   : > { %v6629_v32 = vmax.f32 %v15130_v59, %v15132_v18 }
 0xa0c   : > { %6630 = vmax.xlane.f32.xlu1 %v6629_v32  ;;  %v15136_v13 = vpop.f32.mrb[198].mxu0  ;;  %v15138_v0 = vpop.f32.mrb[202].mxu1 }
 0xa0d   : > { %v15140_v5 = vpop.f32.mrb[199].mxu0  ;;  %v15142_v58 = vpop.f32.mrb[203].mxu1 }
 0xa0e   : > { %v7598_v16 = vmax.f32 %v15136_v13, %v15140_v5  ;;  %v6632_v11 = vmax.f32 %v15138_v0, %v15142_v58 }
 0xa10   : > { %v15148_v22 = vpop.f32.mrb[200].mxu0  ;;  %7599 = vmax.xlane.f32.xlu0 %v7598_v16  ;;  %v15150_v62 = vpop.f32.mrb[204].mxu1 }
 0xa11   : > { %v15152_v14 = vpop.f32.mrb[201].mxu0  ;;  %v15154_v27 = vpop.f32.mrb[205].mxu1 }
 0xa12   : > { %v7601_v12 = vmax.f32 %v15148_v22, %v15152_v14  ;;  %v6635_v54 = vmax.f32 %v15150_v62, %v15154_v27 }
 0xa14   : > { %v15160_v52 = vpop.f32.mrb[202].mxu0  ;;  %7602 = vmax.xlane.f32.xlu1 %v7601_v12  ;;  %6633 = vmax.xlane.f32.xlu0 %v6632_v11  ;;  %v15162_v53 = vpop.f32.mrb[206].mxu1 }
 0xa15   : > { %v15164_v55 = vpop.f32.mrb[203].mxu0  ;;  %v15166_v3 = vpop.f32.mrb[207].mxu1 }
 0xa16   : > { %v7604_v25 = vmax.f32 %v15160_v52, %v15164_v55  ;;  %v6638_v29 = vmax.f32 %v15162_v53, %v15166_v3 }
 0xa18   : > { %v15172_v4 = vpop.f32.mrb[204].mxu0  ;;  %7605 = vmax.xlane.f32.xlu0 %v7604_v25  ;;  %6636 = vmax.xlane.f32.xlu1 %v6635_v54  ;;  %v15174_v48 = vpop.f32.mrb[208].mxu1 }
 0xa19   : > { %v15176_v57 = vpop.f32.mrb[205].mxu0  ;;  %v15178_v63 = vpop.f32.mrb[209].mxu1 }
 0xa1a   : > { %v7607_v6 = vmax.f32 %v15172_v4, %v15176_v57  ;;  %v6641_v60 = vmax.f32 %v15174_v48, %v15178_v63 }
 0xa1c   : > { %v15184_v30 = vpop.f32.mrb[206].mxu0  ;;  %7608 = vmax.xlane.f32.xlu1 %v7607_v6  ;;  %6639 = vmax.xlane.f32.xlu0 %v6638_v29  ;;  %v15186_v45 = vpop.f32.mrb[210].mxu1 }
 0xa1d   : > { %v15188_v17 = vpop.f32.mrb[207].mxu0  ;;  %v15190_v20 = vpop.f32.mrb[211].mxu1 }
 0xa1e   : > { %v7610_v38 = vmax.f32 %v15184_v30, %v15188_v17  ;;  %v6644_v2 = vmax.f32 %v15186_v45, %v15190_v20 }
 0xa20   : > { %v15196_v35 = vpop.f32.mrb[208].mxu0  ;;  %7611 = vmax.xlane.f32.xlu0 %v7610_v38  ;;  %6642 = vmax.xlane.f32.xlu1 %v6641_v60  ;;  %v15198_v37 = vpop.f32.mrb[212].mxu1 }
 0xa21   : > { %v15200_v7 = vpop.f32.mrb[209].mxu0  ;;  %v15202_v51 = vpop.f32.mrb[213].mxu1 }
 0xa22   : > { %v7613_v19 = vmax.f32 %v15196_v35, %v15200_v7  ;;  %v6647_v40 = vmax.f32 %v15198_v37, %v15202_v51 }
 0xa24   : > { %v15208_v46 = vpop.f32.mrb[210].mxu0  ;;  %7614 = vmax.xlane.f32.xlu1 %v7613_v19  ;;  %6645 = vmax.xlane.f32.xlu0 %v6644_v2  ;;  %v15210_v41 = vpop.f32.mrb[214].mxu1 }
 0xa25   : > { %v15212_v34 = vpop.f32.mrb[211].mxu0  ;;  %v15214_v49 = vpop.f32.mrb[215].mxu1 }
 0xa26   : > { %v7616_v21 = vmax.f32 %v15208_v46, %v15212_v34  ;;  %v6650_v56 = vmax.f32 %v15210_v41, %v15214_v49 }
 0xa28   : > { %v15220_v15 = vpop.f32.mrb[212].mxu0  ;;  %7617 = vmax.xlane.f32.xlu0 %v7616_v21  ;;  %6648 = vmax.xlane.f32.xlu1 %v6647_v40  ;;  %v15222_v36 = vpop.f32.mrb[216].mxu1 }
 0xa29   : > { %v15224_v8 = vpop.f32.mrb[213].mxu0  ;;  %v15226_v43 = vpop.f32.mrb[217].mxu1 }
 0xa2a   : > { %v7619_v33 = vmax.f32 %v15220_v15, %v15224_v8  ;;  %v6653_v44 = vmax.f32 %v15222_v36, %v15226_v43 }
 0xa2c   : > { %v15232_v42 = vpop.f32.mrb[214].mxu0  ;;  %7620 = vmax.xlane.f32.xlu1 %v7619_v33  ;;  %6651 = vmax.xlane.f32.xlu0 %v6650_v56  ;;  %v15234_v1 = vpop.f32.mrb[218].mxu1 }
 0xa2d   : > { %v15236_v61 = vpop.f32.mrb[215].mxu0  ;;  %v15238_v39 = vpop.f32.mrb[219].mxu1 }
 0xa2e   : > { %v7622_v28 = vmax.f32 %v15232_v42, %v15236_v61  ;;  %v6656_v31 = vmax.f32 %v15234_v1, %v15238_v39 }
 0xa30   : > { %v15244_v9 = vpop.f32.mrb[216].mxu0  ;;  %7623 = vmax.xlane.f32.xlu0 %v7622_v28  ;;  %6654 = vmax.xlane.f32.xlu1 %v6653_v44  ;;  %v15246_v23 = vpop.f32.mrb[220].mxu1 }
 0xa31   : > { %v15248_v32 = vpop.f32.mrb[217].mxu0  ;;  %v15250_v16 = vpop.f32.mrb[221].mxu1 }
 0xa32   : > { %v7625_v11 = vmax.f32 %v15244_v9, %v15248_v32  ;;  %v6659_v12 = vmax.f32 %v15246_v23, %v15250_v16 }
 0xa34   : > { %v15256_v54 = vpop.f32.mrb[218].mxu0  ;;  %7626 = vmax.xlane.f32.xlu1 %v7625_v11  ;;  %6657 = vmax.xlane.f32.xlu0 %v6656_v31  ;;  %v15258_v25 = vpop.f32.mrb[222].mxu1 }
 0xa35   : > { %v15260_v29 = vpop.f32.mrb[219].mxu0  ;;  %v15262_v6 = vpop.f32.mrb[223].mxu1 }
 0xa36   : > { %v7628_v60 = vmax.f32 %v15256_v54, %v15260_v29  ;;  %v6662_v38 = vmax.f32 %v15258_v25, %v15262_v6 }
 0xa38   : > { %v15268_v2 = vpop.f32.mrb[220].mxu0  ;;  %7629 = vmax.xlane.f32.xlu0 %v7628_v60  ;;  %6660 = vmax.xlane.f32.xlu1 %v6659_v12  ;;  %v15270_v19 = vpop.f32.mrb[224].mxu1 }
 0xa39   : > { %17940 = vst [vmem:[#allocation96_spill] sm:$0xff] %v15270_v19  ;;  %v15272_v40 = vpop.f32.mrb[221].mxu0  ;;  %v15274_v21 = vpop.f32.mrb[225].mxu1 }
 0xa3a   : > { %17941 = vst [vmem:[#allocation90_spill] sm:$0xff] %v15274_v21  ;;  %v7631_v56 = vmax.f32 %v15268_v2, %v15272_v40  ;;  %v6665_v33 = vmax.f32 %v15270_v19, %v15274_v21 }
 0xa3c   : > { %v15280_v44 = vpop.f32.mrb[222].mxu0  ;;  %7632 = vmax.xlane.f32.xlu1 %v7631_v56  ;;  %6663 = vmax.xlane.f32.xlu0 %v6662_v38  ;;  %v15282_v28 = vpop.f32.mrb[226].mxu1 }
 0xa3d   : > { %17942 = vst [vmem:[#allocation17_spill] sm:$0xff] %v15280_v44  ;;  %17943 = vst [vmem:[#allocation46_spill] sm:$0xff] %v15282_v28  ;;  %v15284_v31 = vpop.f32.mrb[223].mxu0  ;;  %v15286_v11 = vpop.f32.mrb[227].mxu1 }
 0xa3e   : > { %17944 = vst [vmem:[#allocation40_spill] sm:$0xff] %v15284_v31  ;;  %17945 = vst [vmem:[#allocation19_spill] sm:$0xff] %v15286_v11  ;;  %v7634_v12 = vmax.f32 %v15280_v44, %v15284_v31  ;;  %v6668_v60 = vmax.f32 %v15282_v28, %v15286_v11 }
 0xa40   : > { %v15292_v50 = vpop.f32.mrb[224].mxu0  ;;  %7635 = vmax.xlane.f32.xlu0 %v7634_v12  ;;  %6666 = vmax.xlane.f32.xlu1 %v6665_v33  ;;  %v15294_v26 = vpop.f32.mrb[228].mxu1 }
 0xa41   : > { %17946 = vst [vmem:[#allocation20_spill] sm:$0xff] %v15292_v50  ;;  %17947 = vst [vmem:[#allocation27_spill] sm:$0xff] %v15294_v26  ;;  %v15296_v56 = vpop.f32.mrb[225].mxu0  ;;  %v15298_v38 = vpop.f32.mrb[229].mxu1 }
 0xa42   : > { %17948 = vst [vmem:[#allocation22_spill] sm:$0xff] %v15296_v56  ;;  %17949 = vst [vmem:[#allocation41_spill] sm:$0xff] %v15298_v38  ;;  %v7637_v24 = vmax.f32 %v15292_v50, %v15296_v56  ;;  %v6671_v21 = vmax.f32 %v15294_v26, %v15298_v38 }
 0xa44   : > { %v15304_v31 = vpop.f32.mrb[226].mxu0  ;;  %7638 = vmax.xlane.f32.xlu1 %v7637_v24  ;;  %6669 = vmax.xlane.f32.xlu0 %v6668_v60  ;;  %v15306_v11 = vpop.f32.mrb[230].mxu1 }
 0xa45   : > { %17950 = vst [vmem:[#allocation42_spill] sm:$0xff] %v15304_v31  ;;  %17951 = vst [vmem:[#allocation48_spill] sm:$0xff] %v15306_v11  ;;  %v15308_v12 = vpop.f32.mrb[227].mxu0  ;;  %v15310_v33 = vpop.f32.mrb[231].mxu1 }
 0xa46   : > { %17952 = vst [vmem:[#allocation45_spill] sm:$0xff] %v15308_v12  ;;  %17953 = vst [vmem:[#allocation39_spill] sm:$0xff] %v15310_v33  ;;  %v7640_v28 = vmax.f32 %v15304_v31, %v15308_v12  ;;  %v6674_v44 = vmax.f32 %v15306_v11, %v15310_v33 }
 0xa48   : > { %v15316_v56 = vpop.f32.mrb[228].mxu0  ;;  %7641 = vmax.xlane.f32.xlu0 %v7640_v28  ;;  %6672 = vmax.xlane.f32.xlu1 %v6671_v21  ;;  %v15318_v38 = vpop.f32.mrb[232].mxu1 }
 0xa49   : > { %17954 = vst [vmem:[#allocation24_spill] sm:$0xff] %v15316_v56  ;;  %17955 = vst [vmem:[#allocation28_spill] sm:$0xff] %v15318_v38  ;;  %v15320_v24 = vpop.f32.mrb[229].mxu0  ;;  %v15322_v60 = vpop.f32.mrb[233].mxu1 }
 0xa4a   : > { %17956 = vst [vmem:[#allocation26_spill] sm:$0xff] %v15320_v24  ;;  %17957 = vst [vmem:[#allocation21_spill] sm:$0xff] %v15322_v60  ;;  %v7643_v26 = vmax.f32 %v15316_v56, %v15320_v24  ;;  %v6677_v50 = vmax.f32 %v15318_v38, %v15322_v60 }
 0xa4c   : > { %v15328_v12 = vpop.f32.mrb[230].mxu0  ;;  %7644 = vmax.xlane.f32.xlu1 %v7643_v26  ;;  %6675 = vmax.xlane.f32.xlu0 %v6674_v44  ;;  %v15330_v33 = vpop.f32.mrb[234].mxu1 }
 0xa4d   : > { %17958 = vst [vmem:[#allocation51_spill] sm:$0xff] %v15328_v12  ;;  %17959 = vst [vmem:[#allocation32_spill] sm:$0xff] %v15330_v33  ;;  %v15332_v28 = vpop.f32.mrb[231].mxu0  ;;  %v15334_v21 = vpop.f32.mrb[235].mxu1 }
 0xa4e   : > { %17960 = vst [vmem:[#allocation50_spill] sm:$0xff] %v15332_v28  ;;  %17961 = vst [vmem:[#allocation44_spill] sm:$0xff] %v15334_v21  ;;  %v7646_v11 = vmax.f32 %v15328_v12, %v15332_v28  ;;  %v6680_v31 = vmax.f32 %v15330_v33, %v15334_v21 }
 0xa50   : > { %v15340_v24 = vpop.f32.mrb[232].mxu0  ;;  %7647 = vmax.xlane.f32.xlu0 %v7646_v11  ;;  %6678 = vmax.xlane.f32.xlu1 %v6677_v50  ;;  %v15342_v60 = vpop.f32.mrb[236].mxu1 }
 0xa51   : > { %17962 = vst [vmem:[#allocation29_spill] sm:$0xff] %v15340_v24  ;;  %17963 = vst [vmem:[#allocation57_spill] sm:$0xff] %v15342_v60  ;;  %v15344_v26 = vpop.f32.mrb[233].mxu0  ;;  %v15346_v44 = vpop.f32.mrb[237].mxu1 }
 0xa52   : > { %17964 = vst [vmem:[#allocation53_spill] sm:$0xff] %v15344_v26  ;;  %17965 = vst [vmem:[#allocation25_spill] sm:$0xff] %v15346_v44  ;;  %v7649_v38 = vmax.f32 %v15340_v24, %v15344_v26  ;;  %v6683_v56 = vmax.f32 %v15342_v60, %v15346_v44 }
 0xa54   : > { %v15352_v28 = vpop.f32.mrb[234].mxu0  ;;  %7650 = vmax.xlane.f32.xlu1 %v7649_v38  ;;  %6681 = vmax.xlane.f32.xlu0 %v6680_v31  ;;  %v15354_v21 = vpop.f32.mrb[238].mxu1 }
 0xa55   : > { %17966 = vst [vmem:[#allocation31_spill] sm:$0xff] %v15352_v28  ;;  %17967 = vst [vmem:[#allocation58_spill] sm:$0xff] %v15354_v21  ;;  %v15356_v11 = vpop.f32.mrb[235].mxu0  ;;  %v15358_v50 = vpop.f32.mrb[239].mxu1 }
 0xa56   : > { %17968 = vst [vmem:[#allocation55_spill] sm:$0xff] %v15356_v11  ;;  %17969 = vst [vmem:[#allocation30_spill] sm:$0xff] %v15358_v50  ;;  %v7652_v33 = vmax.f32 %v15352_v28, %v15356_v11  ;;  %v6686_v12 = vmax.f32 %v15354_v21, %v15358_v50 }
 0xa58   : > { %v15364_v26 = vpop.f32.mrb[236].mxu0  ;;  %7653 = vmax.xlane.f32.xlu0 %v7652_v33  ;;  %6684 = vmax.xlane.f32.xlu1 %v6683_v56  ;;  %v15366_v44 = vpop.f32.mrb[240].mxu1 }
 0xa59   : > { %17970 = vst [vmem:[#allocation56_spill] sm:$0xff] %v15364_v26  ;;  %17971 = vst [vmem:[#allocation36_spill] sm:$0xff] %v15366_v44  ;;  %v15368_v38 = vpop.f32.mrb[237].mxu0  ;;  %v15370_v31 = vpop.f32.mrb[241].mxu1 }
 0xa5a   : > { %17972 = vst [vmem:[#allocation34_spill] sm:$0xff] %v15368_v38  ;;  %17973 = vst [vmem:[#allocation52_spill] sm:$0xff] %v15370_v31  ;;  %v7655_v60 = vmax.f32 %v15364_v26, %v15368_v38  ;;  %v6689_v24 = vmax.f32 %v15366_v44, %v15370_v31 }
 0xa5c   : > { %v15376_v11 = vpop.f32.mrb[238].mxu0  ;;  %7656 = vmax.xlane.f32.xlu1 %v7655_v60  ;;  %6687 = vmax.xlane.f32.xlu0 %v6686_v12  ;;  %v15378_v50 = vpop.f32.mrb[242].mxu1 }
 0xa5d   : > { %17974 = vst [vmem:[#allocation35_spill] sm:$0xff] %v15376_v11  ;;  %17975 = vst [vmem:[#allocation37_spill] sm:$0xff] %v15378_v50  ;;  %v15380_v33 = vpop.f32.mrb[239].mxu0  ;;  %v15382_v56 = vpop.f32.mrb[243].mxu1 }
 0xa5e   : > { %17976 = vst [vmem:[#allocation62_spill] sm:$0xff] %v15380_v33  ;;  %17977 = vst [vmem:[#allocation54_spill] sm:$0xff] %v15382_v56  ;;  %v7658_v21 = vmax.f32 %v15376_v11, %v15380_v33  ;;  %v6692_v28 = vmax.f32 %v15378_v50, %v15382_v56 }
 0xa60   : > { %v15388_v38 = vpop.f32.mrb[240].mxu0  ;;  %7659 = vmax.xlane.f32.xlu0 %v7658_v21  ;;  %6690 = vmax.xlane.f32.xlu1 %v6689_v24  ;;  %v15390_v31 = vpop.f32.mrb[244].mxu1 }
 0xa61   : > { %17978 = vst [vmem:[#allocation64_spill] sm:$0xff] %v15388_v38  ;;  %17979 = vst [vmem:[#allocation70_spill] sm:$0xff] %v15390_v31  ;;  %v15392_v60 = vpop.f32.mrb[241].mxu0  ;;  %v15394_v12 = vpop.f32.mrb[245].mxu1 }
 0xa62   : > { %17980 = vst [vmem:[#allocation67_spill] sm:$0xff] %v15392_v60  ;;  %17981 = vst [vmem:[#allocation33_spill] sm:$0xff] %v15394_v12  ;;  %v7661_v44 = vmax.f32 %v15388_v38, %v15392_v60  ;;  %v6695_v26 = vmax.f32 %v15390_v31, %v15394_v12 }
 0xa64   : > { %v15400_v33 = vpop.f32.mrb[242].mxu0  ;;  %7662 = vmax.xlane.f32.xlu1 %v7661_v44  ;;  %6693 = vmax.xlane.f32.xlu0 %v6692_v28  ;;  %v15402_v56 = vpop.f32.mrb[246].mxu1 }
 0xa65   : > { %17982 = vst [vmem:[#allocation38_spill] sm:$0xff] %v15400_v33  ;;  %17983 = vst [vmem:[#allocation74_spill] sm:$0xff] %v15402_v56  ;;  %v15404_v21 = vpop.f32.mrb[243].mxu0  ;;  %v15406_v24 = vpop.f32.mrb[247].mxu1 }
 0xa66   : > { %17984 = vst [vmem:[#allocation68_spill] sm:$0xff] %v15404_v21  ;;  %17985 = vst [vmem:[#allocation60_spill] sm:$0xff] %v15406_v24  ;;  %v7664_v50 = vmax.f32 %v15400_v33, %v15404_v21  ;;  %v6698_v11 = vmax.f32 %v15402_v56, %v15406_v24 }
 0xa68   : > { %v15412_v60 = vpop.f32.mrb[244].mxu0  ;;  %7665 = vmax.xlane.f32.xlu0 %v7664_v50  ;;  %6696 = vmax.xlane.f32.xlu1 %v6695_v26  ;;  %v15414_v12 = vpop.f32.mrb[248].mxu1 }
 0xa69   : > { %17986 = vst [vmem:[#allocation66_spill] sm:$0xff] %v15412_v60  ;;  %17987 = vst [vmem:[#allocation81_spill] sm:$0xff] %v15414_v12  ;;  %v15416_v44 = vpop.f32.mrb[245].mxu0  ;;  %v15418_v28 = vpop.f32.mrb[249].mxu1 }
 0xa6a   : > { %17988 = vst [vmem:[#allocation73_spill] sm:$0xff] %v15416_v44  ;;  %17989 = vst [vmem:[#allocation71_spill] sm:$0xff] %v15418_v28  ;;  %v7667_v31 = vmax.f32 %v15412_v60, %v15416_v44  ;;  %v6701_v38 = vmax.f32 %v15414_v12, %v15418_v28 }
 0xa6c   : > { %v15424_v21 = vpop.f32.mrb[246].mxu0  ;;  %7668 = vmax.xlane.f32.xlu1 %v7667_v31  ;;  %6699 = vmax.xlane.f32.xlu0 %v6698_v11  ;;  %v15426_v24 = vpop.f32.mrb[250].mxu1 }
 0xa6d   : > { %17990 = vst [vmem:[#allocation75_spill] sm:$0xff] %v15424_v21  ;;  %17991 = vst [vmem:[#allocation69_spill] sm:$0xff] %v15426_v24  ;;  %v15428_v50 = vpop.f32.mrb[247].mxu0  ;;  %v15430_v26 = vpop.f32.mrb[251].mxu1 }
 0xa6e   : > { %17992 = vst [vmem:[#allocation47_spill] sm:$0xff] %v15428_v50  ;;  %17993 = vst [vmem:[#allocation49_spill] sm:$0xff] %v15430_v26  ;;  %v7670_v56 = vmax.f32 %v15424_v21, %v15428_v50  ;;  %v6704_v33 = vmax.f32 %v15426_v24, %v15430_v26 }
 0xa70   : > { %v15436_v44 = vpop.f32.mrb[248].mxu0  ;;  %7671 = vmax.xlane.f32.xlu0 %v7670_v56  ;;  %6702 = vmax.xlane.f32.xlu1 %v6701_v38  ;;  %v15438_v28 = vpop.f32.mrb[252].mxu1 }
 0xa71   : > { %17994 = vst [vmem:[#allocation80_spill] sm:$0xff] %v15436_v44  ;;  %17995 = vst [vmem:[#allocation84_spill] sm:$0xff] %v15438_v28  ;;  %v15440_v31 = vpop.f32.mrb[249].mxu0  ;;  %v15442_v11 = vpop.f32.mrb[253].mxu1 }
 0xa72   : > { %17996 = vst [vmem:[#allocation72_spill] sm:$0xff] %v15440_v31  ;;  %17997 = vst [vmem:[#allocation43_spill] sm:$0xff] %v15442_v11  ;;  %v7673_v12 = vmax.f32 %v15436_v44, %v15440_v31  ;;  %v6707_v60 = vmax.f32 %v15438_v28, %v15442_v11 }
 0xa74   : > { %v15448_v50 = vpop.f32.mrb[250].mxu0  ;;  %7674 = vmax.xlane.f32.xlu1 %v7673_v12  ;;  %6705 = vmax.xlane.f32.xlu0 %v6704_v33  ;;  %v15450_v26 = vpop.f32.mrb[254].mxu1 }
 0xa75   : > { %17998 = vst [vmem:[#allocation76_spill] sm:$0xff] %v15448_v50  ;;  %17999 = vst [vmem:[#allocation77_spill] sm:$0xff] %v15450_v26  ;;  %v15452_v56 = vpop.f32.mrb[251].mxu0  ;;  %v15454_v38 = vpop.f32.mrb[255].mxu1 }
 0xa76   : > { %18000 = vst [vmem:[#allocation82_spill] sm:$0xff] %v15452_v56  ;;  %18001 = vst [vmem:[#allocation78_spill] sm:$0xff] %v15454_v38  ;;  %v7676_v24 = vmax.f32 %v15448_v50, %v15452_v56  ;;  %v6710_v21 = vmax.f32 %v15450_v26, %v15454_v38 }
 0xa78   : > { %v15460_v31 = vpop.f32.mrb[252].mxu0  ;;  %7677 = vmax.xlane.f32.xlu0 %v7676_v24  ;;  %6708 = vmax.xlane.f32.xlu1 %v6707_v60  ;;  %v15462_v11 = vpop.f32.mrb[0].mxu1 }
 0xa79   : > { %18002 = vst [vmem:[#allocation83_spill] sm:$0xff] %v15460_v31  ;;  %18003 = vst [vmem:[#allocation79_spill] sm:$0xff] %v15462_v11  ;;  %v15464_v12 = vpop.f32.mrb[253].mxu0  ;;  %v15466_v33 = vpop.f32.mrb[1].mxu1 }
 0xa7a   : > { %18004 = vst [vmem:[#allocation59_spill] sm:$0xff] %v15464_v12  ;;  %18005 = vst [vmem:[#allocation63_spill] sm:$0xff] %v15466_v33  ;;  %v7679_v28 = vmax.f32 %v15460_v31, %v15464_v12  ;;  %v6713_v44 = vmax.f32 %v15462_v11, %v15466_v33 }
 0xa7c   : > { %v15472_v56 = vpop.f32.mrb[254].mxu0  ;;  %7680 = vmax.xlane.f32.xlu1 %v7679_v28  ;;  %6711 = vmax.xlane.f32.xlu0 %v6710_v21  ;;  %v15474_v38 = vpop.f32.mrb[2].mxu1 }
 0xa7d   : > { %18006 = vst [vmem:[#allocation86_spill] sm:$0xff] %v15472_v56  ;;  %18007 = vst [vmem:[#allocation61_spill] sm:$0xff] %v15474_v38  ;;  %v15476_v24 = vpop.f32.mrb[255].mxu0  ;;  %v15478_v60 = vpop.f32.mrb[3].mxu1 }
 0xa7e   : > { %18008 = vst [vmem:[#allocation95_spill] sm:$0xff] %v15476_v24  ;;  %18009 = vst [vmem:[#allocation88_spill] sm:$0xff] %v15478_v60  ;;  %v7682_v26 = vmax.f32 %v15472_v56, %v15476_v24  ;;  %v6716_v50 = vmax.f32 %v15474_v38, %v15478_v60 }
 0xa80   : > { %v15484_v12 = vpop.f32.mrb[0].mxu0  ;;  %7683 = vmax.xlane.f32.xlu0 %v7682_v26  ;;  %6714 = vmax.xlane.f32.xlu1 %v6713_v44  ;;  %v15486_v33 = vpop.f32.mrb[4].mxu1 }
 0xa81   : > { %18010 = vst [vmem:[#allocation85_spill] sm:$0xff] %v15484_v12  ;;  %18011 = vst [vmem:[#allocation87_spill] sm:$0xff] %v15486_v33  ;;  %v15488_v28 = vpop.f32.mrb[1].mxu0  ;;  %v15490_v21 = vpop.f32.mrb[5].mxu1 }
 0xa82   : > { %18012 = vst [vmem:[#allocation89_spill] sm:$0xff] %v15488_v28  ;;  %18013 = vst [vmem:[#allocation98_spill] sm:$0xff] %v15490_v21  ;;  %v7685_v11 = vmax.f32 %v15484_v12, %v15488_v28  ;;  %v6719_v31 = vmax.f32 %v15486_v33, %v15490_v21 }
 0xa84   : > { %v15496_v24 = vpop.f32.mrb[2].mxu0  ;;  %7686 = vmax.xlane.f32.xlu1 %v7685_v11  ;;  %6717 = vmax.xlane.f32.xlu0 %v6716_v50 }
 0xa85   : > { %18014 = vst [vmem:[#allocation94_spill] sm:$0xff] %v15496_v24  ;;  %v15498_v60 = vpop.f32.mrb[3].mxu0 }
 0xa86   : > { %18015 = vst [vmem:[#allocation65_spill] sm:$0xff] %v15498_v60  ;;  %v7688_v44 = vmax.f32 %v15496_v24, %v15498_v60 }
 0xa88   : > { %v15502_v26 = vpop.f32.mrb[4].mxu0  ;;  %7689 = vmax.xlane.f32.xlu0 %v7688_v44  ;;  %6720 = vmax.xlane.f32.xlu1 %v6719_v31 }
 0xa89   : > { %v15504_v38 = vpop.f32.mrb[5].mxu0 }
 0xa8a   : > { %18016 = vst [vmem:[#allocation99_spill] sm:$0xff] %v15504_v38  ;;  %v7691_v28 = vmax.f32 %v15502_v26, %v15504_v38 }
 0xa8c   : > { %7692 = vmax.xlane.f32.xlu1 %v7691_v28 }
 0xa95   : > { %v6628_v21 = vpop.xlane.xlu0 %6627 }
 0xa96   : > { %v6722_v33 = vsub.f32 %v15124_v10, %v6628_v21  ;;  %v6723_v50 = vsub.f32 %v15126_v47, %v6628_v21 }
 0xa98   : > { %v6786_v11 = vmul.f32 1.442695, %v6722_v33  ;;  %v6788_v12 = vmul.f32 1.442695, %v6723_v50 }
 0xa99   : > { %v6631_v56 = vpop.xlane.xlu1 %6630 }
 0xa9a   : > { %10564 = vpow2.f32 %v6786_v11  ;;  %v6724_v60 = vsub.f32 %v15130_v59, %v6631_v56  ;;  %v6725_v44 = vsub.f32 %v15132_v18, %v6631_v56 }
 0xa9b   : > { %10566 = vpow2.f32 %v6788_v12 }
 0xa9c   : > { %v6790_v31 = vmul.f32 1.442695, %v6724_v60  ;;  %v6792_v24 = vmul.f32 1.442695, %v6725_v44 }
 0xa9d   : > { %v7600_v19 = vpop.xlane.xlu0 %7599 }
 0xa9e   : > { %10568 = vpow2.f32 %v6790_v31  ;;  %v7694_v28 = vsub.f32 %v15136_v13, %v7600_v19  ;;  %v7695_v38 = vsub.f32 %v15140_v5, %v7600_v19 }
 0xa9f   : > { %10570 = vpow2.f32 %v6792_v24 }
 0xaa0   : > { %v7758_v10 = vmul.f32 1.442695, %v7694_v28  ;;  %v7760_v47 = vmul.f32 1.442695, %v7695_v38 }
 0xaa1   : > { %v7603_v33 = vpop.xlane.xlu1 %7602  ;;  %v6634_v21 = vpop.xlane.xlu0 %6633 }
 0xaa2   : > { %10572 = vpow2.f32 %v7758_v10  ;;  %v7696_v50 = vsub.f32 %v15148_v22, %v7603_v33  ;;  %v7697_v59 = vsub.f32 %v15152_v14, %v7603_v33  ;;  %v6726_v18 = vsub.f32 %v15138_v0, %v6634_v21 }
 0xaa3   : > { %10574 = vpow2.f32 %v7760_v47  ;;  %v6727_v56 = vsub.f32 %v15142_v58, %v6634_v21 }
 0xaa4   : > { %v15518_v12 = vpop.eup %10564  ;;  %v7762_v13 = vmul.f32 1.442695, %v7696_v50  ;;  %v7764_v60 = vmul.f32 1.442695, %v7697_v59  ;;  %v6794_v5 = vmul.f32 1.442695, %v6726_v18 }
 0xaa5   : > { %v15520_v19 = vpop.eup %10566  ;;  %v6796_v38 = vmul.f32 1.442695, %v6727_v56  ;;  %v6637_v24 = vpop.xlane.xlu1 %6636 }
 0xaa6   : > { %v7606_v11 = vpop.xlane.xlu0 %7605  ;;  %10576 = vpow2.f32 %v7762_v13  ;;  %v6728_v22 = vsub.f32 %v15150_v62, %v6637_v24  ;;  %v6729_v14 = vsub.f32 %v15154_v27, %v6637_v24  ;;  %v6914_v0 = vadd.f32 %v15520_v19, %v15518_v12 }
 0xaa7   : > { %10578 = vpow2.f32 %v7764_v60  ;;  %v7698_v58 = vsub.f32 %v15160_v52, %v7606_v11  ;;  %v7699_v44 = vsub.f32 %v15164_v55, %v7606_v11 }
 0xaa8   : > { %v15528_v31 = vpop.eup %10568  ;;  %10580 = vpow2.f32 %v6794_v5  ;;  %v6798_v28 = vmul.f32 1.442695, %v6728_v22  ;;  %v6800_v10 = vmul.f32 1.442695, %v6729_v14  ;;  %6915 = vadd.xlane.f32.xlu0 %v6914_v0 }
 0xaa9   : > { %v15530_v47 = vpop.eup %10570  ;;  %10582 = vpow2.f32 %v6796_v38  ;;  %v7766_v62 = vmul.f32 1.442695, %v7698_v58  ;;  %v7768_v33 = vmul.f32 1.442695, %v7699_v44  ;;  %v7609_v27 = vpop.xlane.xlu1 %7608 }
 0xaaa   : > { %v6640_v21 = vpop.xlane.xlu0 %6639  ;;  %10584 = vpow2.f32 %v6798_v28  ;;  %v7700_v50 = vsub.f32 %v15172_v4, %v7609_v27  ;;  %v7701_v52 = vsub.f32 %v15176_v57, %v7609_v27  ;;  %v6917_v55 = vadd.f32 %v15530_v47, %v15528_v31 }
 0xaab   : > { %10586 = vpow2.f32 %v6800_v10  ;;  %v6730_v59 = vsub.f32 %v15162_v53, %v6640_v21  ;;  %v6731_v18 = vsub.f32 %v15166_v3, %v6640_v21 }
 0xaac   : > { %v15538_v56 = vpop.eup %10572  ;;  %10588 = vpow2.f32 %v7766_v62  ;;  %v7770_v13 = vmul.f32 1.442695, %v7700_v50  ;;  %v7772_v60 = vmul.f32 1.442695, %v7701_v52  ;;  %6918 = vadd.xlane.f32.xlu1 %v6917_v55 }
 0xaad   : > { %v15540_v5 = vpop.eup %10574  ;;  %10590 = vpow2.f32 %v7768_v33  ;;  %v6802_v4 = vmul.f32 1.442695, %v6730_v59  ;;  %v6804_v38 = vmul.f32 1.442695, %v6731_v18  ;;  %v6643_v57 = vpop.xlane.xlu1 %6642 }
 0xaae   : > { %v7612_v24 = vpop.xlane.xlu0 %7611  ;;  %10592 = vpow2.f32 %v7770_v13  ;;  %v6732_v11 = vsub.f32 %v15174_v48, %v6643_v57  ;;  %v6733_v53 = vsub.f32 %v15178_v63, %v6643_v57  ;;  %v7886_v14 = vadd.f32 %v15540_v5, %v15538_v56 }
 0xaaf   : > { %v7702_v3 = vsub.f32 %v15184_v30, %v7612_v24  ;;  %10594 = vpow2.f32 %v7772_v60  ;;  %v7703_v22 = vsub.f32 %v15188_v17, %v7612_v24 }
 0xab0   : > { %v15548_v0 = vpop.eup %10576  ;;  %10596 = vpow2.f32 %v6802_v4  ;;  %v6806_v58 = vmul.f32 1.442695, %v6732_v11  ;;  %v6808_v44 = vmul.f32 1.442695, %v6733_v53  ;;  %7887 = vadd.xlane.f32.xlu0 %v7886_v14 }
 0xab1   : > { %v7774_v28 = vmul.f32 1.442695, %v7702_v3  ;;  %v15550_v10 = vpop.eup %10578  ;;  %10598 = vpow2.f32 %v6804_v38  ;;  %v7776_v48 = vmul.f32 1.442695, %v7703_v22  ;;  %v7615_v63 = vpop.xlane.xlu1 %7614 }
 0xab2   : > { %v6646_v62 = vpop.xlane.xlu0 %6645  ;;  %v15552_v30 = vpop.eup %10580  ;;  %10600 = vpow2.f32 %v6806_v58  ;;  %v7704_v17 = vsub.f32 %v15196_v35, %v7615_v63  ;;  %v7705_v33 = vsub.f32 %v15200_v7, %v7615_v63  ;;  %v7889_v52 = vadd.f32 %v15550_v10, %v15548_v0 }
 0xab3   : > { %v6734_v27 = vsub.f32 %v15186_v45, %v6646_v62  ;;  %v15557_v21 = vpop.eup %10582  ;;  %10602 = vpow2.f32 %v6808_v44  ;;  %v6735_v50 = vsub.f32 %v15190_v20, %v6646_v62 }
 0xab4   : > { %v15562_v55 = vpop.eup %10584  ;;  %10604 = vpow2.f32 %v7774_v28  ;;  %v7778_v59 = vmul.f32 1.442695, %v7704_v17  ;;  %v7780_v18 = vmul.f32 1.442695, %v7705_v33  ;;  %7890 = vadd.xlane.f32.xlu1 %v7889_v52  ;;  %v6920_v45 = vadd.f32 %v15557_v21, %v15552_v30 }
 0xab5   : > { %v6810_v13 = vmul.f32 1.442695, %v6734_v27  ;;  %v15564_v60 = vpop.eup %10586  ;;  %10606 = vpow2.f32 %v7776_v48  ;;  %v6812_v35 = vmul.f32 1.442695, %v6735_v50  ;;  %v6649_v7 = vpop.xlane.xlu1 %6648 }
 0xab6   : > { %v7618_v4 = vpop.xlane.xlu0 %7617  ;;  %v15568_v20 = vpop.eup %10588  ;;  %10608 = vpow2.f32 %v7778_v59  ;;  %v6736_v38 = vsub.f32 %v15198_v37, %v6649_v7  ;;  %v6737_v57 = vsub.f32 %v15202_v51, %v6649_v7  ;;  %6921 = vadd.xlane.f32.xlu0 %v6920_v45  ;;  %v6923_v3 = vadd.f32 %v15564_v60, %v15562_v55 }
 0xab7   : > { %v7706_v24 = vsub.f32 %v15208_v46, %v7618_v4  ;;  %v15573_v11 = vpop.eup %10590  ;;  %10610 = vpow2.f32 %v7780_v18  ;;  %v7707_v53 = vsub.f32 %v15212_v34, %v7618_v4 }
 0xab8   : > { %v15578_v22 = vpop.eup %10592  ;;  %10612 = vpow2.f32 %v6810_v13  ;;  %v6814_v14 = vmul.f32 1.442695, %v6736_v38  ;;  %v6816_v58 = vmul.f32 1.442695, %v6737_v57  ;;  %6924 = vadd.xlane.f32.xlu1 %v6923_v3  ;;  %v7892_v46 = vadd.f32 %v15573_v11, %v15568_v20 }
 0xab9   : > { %v7782_v44 = vmul.f32 1.442695, %v7706_v24  ;;  %v15580_v37 = vpop.eup %10594  ;;  %10614 = vpow2.f32 %v6812_v35  ;;  %v7784_v51 = vmul.f32 1.442695, %v7707_v53  ;;  %v7621_v28 = vpop.xlane.xlu1 %7620 }
 0xaba   : > { %v6652_v48 = vpop.xlane.xlu0 %6651  ;;  %v15584_v34 = vpop.eup %10596  ;;  %10616 = vpow2.f32 %v6814_v14  ;;  %v7708_v63 = vsub.f32 %v15220_v15, %v7621_v28  ;;  %v7709_v62 = vsub.f32 %v15224_v8, %v7621_v28  ;;  %7893 = vadd.xlane.f32.xlu0 %v7892_v46  ;;  %v7895_v50 = vadd.f32 %v15580_v37, %v15578_v22 }
 0xabb   : > { %v6738_v17 = vsub.f32 %v15210_v41, %v6652_v48  ;;  %v15589_v33 = vpop.eup %10598  ;;  %10618 = vpow2.f32 %v6816_v58  ;;  %v6739_v27 = vsub.f32 %v15214_v49, %v6652_v48 }
 0xabc   : > { %v15594_v52 = vpop.eup %10600  ;;  %10620 = vpow2.f32 %v7782_v44  ;;  %v7786_v59 = vmul.f32 1.442695, %v7708_v63  ;;  %v7788_v18 = vmul.f32 1.442695, %v7709_v62  ;;  %7896 = vadd.xlane.f32.xlu1 %v7895_v50  ;;  %v6926_v41 = vadd.f32 %v15589_v33, %v15584_v34 }
 0xabd   : > { %v6818_v13 = vmul.f32 1.442695, %v6738_v17  ;;  %v15596_v15 = vpop.eup %10602  ;;  %10622 = vpow2.f32 %v7784_v51  ;;  %v6820_v8 = vmul.f32 1.442695, %v6739_v27  ;;  %v6655_v35 = vpop.xlane.xlu1 %6654 }
 0xabe   : > { %v7624_v45 = vpop.xlane.xlu0 %7623  ;;  %v15600_v49 = vpop.eup %10604  ;;  %10624 = vpow2.f32 %v7786_v59  ;;  %v6740_v7 = vsub.f32 %v15222_v36, %v6655_v35  ;;  %v6741_v4 = vsub.f32 %v15226_v43, %v6655_v35  ;;  %6927 = vadd.xlane.f32.xlu0 %v6926_v41  ;;  %v6929_v53 = vadd.f32 %v15596_v15, %v15594_v52 }
 0xabf   : > { %v7710_v38 = vsub.f32 %v15232_v42, %v7624_v45  ;;  %v15605_v57 = vpop.eup %10606  ;;  %10626 = vpow2.f32 %v7788_v18  ;;  %v7711_v24 = vsub.f32 %v15236_v61, %v7624_v45 }
 0xac0   : > { %v15610_v3 = vpop.eup %10608  ;;  %10628 = vpow2.f32 %v6818_v13  ;;  %v6822_v14 = vmul.f32 1.442695, %v6740_v7  ;;  %v6824_v58 = vmul.f32 1.442695, %v6741_v4  ;;  %6930 = vadd.xlane.f32.xlu1 %v6929_v53  ;;  %v7898_v42 = vadd.f32 %v15605_v57, %v15600_v49 }
 0xac1   : > { %v7790_v44 = vmul.f32 1.442695, %v7710_v38  ;;  %v15612_v36 = vpop.eup %10610  ;;  %10630 = vpow2.f32 %v6820_v8  ;;  %v7792_v43 = vmul.f32 1.442695, %v7711_v24  ;;  %v7627_v51 = vpop.xlane.xlu1 %7626 }
 0xac2   : > { %v6658_v46 = vpop.xlane.xlu0 %6657  ;;  %v15616_v61 = vpop.eup %10612  ;;  %10632 = vpow2.f32 %v6822_v14  ;;  %v7712_v28 = vsub.f32 %v15244_v9, %v7627_v51  ;;  %v7713_v48 = vsub.f32 %v15248_v32, %v7627_v51  ;;  %7899 = vadd.xlane.f32.xlu0 %v7898_v42  ;;  %v7901_v27 = vadd.f32 %v15612_v36, %v15610_v3 }
 0xac3   : > { %v6742_v63 = vsub.f32 %v15234_v1, %v6658_v46  ;;  %v15621_v62 = vpop.eup %10614  ;;  %10634 = vpow2.f32 %v6824_v58  ;;  %v6743_v17 = vsub.f32 %v15238_v39, %v6658_v46 }
 0xac4   : > { %v15626_v50 = vpop.eup %10616  ;;  %10636 = vpow2.f32 %v7790_v44  ;;  %v7794_v59 = vmul.f32 1.442695, %v7712_v28  ;;  %v7796_v18 = vmul.f32 1.442695, %v7713_v48  ;;  %7902 = vadd.xlane.f32.xlu1 %v7901_v27  ;;  %v6932_v1 = vadd.f32 %v15621_v62, %v15616_v61 }
 0xac5   : > { %v6826_v13 = vmul.f32 1.442695, %v6742_v63  ;;  %v15628_v9 = vpop.eup %10618  ;;  %10638 = vpow2.f32 %v7792_v43  ;;  %v6828_v32 = vmul.f32 1.442695, %v6743_v17  ;;  %v6661_v8 = vpop.xlane.xlu1 %6660 }
 0xac6   : > { %v7630_v41 = vpop.xlane.xlu0 %7629  ;;  %v15632_v39 = vpop.eup %10620  ;;  %10640 = vpow2.f32 %v7794_v59  ;;  %v6744_v35 = vsub.f32 %v15246_v23, %v6661_v8  ;;  %v6745_v45 = vsub.f32 %v15250_v16, %v6661_v8  ;;  %6933 = vadd.xlane.f32.xlu0 %v6932_v1  ;;  %v6935_v24 = vadd.f32 %v15628_v9, %v15626_v50  ;;  %v18017_v8 = vld [vmem:[#allocation96_spill] sm:$0xff] }
 0xac7   : > { %v7714_v7 = vsub.f32 %v15256_v54, %v7630_v41  ;;  %v15637_v4 = vpop.eup %10622  ;;  %10642 = vpow2.f32 %v7796_v18  ;;  %v7715_v38 = vsub.f32 %v15260_v29, %v7630_v41 }
 0xac8   : > { %v15642_v53 = vpop.eup %10624  ;;  %10644 = vpow2.f32 %v6826_v13  ;;  %v6830_v14 = vmul.f32 1.442695, %v6744_v35  ;;  %v6832_v58 = vmul.f32 1.442695, %v6745_v45  ;;  %6936 = vadd.xlane.f32.xlu1 %v6935_v24  ;;  %v7904_v54 = vadd.f32 %v15637_v4, %v15632_v39  ;;  %v18018_v35 = vld [vmem:[#allocation90_spill] sm:$0xff] }
 0xac9   : > { %v7798_v44 = vmul.f32 1.442695, %v7714_v7  ;;  %v15644_v23 = vpop.eup %10626  ;;  %10646 = vpow2.f32 %v6828_v32  ;;  %v7800_v16 = vmul.f32 1.442695, %v7715_v38  ;;  %v7633_v43 = vpop.xlane.xlu1 %7632  ;;  %v18019_v7 = vld [vmem:[#allocation17_spill] sm:$0xff] }
 0xaca   : > { %v6664_v42 = vpop.xlane.xlu0 %6663  ;;  %v15648_v29 = vpop.eup %10628  ;;  %10648 = vpow2.f32 %v6830_v14  ;;  %v7716_v51 = vsub.f32 %v15268_v2, %v7633_v43  ;;  %v7717_v46 = vsub.f32 %v15272_v40, %v7633_v43  ;;  %7905 = vadd.xlane.f32.xlu0 %v7904_v54  ;;  %v7907_v17 = vadd.f32 %v15644_v23, %v15642_v53  ;;  %v18020_v14 = vld [vmem:[#allocation40_spill] sm:$0xff] }
 0xacb   : > { %v6746_v28 = vsub.f32 %v15258_v25, %v6664_v42  ;;  %v15653_v48 = vpop.eup %10630  ;;  %10650 = vpow2.f32 %v6832_v58  ;;  %v6747_v63 = vsub.f32 %v15262_v6, %v6664_v42 }
 0xacc   : > { %v15658_v27 = vpop.eup %10632  ;;  %10652 = vpow2.f32 %v7798_v44  ;;  %v7802_v59 = vmul.f32 1.442695, %v7716_v51  ;;  %v7804_v18 = vmul.f32 1.442695, %v7717_v46  ;;  %7908 = vadd.xlane.f32.xlu1 %v7907_v17  ;;  %v6938_v25 = vadd.f32 %v15653_v48, %v15648_v29 }
 0xacd   : > { %v6834_v13 = vmul.f32 1.442695, %v6746_v28  ;;  %v15660_v2 = vpop.eup %10634  ;;  %10654 = vpow2.f32 %v7800_v16  ;;  %v6836_v40 = vmul.f32 1.442695, %v6747_v63  ;;  %v6667_v32 = vpop.xlane.xlu1 %6666 }
 0xace   : > { %v7636_v1 = vpop.xlane.xlu0 %7635  ;;  %v15664_v6 = vpop.eup %10636  ;;  %10656 = vpow2.f32 %v7802_v59  ;;  %v6748_v41 = vsub.f32 %v18017_v8, %v6667_v32  ;;  %v6749_v45 = vsub.f32 %v18018_v35, %v6667_v32  ;;  %6939 = vadd.xlane.f32.xlu0 %v6938_v25  ;;  %v6941_v44 = vadd.f32 %v15660_v2, %v15658_v27  ;;  %v18023_v32 = vld [vmem:[#allocation22_spill] sm:$0xff] }
 0xacf   : > { %v7718_v38 = vsub.f32 %v18019_v7, %v7636_v1  ;;  %v15669_v24 = vpop.eup %10638  ;;  %10658 = vpow2.f32 %v7804_v18  ;;  %v7719_v58 = vsub.f32 %v18020_v14, %v7636_v1  ;;  %v18022_v18 = vld [vmem:[#allocation20_spill] sm:$0xff]  ;;  %v18024_v1 = vld [vmem:[#allocation46_spill] sm:$0xff] }
 0xad0   : > { %v15674_v16 = vpop.eup %10640  ;;  %10660 = vpow2.f32 %v6834_v13  ;;  %v6838_v54 = vmul.f32 1.442695, %v6748_v41  ;;  %v6840_v43 = vmul.f32 1.442695, %v6749_v45  ;;  %6942 = vadd.xlane.f32.xlu1 %v6941_v44  ;;  %v7910_v28 = vadd.f32 %v15669_v24, %v15664_v6 }
 0xad1   : > { %v7806_v42 = vmul.f32 1.442695, %v7718_v38  ;;  %v15676_v51 = vpop.eup %10642  ;;  %10662 = vpow2.f32 %v6836_v40  ;;  %v7808_v46 = vmul.f32 1.442695, %v7719_v58  ;;  %v7639_v63 = vpop.xlane.xlu1 %7638  ;;  %v18026_v40 = vld [vmem:[#allocation19_spill] sm:$0xff] }
 0xad2   : > { %v6670_v17 = vpop.xlane.xlu0 %6669  ;;  %v15680_v59 = vpop.eup %10644  ;;  %10664 = vpow2.f32 %v6838_v54  ;;  %v7720_v25 = vsub.f32 %v18022_v18, %v7639_v63  ;;  %v7721_v13 = vsub.f32 %v18023_v32, %v7639_v63  ;;  %7911 = vadd.xlane.f32.xlu0 %v7910_v28  ;;  %v7913_v45 = vadd.f32 %v15676_v51, %v15674_v16  ;;  %v18030_v18 = vld [vmem:[#allocation27_spill] sm:$0xff] }
 0xad3   : > { %18021 = vst [vmem:[#allocation96_spill] sm:$0xff] %v15680_v59  ;;  %v6750_v8 = vsub.f32 %v18024_v1, %v6670_v17  ;;  %v15685_v41 = vpop.eup %10646  ;;  %10666 = vpow2.f32 %v6840_v43  ;;  %v6751_v35 = vsub.f32 %v18026_v40, %v6670_v17  ;;  %v18031_v1 = vld [vmem:[#allocation41_spill] sm:$0xff] }
 0xad4   : > { %18025 = vst [vmem:[#allocation90_spill] sm:$0xff] %v15685_v41  ;;  %v15690_v7 = vpop.eup %10648  ;;  %10668 = vpow2.f32 %v7806_v42  ;;  %v7810_v38 = vmul.f32 1.442695, %v7720_v25  ;;  %v7812_v14 = vmul.f32 1.442695, %v7721_v13  ;;  %7914 = vadd.xlane.f32.xlu1 %v7913_v45  ;;  %v6944_v43 = vadd.f32 %v15685_v41, %v15680_v59  ;;  %v18032_v25 = vld [vmem:[#allocation42_spill] sm:$0xff] }
 0xad5   : > { %18027 = vst [vmem:[#allocation17_spill] sm:$0xff] %v15690_v7  ;;  %v6842_v58 = vmul.f32 1.442695, %v6750_v8  ;;  %v15692_v44 = vpop.eup %10650  ;;  %10670 = vpow2.f32 %v7808_v46  ;;  %v6844_v54 = vmul.f32 1.442695, %v6751_v35  ;;  %v6673_v28 = vpop.xlane.xlu1 %6672  ;;  %v18034_v46 = vld [vmem:[#allocation45_spill] sm:$0xff] }
 0xad6   : > { %18028 = vst [vmem:[#allocation40_spill] sm:$0xff] %v15692_v44  ;;  %v7642_v63 = vpop.xlane.xlu0 %7641  ;;  %v15696_v17 = vpop.eup %10652  ;;  %10672 = vpow2.f32 %v7810_v38  ;;  %v6752_v32 = vsub.f32 %v18030_v18, %v6673_v28  ;;  %v6753_v42 = vsub.f32 %v18031_v1, %v6673_v28  ;;  %6945 = vadd.xlane.f32.xlu0 %v6944_v43  ;;  %v6947_v35 = vadd.f32 %v15692_v44, %v15690_v7  ;;  %v18039_v7 = vld [vmem:[#allocation26_spill] sm:$0xff] }
 0xad7   : > { %18029 = vst [vmem:[#allocation20_spill] sm:$0xff] %v15696_v17  ;;  %v7722_v13 = vsub.f32 %v18032_v25, %v7642_v63  ;;  %v15701_v8 = vpop.eup %10654  ;;  %10674 = vpow2.f32 %v7812_v14  ;;  %v7723_v40 = vsub.f32 %v18034_v46, %v7642_v63  ;;  %v18038_v25 = vld [vmem:[#allocation24_spill] sm:$0xff] }
 0xad8   : > { %18033 = vst [vmem:[#allocation22_spill] sm:$0xff] %v15701_v8  ;;  %v15706_v45 = vpop.eup %10656  ;;  %10676 = vpow2.f32 %v6842_v58  ;;  %v6846_v59 = vmul.f32 1.442695, %v6752_v32  ;;  %v6848_v38 = vmul.f32 1.442695, %v6753_v42  ;;  %6948 = vadd.xlane.f32.xlu1 %v6947_v35  ;;  %v7916_v14 = vadd.f32 %v15701_v8, %v15696_v17  ;;  %v18040_v32 = vld [vmem:[#allocation48_spill] sm:$0xff] }
 0xad9   : > { %18035 = vst [vmem:[#allocation46_spill] sm:$0xff] %v15706_v45  ;;  %v7814_v41 = vmul.f32 1.442695, %v7722_v13  ;;  %v15708_v18 = vpop.eup %10658  ;;  %10678 = vpow2.f32 %v6844_v54  ;;  %v7816_v28 = vmul.f32 1.442695, %v7723_v40  ;;  %v7645_v43 = vpop.xlane.xlu1 %7644  ;;  %v18042_v54 = vld [vmem:[#allocation39_spill] sm:$0xff] }
 0xada   : > { %18036 = vst [vmem:[#allocation19_spill] sm:$0xff] %v15708_v18  ;;  %v6676_v1 = vpop.xlane.xlu0 %6675  ;;  %v15712_v63 = vpop.eup %10660  ;;  %10680 = vpow2.f32 %v6846_v59  ;;  %v7724_v46 = vsub.f32 %v18038_v25, %v7645_v43  ;;  %v7725_v58 = vsub.f32 %v18039_v7, %v7645_v43  ;;  %7917 = vadd.xlane.f32.xlu0 %v7916_v14  ;;  %v7919_v35 = vadd.f32 %v15708_v18, %v15706_v45  ;;  %v18047_v45 = vld [vmem:[#allocation21_spill] sm:$0xff] }
 0xadb   : > { %18037 = vst [vmem:[#allocation27_spill] sm:$0xff] %v15712_v63  ;;  %v6754_v42 = vsub.f32 %v18040_v32, %v6676_v1  ;;  %v15717_v13 = vpop.eup %10662  ;;  %10682 = vpow2.f32 %v6848_v38  ;;  %v6755_v40 = vsub.f32 %v18042_v54, %v6676_v1  ;;  %v18046_v32 = vld [vmem:[#allocation28_spill] sm:$0xff] }
 0xadc   : > { %18041 = vst [vmem:[#allocation41_spill] sm:$0xff] %v15717_v13  ;;  %v15722_v17 = vpop.eup %10664  ;;  %10684 = vpow2.f32 %v7814_v41  ;;  %v7818_v8 = vmul.f32 1.442695, %v7724_v46  ;;  %v7820_v59 = vmul.f32 1.442695, %v7725_v58  ;;  %7920 = vadd.xlane.f32.xlu1 %v7919_v35  ;;  %v6950_v38 = vadd.f32 %v15717_v13, %v15712_v63  ;;  %v18048_v46 = vld [vmem:[#allocation51_spill] sm:$0xff] }
 0xadd   : > { %18043 = vst [vmem:[#allocation42_spill] sm:$0xff] %v15722_v17  ;;  %v6850_v44 = vmul.f32 1.442695, %v6754_v42  ;;  %v15724_v25 = vpop.eup %10666  ;;  %10686 = vpow2.f32 %v7816_v28  ;;  %v6852_v7 = vmul.f32 1.442695, %v6755_v40  ;;  %v6679_v14 = vpop.xlane.xlu1 %6678  ;;  %v18050_v28 = vld [vmem:[#allocation50_spill] sm:$0xff] }
 0xade   : > { %18044 = vst [vmem:[#allocation45_spill] sm:$0xff] %v15724_v25  ;;  %v7648_v43 = vpop.xlane.xlu0 %7647  ;;  %v15728_v1 = vpop.eup %10668  ;;  %10688 = vpow2.f32 %v7818_v8  ;;  %v6756_v54 = vsub.f32 %v18046_v32, %v6679_v14  ;;  %v6757_v41 = vsub.f32 %v18047_v45, %v6679_v14  ;;  %6951 = vadd.xlane.f32.xlu0 %v6950_v38  ;;  %v6953_v35 = vadd.f32 %v15724_v25, %v15722_v17  ;;  %v18055_v17 = vld [vmem:[#allocation53_spill] sm:$0xff] }
 0xadf   : > { %18045 = vst [vmem:[#allocation24_spill] sm:$0xff] %v15728_v1  ;;  %v7726_v58 = vsub.f32 %v18048_v46, %v7648_v43  ;;  %v15733_v42 = vpop.eup %10670  ;;  %10690 = vpow2.f32 %v7820_v59  ;;  %v7727_v40 = vsub.f32 %v18050_v28, %v7648_v43  ;;  %v18054_v46 = vld [vmem:[#allocation29_spill] sm:$0xff] }
 0xae0   : > { %18049 = vst [vmem:[#allocation26_spill] sm:$0xff] %v15733_v42  ;;  %v15738_v63 = vpop.eup %10672  ;;  %10692 = vpow2.f32 %v6850_v44  ;;  %v6854_v13 = vmul.f32 1.442695, %v6756_v54  ;;  %v6856_v8 = vmul.f32 1.442695, %v6757_v41  ;;  %6954 = vadd.xlane.f32.xlu1 %v6953_v35  ;;  %v7922_v59 = vadd.f32 %v15733_v42, %v15728_v1  ;;  %v18056_v54 = vld [vmem:[#allocation32_spill] sm:$0xff] }
 0xae1   : > { %18051 = vst [vmem:[#allocation48_spill] sm:$0xff] %v15738_v63  ;;  %v7822_v18 = vmul.f32 1.442695, %v7726_v58  ;;  %v15740_v32 = vpop.eup %10674  ;;  %10694 = vpow2.f32 %v6852_v7  ;;  %v7824_v45 = vmul.f32 1.442695, %v7727_v40  ;;  %v7651_v38 = vpop.xlane.xlu1 %7650  ;;  %v18058_v7 = vld [vmem:[#allocation44_spill] sm:$0xff] }
 0xae2   : > { %18052 = vst [vmem:[#allocation39_spill] sm:$0xff] %v15740_v32  ;;  %v6682_v14 = vpop.xlane.xlu0 %6681  ;;  %v15744_v43 = vpop.eup %10676  ;;  %10696 = vpow2.f32 %v6854_v13  ;;  %v7728_v28 = vsub.f32 %v18054_v46, %v7651_v38  ;;  %v7729_v44 = vsub.f32 %v18055_v17, %v7651_v38  ;;  %7923 = vadd.xlane.f32.xlu0 %v7922_v59  ;;  %v7925_v35 = vadd.f32 %v15740_v32, %v15738_v63  ;;  %v18063_v63 = vld [vmem:[#allocation25_spill] sm:$0xff] }
 0xae3   : > { %18053 = vst [vmem:[#allocation28_spill] sm:$0xff] %v15744_v43  ;;  %v6758_v41 = vsub.f32 %v18056_v54, %v6682_v14  ;;  %v15749_v58 = vpop.eup %10678  ;;  %10698 = vpow2.f32 %v6856_v8  ;;  %v6759_v40 = vsub.f32 %v18058_v7, %v6682_v14  ;;  %v18062_v54 = vld [vmem:[#allocation57_spill] sm:$0xff] }
 0xae4   : > { %18057 = vst [vmem:[#allocation21_spill] sm:$0xff] %v15749_v58  ;;  %v15754_v1 = vpop.eup %10680  ;;  %10700 = vpow2.f32 %v7822_v18  ;;  %v7826_v42 = vmul.f32 1.442695, %v7728_v28  ;;  %v7828_v13 = vmul.f32 1.442695, %v7729_v44  ;;  %7926 = vadd.xlane.f32.xlu1 %v7925_v35  ;;  %v6956_v8 = vadd.f32 %v15749_v58, %v15744_v43  ;;  %v18064_v28 = vld [vmem:[#allocation31_spill] sm:$0xff] }
 0xae5   : > { %18059 = vst [vmem:[#allocation51_spill] sm:$0xff] %v15754_v1  ;;  %v6858_v25 = vmul.f32 1.442695, %v6758_v41  ;;  %v15756_v46 = vpop.eup %10682  ;;  %10702 = vpow2.f32 %v7824_v45  ;;  %v6860_v17 = vmul.f32 1.442695, %v6759_v40  ;;  %v6685_v59 = vpop.xlane.xlu1 %6684  ;;  %v18066_v45 = vld [vmem:[#allocation55_spill] sm:$0xff] }
 0xae6   : > { %18060 = vst [vmem:[#allocation50_spill] sm:$0xff] %v15756_v46  ;;  %v7654_v38 = vpop.xlane.xlu0 %7653  ;;  %v15760_v14 = vpop.eup %10684  ;;  %10704 = vpow2.f32 %v7826_v42  ;;  %v6760_v7 = vsub.f32 %v18062_v54, %v6685_v59  ;;  %v6761_v18 = vsub.f32 %v18063_v63, %v6685_v59  ;;  %6957 = vadd.xlane.f32.xlu0 %v6956_v8  ;;  %v6959_v35 = vadd.f32 %v15756_v46, %v15754_v1  ;;  %v18071_v1 = vld [vmem:[#allocation34_spill] sm:$0xff] }
 0xae7   : > { %18061 = vst [vmem:[#allocation29_spill] sm:$0xff] %v15760_v14  ;;  %v7730_v44 = vsub.f32 %v18064_v28, %v7654_v38  ;;  %v15765_v41 = vpop.eup %10686  ;;  %10706 = vpow2.f32 %v7828_v13  ;;  %v7731_v40 = vsub.f32 %v18066_v45, %v7654_v38  ;;  %v18070_v28 = vld [vmem:[#allocation56_spill] sm:$0xff] }
 0xae8   : > { %18065 = vst [vmem:[#allocation53_spill] sm:$0xff] %v15765_v41  ;;  %v15770_v43 = vpop.eup %10688  ;;  %10708 = vpow2.f32 %v6858_v25  ;;  %v6862_v58 = vmul.f32 1.442695, %v6760_v7  ;;  %v6864_v42 = vmul.f32 1.442695, %v6761_v18  ;;  %6960 = vadd.xlane.f32.xlu1 %v6959_v35  ;;  %v7928_v13 = vadd.f32 %v15765_v41, %v15760_v14  ;;  %v18072_v7 = vld [vmem:[#allocation58_spill] sm:$0xff] }
 0xae9   : > { %18067 = vst [vmem:[#allocation32_spill] sm:$0xff] %v15770_v43  ;;  %v7830_v32 = vmul.f32 1.442695, %v7730_v44  ;;  %v15772_v54 = vpop.eup %10690  ;;  %10710 = vpow2.f32 %v6860_v17  ;;  %v7832_v63 = vmul.f32 1.442695, %v7731_v40  ;;  %v7657_v8 = vpop.xlane.xlu1 %7656  ;;  %v18074_v17 = vld [vmem:[#allocation30_spill] sm:$0xff] }
 0xaea   : > { %18068 = vst [vmem:[#allocation44_spill] sm:$0xff] %v15772_v54  ;;  %v6688_v59 = vpop.xlane.xlu0 %6687  ;;  %v15776_v38 = vpop.eup %10692  ;;  %10712 = vpow2.f32 %v6862_v58  ;;  %v7732_v45 = vsub.f32 %v18070_v28, %v7657_v8  ;;  %v7733_v25 = vsub.f32 %v18071_v1, %v7657_v8  ;;  %7929 = vadd.xlane.f32.xlu0 %v7928_v13  ;;  %v7931_v35 = vadd.f32 %v15772_v54, %v15770_v43  ;;  %v18079_v43 = vld [vmem:[#allocation52_spill] sm:$0xff] }
 0xaeb   : > { %18069 = vst [vmem:[#allocation57_spill] sm:$0xff] %v15776_v38  ;;  %v6762_v18 = vsub.f32 %v18072_v7, %v6688_v59  ;;  %v15781_v44 = vpop.eup %10694  ;;  %10714 = vpow2.f32 %v6864_v42  ;;  %v6763_v40 = vsub.f32 %v18074_v17, %v6688_v59  ;;  %v18078_v7 = vld [vmem:[#allocation36_spill] sm:$0xff] }
 0xaec   : > { %18073 = vst [vmem:[#allocation25_spill] sm:$0xff] %v15781_v44  ;;  %v15786_v14 = vpop.eup %10696  ;;  %10716 = vpow2.f32 %v7830_v32  ;;  %v7834_v41 = vmul.f32 1.442695, %v7732_v45  ;;  %v7836_v58 = vmul.f32 1.442695, %v7733_v25  ;;  %7932 = vadd.xlane.f32.xlu1 %v7931_v35  ;;  %v6962_v42 = vadd.f32 %v15781_v44, %v15776_v38  ;;  %v18080_v45 = vld [vmem:[#allocation35_spill] sm:$0xff] }
 0xaed   : > { %18075 = vst [vmem:[#allocation31_spill] sm:$0xff] %v15786_v14  ;;  %v6866_v46 = vmul.f32 1.442695, %v6762_v18  ;;  %v15788_v28 = vpop.eup %10698  ;;  %10718 = vpow2.f32 %v7832_v63  ;;  %v6868_v1 = vmul.f32 1.442695, %v6763_v40  ;;  %v6691_v13 = vpop.xlane.xlu1 %6690  ;;  %v18082_v63 = vld [vmem:[#allocation62_spill] sm:$0xff] }
 0xaee   : > { %18076 = vst [vmem:[#allocation55_spill] sm:$0xff] %v15788_v28  ;;  %v7660_v8 = vpop.xlane.xlu0 %7659  ;;  %v15792_v59 = vpop.eup %10700  ;;  %10720 = vpow2.f32 %v7834_v41  ;;  %v6764_v17 = vsub.f32 %v18078_v7, %v6691_v13  ;;  %v6765_v32 = vsub.f32 %v18079_v43, %v6691_v13  ;;  %6963 = vadd.xlane.f32.xlu0 %v6962_v42  ;;  %v6965_v35 = vadd.f32 %v15788_v28, %v15786_v14  ;;  %v18087_v14 = vld [vmem:[#allocation67_spill] sm:$0xff] }
 0xaef   : > { %18077 = vst [vmem:[#allocation56_spill] sm:$0xff] %v15792_v59  ;;  %v7734_v25 = vsub.f32 %v18080_v45, %v7660_v8  ;;  %v15797_v18 = vpop.eup %10702  ;;  %10722 = vpow2.f32 %v7836_v58  ;;  %v7735_v40 = vsub.f32 %v18082_v63, %v7660_v8  ;;  %v18086_v45 = vld [vmem:[#allocation64_spill] sm:$0xff] }
 0xaf0   : > { %18081 = vst [vmem:[#allocation34_spill] sm:$0xff] %v15797_v18  ;;  %v15802_v38 = vpop.eup %10704  ;;  %10724 = vpow2.f32 %v6866_v46  ;;  %v6870_v44 = vmul.f32 1.442695, %v6764_v17  ;;  %v6872_v41 = vmul.f32 1.442695, %v6765_v32  ;;  %6966 = vadd.xlane.f32.xlu1 %v6965_v35  ;;  %v7934_v58 = vadd.f32 %v15797_v18, %v15792_v59  ;;  %v18088_v17 = vld [vmem:[#allocation37_spill] sm:$0xff] }
 0xaf1   : > { %18083 = vst [vmem:[#allocation58_spill] sm:$0xff] %v15802_v38  ;;  %v7838_v54 = vmul.f32 1.442695, %v7734_v25  ;;  %v15804_v7 = vpop.eup %10706  ;;  %10726 = vpow2.f32 %v6868_v1  ;;  %v7840_v43 = vmul.f32 1.442695, %v7735_v40  ;;  %v7663_v42 = vpop.xlane.xlu1 %7662  ;;  %v18090_v1 = vld [vmem:[#allocation54_spill] sm:$0xff] }
 0xaf2   : > { %18084 = vst [vmem:[#allocation30_spill] sm:$0xff] %v15804_v7  ;;  %v6694_v13 = vpop.xlane.xlu0 %6693  ;;  %v15808_v8 = vpop.eup %10708  ;;  %10728 = vpow2.f32 %v6870_v44  ;;  %v7736_v63 = vsub.f32 %v18086_v45, %v7663_v42  ;;  %v7737_v46 = vsub.f32 %v18087_v14, %v7663_v42  ;;  %7935 = vadd.xlane.f32.xlu0 %v7934_v58  ;;  %v7937_v35 = vadd.f32 %v15804_v7, %v15802_v38  ;;  %v18095_v38 = vld [vmem:[#allocation33_spill] sm:$0xff] }
 0xaf3   : > { %18085 = vst [vmem:[#allocation36_spill] sm:$0xff] %v15808_v8  ;;  %v6766_v32 = vsub.f32 %v18088_v17, %v6694_v13  ;;  %v15813_v25 = vpop.eup %10710  ;;  %10730 = vpow2.f32 %v6872_v41  ;;  %v6767_v40 = vsub.f32 %v18090_v1, %v6694_v13  ;;  %v18094_v17 = vld [vmem:[#allocation70_spill] sm:$0xff] }
 0xaf4   : > { %18089 = vst [vmem:[#allocation52_spill] sm:$0xff] %v15813_v25  ;;  %v15818_v59 = vpop.eup %10712  ;;  %10732 = vpow2.f32 %v7838_v54  ;;  %v7842_v18 = vmul.f32 1.442695, %v7736_v63  ;;  %v7844_v44 = vmul.f32 1.442695, %v7737_v46  ;;  %7938 = vadd.xlane.f32.xlu1 %v7937_v35  ;;  %v6968_v41 = vadd.f32 %v15813_v25, %v15808_v8  ;;  %v18096_v63 = vld [vmem:[#allocation38_spill] sm:$0xff] }
 0xaf5   : > { %18091 = vst [vmem:[#allocation35_spill] sm:$0xff] %v15818_v59  ;;  %v6874_v28 = vmul.f32 1.442695, %v6766_v32  ;;  %v15820_v45 = vpop.eup %10714  ;;  %10734 = vpow2.f32 %v7840_v43  ;;  %v6876_v14 = vmul.f32 1.442695, %v6767_v40  ;;  %v6697_v58 = vpop.xlane.xlu1 %6696  ;;  %v18098_v43 = vld [vmem:[#allocation68_spill] sm:$0xff] }
 0xaf6   : > { %18092 = vst [vmem:[#allocation62_spill] sm:$0xff] %v15820_v45  ;;  %v7666_v42 = vpop.xlane.xlu0 %7665  ;;  %v15824_v13 = vpop.eup %10716  ;;  %10736 = vpow2.f32 %v7842_v18  ;;  %v6768_v1 = vsub.f32 %v18094_v17, %v6697_v58  ;;  %v6769_v54 = vsub.f32 %v18095_v38, %v6697_v58  ;;  %6969 = vadd.xlane.f32.xlu0 %v6968_v41  ;;  %v6971_v35 = vadd.f32 %v15820_v45, %v15818_v59  ;;  %v18103_v59 = vld [vmem:[#allocation73_spill] sm:$0xff] }
 0xaf7   : > { %18093 = vst [vmem:[#allocation64_spill] sm:$0xff] %v15824_v13  ;;  %v7738_v46 = vsub.f32 %v18096_v63, %v7666_v42  ;;  %v15829_v32 = vpop.eup %10718  ;;  %10738 = vpow2.f32 %v7844_v44  ;;  %v7739_v40 = vsub.f32 %v18098_v43, %v7666_v42  ;;  %v18102_v63 = vld [vmem:[#allocation66_spill] sm:$0xff] }
 0xaf8   : > { %18097 = vst [vmem:[#allocation67_spill] sm:$0xff] %v15829_v32  ;;  %v15834_v8 = vpop.eup %10720  ;;  %10740 = vpow2.f32 %v6874_v28  ;;  %v6878_v25 = vmul.f32 1.442695, %v6768_v1  ;;  %v6880_v18 = vmul.f32 1.442695, %v6769_v54  ;;  %6972 = vadd.xlane.f32.xlu1 %v6971_v35  ;;  %v7940_v44 = vadd.f32 %v15829_v32, %v15824_v13  ;;  %v18104_v1 = vld [vmem:[#allocation74_spill] sm:$0xff] }
 0xaf9   : > { %18099 = vst [vmem:[#allocation37_spill] sm:$0xff] %v15834_v8  ;;  %v7846_v7 = vmul.f32 1.442695, %v7738_v46  ;;  %v15836_v17 = vpop.eup %10722  ;;  %10742 = vpow2.f32 %v6876_v14  ;;  %v7848_v38 = vmul.f32 1.442695, %v7739_v40  ;;  %v7669_v41 = vpop.xlane.xlu1 %7668  ;;  %v18106_v14 = vld [vmem:[#allocation60_spill] sm:$0xff] }
 0xafa   : > { %18100 = vst [vmem:[#allocation54_spill] sm:$0xff] %v15836_v17  ;;  %v6700_v58 = vpop.xlane.xlu0 %6699  ;;  %v15840_v42 = vpop.eup %10724  ;;  %10744 = vpow2.f32 %v6878_v25  ;;  %v7740_v43 = vsub.f32 %v18102_v63, %v7669_v41  ;;  %v7741_v28 = vsub.f32 %v18103_v59, %v7669_v41  ;;  %7941 = vadd.xlane.f32.xlu0 %v7940_v44  ;;  %v7943_v35 = vadd.f32 %v15836_v17, %v15834_v8  ;;  %v18111_v8 = vld [vmem:[#allocation71_spill] sm:$0xff] }
 0xafb   : > { %18101 = vst [vmem:[#allocation70_spill] sm:$0xff] %v15840_v42  ;;  %v6770_v54 = vsub.f32 %v18104_v1, %v6700_v58  ;;  %v15845_v46 = vpop.eup %10726  ;;  %10746 = vpow2.f32 %v6880_v18  ;;  %v6771_v40 = vsub.f32 %v18106_v14, %v6700_v58  ;;  %v18110_v1 = vld [vmem:[#allocation81_spill] sm:$0xff] }
 0xafc   : > { %18105 = vst [vmem:[#allocation33_spill] sm:$0xff] %v15845_v46  ;;  %v15850_v13 = vpop.eup %10728  ;;  %10748 = vpow2.f32 %v7846_v7  ;;  %v7850_v32 = vmul.f32 1.442695, %v7740_v43  ;;  %v7852_v25 = vmul.f32 1.442695, %v7741_v28  ;;  %7944 = vadd.xlane.f32.xlu1 %v7943_v35  ;;  %v6974_v18 = vadd.f32 %v15845_v46, %v15840_v42  ;;  %v18112_v43 = vld [vmem:[#allocation75_spill] sm:$0xff] }
 0xafd   : > { %18107 = vst [vmem:[#allocation38_spill] sm:$0xff] %v15850_v13  ;;  %v6882_v45 = vmul.f32 1.442695, %v6770_v54  ;;  %v15852_v63 = vpop.eup %10730  ;;  %10750 = vpow2.f32 %v7848_v38  ;;  %v6884_v59 = vmul.f32 1.442695, %v6771_v40  ;;  %v6703_v44 = vpop.xlane.xlu1 %6702  ;;  %v18114_v38 = vld [vmem:[#allocation47_spill] sm:$0xff] }
 0xafe   : > { %18108 = vst [vmem:[#allocation68_spill] sm:$0xff] %v15852_v63  ;;  %v7672_v41 = vpop.xlane.xlu0 %7671  ;;  %v15856_v58 = vpop.eup %10732  ;;  %10752 = vpow2.f32 %v7850_v32  ;;  %v6772_v14 = vsub.f32 %v18110_v1, %v6703_v44  ;;  %v6773_v7 = vsub.f32 %v18111_v8, %v6703_v44  ;;  %6975 = vadd.xlane.f32.xlu0 %v6974_v18  ;;  %v6977_v35 = vadd.f32 %v15852_v63, %v15850_v13  ;;  %v18119_v13 = vld [vmem:[#allocation72_spill] sm:$0xff] }
 0xaff   : > { %18109 = vst [vmem:[#allocation66_spill] sm:$0xff] %v15856_v58  ;;  %v7742_v28 = vsub.f32 %v18112_v43, %v7672_v41  ;;  %v15861_v54 = vpop.eup %10734  ;;  %10754 = vpow2.f32 %v7852_v25  ;;  %v7743_v40 = vsub.f32 %v18114_v38, %v7672_v41  ;;  %v18118_v43 = vld [vmem:[#allocation80_spill] sm:$0xff] }
 0xb00   : > { %18113 = vst [vmem:[#allocation73_spill] sm:$0xff] %v15861_v54  ;;  %v15866_v42 = vpop.eup %10736  ;;  %10756 = vpow2.f32 %v6882_v45  ;;  %v6886_v46 = vmul.f32 1.442695, %v6772_v14  ;;  %v6888_v32 = vmul.f32 1.442695, %v6773_v7  ;;  %6978 = vadd.xlane.f32.xlu1 %v6977_v35  ;;  %v7946_v25 = vadd.f32 %v15861_v54, %v15856_v58  ;;  %v18120_v14 = vld [vmem:[#allocation69_spill] sm:$0xff] }
 0xb01   : > { %18115 = vst [vmem:[#allocation74_spill] sm:$0xff] %v15866_v42  ;;  %v7854_v17 = vmul.f32 1.442695, %v7742_v28  ;;  %v15868_v1 = vpop.eup %10738  ;;  %10758 = vpow2.f32 %v6884_v59  ;;  %v7856_v8 = vmul.f32 1.442695, %v7743_v40  ;;  %v7675_v18 = vpop.xlane.xlu1 %7674  ;;  %v18122_v59 = vld [vmem:[#allocation49_spill] sm:$0xff] }
 0xb02   : > { %18116 = vst [vmem:[#allocation60_spill] sm:$0xff] %v15868_v1  ;;  %v6706_v44 = vpop.xlane.xlu0 %6705  ;;  %v15872_v41 = vpop.eup %10740  ;;  %10760 = vpow2.f32 %v6886_v46  ;;  %v7744_v38 = vsub.f32 %v18118_v43, %v7675_v18  ;;  %v7745_v45 = vsub.f32 %v18119_v13, %v7675_v18  ;;  %7947 = vadd.xlane.f32.xlu0 %v7946_v25  ;;  %v7949_v35 = vadd.f32 %v15868_v1, %v15866_v42  ;;  %v18127_v42 = vld [vmem:[#allocation43_spill] sm:$0xff] }
 0xb03   : > { %18117 = vst [vmem:[#allocation81_spill] sm:$0xff] %v15872_v41  ;;  %v6774_v7 = vsub.f32 %v18120_v14, %v6706_v44  ;;  %v15877_v28 = vpop.eup %10742  ;;  %10762 = vpow2.f32 %v6888_v32  ;;  %v6775_v40 = vsub.f32 %v18122_v59, %v6706_v44  ;;  %v18126_v14 = vld [vmem:[#allocation84_spill] sm:$0xff] }
 0xb04   : > { %18121 = vst [vmem:[#allocation71_spill] sm:$0xff] %v15877_v28  ;;  %v15882_v58 = vpop.eup %10744  ;;  %10764 = vpow2.f32 %v7854_v17  ;;  %v7858_v54 = vmul.f32 1.442695, %v7744_v38  ;;  %v7860_v46 = vmul.f32 1.442695, %v7745_v45  ;;  %7950 = vadd.xlane.f32.xlu1 %v7949_v35  ;;  %v6980_v32 = vadd.f32 %v15877_v28, %v15872_v41  ;;  %v18128_v38 = vld [vmem:[#allocation76_spill] sm:$0xff] }
 0xb05   : > { %18123 = vst [vmem:[#allocation75_spill] sm:$0xff] %v15882_v58  ;;  %v6890_v63 = vmul.f32 1.442695, %v6774_v7  ;;  %v15884_v43 = vpop.eup %10746  ;;  %10766 = vpow2.f32 %v7856_v8  ;;  %v6892_v13 = vmul.f32 1.442695, %v6775_v40  ;;  %v6709_v25 = vpop.xlane.xlu1 %6708  ;;  %v18130_v8 = vld [vmem:[#allocation82_spill] sm:$0xff] }
 0xb06   : > { %18124 = vst [vmem:[#allocation47_spill] sm:$0xff] %v15884_v43  ;;  %v7678_v18 = vpop.xlane.xlu0 %7677  ;;  %v15888_v44 = vpop.eup %10748  ;;  %10768 = vpow2.f32 %v7858_v54  ;;  %v6776_v59 = vsub.f32 %v18126_v14, %v6709_v25  ;;  %v6777_v17 = vsub.f32 %v18127_v42, %v6709_v25  ;;  %6981 = vadd.xlane.f32.xlu0 %v6980_v32  ;;  %v6983_v35 = vadd.f32 %v15884_v43, %v15882_v58  ;;  %v18135_v58 = vld [vmem:[#allocation59_spill] sm:$0xff] }
 0xb07   : > { %18125 = vst [vmem:[#allocation80_spill] sm:$0xff] %v15888_v44  ;;  %v7746_v45 = vsub.f32 %v18128_v38, %v7678_v18  ;;  %v15893_v7 = vpop.eup %10750  ;;  %10770 = vpow2.f32 %v7860_v46  ;;  %v7747_v40 = vsub.f32 %v18130_v8, %v7678_v18  ;;  %v18134_v38 = vld [vmem:[#allocation83_spill] sm:$0xff] }
 0xb08   : > { %18129 = vst [vmem:[#allocation72_spill] sm:$0xff] %v15893_v7  ;;  %v15898_v41 = vpop.eup %10752  ;;  %10772 = vpow2.f32 %v6890_v63  ;;  %v6894_v28 = vmul.f32 1.442695, %v6776_v59  ;;  %v6896_v54 = vmul.f32 1.442695, %v6777_v17  ;;  %6984 = vadd.xlane.f32.xlu1 %v6983_v35  ;;  %v7952_v46 = vadd.f32 %v15893_v7, %v15888_v44  ;;  %v18136_v59 = vld [vmem:[#allocation77_spill] sm:$0xff] }
 0xb09   : > { %18131 = vst [vmem:[#allocation69_spill] sm:$0xff] %v15898_v41  ;;  %v7862_v1 = vmul.f32 1.442695, %v7746_v45  ;;  %v15900_v14 = vpop.eup %10754  ;;  %10774 = vpow2.f32 %v6892_v13  ;;  %v7864_v42 = vmul.f32 1.442695, %v7747_v40  ;;  %v7681_v32 = vpop.xlane.xlu1 %7680  ;;  %v18138_v13 = vld [vmem:[#allocation78_spill] sm:$0xff] }
 0xb0a   : > { %18132 = vst [vmem:[#allocation49_spill] sm:$0xff] %v15900_v14  ;;  %v6712_v25 = vpop.xlane.xlu0 %6711  ;;  %v15904_v18 = vpop.eup %10756  ;;  %10776 = vpow2.f32 %v6894_v28  ;;  %v7748_v8 = vsub.f32 %v18134_v38, %v7681_v32  ;;  %v7749_v63 = vsub.f32 %v18135_v58, %v7681_v32  ;;  %7953 = vadd.xlane.f32.xlu0 %v7952_v46  ;;  %v7955_v35 = vadd.f32 %v15900_v14, %v15898_v41  ;;  %v18143_v41 = vld [vmem:[#allocation63_spill] sm:$0xff] }
 0xb0b   : > { %18133 = vst [vmem:[#allocation84_spill] sm:$0xff] %v15904_v18  ;;  %v6778_v17 = vsub.f32 %v18136_v59, %v6712_v25  ;;  %v15909_v45 = vpop.eup %10758  ;;  %10778 = vpow2.f32 %v6896_v54  ;;  %v6779_v40 = vsub.f32 %v18138_v13, %v6712_v25  ;;  %v18142_v59 = vld [vmem:[#allocation79_spill] sm:$0xff] }
 0xb0c   : > { %18137 = vst [vmem:[#allocation43_spill] sm:$0xff] %v15909_v45  ;;  %v15914_v44 = vpop.eup %10760  ;;  %10780 = vpow2.f32 %v7862_v1  ;;  %v7866_v7 = vmul.f32 1.442695, %v7748_v8  ;;  %v7868_v28 = vmul.f32 1.442695, %v7749_v63  ;;  %7956 = vadd.xlane.f32.xlu1 %v7955_v35  ;;  %v6986_v54 = vadd.f32 %v15909_v45, %v15904_v18  ;;  %v18144_v8 = vld [vmem:[#allocation86_spill] sm:$0xff] }
 0xb0d   : > { %18139 = vst [vmem:[#allocation76_spill] sm:$0xff] %v15914_v44  ;;  %v6898_v43 = vmul.f32 1.442695, %v6778_v17  ;;  %v15916_v38 = vpop.eup %10762  ;;  %10782 = vpow2.f32 %v7864_v42  ;;  %v6900_v58 = vmul.f32 1.442695, %v6779_v40  ;;  %v6715_v46 = vpop.xlane.xlu1 %6714  ;;  %v18146_v42 = vld [vmem:[#allocation95_spill] sm:$0xff] }
 0xb0e   : > { %18140 = vst [vmem:[#allocation82_spill] sm:$0xff] %v15916_v38  ;;  %v7684_v32 = vpop.xlane.xlu0 %7683  ;;  %v15920_v25 = vpop.eup %10764  ;;  %10784 = vpow2.f32 %v7866_v7  ;;  %v6780_v13 = vsub.f32 %v18142_v59, %v6715_v46  ;;  %v6781_v1 = vsub.f32 %v18143_v41, %v6715_v46  ;;  %6987 = vadd.xlane.f32.xlu0 %v6986_v54  ;;  %v6989_v35 = vadd.f32 %v15916_v38, %v15914_v44  ;;  %v18151_v44 = vld [vmem:[#allocation89_spill] sm:$0xff] }
 0xb0f   : > { %18141 = vst [vmem:[#allocation83_spill] sm:$0xff] %v15920_v25  ;;  %v7750_v63 = vsub.f32 %v18144_v8, %v7684_v32  ;;  %v15925_v17 = vpop.eup %10766  ;;  %10786 = vpow2.f32 %v7868_v28  ;;  %v7751_v40 = vsub.f32 %v18146_v42, %v7684_v32  ;;  %v18150_v8 = vld [vmem:[#allocation85_spill] sm:$0xff] }
 0xb10   : > { %18145 = vst [vmem:[#allocation59_spill] sm:$0xff] %v15925_v17  ;;  %v15930_v18 = vpop.eup %10768  ;;  %10788 = vpow2.f32 %v6898_v43  ;;  %v6902_v45 = vmul.f32 1.442695, %v6780_v13  ;;  %v6904_v7 = vmul.f32 1.442695, %v6781_v1  ;;  %6990 = vadd.xlane.f32.xlu1 %v6989_v35  ;;  %v7958_v28 = vadd.f32 %v15925_v17, %v15920_v25  ;;  %v18152_v13 = vld [vmem:[#allocation61_spill] sm:$0xff] }
 0xb11   : > { %18147 = vst [vmem:[#allocation77_spill] sm:$0xff] %v15930_v18  ;;  %v7870_v14 = vmul.f32 1.442695, %v7750_v63  ;;  %v15932_v59 = vpop.eup %10770  ;;  %10790 = vpow2.f32 %v6900_v58  ;;  %v7872_v41 = vmul.f32 1.442695, %v7751_v40  ;;  %v7687_v54 = vpop.xlane.xlu1 %7686  ;;  %v18154_v58 = vld [vmem:[#allocation88_spill] sm:$0xff] }
 0xb12   : > { %18148 = vst [vmem:[#allocation78_spill] sm:$0xff] %v15932_v59  ;;  %v6718_v46 = vpop.xlane.xlu0 %6717  ;;  %v15936_v32 = vpop.eup %10772  ;;  %10792 = vpow2.f32 %v6902_v45  ;;  %v7752_v42 = vsub.f32 %v18150_v8, %v7687_v54  ;;  %v7753_v43 = vsub.f32 %v18151_v44, %v7687_v54  ;;  %7959 = vadd.xlane.f32.xlu0 %v7958_v28  ;;  %v7961_v35 = vadd.f32 %v15932_v59, %v15930_v18  ;;  %v18156_v18 = vld [vmem:[#allocation98_spill] sm:$0xff] }
 0xb13   : > { %18149 = vst [vmem:[#allocation79_spill] sm:$0xff] %v15936_v32  ;;  %v6782_v1 = vsub.f32 %v18152_v13, %v6718_v46  ;;  %v15941_v63 = vpop.eup %10774  ;;  %10794 = vpow2.f32 %v6904_v7  ;;  %v6783_v40 = vsub.f32 %v18154_v58, %v6718_v46  ;;  %v18155_v13 = vld [vmem:[#allocation87_spill] sm:$0xff] }
 0xb14   : > { %18153 = vst [vmem:[#allocation63_spill] sm:$0xff] %v15941_v63  ;;  %v15946_v25 = vpop.eup %10776  ;;  %10796 = vpow2.f32 %v7870_v14  ;;  %v7874_v17 = vmul.f32 1.442695, %v7752_v42  ;;  %v7876_v45 = vmul.f32 1.442695, %v7753_v43  ;;  %7962 = vadd.xlane.f32.xlu1 %v7961_v35  ;;  %v6992_v7 = vadd.f32 %v15941_v63, %v15936_v32  ;;  %v18157_v42 = vld [vmem:[#allocation94_spill] sm:$0xff] }
 0xb15   : > { %v6906_v38 = vmul.f32 1.442695, %v6782_v1  ;;  %v15948_v8 = vpop.eup %10778  ;;  %10798 = vpow2.f32 %v7872_v41  ;;  %v6908_v44 = vmul.f32 1.442695, %v6783_v40  ;;  %v6721_v28 = vpop.xlane.xlu1 %6720  ;;  %v18158_v41 = vld [vmem:[#allocation65_spill] sm:$0xff] }
 0xb16   : > { %v7690_v54 = vpop.xlane.xlu0 %7689  ;;  %v15952_v46 = vpop.eup %10780  ;;  %10800 = vpow2.f32 %v7874_v17  ;;  %v6784_v58 = vsub.f32 %v18155_v13, %v6721_v28  ;;  %v6785_v14 = vsub.f32 %v18156_v18, %v6721_v28  ;;  %6993 = vadd.xlane.f32.xlu0 %v6992_v7  ;;  %v6995_v35 = vadd.f32 %v15948_v8, %v15946_v25 }
 0xb17   : > { %v7754_v43 = vsub.f32 %v18157_v42, %v7690_v54  ;;  %v15957_v1 = vpop.eup %10782  ;;  %10802 = vpow2.f32 %v7876_v45  ;;  %v7755_v40 = vsub.f32 %v18158_v41, %v7690_v54  ;;  %v18159_v42 = vld [vmem:[#allocation99_spill] sm:$0xff] }
 0xb18   : > { %v15962_v32 = vpop.eup %10784  ;;  %10804 = vpow2.f32 %v6906_v38  ;;  %v6910_v63 = vmul.f32 1.442695, %v6784_v58  ;;  %v6912_v17 = vmul.f32 1.442695, %v6785_v14  ;;  %6996 = vadd.xlane.f32.xlu1 %v6995_v35  ;;  %v7964_v45 = vadd.f32 %v15957_v1, %v15952_v46 }
 0xb19   : > { %v7878_v59 = vmul.f32 1.442695, %v7754_v43  ;;  %v15964_v13 = vpop.eup %10786  ;;  %10806 = vpow2.f32 %v6908_v44  ;;  %v7880_v18 = vmul.f32 1.442695, %v7755_v40  ;;  %v7693_v7 = vpop.xlane.xlu1 %7692 }
 0xb1a   : > { %v15968_v28 = vpop.eup %10788  ;;  %10808 = vpow2.f32 %v6910_v63  ;;  %v7756_v54 = vsub.f32 %v15502_v26, %v7693_v7  ;;  %v7757_v41 = vsub.f32 %v18159_v42, %v7693_v7  ;;  %v7967_v38 = vadd.f32 %v15964_v13, %v15962_v32  ;;  %7965 = vadd.xlane.f32.xlu0 %v7964_v45 }
 0xb1b   : > { %v15974_v58 = vpop.eup %10790  ;;  %10810 = vpow2.f32 %v6912_v17 }
 0xb1c   : > { %v15976_v44 = vpop.eup %10792  ;;  %10812 = vpow2.f32 %v7878_v59  ;;  %v7882_v14 = vmul.f32 1.442695, %v7756_v54  ;;  %v7884_v43 = vmul.f32 1.442695, %v7757_v41  ;;  %v6998_v40 = vadd.f32 %v15974_v58, %v15968_v28  ;;  %7968 = vadd.xlane.f32.xlu1 %v7967_v38 }
 0xb1d   : > { %v15980_v63 = vpop.eup %10794  ;;  %10814 = vpow2.f32 %v7880_v18 }
 0xb1e   : > { %v15982_v26 = vpop.eup %10796  ;;  %10816 = vpow2.f32 %v7882_v14  ;;  %v7001_v35 = vadd.f32 %v15980_v63, %v15976_v44  ;;  %6999 = vadd.xlane.f32.xlu0 %v6998_v40 }
 0xb1f   : > { %18160 = vst [vmem:[#allocation86_spill] sm:$0xff] %v15982_v26  ;;  %v15986_v17 = vpop.eup %10798  ;;  %10818 = vpow2.f32 %v7884_v43 }
 0xb20   : > { %18161 = vst [vmem:[#allocation95_spill] sm:$0xff] %v15986_v17  ;;  %v15988_v59 = vpop.eup %10800  ;;  %v7970_v45 = vadd.f32 %v15986_v17, %v15982_v26  ;;  %7002 = vadd.xlane.f32.xlu1 %v7001_v35 }
 0xb21   : > { %18162 = vst [vmem:[#allocation85_spill] sm:$0xff] %v15988_v59  ;;  %v15992_v7 = vpop.eup %10802 }
 0xb22   : > { %18163 = vst [vmem:[#allocation89_spill] sm:$0xff] %v15992_v7  ;;  %v15994_v18 = vpop.eup %10804  ;;  %v7973_v54 = vadd.f32 %v15992_v7, %v15988_v59  ;;  %7971 = vadd.xlane.f32.xlu0 %v7970_v45 }
 0xb23   : > { %18164 = vst [vmem:[#allocation61_spill] sm:$0xff] %v15994_v18  ;;  %v15998_v42 = vpop.eup %10806 }
 0xb24   : > { %18165 = vst [vmem:[#allocation88_spill] sm:$0xff] %v15998_v42  ;;  %v16000_v41 = vpop.eup %10808  ;;  %v7004_v38 = vadd.f32 %v15998_v42, %v15994_v18  ;;  %7974 = vadd.xlane.f32.xlu1 %v7973_v54 }
 0xb25   : > { %18166 = vst [vmem:[#allocation87_spill] sm:$0xff] %v16000_v41  ;;  %v16004_v14 = vpop.eup %10810 }
 0xb26   : > { %18167 = vst [vmem:[#allocation98_spill] sm:$0xff] %v16004_v14  ;;  %v16006_v43 = vpop.eup %10812  ;;  %v7007_v40 = vadd.f32 %v16004_v14, %v16000_v41  ;;  %7005 = vadd.xlane.f32.xlu0 %v7004_v38 }
 0xb27   : > { %18168 = vst [vmem:[#allocation94_spill] sm:$0xff] %v16006_v43  ;;  %v16010_v35 = vpop.eup %10814 }
 0xb28   : > { %18169 = vst [vmem:[#allocation65_spill] sm:$0xff] %v16010_v35  ;;  %v16012_v59 = vpop.eup %10816  ;;  %v7976_v45 = vadd.f32 %v16010_v35, %v16006_v43  ;;  %7008 = vadd.xlane.f32.xlu1 %v7007_v40 }
 0xb29   : > { %18170 = vst [vmem:[#allocation99_spill] sm:$0xff] %v16012_v59  ;;  %v16016_v26 = vpop.eup %10818 }
 0xb2a   : > { %18171 = vst [vmem:[#allocation100_spill] sm:$0xff] %v16016_v26  ;;  %v7979_v18 = vadd.f32 %v16016_v26, %v16012_v59  ;;  %7977 = vadd.xlane.f32.xlu0 %v7976_v45 }
 0xb2c   : > { %7980 = vadd.xlane.f32.xlu1 %v7979_v18 }
 0xb35   : > { %v6916_v54 = vpop.xlane.xlu0 %6915 }
 0xb36   : > { %10820 = vrcp.f32 %v6916_v54 }
 0xb39   : > { %v6919_v42 = vpop.xlane.xlu1 %6918 }
 0xb3a   : > { %10822 = vrcp.f32 %v6919_v42 }
 0xb3d   : > { %v7888_v41 = vpop.xlane.xlu0 %7887 }
 0xb3e   : > { %10824 = vrcp.f32 %v7888_v41 }
 0xb40   : > { %v10821_v14 = vpop.eup %10820 }
 0xb41   : > { %v7891_v38 = vpop.xlane.xlu1 %7890  ;;  %v7043_v43 = vmul.f32 %v10821_v14, %v15520_v19  ;;  %v7042_v45 = vmul.f32 %v10821_v14, %v15518_v12 }
 0xb42   : > { %10826 = vrcp.f32 %v7891_v38 }
 0xb43   : > { %v6922_v17 = vpop.xlane.xlu0 %6921 }
 0xb44   : > { %v10823_v7 = vpop.eup %10822  ;;  %10828 = vrcp.f32 %v6922_v17  ;;  %v6208_v17 = vld [vmem:[%s12518_s24 + $0x68] sm:$0xff] }
 0xb45   : > { %v7045_v40 = vmul.f32 %v10823_v7, %v15530_v47  ;;  %v7044_v18 = vmul.f32 %v10823_v7, %v15528_v31  ;;  %v6925_v54 = vpop.xlane.xlu1 %6924  ;;  %7170 = vmatprep.mubr.f32.mxu1 %v6208_v17 }
 0xb46   : > { %10830 = vrcp.f32 %v6925_v54 }
 0xb47   : > { %v9180_v42 = vpack.c.bf16 %v7045_v40, %v7043_v43  ;;  %v9182_v59 = vpack.c.bf16 %v7044_v18, %v7042_v45  ;;  %v7894_v26 = vpop.xlane.xlu0 %7893  ;;  %v7180_v45 = vld [vmem:[%s12518_s24 + $0x78] sm:$0xff] }
 0xb48   : > { %10832 = vrcp.f32 %v7894_v26  ;;  %v10825_v38 = vpop.eup %10824  ;;  %8142 = vmatprep.mubr.f32.mxu0 %v7180_v45 }
 0xb49   : > { %9181 = vmatprep.subr.bf16.mxu1 %v9180_v42  ;;  %v7897_v41 = vpop.xlane.xlu1 %7896  ;;  %v8015_v31 = vmul.f32 %v10825_v38, %v15540_v5  ;;  %v8014_v7 = vmul.f32 %v10825_v38, %v15538_v56 }
 0xb4a   : > { %9183 = vmatpush1.bf16.xpose.msra.mxu1 %v9182_v59  ;;  %10834 = vrcp.f32 %v7897_v41 }
 0xb4b   : > { %v6928_v19 = vpop.xlane.xlu0 %6927 }
 0xb4c   : > { %v10827_v35 = vpop.eup %10826  ;;  %10836 = vrcp.f32 %v6928_v19 }
 0xb4d   : > { %v6931_v12 = vpop.xlane.xlu1 %6930  ;;  %v8017_v47 = vmul.f32 %v10827_v35, %v15550_v10  ;;  %v8016_v26 = vmul.f32 %v10827_v35, %v15548_v0 }
 0xb4e   : > { %v10829_v14 = vpop.eup %10828  ;;  %10838 = vrcp.f32 %v6931_v12 }
 0xb4f   : > { %v7900_v59 = vpop.xlane.xlu0 %7899  ;;  %v9244_v43 = vpack.c.bf16 %v8017_v47, %v8015_v31  ;;  %v9246_v40 = vpack.c.bf16 %v8016_v26, %v8014_v7  ;;  %v7047_v42 = vmul.f32 %v10829_v14, %v15557_v21  ;;  %v7046_v10 = vmul.f32 %v10829_v14, %v15552_v30 }
 0xb50   : > { %v10831_v18 = vpop.eup %10830  ;;  %10840 = vrcp.f32 %v7900_v59 }
 0xb51   : > { %v7903_v54 = vpop.xlane.xlu1 %7902  ;;  %9245 = vmatprep.subr.bf16.mxu0 %v9244_v43  ;;  %v7049_v5 = vmul.f32 %v10831_v18, %v15564_v60  ;;  %v7048_v56 = vmul.f32 %v10831_v18, %v15562_v55 }
 0xb52   : > { %v10833_v0 = vpop.eup %10832  ;;  %10842 = vrcp.f32 %v7903_v54  ;;  %9247 = vmatpush1.bf16.xpose.msra.mxu0 %v9246_v40 }
 0xb53   : > { %v6934_v35 = vpop.xlane.xlu0 %6933  ;;  %v9184_v41 = vpack.c.bf16 %v7049_v5, %v7047_v42  ;;  %v9186_v38 = vpack.c.bf16 %v7048_v56, %v7046_v10  ;;  %v8019_v12 = vmul.f32 %v10833_v0, %v15573_v11  ;;  %v8018_v60 = vmul.f32 %v10833_v0, %v15568_v20 }
 0xb54   : > { %v10835_v19 = vpop.eup %10834  ;;  %10844 = vrcp.f32 %v6934_v35 }
 0xb55   : > { %v6937_v17 = vpop.xlane.xlu1 %6936  ;;  %9185 = vmatprep.subr.bf16.mxu1 %v9184_v41  ;;  %v8021_v21 = vmul.f32 %v10835_v19, %v15580_v37  ;;  %v8020_v30 = vmul.f32 %v10835_v19, %v15578_v22 }
 0xb56   : > { %v10837_v31 = vpop.eup %10836  ;;  %10846 = vrcp.f32 %v6937_v17  ;;  %9187 = vmatpush1.bf16.xpose.msra.mxu1 %v9186_v38 }
 0xb57   : > { %v7906_v55 = vpop.xlane.xlu0 %7905  ;;  %v9248_v47 = vpack.c.bf16 %v8021_v21, %v8019_v12  ;;  %v9250_v7 = vpack.c.bf16 %v8020_v30, %v8018_v60  ;;  %v7051_v59 = vmul.f32 %v10837_v31, %v15589_v33  ;;  %v7050_v37 = vmul.f32 %v10837_v31, %v15584_v34 }
 0xb58   : > { %v10839_v26 = vpop.eup %10838  ;;  %10848 = vrcp.f32 %v7906_v55 }
 0xb59   : > { %v7909_v14 = vpop.xlane.xlu1 %7908  ;;  %9249 = vmatprep.subr.bf16.mxu0 %v9248_v47  ;;  %v7053_v11 = vmul.f32 %v10839_v26, %v15596_v15  ;;  %v7052_v20 = vmul.f32 %v10839_v26, %v15594_v52 }
 0xb5a   : > { %v10841_v43 = vpop.eup %10840  ;;  %10850 = vrcp.f32 %v7909_v14  ;;  %9251 = vmatpush1.bf16.xpose.msra.mxu0 %v9250_v7 }
 0xb5b   : > { %v6940_v22 = vpop.xlane.xlu0 %6939  ;;  %v9188_v40 = vpack.c.bf16 %v7053_v11, %v7051_v59  ;;  %v9190_v45 = vpack.c.bf16 %v7052_v20, %v7050_v37  ;;  %v8023_v42 = vmul.f32 %v10841_v43, %v15605_v57  ;;  %v8022_v15 = vmul.f32 %v10841_v43, %v15600_v49 }
 0xb5c   : > { %v10843_v18 = vpop.eup %10842  ;;  %10852 = vrcp.f32 %v6940_v22 }
 0xb5d   : > { %v6943_v54 = vpop.xlane.xlu1 %6942  ;;  %9189 = vmatprep.subr.bf16.mxu1 %v9188_v40  ;;  %v8025_v33 = vmul.f32 %v10843_v18, %v15612_v36  ;;  %v8024_v34 = vmul.f32 %v10843_v18, %v15610_v3 }
 0xb5e   : > { %v10845_v5 = vpop.eup %10844  ;;  %10854 = vrcp.f32 %v6943_v54  ;;  %9191 = vmatpush1.bf16.xpose.msra.mxu1 %v9190_v45 }
 0xb5f   : > { %v7912_v52 = vpop.xlane.xlu0 %7911  ;;  %v9252_v10 = vpack.c.bf16 %v8025_v33, %v8023_v42  ;;  %v9254_v56 = vpack.c.bf16 %v8024_v34, %v8022_v15  ;;  %v7055_v41 = vmul.f32 %v10845_v5, %v15621_v62  ;;  %v7054_v36 = vmul.f32 %v10845_v5, %v15616_v61  ;;  %v18172_v42 = vld [vmem:[#allocation90_spill] sm:$0xff]  ;;  %v18173_v15 = vld [vmem:[#allocation40_spill] sm:$0xff]  ;;  %v18175_v5 = vld [vmem:[#allocation17_spill] sm:$0xff] }
 0xb60   : > { %v10847_v0 = vpop.eup %10846  ;;  %10856 = vrcp.f32 %v7912_v52  ;;  %v18174_v34 = vld [vmem:[#allocation96_spill] sm:$0xff] }
 0xb61   : > { %v7915_v35 = vpop.xlane.xlu1 %7914  ;;  %9253 = vmatprep.subr.bf16.mxu0 %v9252_v10  ;;  %v7057_v57 = vmul.f32 %v10847_v0, %v15628_v9  ;;  %v7056_v49 = vmul.f32 %v10847_v0, %v15626_v50 }
 0xb62   : > { %v10849_v38 = vpop.eup %10848  ;;  %10858 = vrcp.f32 %v7915_v35  ;;  %9255 = vmatpush1.bf16.xpose.msra.mxu0 %v9254_v56 }
 0xb63   : > { %v6946_v3 = vpop.xlane.xlu0 %6945  ;;  %v9192_v19 = vpack.c.bf16 %v7057_v57, %v7055_v41  ;;  %v9194_v17 = vpack.c.bf16 %v7056_v49, %v7054_v36  ;;  %v8027_v60 = vmul.f32 %v10849_v38, %v15637_v4  ;;  %v8026_v9 = vmul.f32 %v10849_v38, %v15632_v39  ;;  %v18176_v41 = vld [vmem:[#allocation22_spill] sm:$0xff]  ;;  %v18177_v36 = vld [vmem:[#allocation19_spill] sm:$0xff]  ;;  %v18178_v38 = vld [vmem:[#allocation20_spill] sm:$0xff] }
 0xb64   : > { %v10851_v12 = vpop.eup %10850  ;;  %10860 = vrcp.f32 %v6946_v3 }
 0xb65   : > { %v6949_v21 = vpop.xlane.xlu1 %6948  ;;  %9193 = vmatprep.subr.bf16.mxu1 %v9192_v19  ;;  %v8029_v62 = vmul.f32 %v10851_v12, %v15644_v23  ;;  %v8028_v61 = vmul.f32 %v10851_v12, %v15642_v53  ;;  %v18179_v19 = vld [vmem:[#allocation46_spill] sm:$0xff] }
 0xb66   : > { %v10853_v30 = vpop.eup %10852  ;;  %10862 = vrcp.f32 %v6949_v21  ;;  %9195 = vmatpush1.bf16.xpose.msra.mxu1 %v9194_v17 }
 0xb67   : > { %v7918_v50 = vpop.xlane.xlu0 %7917  ;;  %v9256_v31 = vpack.c.bf16 %v8029_v62, %v8027_v60  ;;  %v9258_v55 = vpack.c.bf16 %v8028_v61, %v8026_v9  ;;  %v7059_v26 = vmul.f32 %v10853_v30, %v15653_v48  ;;  %v7058_v23 = vmul.f32 %v10853_v30, %v15648_v29  ;;  %v18180_v30 = vld [vmem:[#allocation41_spill] sm:$0xff] }
 0xb68   : > { %v10855_v47 = vpop.eup %10854  ;;  %10864 = vrcp.f32 %v7918_v50 }
 0xb69   : > { %v7921_v7 = vpop.xlane.xlu1 %7920  ;;  %9257 = vmatprep.subr.bf16.mxu0 %v9256_v31  ;;  %v7061_v4 = vmul.f32 %v10855_v47, %v15660_v2  ;;  %v7060_v39 = vmul.f32 %v10855_v47, %v15658_v27  ;;  %v18181_v31 = vld [vmem:[#allocation45_spill] sm:$0xff]  ;;  %v18182_v47 = vld [vmem:[#allocation27_spill] sm:$0xff] }
 0xb6a   : > { %v10857_v14 = vpop.eup %10856  ;;  %10866 = vrcp.f32 %v7921_v7  ;;  %9259 = vmatpush1.bf16.xpose.msra.mxu0 %v9258_v55 }
 0xb6b   : > { %v6952_v53 = vpop.xlane.xlu0 %6951  ;;  %v9196_v59 = vpack.c.bf16 %v7061_v4, %v7059_v26  ;;  %v9198_v11 = vpack.c.bf16 %v7060_v39, %v7058_v23  ;;  %v8031_v43 = vmul.f32 %v10857_v14, %v15669_v24  ;;  %v8030_v2 = vmul.f32 %v10857_v14, %v15664_v6  ;;  %v18183_v26 = vld [vmem:[#allocation42_spill] sm:$0xff] }
 0xb6c   : > { %v10859_v37 = vpop.eup %10858  ;;  %10868 = vrcp.f32 %v6952_v53 }
 0xb6d   : > { %v6955_v20 = vpop.xlane.xlu1 %6954  ;;  %9197 = vmatprep.subr.bf16.mxu1 %v9196_v59  ;;  %v8033_v48 = vmul.f32 %v10859_v37, %v15676_v51  ;;  %v8032_v29 = vmul.f32 %v10859_v37, %v15674_v16  ;;  %v18184_v37 = vld [vmem:[#allocation26_spill] sm:$0xff] }
 0xb6e   : > { %v10861_v22 = vpop.eup %10860  ;;  %10870 = vrcp.f32 %v6955_v20  ;;  %9199 = vmatpush1.bf16.xpose.msra.mxu1 %v9198_v11 }
 0xb6f   : > { %v7924_v27 = vpop.xlane.xlu0 %7923  ;;  %v9260_v40 = vpack.c.bf16 %v8033_v48, %v8031_v43  ;;  %v9262_v45 = vpack.c.bf16 %v8032_v29, %v8030_v2  ;;  %v7063_v33 = vmul.f32 %v10861_v22, %v18172_v42  ;;  %v7062_v51 = vmul.f32 %v10861_v22, %v18174_v34  ;;  %v18185_v43 = vld [vmem:[#allocation39_spill] sm:$0xff]  ;;  %v18186_v2 = vld [vmem:[#allocation24_spill] sm:$0xff]  ;;  %v18189_v34 = vld [vmem:[#allocation50_spill] sm:$0xff] }
 0xb70   : > { %v10863_v18 = vpop.eup %10862  ;;  %10872 = vrcp.f32 %v7924_v27  ;;  %v18187_v22 = vld [vmem:[#allocation48_spill] sm:$0xff] }
 0xb71   : > { %v7927_v54 = vpop.xlane.xlu1 %7926  ;;  %9261 = vmatprep.subr.bf16.mxu0 %v9260_v40  ;;  %v7065_v24 = vmul.f32 %v10863_v18, %v18173_v15  ;;  %v7064_v6 = vmul.f32 %v10863_v18, %v18175_v5  ;;  %v18188_v15 = vld [vmem:[#allocation21_spill] sm:$0xff]  ;;  %v18190_v5 = vld [vmem:[#allocation28_spill] sm:$0xff] }
 0xb72   : > { %v10865_v52 = vpop.eup %10864  ;;  %10874 = vrcp.f32 %v7927_v54  ;;  %9263 = vmatpush1.bf16.xpose.msra.mxu0 %v9262_v45 }
 0xb73   : > { %v6958_v16 = vpop.xlane.xlu0 %6957  ;;  %v9200_v10 = vpack.c.bf16 %v7065_v24, %v7063_v33  ;;  %v9202_v56 = vpack.c.bf16 %v7064_v6, %v7062_v51  ;;  %v8035_v57 = vmul.f32 %v10865_v52, %v18176_v41  ;;  %v8034_v3 = vmul.f32 %v10865_v52, %v18178_v38  ;;  %v18191_v52 = vld [vmem:[#allocation51_spill] sm:$0xff]  ;;  %v18193_v38 = vld [vmem:[#allocation44_spill] sm:$0xff] }
 0xb74   : > { %v10867_v0 = vpop.eup %10866  ;;  %10876 = vrcp.f32 %v6958_v16 }
 0xb75   : > { %v6961_v35 = vpop.xlane.xlu1 %6960  ;;  %9201 = vmatprep.subr.bf16.mxu1 %v9200_v10  ;;  %v8037_v49 = vmul.f32 %v10867_v0, %v18177_v36  ;;  %v8036_v17 = vmul.f32 %v10867_v0, %v18179_v19  ;;  %v18192_v36 = vld [vmem:[#allocation53_spill] sm:$0xff] }
 0xb76   : > { %v10869_v12 = vpop.eup %10868  ;;  %10878 = vrcp.f32 %v6961_v35  ;;  %9203 = vmatpush1.bf16.xpose.msra.mxu1 %v9202_v56  ;;  %v18194_v19 = vld [vmem:[#allocation29_spill] sm:$0xff] }
 0xb77   : > { %v7930_v21 = vpop.xlane.xlu0 %7929  ;;  %v9264_v60 = vpack.c.bf16 %v8037_v49, %v8035_v57  ;;  %v9266_v62 = vpack.c.bf16 %v8036_v17, %v8034_v3  ;;  %v7067_v50 = vmul.f32 %v10869_v12, %v18180_v30  ;;  %v7066_v7 = vmul.f32 %v10869_v12, %v18182_v47  ;;  %v18195_v12 = vld [vmem:[#allocation32_spill] sm:$0xff]  ;;  %v18197_v47 = vld [vmem:[#allocation55_spill] sm:$0xff] }
 0xb78   : > { %v10871_v9 = vpop.eup %10870  ;;  %10880 = vrcp.f32 %v7930_v21 }
 0xb79   : > { %v7933_v61 = vpop.xlane.xlu1 %7932  ;;  %9265 = vmatprep.subr.bf16.mxu0 %v9264_v60  ;;  %v7069_v55 = vmul.f32 %v10871_v9, %v18181_v31  ;;  %v7068_v4 = vmul.f32 %v10871_v9, %v18183_v26  ;;  %v18196_v31 = vld [vmem:[#allocation25_spill] sm:$0xff] }
 0xb7a   : > { %v10873_v23 = vpop.eup %10872  ;;  %10882 = vrcp.f32 %v7933_v61  ;;  %9267 = vmatpush1.bf16.xpose.msra.mxu0 %v9266_v62  ;;  %v18198_v26 = vld [vmem:[#allocation57_spill] sm:$0xff] }
 0xb7b   : > { %v6964_v39 = vpop.xlane.xlu0 %6963  ;;  %v9204_v14 = vpack.c.bf16 %v7069_v55, %v7067_v50  ;;  %v9206_v53 = vpack.c.bf16 %v7068_v4, %v7066_v7  ;;  %v8039_v20 = vmul.f32 %v10873_v23, %v18184_v37  ;;  %v8038_v29 = vmul.f32 %v10873_v23, %v18186_v2  ;;  %v18199_v23 = vld [vmem:[#allocation31_spill] sm:$0xff]  ;;  %v18201_v2 = vld [vmem:[#allocation30_spill] sm:$0xff] }
 0xb7c   : > { %v10875_v59 = vpop.eup %10874  ;;  %10884 = vrcp.f32 %v6964_v39 }
 0xb7d   : > { %v6967_v11 = vpop.xlane.xlu1 %6966  ;;  %9205 = vmatprep.subr.bf16.mxu1 %v9204_v14  ;;  %v8041_v48 = vmul.f32 %v10875_v59, %v18185_v43  ;;  %v8040_v27 = vmul.f32 %v10875_v59, %v18187_v22  ;;  %v18200_v43 = vld [vmem:[#allocation34_spill] sm:$0xff]  ;;  %v18202_v22 = vld [vmem:[#allocation56_spill] sm:$0xff] }
 0xb7e   : > { %v10877_v40 = vpop.eup %10876  ;;  %10886 = vrcp.f32 %v6967_v11  ;;  %9207 = vmatpush1.bf16.xpose.msra.mxu1 %v9206_v53 }
 0xb7f   : > { %v7936_v45 = vpop.xlane.xlu0 %7935  ;;  %v9268_v18 = vpack.c.bf16 %v8041_v48, %v8039_v20  ;;  %v9270_v54 = vpack.c.bf16 %v8040_v27, %v8038_v29  ;;  %v7071_v24 = vmul.f32 %v10877_v40, %v18188_v15  ;;  %v7070_v6 = vmul.f32 %v10877_v40, %v18190_v5  ;;  %v18203_v40 = vld [vmem:[#allocation58_spill] sm:$0xff] }
 0xb80   : > { %v10879_v42 = vpop.eup %10878  ;;  %10888 = vrcp.f32 %v7936_v45  ;;  %v18205_v5 = vld [vmem:[#allocation62_spill] sm:$0xff] }
 0xb81   : > { %v7939_v33 = vpop.xlane.xlu1 %7938  ;;  %9269 = vmatprep.subr.bf16.mxu0 %v9268_v18  ;;  %v7073_v51 = vmul.f32 %v10879_v42, %v18189_v34  ;;  %v7072_v16 = vmul.f32 %v10879_v42, %v18191_v52  ;;  %v18204_v34 = vld [vmem:[#allocation52_spill] sm:$0xff] }
 0xb82   : > { %v10881_v10 = vpop.eup %10880  ;;  %10890 = vrcp.f32 %v7939_v33  ;;  %9271 = vmatpush1.bf16.xpose.msra.mxu0 %v9270_v54  ;;  %v18206_v52 = vld [vmem:[#allocation36_spill] sm:$0xff] }
 0xb83   : > { %v6970_v56 = vpop.xlane.xlu0 %6969  ;;  %v9208_v0 = vpack.c.bf16 %v7073_v51, %v7071_v24  ;;  %v9210_v35 = vpack.c.bf16 %v7072_v16, %v7070_v6  ;;  %v8043_v49 = vmul.f32 %v10881_v10, %v18192_v36  ;;  %v8042_v17 = vmul.f32 %v10881_v10, %v18194_v19  ;;  %v18207_v10 = vld [vmem:[#allocation35_spill] sm:$0xff]  ;;  %v18209_v19 = vld [vmem:[#allocation54_spill] sm:$0xff] }
 0xb84   : > { %v10883_v41 = vpop.eup %10882  ;;  %10892 = vrcp.f32 %v6970_v56 }
 0xb85   : > { %v6973_v57 = vpop.xlane.xlu1 %6972  ;;  %9209 = vmatprep.subr.bf16.mxu1 %v9208_v0  ;;  %v8045_v3 = vmul.f32 %v10883_v41, %v18193_v38  ;;  %v8044_v21 = vmul.f32 %v10883_v41, %v18195_v12  ;;  %v18208_v38 = vld [vmem:[#allocation67_spill] sm:$0xff]  ;;  %v18210_v12 = vld [vmem:[#allocation64_spill] sm:$0xff] }
 0xb86   : > { %v10885_v60 = vpop.eup %10884  ;;  %10894 = vrcp.f32 %v6973_v57  ;;  %9211 = vmatpush1.bf16.xpose.msra.mxu1 %v9210_v35 }
 0xb87   : > { %v7942_v62 = vpop.xlane.xlu0 %7941  ;;  %v9272_v9 = vpack.c.bf16 %v8045_v3, %v8043_v49  ;;  %v9274_v61 = vpack.c.bf16 %v8044_v21, %v8042_v17  ;;  %v7075_v55 = vmul.f32 %v10885_v60, %v18196_v31  ;;  %v7074_v4 = vmul.f32 %v10885_v60, %v18198_v26  ;;  %v18211_v60 = vld [vmem:[#allocation37_spill] sm:$0xff]  ;;  %v18213_v26 = vld [vmem:[#allocation68_spill] sm:$0xff] }
 0xb88   : > { %v10887_v30 = vpop.eup %10886  ;;  %10896 = vrcp.f32 %v7942_v62 }
 0xb89   : > { %v7945_v50 = vpop.xlane.xlu1 %7944  ;;  %9273 = vmatprep.subr.bf16.mxu0 %v9272_v9  ;;  %v7077_v7 = vmul.f32 %v10887_v30, %v18197_v47  ;;  %v7076_v39 = vmul.f32 %v10887_v30, %v18199_v23  ;;  %v18212_v47 = vld [vmem:[#allocation33_spill] sm:$0xff]  ;;  %v18214_v23 = vld [vmem:[#allocation70_spill] sm:$0xff] }
 0xb8a   : > { %v10889_v14 = vpop.eup %10888  ;;  %10898 = vrcp.f32 %v7945_v50  ;;  %9275 = vmatpush1.bf16.xpose.msra.mxu0 %v9274_v61 }
 0xb8b   : > { %v6976_v53 = vpop.xlane.xlu0 %6975  ;;  %v9212_v59 = vpack.c.bf16 %v7077_v7, %v7075_v55  ;;  %v9214_v11 = vpack.c.bf16 %v7076_v39, %v7074_v4  ;;  %v8047_v48 = vmul.f32 %v10889_v14, %v18200_v43  ;;  %v8046_v27 = vmul.f32 %v10889_v14, %v18202_v22  ;;  %v18215_v14 = vld [vmem:[#allocation38_spill] sm:$0xff]  ;;  %v18217_v22 = vld [vmem:[#allocation60_spill] sm:$0xff] }
 0xb8c   : > { %v10891_v37 = vpop.eup %10890  ;;  %10900 = vrcp.f32 %v6976_v53 }
 0xb8d   : > { %v6979_v20 = vpop.xlane.xlu1 %6978  ;;  %9213 = vmatprep.subr.bf16.mxu1 %v9212_v59  ;;  %v8049_v29 = vmul.f32 %v10891_v37, %v18201_v2  ;;  %v8048_v45 = vmul.f32 %v10891_v37, %v18203_v40  ;;  %v18216_v2 = vld [vmem:[#allocation73_spill] sm:$0xff]  ;;  %v18218_v40 = vld [vmem:[#allocation66_spill] sm:$0xff] }
 0xb8e   : > { %v10893_v18 = vpop.eup %10892  ;;  %10902 = vrcp.f32 %v6979_v20  ;;  %9215 = vmatpush1.bf16.xpose.msra.mxu1 %v9214_v11 }
 0xb8f   : > { %v7948_v54 = vpop.xlane.xlu0 %7947  ;;  %v9276_v42 = vpack.c.bf16 %v8049_v29, %v8047_v48  ;;  %v9278_v33 = vpack.c.bf16 %v8048_v45, %v8046_v27  ;;  %v7079_v51 = vmul.f32 %v10893_v18, %v18204_v34  ;;  %v7078_v16 = vmul.f32 %v10893_v18, %v18206_v52  ;;  %v18219_v18 = vld [vmem:[#allocation74_spill] sm:$0xff]  ;;  %v18221_v52 = vld [vmem:[#allocation47_spill] sm:$0xff] }
 0xb90   : > { %v10895_v15 = vpop.eup %10894  ;;  %10904 = vrcp.f32 %v7948_v54 }
 0xb91   : > { %v7951_v24 = vpop.xlane.xlu1 %7950  ;;  %9277 = vmatprep.subr.bf16.mxu0 %v9276_v42  ;;  %v7081_v6 = vmul.f32 %v10895_v15, %v18205_v5  ;;  %v7080_v56 = vmul.f32 %v10895_v15, %v18207_v10  ;;  %v18220_v5 = vld [vmem:[#allocation71_spill] sm:$0xff]  ;;  %v18222_v10 = vld [vmem:[#allocation81_spill] sm:$0xff] }
 0xb92   : > { %v10897_v0 = vpop.eup %10896  ;;  %10906 = vrcp.f32 %v7951_v24  ;;  %9279 = vmatpush1.bf16.xpose.msra.mxu0 %v9278_v33 }
 0xb93   : > { %v6982_v35 = vpop.xlane.xlu0 %6981  ;;  %v9216_v41 = vpack.c.bf16 %v7081_v6, %v7079_v51  ;;  %v9218_v57 = vpack.c.bf16 %v7080_v56, %v7078_v16  ;;  %v8051_v3 = vmul.f32 %v10897_v0, %v18208_v38  ;;  %v8050_v21 = vmul.f32 %v10897_v0, %v18210_v12  ;;  %v18223_v0 = vld [vmem:[#allocation75_spill] sm:$0xff]  ;;  %v18225_v12 = vld [vmem:[#allocation49_spill] sm:$0xff] }
 0xb94   : > { %v10899_v36 = vpop.eup %10898  ;;  %10908 = vrcp.f32 %v6982_v35 }
 0xb95   : > { %v6985_v49 = vpop.xlane.xlu1 %6984  ;;  %9217 = vmatprep.subr.bf16.mxu1 %v9216_v41  ;;  %v8053_v17 = vmul.f32 %v10899_v36, %v18209_v19  ;;  %v8052_v62 = vmul.f32 %v10899_v36, %v18211_v60  ;;  %v18224_v19 = vld [vmem:[#allocation72_spill] sm:$0xff] }
 0xb96   : > { %v10901_v9 = vpop.eup %10900  ;;  %10910 = vrcp.f32 %v6985_v49  ;;  %9219 = vmatpush1.bf16.xpose.msra.mxu1 %v9218_v57  ;;  %v18226_v60 = vld [vmem:[#allocation80_spill] sm:$0xff] }
 0xb97   : > { %v7954_v61 = vpop.xlane.xlu0 %7953  ;;  %v9280_v30 = vpack.c.bf16 %v8053_v17, %v8051_v3  ;;  %v9282_v50 = vpack.c.bf16 %v8052_v62, %v8050_v21  ;;  %v7083_v7 = vmul.f32 %v10901_v9, %v18212_v47  ;;  %v7082_v39 = vmul.f32 %v10901_v9, %v18214_v23  ;;  %v18227_v9 = vld [vmem:[#allocation69_spill] sm:$0xff]  ;;  %v18229_v23 = vld [vmem:[#allocation82_spill] sm:$0xff] }
 0xb98   : > { %v10903_v31 = vpop.eup %10902  ;;  %10912 = vrcp.f32 %v7954_v61 }
 0xb99   : > { %v7957_v55 = vpop.xlane.xlu1 %7956  ;;  %9281 = vmatprep.subr.bf16.mxu0 %v9280_v30  ;;  %v7085_v4 = vmul.f32 %v10903_v31, %v18213_v26  ;;  %v7084_v53 = vmul.f32 %v10903_v31, %v18215_v14  ;;  %v18228_v26 = vld [vmem:[#allocation43_spill] sm:$0xff]  ;;  %v18230_v14 = vld [vmem:[#allocation84_spill] sm:$0xff] }
 0xb9a   : > { %v10905_v59 = vpop.eup %10904  ;;  %10914 = vrcp.f32 %v7957_v55  ;;  %9283 = vmatpush1.bf16.xpose.msra.mxu0 %v9282_v50 }
 0xb9b   : > { %v6988_v11 = vpop.xlane.xlu0 %6987  ;;  %v9220_v37 = vpack.c.bf16 %v7085_v4, %v7083_v7  ;;  %v9222_v20 = vpack.c.bf16 %v7084_v53, %v7082_v39  ;;  %v8055_v29 = vmul.f32 %v10905_v59, %v18216_v2  ;;  %v8054_v45 = vmul.f32 %v10905_v59, %v18218_v40  ;;  %v18231_v59 = vld [vmem:[#allocation76_spill] sm:$0xff]  ;;  %v18233_v40 = vld [vmem:[#allocation78_spill] sm:$0xff] }
 0xb9c   : > { %v10907_v43 = vpop.eup %10906  ;;  %10916 = vrcp.f32 %v6988_v11 }
 0xb9d   : > { %v6991_v48 = vpop.xlane.xlu1 %6990  ;;  %9221 = vmatprep.subr.bf16.mxu1 %v9220_v37  ;;  %v8057_v27 = vmul.f32 %v10907_v43, %v18217_v22  ;;  %v8056_v54 = vmul.f32 %v10907_v43, %v18219_v18  ;;  %v18232_v22 = vld [vmem:[#allocation59_spill] sm:$0xff] }
 0xb9e   : > { %v10909_v42 = vpop.eup %10908  ;;  %10918 = vrcp.f32 %v6991_v48  ;;  %9223 = vmatpush1.bf16.xpose.msra.mxu1 %v9222_v20  ;;  %v18234_v18 = vld [vmem:[#allocation83_spill] sm:$0xff] }
 0xb9f   : > { %v7960_v33 = vpop.xlane.xlu0 %7959  ;;  %v9284_v15 = vpack.c.bf16 %v8057_v27, %v8055_v29  ;;  %v9286_v24 = vpack.c.bf16 %v8056_v54, %v8054_v45  ;;  %v7087_v6 = vmul.f32 %v10909_v42, %v18220_v5  ;;  %v7086_v56 = vmul.f32 %v10909_v42, %v18222_v10  ;;  %v18235_v42 = vld [vmem:[#allocation77_spill] sm:$0xff] }
 0xba0   : > { %v10911_v34 = vpop.eup %10910  ;;  %10920 = vrcp.f32 %v7960_v33 }
 0xba1   : > { %v7963_v51 = vpop.xlane.xlu1 %7962  ;;  %9285 = vmatprep.subr.bf16.mxu0 %v9284_v15  ;;  %v7089_v16 = vmul.f32 %v10911_v34, %v18221_v52  ;;  %v7088_v35 = vmul.f32 %v10911_v34, %v18223_v0  ;;  %v18236_v52 = vld [vmem:[#allocation63_spill] sm:$0xff] }
 0xba2   : > { %v10913_v41 = vpop.eup %10912  ;;  %10922 = vrcp.f32 %v7963_v51  ;;  %9287 = vmatpush1.bf16.xpose.msra.mxu0 %v9286_v24 }
 0xba3   : > { %v6994_v57 = vpop.xlane.xlu0 %6993  ;;  %v9224_v36 = vpack.c.bf16 %v7089_v16, %v7087_v6  ;;  %v9226_v49 = vpack.c.bf16 %v7088_v35, %v7086_v56  ;;  %v8059_v17 = vmul.f32 %v10913_v41, %v18224_v19  ;;  %v8058_v62 = vmul.f32 %v10913_v41, %v18226_v60  ;;  %v18237_v56 = vld [vmem:[#allocation79_spill] sm:$0xff] }
 0xba4   : > { %v10915_v38 = vpop.eup %10914  ;;  %10924 = vrcp.f32 %v6994_v57 }
 0xba5   : > { %v6997_v3 = vpop.xlane.xlu1 %6996  ;;  %9225 = vmatprep.subr.bf16.mxu1 %v9224_v36  ;;  %v8061_v21 = vmul.f32 %v10915_v38, %v18225_v12  ;;  %v8060_v61 = vmul.f32 %v10915_v38, %v18227_v9 }
 0xba6   : > { %v10917_v30 = vpop.eup %10916  ;;  %10926 = vrcp.f32 %v6997_v3  ;;  %9227 = vmatpush1.bf16.xpose.msra.mxu1 %v9226_v49 }
 0xba7   : > { %v7966_v50 = vpop.xlane.xlu0 %7965  ;;  %v9288_v31 = vpack.c.bf16 %v8061_v21, %v8059_v17  ;;  %v9290_v55 = vpack.c.bf16 %v8060_v61, %v8058_v62  ;;  %v7091_v4 = vmul.f32 %v10917_v30, %v18228_v26  ;;  %v7090_v53 = vmul.f32 %v10917_v30, %v18230_v14  ;;  %v18239_v26 = vld [vmem:[#allocation89_spill] sm:$0xff] }
 0xba8   : > { %v10919_v47 = vpop.eup %10918  ;;  %10928 = vrcp.f32 %v7966_v50 }
 0xba9   : > { %v7969_v7 = vpop.xlane.xlu1 %7968  ;;  %9289 = vmatprep.subr.bf16.mxu0 %v9288_v31  ;;  %v7093_v39 = vmul.f32 %v10919_v47, %v18229_v23  ;;  %v7092_v11 = vmul.f32 %v10919_v47, %v18231_v59  ;;  %v18238_v47 = vld [vmem:[#allocation95_spill] sm:$0xff]  ;;  %v18240_v23 = vld [vmem:[#allocation86_spill] sm:$0xff]  ;;  %v18242_v59 = vld [vmem:[#allocation88_spill] sm:$0xff] }
 0xbaa   : > { %v10921_v37 = vpop.eup %10920  ;;  %10930 = vrcp.f32 %v7969_v7  ;;  %9291 = vmatpush1.bf16.xpose.msra.mxu0 %v9290_v55 }
 0xbab   : > { %v7000_v20 = vpop.xlane.xlu0 %6999  ;;  %v9228_v43 = vpack.c.bf16 %v7093_v39, %v7091_v4  ;;  %v9230_v48 = vpack.c.bf16 %v7092_v11, %v7090_v53  ;;  %v8063_v27 = vmul.f32 %v10921_v37, %v18232_v22  ;;  %v8062_v54 = vmul.f32 %v10921_v37, %v18234_v18  ;;  %v18243_v37 = vld [vmem:[#allocation98_spill] sm:$0xff]  ;;  %v18246_v18 = vld [vmem:[#allocation65_spill] sm:$0xff] }
 0xbac   : > { %v10923_v2 = vpop.eup %10922  ;;  %10932 = vrcp.f32 %v7000_v20 }
 0xbad   : > { %v7003_v29 = vpop.xlane.xlu1 %7002  ;;  %9229 = vmatprep.subr.bf16.mxu1 %v9228_v43  ;;  %v8065_v45 = vmul.f32 %v10923_v2, %v18233_v40  ;;  %v8064_v33 = vmul.f32 %v10923_v2, %v18235_v42  ;;  %v18244_v43 = vld [vmem:[#allocation61_spill] sm:$0xff]  ;;  %v18245_v2 = vld [vmem:[#allocation87_spill] sm:$0xff]  ;;  %v18247_v42 = vld [vmem:[#allocation100_spill] sm:$0xff] }
 0xbae   : > { %v10925_v15 = vpop.eup %10924  ;;  %10934 = vrcp.f32 %v7003_v29  ;;  %9231 = vmatpush1.bf16.xpose.msra.mxu1 %v9230_v48 }
 0xbaf   : > { %v7972_v24 = vpop.xlane.xlu0 %7971  ;;  %v9292_v34 = vpack.c.bf16 %v8065_v45, %v8063_v27  ;;  %v9294_v51 = vpack.c.bf16 %v8064_v33, %v8062_v54  ;;  %v7095_v16 = vmul.f32 %v10925_v15, %v18236_v52  ;;  %v7094_v0 = vmul.f32 %v10925_v15, %v18237_v56  ;;  %v18248_v15 = vld [vmem:[#allocation94_spill] sm:$0xff]  ;;  %v7179_v56 = vld [vmem:[%s12518_s24 + $0x70] sm:$0xff] }
 0xbb0   : > { %v10927_v5 = vpop.eup %10926  ;;  %10936 = vrcp.f32 %v7972_v24 }
 0xbb1   : > { %v7975_v6 = vpop.xlane.xlu1 %7974  ;;  %9293 = vmatprep.subr.bf16.mxu0 %v9292_v34  ;;  %v7097_v10 = vmul.f32 %v10927_v5, %v15948_v8  ;;  %v7096_v35 = vmul.f32 %v10927_v5, %v15946_v25  ;;  %v18249_v34 = vld [vmem:[#allocation99_spill] sm:$0xff] }
 0xbb2   : > { %v10929_v41 = vpop.eup %10928  ;;  %10938 = vrcp.f32 %v7975_v6  ;;  %9295 = vmatpush1.bf16.xpose.msra.mxu0 %v9294_v51  ;;  %v18250_v5 = vld [vmem:[#allocation91_spill] sm:$0xff] }
 0xbb3   : > { %v7006_v57 = vpop.xlane.xlu0 %7005  ;;  %v9232_v36 = vpack.c.bf16 %v7097_v10, %v7095_v16  ;;  %v9234_v49 = vpack.c.bf16 %v7096_v35, %v7094_v0  ;;  %v8067_v19 = vmul.f32 %v10929_v41, %v15957_v1  ;;  %v8066_v8 = vmul.f32 %v10929_v41, %v15952_v46  ;;  %v6207_v16 = vld [vmem:[%s12518_s24 + $0x60] sm:$0xff]  ;;  %v18251_v10 = vld [vmem:[#allocation92_spill] sm:$0xff]  ;;  %s11038_s24 = scalar_lea.vmem %s16250_s14, 2048 }
 0xbb4   : > { %v10931_v38 = vpop.eup %10930  ;;  %10940 = vrcp.f32 %v7006_v57  ;;  %v18252_v0 = vmov 0.0   ;;  %v18253_v35 = vld [vmem:[#allocation97_spill] sm:$0xff]  ;;  %v18255_v57 = vld [vmem:[#allocation23_spill] sm:$0xff]  ;;  %p11039_p0 = scmp.ne.s32.totalorder %s16250_s14, %s11038_s24  ;;  %p11046_p1 = scmp.lt.s32.totalorder %s11044_s7, %s11038_s24 }
 0xbb5   : > { %v7009_v3 = vpop.xlane.xlu1 %7008  ;;  %9233 = vmatprep.subr.bf16.mxu1 %v9232_v36  ;;  %v8069_v17 = vmul.f32 %v10931_v38, %v15964_v13  ;;  %v8068_v12 = vmul.f32 %v10931_v38, %v15962_v32  ;;  %v18254_v41 = vld [vmem:[#allocation93_spill] sm:$0xff]  ;;  %v18256_v36 = vld [vmem:[#allocation18_spill] sm:$0xff]  ;;  %v11132_v38 = vmov 0  }
 0xbb6   : > { %v10933_v21 = vpop.eup %10932  ;;  %10942 = vrcp.f32 %v7009_v3  ;;  %9235 = vmatpush1.bf16.xpose.msra.mxu1 %v9234_v49  ;;  %v8158_v49 = vld [vmem:[%s16307_s4 + $0x8] sm:$0xff]  ;;  %9411 = vset.pattern.permute.xlu1 %v11132_v38  ;;  %v8157_v3 = vld [vmem:[%s16307_s4] sm:$0xff]  ;;  %p11040_p8 = pnand %p11039_p0, %p18257_p10  ;;  %p11047_p6 = por %p11046_p1, %p11045_p12 }
 0xbb7   : > { %v7978_v25 = vpop.xlane.xlu0 %7977  ;;  %v9296_v60 = vpack.c.bf16 %v8069_v17, %v8067_v19  ;;  %v9298_v62 = vpack.c.bf16 %v8068_v12, %v8066_v8  ;;  %v7099_v30 = vmul.f32 %v10933_v21, %v15974_v58  ;;  %v7098_v13 = vmul.f32 %v10933_v21, %v15968_v28  ;;  %v18241_v58 = vld [vmem:[#allocation85_spill] sm:$0xff]  ;;  %9410 = vset.pattern.permute.xlu0 %v11132_v38  ;;  %v8159_v19 = vld [vmem:[%s16307_s4 + $0x10] sm:$0xff]  ;;  %v8160_v17 = vld [vmem:[%s16307_s4 + $0x18] sm:$0xff] }
 0xbb8   : > { %v10935_v9 = vpop.eup %10934  ;;  %10944 = vrcp.f32 %v7978_v25  ;;  %8172 = vperm.xlu1 %9411, %v8158_v49   ;;  %8167 = vperm.xlu0 %9410, %v8157_v3   ;;  %v8161_v8 = vld [vmem:[%s16307_s4 + $0x20] sm:$0xff]  ;;  %v8162_v12 = vld [vmem:[%s16307_s4 + $0x28] sm:$0xff]  ;;  %v8163_v21 = vld [vmem:[%s16307_s4 + $0x30] sm:$0xff]  ;;  %p11041_p9 = pneg %p11040_p8 }
 0xbb9   : > { %v7981_v61 = vpop.xlane.xlu1 %7980  ;;  %9297 = vmatprep.subr.bf16.mxu0 %v9296_v60  ;;  %v7101_v1 = vmul.f32 %v10935_v9, %v15980_v63  ;;  %v7100_v46 = vmul.f32 %v10935_v9, %v15976_v44  ;;  %v8164_v25 = vld [vmem:[%s16307_s4 + $0x38] sm:$0xff] }
 0xbba   : > { %v10937_v50 = vpop.eup %10936  ;;  %10946 = vrcp.f32 %v7981_v61  ;;  %9299 = vmatpush1.bf16.xpose.msra.mxu0 %v9298_v62  ;;  %p11048_p13 = pnand %p11047_p6, %p11041_p9 }
 0xbbb   : > { %v9236_v32 = vpack.c.bf16 %v7101_v1, %v7099_v30  ;;  %v9238_v31 = vpack.c.bf16 %v7100_v46, %v7098_v13  ;;  %v8071_v7 = vmul.f32 %v10937_v50, %v18238_v47  ;;  %v8070_v39 = vmul.f32 %v10937_v50, %v18240_v23  ;;  %v8149_v13 = vld [vmem:[%s16306_s3] sm:$0xff]  ;;  %v8150_v50 = vld [vmem:[%s16306_s3 + $0x8] sm:$0xff]  ;;  %v8152_v47 = vld [vmem:[%s16306_s3 + $0x18] sm:$0xff] }
 0xbbc   : > { %v10939_v55 = vpop.eup %10938  ;;  %8177 = vperm.xlu1 %9411, %v8159_v19   ;;  %v8153_v46 = vld [vmem:[%s16306_s3 + $0x20] sm:$0xff] }
 0xbbd   : > { %9237 = vmatprep.subr.bf16.mxu1 %v9236_v32  ;;  %v8073_v4 = vmul.f32 %v10939_v55, %v18239_v26  ;;  %v8072_v14 = vmul.f32 %v10939_v55, %v18241_v58  ;;  %v8154_v32 = vld [vmem:[%s16306_s3 + $0x28] sm:$0xff]  ;;  %v8155_v55 = vld [vmem:[%s16306_s3 + $0x30] sm:$0xff] }
 0xbbe   : > { %v10941_v63 = vpop.eup %10940  ;;  %9239 = vmatpush1.bf16.xpose.msra.mxu1 %v9238_v31  ;;  %v8151_v31 = vld [vmem:[%s16306_s3 + $0x10] sm:$0xff] }
 0xbbf   : > { %v9300_v28 = vpack.c.bf16 %v8073_v4, %v8071_v7  ;;  %v9302_v53 = vpack.c.bf16 %v8072_v14, %v8070_v39  ;;  %v7103_v11 = vmul.f32 %v10941_v63, %v18242_v59  ;;  %v7102_v48 = vmul.f32 %v10941_v63, %v18244_v43  ;;  %v8156_v7 = vld [vmem:[%s16306_s3 + $0x38] sm:$0xff] }
 0xbc0   : > { %v10943_v44 = vpop.eup %10942  ;;  %8182 = vperm.xlu1 %9411, %v8160_v17  }
 0xbc1   : > { %9301 = vmatprep.subr.bf16.mxu0 %v9300_v28  ;;  %v7105_v20 = vmul.f32 %v10943_v44, %v18243_v37  ;;  %v7104_v29 = vmul.f32 %v10943_v44, %v18245_v2 }
 0xbc2   : > { %v10945_v22 = vpop.eup %10944  ;;  %9303 = vmatpush1.bf16.xpose.msra.mxu0 %v9302_v53 }
 0xbc3   : > { %v9240_v27 = vpack.c.bf16 %v7105_v20, %v7103_v11  ;;  %v9242_v40 = vpack.c.bf16 %v7104_v29, %v7102_v48  ;;  %v8075_v54 = vmul.f32 %v10945_v22, %v18246_v18  ;;  %v8074_v24 = vmul.f32 %v10945_v22, %v18248_v15 }
 0xbc4   : > { %v10947_v45 = vpop.eup %10946  ;;  %8187 = vperm.xlu1 %9411, %v8161_v8  }
 0xbc5   : > { %9241 = vmatprep.subr.bf16.mxu1 %v9240_v27  ;;  %v8077_v33 = vmul.f32 %v10947_v45, %v18247_v42  ;;  %v8076_v51 = vmul.f32 %v10947_v45, %v18249_v34 }
 0xbc6   : > { %9243 = vmatpush1.bf16.xpose.msra.mxu1 %v9242_v40 }
 0xbc7   : > { %9324 = vmatprep.subr.bf16.mxu1 %v18250_v5  ;;  %v9304_v6 = vpack.c.bf16 %v8077_v33, %v8075_v54  ;;  %v9306_v52 = vpack.c.bf16 %v8076_v51, %v8074_v24 }
 0xbc8   : > { %8192 = vperm.xlu1 %9411, %v8162_v12  }
 0xbc9   : > { %9305 = vmatprep.subr.bf16.mxu0 %v9304_v6 }
 0xbca   : > { %9307 = vmatpush1.bf16.xpose.msra.mxu0 %v9306_v52 }
 0xbcb   : > { %9309 = vmatprep.subr.bf16.mxu0 %v18250_v5 }
 0xbcc   : > { %8197 = vperm.xlu1 %9411, %v8163_v21  }
 0xbcd   : > { %7171 = vmatmul.mubr.f32.vlgmr.msra.gmra.mrb[6].mxu1 %v6207_v16 }
 0xbce   : > { %9328 = vmatpush1.bf16.msra.mxu1 %v18251_v10  ;;  %8318 = vmatprep.mubr.f32.mxu1 %v18252_v0 }
 0xbcf   : > { %9325 = vmatprep.subr.bf16.mxu1 %v18253_v35 }
 0xbd0   : > { %8202 = vperm.xlu1 %9411, %v8164_v25  }
 0xbd1   : > { %8143 = vmatmul.mubr.f32.vlgmr.msra.gmra.mrb[6].mxu0 %v7179_v56 }
 0xbd2   : > { %9311 = vmatpush1.bf16.msra.mxu0 %v18251_v10  ;;  %9329 = vmatpush1.bf16.msra.mxu1 %v18254_v41 }
 0xbd3   : > { %9313 = vmatprep.subr.bf16.mxu0 %v18253_v35  ;;  %9326 = vmatprep.subr.bf16.mxu1 %v18255_v57 }
 0xbd4   : > { %8294 = vmatprep.mubr.f32.mxu0 %v18252_v0 }
 0xbd6   : > { %9315 = vmatpush1.bf16.msra.mxu0 %v18254_v41  ;;  %9330 = vmatpush1.bf16.msra.mxu1 %v18256_v36 }
 0xbd7   : > { %9317 = vmatprep.subr.bf16.mxu0 %v18255_v57 }
 0xbda   : > { %9319 = vmatpush1.bf16.msra.mxu0 %v18256_v36 }
 0xc37   : > { %v8173_v26 = vpop.permute.xlu1 %8172  ;;  %v8168_v14 = vpop.permute.xlu0 %8167 }
 0xc3b   : > { %v8178_v4 = vpop.permute.xlu1 %8177 }
 0xc3f   : > { %v8183_v23 = vpop.permute.xlu1 %8182 }
 0xc43   : > { %v8188_v39 = vpop.permute.xlu1 %8187 }
 0xc47   : > { %v8193_v58 = vpop.permute.xlu1 %8192 }
 0xc4b   : > { %v8198_v43 = vpop.permute.xlu1 %8197 }
 0xc4f   : > { %v8203_v6 = vpop.permute.xlu1 %8202 }
 0xca0   : > { %v7172_v60 = vpop.f32.mrb[6].mxu1 }
 0xca1   : > { %v7174_v62 = vpop.f32.mrb[7].mxu1 }
 0xca4   : > { %v8144_v9 = vpop.f32.mrb[6].mxu0 }
 0xca5   : > { %v9322_v61 = vpack.c.bf16 %v8144_v9, %v7172_v60  ;;  %v8146_v30 = vpop.f32.mrb[7].mxu0 }
 0xca6   : > { %v9320_v1 = vpack.c.bf16 %v8146_v30, %v7174_v62 }
 0xca8   : > { %9321 = vmatprep.subr.bf16.mxu0 %v9320_v1  ;;  %9327 = vmatprep.subr.bf16.mxu1 %v9320_v1 }
 0xca9   : > { %9323 = vmatpush1.bf16.msra.mxu0 %v9322_v61  ;;  %9331 = vmatpush1.bf16.msra.mxu1 %v9322_v61 }
 0xcac   : > { %8779 = vmatmul.mubr.msk.f32.vlgmr.msra.gmra.mrb[8].mxu0 %vm8205_vm1, %v8149_v13  ;;  %8783 = vmatmul.mubr.msk.f32.vlgmr.msra.gmra.mrb[8].mxu1 %vm8205_vm1, %v8153_v46 }
 0xcad   : > { %8300 = vmatprep.mubr.f32.mxu0 %v18252_v0  ;;  %8324 = vmatprep.mubr.f32.mxu1 %v18252_v0 }
 0xcb0   : > { %8780 = vmatmul.mubr.msk.f32.gmra.mrb[10].mxu0 %vm8205_vm1, %v8150_v50  ;;  %8784 = vmatmul.mubr.msk.f32.gmra.mrb[10].mxu1 %vm8205_vm1, %v8154_v32 }
 0xcb1   : > { %8306 = vmatprep.mubr.f32.mxu0 %v18252_v0  ;;  %8330 = vmatprep.mubr.f32.mxu1 %v18252_v0 }
 0xcb4   : > { %8781 = vmatmul.mubr.msk.f32.gmra.mrb[12].mxu0 %vm8205_vm1, %v8151_v31  ;;  %8785 = vmatmul.mubr.msk.f32.gmra.mrb[12].mxu1 %vm8205_vm1, %v8155_v55 }
 0xcb5   : > { %8312 = vmatprep.mubr.f32.mxu0 %v18252_v0  ;;  %8336 = vmatprep.mubr.f32.mxu1 %v18252_v0 }
 0xcb8   : > { %8782 = vmatmul.mubr.msk.f32.gmra.mrb[14].mxu0 %vm8205_vm1, %v8152_v47  ;;  %8786 = vmatmul.mubr.msk.f32.gmra.mrb[14].mxu1 %vm8205_vm1, %v8156_v7 }
 0xd7f   : > { %v8296_v63 = vpop.f32.mrb[8].mxu0  ;;  %v8320_v28 = vpop.f32.mrb[8].mxu1 }
 0xd80   : > { %v8321_v53 = vadd.f32 %v8320_v28, %v8188_v39  ;;  %v8298_v44 = vpop.f32.mrb[9].mxu0  ;;  %v8322_v59 = vpop.f32.mrb[9].mxu1  ;;  %v8297_v11 = vadd.f32 %v8296_v63, %v8168_v14 }
 0xd81   : > { %v8323_v37 = vadd.f32 %v8322_v59, %v8188_v39  ;;  %v8299_v20 = vadd.f32 %v8298_v44, %v8168_v14 }
 0xd82   : > { %8351 = vst [vmem:[%s16229_s12 + $0x40] sm:$0xff] %v8321_v53  ;;  %8343 = vst [vmem:[%s16229_s12] sm:$0xff] %v8297_v11 }
 0xd83   : > { %8352 = vst [vmem:[%s16229_s12 + $0x48] sm:$0xff] %v8323_v37  ;;  %8344 = vst [vmem:[%s16229_s12 + $0x8] sm:$0xff] %v8299_v20  ;;  %v8302_v48 = vpop.f32.mrb[10].mxu0  ;;  %v8326_v2 = vpop.f32.mrb[10].mxu1 }
 0xd84   : > { %v8303_v29 = vadd.f32 %v8302_v48, %v8173_v26  ;;  %v8327_v22 = vadd.f32 %v8326_v2, %v8193_v58  ;;  %v8304_v27 = vpop.f32.mrb[11].mxu0  ;;  %v8328_v40 = vpop.f32.mrb[11].mxu1 }
 0xd85   : > { %v8305_v45 = vadd.f32 %v8304_v27, %v8173_v26  ;;  %v8329_v18 = vadd.f32 %v8328_v40, %v8193_v58 }
 0xd86   : > { %8345 = vst [vmem:[%s16229_s12 + $0x10] sm:$0xff] %v8303_v29  ;;  %8353 = vst [vmem:[%s16229_s12 + $0x50] sm:$0xff] %v8327_v22 }
 0xd87   : > { %8346 = vst [vmem:[%s16229_s12 + $0x18] sm:$0xff] %v8305_v45  ;;  %8354 = vst [vmem:[%s16229_s12 + $0x58] sm:$0xff] %v8329_v18  ;;  %v8308_v54 = vpop.f32.mrb[12].mxu0  ;;  %v8332_v42 = vpop.f32.mrb[12].mxu1 }
 0xd88   : > { %v8309_v33 = vadd.f32 %v8308_v54, %v8178_v4  ;;  %v8333_v15 = vadd.f32 %v8332_v42, %v8198_v43  ;;  %v8310_v24 = vpop.f32.mrb[13].mxu0  ;;  %v8334_v34 = vpop.f32.mrb[13].mxu1 }
 0xd89   : > { %v8311_v51 = vadd.f32 %v8310_v24, %v8178_v4  ;;  %v8335_v5 = vadd.f32 %v8334_v34, %v8198_v43 }
 0xd8a   : > { %8347 = vst [vmem:[%s16229_s12 + $0x20] sm:$0xff] %v8309_v33  ;;  %8355 = vst [vmem:[%s16229_s12 + $0x60] sm:$0xff] %v8333_v15 }
 0xd8b   : > { %8348 = vst [vmem:[%s16229_s12 + $0x28] sm:$0xff] %v8311_v51  ;;  %8356 = vst [vmem:[%s16229_s12 + $0x68] sm:$0xff] %v8335_v5  ;;  %v8314_v52 = vpop.f32.mrb[14].mxu0  ;;  %v8338_v16 = vpop.f32.mrb[14].mxu1 }
 0xd8c   : > { %v8315_v10 = vadd.f32 %v8314_v52, %v8183_v23  ;;  %v8339_v56 = vadd.f32 %v8338_v16, %v8203_v6  ;;  %v8316_v0 = vpop.f32.mrb[15].mxu0  ;;  %v8340_v35 = vpop.f32.mrb[15].mxu1 }
 0xd8d   : > { %v8317_v41 = vadd.f32 %v8316_v0, %v8183_v23  ;;  %v8341_v57 = vadd.f32 %v8340_v35, %v8203_v6 }
 0xd8e   : > { %8349 = vst [vmem:[%s16229_s12 + $0x30] sm:$0xff] %v8315_v10  ;;  %8357 = vst [vmem:[%s16229_s12 + $0x70] sm:$0xff] %v8339_v56 }
 0xd8f   : > { %8350 = vst [vmem:[%s16229_s12 + $0x38] sm:$0xff] %v8317_v41  ;;  %8358 = vst [vmem:[%s16229_s12 + $0x78] sm:$0xff] %v8341_v57 }
 0xd90   : > { %11051 = shalt.err (!%p11048_p13)
}
 0xd91   : > { %s11052_s13 = scalar_lea.hbm %s16248_s9, 2048  ;;  %s11056_s28 = scalar_lea.hbm %s16308_s5, 4096 }
 0xd92   : > { %p11053_p11 = scmp.ne.s32.totalorder %s16248_s9, %s11052_s13  ;;  %p11057_p7 = scmp.lt.u32.totalorder %s16248_s9, %s16308_s5 }
 0xd93   : > { %p11058_p4 = scmp.lt.u32.totalorder %s11056_s28, %s11052_s13  ;;  %p11060_p0 = scmp.lt.u32.totalorder %s11052_s13, %s16248_s9 }
 0xd94   : > { %p11054_p2 = pnand %p11053_p11, %p18257_p10 }
 0xd95   : > { %p11059_p3 = por %p11058_p4, %p11057_p7 }
 0xd96   : > { %p11055_p5 = pneg %p11054_p2 }
 0xd97   : > { %p11061_p8 = por %p11060_p0, %p11059_p3 }
 0xd99   : > { %p11062_p9 = pnand %p11061_p8, %p11055_p5 }
 0xd9b   : > { %11065 = shalt.err (!%p11062_p9)
}
 0xd9c   : > { %s11134_s1 = smov 256   ;;  %s11135_s22 = smov 16  }
 0xd9d   : > { %9338 = dma.vmem_to_hbm [thread:$0]  (%p18257_p10), %s16250_s14, 2048, %s16248_s9, %s8360_s17, %s11134_s1, %s11134_s1, %s11135_s22  }
 0xd9e PF: > { %s18258_s10 = sld [smem:[#allocation16_spill]]  ;;  %s18259_s15 = sld [smem:[#allocation13_spill]] }
 0xd9f   : > { %s8390_s12 = sand.u32 1, %s11104_s18  }
 0xda0   : > { %s8391_s25 = scalar_lea.sflag [#allocation4], %s8390_s12 }
 0xda4   : > { %p18260_p12 = scmp.ne.s32.totalorder %s18258_s10, 0  ;;  %p18261_p1 = scmp.ge.s32.totalorder %s18259_s15, 2 }
 0xda6   : > { %p9351_p6 = pnand %p18261_p1, %p18260_p12 }
 0xda8   : > { %11099 = dma.done.wait (!%p9351_p6), %s8391_s25, 2048  }
 0xda9   : > { %11101 = vsyncadd (!%p9351_p6), %s8391_s25, 4294965248  ;;  %s24_s23 = sadd.s32 1, %s18259_s15   ;;  %s18262_s27 = sld [smem:[#allocation15_spill]] }
 0xdaa   : > { %p21_p13 = scmp.ge.s32.totalorder %s24_s23, 4   ;;  %s18263_s21 = sld [smem:[#allocation12_spill]] }
 0xdab   : > { %s18264_s22 = sld [smem:[#allocation14_spill]]  ;;  %s18265_s18 = smov %s11108_s19 }
 0xdac   : > { %s18266_s19 = smov %s11112_s20  ;;  %23 = sbr.rel (!%p21_p13) target bundleno = 10 (0xa), region = 109 }
 0xdaf   : > { %s18267_s20 = smov %s18262_s27 }
 0xdb3   :  { %8396 = vsyncpa [#allocation3], 1 }
 0xdb4   :  { %8398 = vsyncpa [#allocation3 + $0x1], 1 }
 0xdb5   :  { %8399 = vsyncpa [#allocation6], 1 }
 0xdb6   :  { %8401 = vsyncpa [#allocation6 + $0x1], 1 }
 0xdb7   :  { %8402 = vsyncpa [#allocation4], 1 }
 0xdb8   :  { %8404 = vsyncpa [#allocation4 + $0x1], 1 }

</bundles_post_ra>
